<compile_context>
chip_gen: v5e
topology: v5e:2x2
jax: 0.10.0
libtpu: 0.0.40
codegen_flags: <defaults>
</compile_context>

<pallas_src>
import functools

import jax
import jax.numpy as jnp
from jax import lax
from jax.experimental import pallas as pl
from jax.experimental.pallas import tpu as pltpu


def _round_up(x, m):
    return ((x + m - 1) // m) * m


_VMEM = pl.BlockSpec(memory_space=pltpu.MemorySpace.VMEM)


# ----------------------------------------------------------------------------
# Fused kernel: n_layers LSTM + FC head, everything VMEM-resident.
# ----------------------------------------------------------------------------

def fused_lstm_fc_kernel(len_ref, x_ref, w_ih_ref, w_hh_ref, b_ref,
                         fc_w_ref, fc_b_ref, out_ref,
                         y_scr, gx_scr, h_scr,
                         *, n_layers, seq_len, in_pad, hid_pad):
    """Shapes (all float32 unless noted, feature dims padded to 128 lanes):

    len_ref:  (Bp, 1) int32     per-sequence valid lengths (0 for padded batch rows)
    x_ref:    (T, Bp, Ip)       time-major inputs
    w_ih_ref: (L, Dp, 4*Hp)     per-layer input weights, gate-blocks lane-aligned
    w_hh_ref: (L, Hp, 4*Hp)     per-layer recurrent weights
    b_ref:    (L, 1, 4*Hp)      combined bias (b_ih + b_hh)
    fc_w_ref: (Hp, Op)          FC weight (pre-transposed, padded)
    fc_b_ref: (1, Op)
    out_ref:  (L*Bp, Op)        FC output on the layer-major final hidden states
    y_scr:    (T, Bp, Hp)       inter-layer hidden sequence (VMEM scratch)
    gx_scr:   (T, Bp, 4*Hp)     hoisted input projection (VMEM scratch)
    h_scr:    (L, Bp, Hp)       final hidden state per layer (VMEM scratch)
    """
    T = seq_len
    Bp = x_ref.shape[1]
    Hp = hid_pad

    # Hoisted once: per-row lengths broadcast across lanes (1 vreg, int32).
    lens_b = jnp.broadcast_to(len_ref[...], (Bp, Hp))

    for layer in range(n_layers):
        is_first = layer == 0
        is_last = layer == n_layers - 1
        d = in_pad if is_first else hid_pad

        # ---- hoisted input projection: ONE matmul over all timesteps -------
        inp = x_ref[...] if is_first else y_scr[...]          # (T, Bp, d)
        inp_flat = inp.reshape(T * Bp, d)
        w_ih = w_ih_ref[layer][:d]                            # (d, 4*Hp)
        gx = jnp.dot(inp_flat, w_ih, preferred_element_type=jnp.float32)
        gx = gx + b_ref[layer]                                # (+ (1, 4*Hp))
        gx_scr[...] = gx.reshape(T, Bp, 4 * Hp)

        # ---- serial recurrence: only h @ W_hh on the critical path ---------
        def step(t, carry):
            h, c = carry
            gates = gx_scr[t] + jnp.dot(h, w_hh_ref[layer],
                                        preferred_element_type=jnp.float32)
            i_g = jax.nn.sigmoid(gates[:, 0 * Hp:1 * Hp])     # 128-lane aligned slabs
            f_g = jax.nn.sigmoid(gates[:, 1 * Hp:2 * Hp])
            g_g = jnp.tanh(gates[:, 2 * Hp:3 * Hp])
            o_g = jax.nn.sigmoid(gates[:, 3 * Hp:4 * Hp])

            c_new = f_g * c + i_g * g_g
            h_new = o_g * jnp.tanh(c_new)

            m = t < lens_b                                    # (Bp, Hp) bool
            h = jnp.where(m, h_new, h)                        # freeze past length
            c = jnp.where(m, c_new, c)
            if not is_last:
                y_scr[t] = h                                  # feed next layer
            return h, c

        h0 = jnp.zeros((Bp, Hp), jnp.float32)
        c0 = jnp.zeros((Bp, Hp), jnp.float32)
        hN, _ = lax.fori_loop(0, T, step, (h0, c0), unroll=True)
        h_scr[layer] = hN

    # ---- fused FC head on the layer-major final hidden states --------------
    hidden = h_scr[...].reshape(n_layers * Bp, Hp)
    out_ref[...] = (jnp.dot(hidden, fc_w_ref[...],
                            preferred_element_type=jnp.float32)
                    + fc_b_ref[...])


def fused_forward(len_col, x_pad, w_ih_all, w_hh_all, b_all, fc_w_pad, fc_b_pad,
                  *, n_layers, seq_len, in_pad, hid_pad, out_pad):
    T, Bp, _ = x_pad.shape
    kernel = functools.partial(fused_lstm_fc_kernel, n_layers=n_layers,
                               seq_len=seq_len, in_pad=in_pad, hid_pad=hid_pad)
    return pl.pallas_call(
        kernel,
        out_shape=jax.ShapeDtypeStruct((n_layers * Bp, out_pad), jnp.float32),
        in_specs=[_VMEM] * 7,
        out_specs=_VMEM,
        scratch_shapes=[
            pltpu.VMEM((T, Bp, hid_pad), jnp.float32),        # y_scr
            pltpu.VMEM((T, Bp, 4 * hid_pad), jnp.float32),    # gx_scr
            pltpu.VMEM((n_layers, Bp, hid_pad), jnp.float32), # h_scr
        ],
    )(len_col, x_pad, w_ih_all, w_hh_all, b_all, fc_w_pad, fc_b_pad)


# ----------------------------------------------------------------------------
# Model (parameter container + forward)
# ----------------------------------------------------------------------------

class PallasLSTMModel:
    def __init__(self, input_size, output_size, hidden_dim, n_layers, dropout,
                 key):
        self.input_size = input_size
        self.output_size = output_size
        self.hidden_dim = hidden_dim
        self.n_layers = n_layers
        self.dropout = dropout  # identity at inference time

        H = hidden_dim
        k_lstm = 1.0 / jnp.sqrt(jnp.float32(H))
        keys = jax.random.split(key, 4 * n_layers + 2)

        # ---- raw (PyTorch-layout) parameters --------------------------------
        self.lstm_params = []
        for layer in range(n_layers):
            in_dim = input_size if layer == 0 else H
            k0, k1, k2, k3 = keys[4 * layer:4 * layer + 4]
            w_ih = jax.random.uniform(k0, (4 * H, in_dim), jnp.float32,
                                      -k_lstm, k_lstm)
            w_hh = jax.random.uniform(k1, (4 * H, H), jnp.float32,
                                      -k_lstm, k_lstm)
            b_ih = jax.random.uniform(k2, (4 * H,), jnp.float32, -k_lstm, k_lstm)
            b_hh = jax.random.uniform(k3, (4 * H,), jnp.float32, -k_lstm, k_lstm)
            self.lstm_params.append((w_ih, w_hh, b_ih, b_hh))

        k_fc = 1.0 / jnp.sqrt(jnp.float32(H))
        self.fc_w = jax.random.uniform(keys[-2], (output_size, H), jnp.float32,
                                       -k_fc, k_fc)
        self.fc_b = jax.random.uniform(keys[-1], (output_size,), jnp.float32,
                                       -k_fc, k_fc)

        # ---- padded / stacked kernel parameters (computed ONCE here) --------
        Hp = _round_up(H, 128)
        Ip = _round_up(input_size, 128)
        Dp = max(Ip, Hp)
        Op = _round_up(output_size, 128)
        self.Hp, self.Ip, self.Dp, self.Op = Hp, Ip, Dp, Op

        w_ih_stack = jnp.zeros((n_layers, Dp, 4 * Hp), jnp.float32)
        w_hh_stack = jnp.zeros((n_layers, Hp, 4 * Hp), jnp.float32)
        b_stack = jnp.zeros((n_layers, 1, 4 * Hp), jnp.float32)
        for layer, (w_ih, w_hh, b_ih, b_hh) in enumerate(self.lstm_params):
            in_dim = w_ih.shape[1]
            w_ih_t = w_ih.T                                   # (in_dim, 4H)
            w_hh_t = w_hh.T                                   # (H, 4H)
            bias = b_ih + b_hh
            for g in range(4):                                # gate blocks lane-aligned
                w_ih_stack = w_ih_stack.at[
                    layer, :in_dim, g * Hp:g * Hp + H].set(w_ih_t[:, g * H:(g + 1) * H])
                w_hh_stack = w_hh_stack.at[
                    layer, :H, g * Hp:g * Hp + H].set(w_hh_t[:, g * H:(g + 1) * H])
                b_stack = b_stack.at[
                    layer, 0, g * Hp:g * Hp + H].set(bias[g * H:(g + 1) * H])
        self.w_ih_stack = w_ih_stack
        self.w_hh_stack = w_hh_stack
        self.b_stack = b_stack

        self.fc_w_pad = jnp.zeros((Hp, Op), jnp.float32).at[:H, :output_size].set(
            self.fc_w.T)
        self.fc_b_pad = jnp.zeros((1, Op), jnp.float32).at[0, :output_size].set(
            self.fc_b)

    def forward(self, x, length):
        """x: (B, T, input_size) batch-first; length: (B,) int32."""
        x = x.astype(jnp.float32)
        B, T, I = x.shape
        Bp = _round_up(B, 8)                                  # full f32 sublanes

        # time-major + pad batch rows and input lanes with zeros
        x_tm = jnp.transpose(x, (1, 0, 2))                    # (T, B, I)
        x_pad = jnp.zeros((T, Bp, self.Ip), jnp.float32).at[:, :B, :I].set(x_tm)
        len_col = jnp.zeros((Bp, 1), jnp.int32).at[:B, 0].set(
            length.astype(jnp.int32))

        out_p = fused_forward(
            len_col, x_pad, self.w_ih_stack, self.w_hh_stack, self.b_stack,
            self.fc_w_pad, self.fc_b_pad,
            n_layers=self.n_layers, seq_len=T,
            in_pad=self.Ip, hid_pad=self.Hp, out_pad=self.Op)  # (L*Bp, Op)

        # TODO(synk): nn.Dropout on hidden treated as identity (eval/inference mode).

        L, O = self.n_layers, self.output_size
        out = out_p.reshape(L, Bp, self.Op)[:, :B, :O]         # strip padding
        # exact PyTorch reshape semantics: (L, B, O) -> (L*B, O) -> view(B, -1)
        return out.reshape(L * B, O).reshape(B, -1)


# ----------------------------------------------------------------------------
# Pure-JAX reference (silent correctness check)
# ----------------------------------------------------------------------------

def reference_forward(model, x, length):
    x = x.astype(jnp.float32)
    B, T, _ = x.shape
    H = model.hidden_dim
    mask = (jnp.arange(T)[:, None] < length[None, :]).astype(jnp.float32)

    layer_in = jnp.transpose(x, (1, 0, 2))                     # (T, B, I)
    finals = []
    for (w_ih, w_hh, b_ih, b_hh) in model.lstm_params:
        h = jnp.zeros((B, H), jnp.float32)
        c = jnp.zeros((B, H), jnp.float32)
        ys = []
        for t in range(T):
            g = layer_in[t] @ w_ih.T + h @ w_hh.T + b_ih + b_hh
            i = jax.nn.sigmoid(g[:, :H])
            f = jax.nn.sigmoid(g[:, H:2 * H])
            gg = jnp.tanh(g[:, 2 * H:3 * H])
            o = jax.nn.sigmoid(g[:, 3 * H:])
            c_new = f * c + i * gg
            h_new = o * jnp.tanh(c_new)
            m = mask[t][:, None]
            h = m * h_new + (1 - m) * h
            c = m * c_new + (1 - m) * c
            ys.append(h)
        finals.append(h)
        layer_in = jnp.stack(ys, axis=0)

    hidden = jnp.concatenate(finals, axis=0)
    out = hidden @ model.fc_w.T + model.fc_b
    return jnp.reshape(out, (B, -1))


# ----------------------------------------------------------------------------
# Main
# ----------------------------------------------------------------------------

if __name__ == "__main__":
    batch = 2
    seq_len = 8
    input_size = 16
    hidden_dim = 32
    n_layers = 2
    output_size = 4
    dropout = 0.5

    key = jax.random.PRNGKey(0)
    k_param, k_x = jax.random.split(key)

    model = PallasLSTMModel(input_size, output_size, hidden_dim, n_layers,
                            dropout, k_param)

    x = jax.random.normal(k_x, (batch, seq_len, input_size), jnp.float32)
    length = jnp.array([8, 5], dtype=jnp.int32)   # variable lengths, unsorted OK

    out = model.forward(x, length)
    out = jax.block_until_ready(out)

    ref = reference_forward(model, x, length)
    assert out.shape == (batch, n_layers * output_size)
    assert jnp.allclose(out, ref, atol=1e-4, rtol=1e-4)

    print("KERNEL_OK")
</pallas_src>

<mosaic_0001>
module attributes {stable_mosaic.version = 11 : i64} {
  func.func @fused_lstm_fc_kernel(%arg0: memref<8x1xi32, #tpu.memory_space<vmem>>, %arg1: memref<8x8x128xf32, #tpu.memory_space<vmem>>, %arg2: memref<2x128x512xf32, #tpu.memory_space<vmem>>, %arg3: memref<2x128x512xf32, #tpu.memory_space<vmem>>, %arg4: memref<2x1x512xf32, #tpu.memory_space<vmem>>, %arg5: memref<128x128xf32, #tpu.memory_space<vmem>>, %arg6: memref<1x128xf32, #tpu.memory_space<vmem>>, %arg7: memref<16x128xf32, #tpu.memory_space<vmem>>, %arg8: memref<8x8x128xf32, #tpu.memory_space<vmem>>, %arg9: memref<8x8x512xf32, #tpu.memory_space<vmem>>, %arg10: memref<2x8x128xf32, #tpu.memory_space<vmem>>) attributes {dimension_semantics = [], scalar_prefetch = 0 : i64, scratch_operands = 3 : i64, tpu.core_type = #tpu.core_type<tc>} {
    %c0 = arith.constant 0 : index
    %c0_0 = arith.constant 0 : index
    %0 = vector.load %arg0[%c0, %c0_0] : memref<8x1xi32, #tpu.memory_space<vmem>>, vector<8x1xi32>
    %1 = vector.shape_cast %0 : vector<8x1xi32> to vector<8x1xi32>
    %2 = vector.broadcast %1 : vector<8x1xi32> to vector<8x128xi32>
    %c0_1 = arith.constant 0 : index
    %c0_2 = arith.constant 0 : index
    %c0_3 = arith.constant 0 : index
    %3 = vector.load %arg1[%c0_1, %c0_2, %c0_3] : memref<8x8x128xf32, #tpu.memory_space<vmem>>, vector<8x8x128xf32>
    %4 = vector.shape_cast %3 : vector<8x8x128xf32> to vector<64x128xf32>
    %c0_4 = arith.constant 0 : index
    %c0_5 = arith.constant 0 : index
    %c0_6 = arith.constant 0 : index
    %5 = vector.load %arg2[%c0_4, %c0_5, %c0_6] : memref<2x128x512xf32, #tpu.memory_space<vmem>>, vector<1x128x512xf32>
    %6 = vector.shape_cast %5 : vector<1x128x512xf32> to vector<128x512xf32>
    %cst = arith.constant dense<0.000000e+00> : vector<64x512xf32>
    %7 = tpu.matmul %4, %6, %cst {dimension_numbers = #tpu.dot_dimension_numbers<[1], [0], [0], [1], [0, 0, 1, 1], [], []>} : vector<64x128xf32>, vector<128x512xf32>, vector<64x512xf32> -> vector<64x512xf32>
    %c0_7 = arith.constant 0 : index
    %c0_8 = arith.constant 0 : index
    %c0_9 = arith.constant 0 : index
    %8 = vector.load %arg4[%c0_7, %c0_8, %c0_9] : memref<2x1x512xf32, #tpu.memory_space<vmem>>, vector<1x1x512xf32>
    %9 = vector.shape_cast %8 : vector<1x1x512xf32> to vector<1x512xf32>
    %10 = vector.broadcast %9 : vector<1x512xf32> to vector<64x512xf32>
    %11 = arith.addf %7, %10 : vector<64x512xf32>
    %12 = vector.shape_cast %11 : vector<64x512xf32> to vector<8x8x512xf32>
    %c0_10 = arith.constant 0 : index
    %c0_11 = arith.constant 0 : index
    %c0_12 = arith.constant 0 : index
    %13 = vector.load %arg9[%c0_10, %c0_11, %c0_12] : memref<8x8x512xf32, #tpu.memory_space<vmem>>, vector<8x8x512xf32>
    tpu.vector_store %arg9[%c0_10, %c0_11, %c0_12], %12 {strides = array<i32>} : memref<8x8x512xf32, #tpu.memory_space<vmem>>, vector<8x8x512xf32>,
    %cst_13 = arith.constant 0.000000e+00 : f32
    %14 = vector.broadcast %cst_13 : f32 to vector<8x128xf32>
    %cst_14 = arith.constant 0.000000e+00 : f32
    %15 = vector.broadcast %cst_14 : f32 to vector<8x128xf32>
    %c0_i32 = arith.constant 0 : i32
    %16 = arith.index_cast %c0_i32 : i32 to index
    %c0_15 = arith.constant 0 : index
    %c0_16 = arith.constant 0 : index
    %17 = vector.load %arg9[%16, %c0_15, %c0_16] : memref<8x8x512xf32, #tpu.memory_space<vmem>>, vector<1x8x512xf32>
    %18 = vector.shape_cast %17 : vector<1x8x512xf32> to vector<8x512xf32>
    %c0_17 = arith.constant 0 : index
    %c0_18 = arith.constant 0 : index
    %c0_19 = arith.constant 0 : index
    %19 = vector.load %arg3[%c0_17, %c0_18, %c0_19] : memref<2x128x512xf32, #tpu.memory_space<vmem>>, vector<1x128x512xf32>
    %20 = vector.shape_cast %19 : vector<1x128x512xf32> to vector<128x512xf32>
    %cst_20 = arith.constant dense<0.000000e+00> : vector<8x512xf32>
    %21 = tpu.matmul %14, %20, %cst_20 {dimension_numbers = #tpu.dot_dimension_numbers<[1], [0], [0], [1], [0, 0, 1, 1], [], []>} : vector<8x128xf32>, vector<128x512xf32>, vector<8x512xf32> -> vector<8x512xf32>
    %22 = arith.addf %18, %21 : vector<8x512xf32>
    %23 = vector.extract_strided_slice %22 {offsets = [0, 0], sizes = [8, 128], strides = [1, 1]} : vector<8x512xf32> to vector<8x128xf32>
    %24 = arith.negf %23 : vector<8x128xf32>
    %25 = math.exp %24 : vector<8x128xf32>
    %cst_21 = arith.constant 1.000000e+00 : f32
    %26 = vector.broadcast %cst_21 : f32 to vector<8x128xf32>
    %27 = arith.addf %26, %25 : vector<8x128xf32>
    %28 = arith.divf %26, %27 : vector<8x128xf32>
    %29 = vector.extract_strided_slice %22 {offsets = [0, 128], sizes = [8, 128], strides = [1, 1]} : vector<8x512xf32> to vector<8x128xf32>
    %30 = arith.negf %29 : vector<8x128xf32>
    %31 = math.exp %30 : vector<8x128xf32>
    %cst_22 = arith.constant 1.000000e+00 : f32
    %32 = vector.broadcast %cst_22 : f32 to vector<8x128xf32>
    %33 = arith.addf %32, %31 : vector<8x128xf32>
    %34 = arith.divf %32, %33 : vector<8x128xf32>
    %35 = vector.extract_strided_slice %22 {offsets = [0, 256], sizes = [8, 128], strides = [1, 1]} : vector<8x512xf32> to vector<8x128xf32>
    %36 = math.tanh %35 : vector<8x128xf32>
    %37 = vector.extract_strided_slice %22 {offsets = [0, 384], sizes = [8, 128], strides = [1, 1]} : vector<8x512xf32> to vector<8x128xf32>
    %38 = arith.negf %37 : vector<8x128xf32>
    %39 = math.exp %38 : vector<8x128xf32>
    %cst_23 = arith.constant 1.000000e+00 : f32
    %40 = vector.broadcast %cst_23 : f32 to vector<8x128xf32>
    %41 = arith.addf %40, %39 : vector<8x128xf32>
    %42 = arith.divf %40, %41 : vector<8x128xf32>
    %43 = arith.mulf %34, %15 : vector<8x128xf32>
    %44 = arith.mulf %28, %36 : vector<8x128xf32>
    %45 = arith.addf %43, %44 : vector<8x128xf32>
    %46 = math.tanh %45 : vector<8x128xf32>
    %47 = arith.mulf %42, %46 : vector<8x128xf32>
    %48 = vector.broadcast %c0_i32 : i32 to vector<8x128xi32>
    %49 = arith.cmpi slt, %48, %2 : vector<8x128xi32>
    %50 = arith.select %49, %47, %14 : vector<8x128xi1>, vector<8x128xf32>
    %51 = arith.select %49, %45, %15 : vector<8x128xi1>, vector<8x128xf32>
    %52 = arith.index_cast %c0_i32 : i32 to index
    %c0_24 = arith.constant 0 : index
    %c0_25 = arith.constant 0 : index
    %53 = vector.load %arg8[%52, %c0_24, %c0_25] : memref<8x8x128xf32, #tpu.memory_space<vmem>>, vector<1x8x128xf32>
    %54 = vector.shape_cast %53 : vector<1x8x128xf32> to vector<8x128xf32>
    %55 = vector.shape_cast %50 : vector<8x128xf32> to vector<1x8x128xf32>
    tpu.vector_store %arg8[%52, %c0_24, %c0_25], %55 {strides = array<i32>} : memref<8x8x128xf32, #tpu.memory_space<vmem>>, vector<1x8x128xf32>,
    %c1_i32 = arith.constant 1 : i32
    %56 = arith.index_cast %c1_i32 : i32 to index
    %c0_26 = arith.constant 0 : index
    %c0_27 = arith.constant 0 : index
    %57 = vector.load %arg9[%56, %c0_26, %c0_27] : memref<8x8x512xf32, #tpu.memory_space<vmem>>, vector<1x8x512xf32>
    %58 = vector.shape_cast %57 : vector<1x8x512xf32> to vector<8x512xf32>
    %c0_28 = arith.constant 0 : index
    %c0_29 = arith.constant 0 : index
    %c0_30 = arith.constant 0 : index
    %59 = vector.load %arg3[%c0_28, %c0_29, %c0_30] : memref<2x128x512xf32, #tpu.memory_space<vmem>>, vector<1x128x512xf32>
    %60 = vector.shape_cast %59 : vector<1x128x512xf32> to vector<128x512xf32>
    %cst_31 = arith.constant dense<0.000000e+00> : vector<8x512xf32>
    %61 = tpu.matmul %50, %60, %cst_31 {dimension_numbers = #tpu.dot_dimension_numbers<[1], [0], [0], [1], [0, 0, 1, 1], [], []>} : vector<8x128xf32>, vector<128x512xf32>, vector<8x512xf32> -> vector<8x512xf32>
    %62 = arith.addf %58, %61 : vector<8x512xf32>
    %63 = vector.extract_strided_slice %62 {offsets = [0, 0], sizes = [8, 128], strides = [1, 1]} : vector<8x512xf32> to vector<8x128xf32>
    %64 = arith.negf %63 : vector<8x128xf32>
    %65 = math.exp %64 : vector<8x128xf32>
    %cst_32 = arith.constant 1.000000e+00 : f32
    %66 = vector.broadcast %cst_32 : f32 to vector<8x128xf32>
    %67 = arith.addf %66, %65 : vector<8x128xf32>
    %68 = arith.divf %66, %67 : vector<8x128xf32>
    %69 = vector.extract_strided_slice %62 {offsets = [0, 128], sizes = [8, 128], strides = [1, 1]} : vector<8x512xf32> to vector<8x128xf32>
    %70 = arith.negf %69 : vector<8x128xf32>
    %71 = math.exp %70 : vector<8x128xf32>
    %cst_33 = arith.constant 1.000000e+00 : f32
    %72 = vector.broadcast %cst_33 : f32 to vector<8x128xf32>
    %73 = arith.addf %72, %71 : vector<8x128xf32>
    %74 = arith.divf %72, %73 : vector<8x128xf32>
    %75 = vector.extract_strided_slice %62 {offsets = [0, 256], sizes = [8, 128], strides = [1, 1]} : vector<8x512xf32> to vector<8x128xf32>
    %76 = math.tanh %75 : vector<8x128xf32>
    %77 = vector.extract_strided_slice %62 {offsets = [0, 384], sizes = [8, 128], strides = [1, 1]} : vector<8x512xf32> to vector<8x128xf32>
    %78 = arith.negf %77 : vector<8x128xf32>
    %79 = math.exp %78 : vector<8x128xf32>
    %cst_34 = arith.constant 1.000000e+00 : f32
    %80 = vector.broadcast %cst_34 : f32 to vector<8x128xf32>
    %81 = arith.addf %80, %79 : vector<8x128xf32>
    %82 = arith.divf %80, %81 : vector<8x128xf32>
    %83 = arith.mulf %74, %51 : vector<8x128xf32>
    %84 = arith.mulf %68, %76 : vector<8x128xf32>
    %85 = arith.addf %83, %84 : vector<8x128xf32>
    %86 = math.tanh %85 : vector<8x128xf32>
    %87 = arith.mulf %82, %86 : vector<8x128xf32>
    %88 = vector.broadcast %c1_i32 : i32 to vector<8x128xi32>
    %89 = arith.cmpi slt, %88, %2 : vector<8x128xi32>
    %90 = arith.select %89, %87, %50 : vector<8x128xi1>, vector<8x128xf32>
    %91 = arith.select %89, %85, %51 : vector<8x128xi1>, vector<8x128xf32>
    %92 = arith.index_cast %c1_i32 : i32 to index
    %c0_35 = arith.constant 0 : index
    %c0_36 = arith.constant 0 : index
    %93 = vector.load %arg8[%92, %c0_35, %c0_36] : memref<8x8x128xf32, #tpu.memory_space<vmem>>, vector<1x8x128xf32>
    %94 = vector.shape_cast %93 : vector<1x8x128xf32> to vector<8x128xf32>
    %95 = vector.shape_cast %90 : vector<8x128xf32> to vector<1x8x128xf32>
    tpu.vector_store %arg8[%92, %c0_35, %c0_36], %95 {strides = array<i32>} : memref<8x8x128xf32, #tpu.memory_space<vmem>>, vector<1x8x128xf32>,
    %c2_i32 = arith.constant 2 : i32
    %96 = arith.index_cast %c2_i32 : i32 to index
    %c0_37 = arith.constant 0 : index
    %c0_38 = arith.constant 0 : index
    %97 = vector.load %arg9[%96, %c0_37, %c0_38] : memref<8x8x512xf32, #tpu.memory_space<vmem>>, vector<1x8x512xf32>
    %98 = vector.shape_cast %97 : vector<1x8x512xf32> to vector<8x512xf32>
    %c0_39 = arith.constant 0 : index
    %c0_40 = arith.constant 0 : index
    %c0_41 = arith.constant 0 : index
    %99 = vector.load %arg3[%c0_39, %c0_40, %c0_41] : memref<2x128x512xf32, #tpu.memory_space<vmem>>, vector<1x128x512xf32>
    %100 = vector.shape_cast %99 : vector<1x128x512xf32> to vector<128x512xf32>
    %cst_42 = arith.constant dense<0.000000e+00> : vector<8x512xf32>
    %101 = tpu.matmul %90, %100, %cst_42 {dimension_numbers = #tpu.dot_dimension_numbers<[1], [0], [0], [1], [0, 0, 1, 1], [], []>} : vector<8x128xf32>, vector<128x512xf32>, vector<8x512xf32> -> vector<8x512xf32>
    %102 = arith.addf %98, %101 : vector<8x512xf32>
    %103 = vector.extract_strided_slice %102 {offsets = [0, 0], sizes = [8, 128], strides = [1, 1]} : vector<8x512xf32> to vector<8x128xf32>
    %104 = arith.negf %103 : vector<8x128xf32>
    %105 = math.exp %104 : vector<8x128xf32>
    %cst_43 = arith.constant 1.000000e+00 : f32
    %106 = vector.broadcast %cst_43 : f32 to vector<8x128xf32>
    %107 = arith.addf %106, %105 : vector<8x128xf32>
    %108 = arith.divf %106, %107 : vector<8x128xf32>
    %109 = vector.extract_strided_slice %102 {offsets = [0, 128], sizes = [8, 128], strides = [1, 1]} : vector<8x512xf32> to vector<8x128xf32>
    %110 = arith.negf %109 : vector<8x128xf32>
    %111 = math.exp %110 : vector<8x128xf32>
    %cst_44 = arith.constant 1.000000e+00 : f32
    %112 = vector.broadcast %cst_44 : f32 to vector<8x128xf32>
    %113 = arith.addf %112, %111 : vector<8x128xf32>
    %114 = arith.divf %112, %113 : vector<8x128xf32>
    %115 = vector.extract_strided_slice %102 {offsets = [0, 256], sizes = [8, 128], strides = [1, 1]} : vector<8x512xf32> to vector<8x128xf32>
    %116 = math.tanh %115 : vector<8x128xf32>
    %117 = vector.extract_strided_slice %102 {offsets = [0, 384], sizes = [8, 128], strides = [1, 1]} : vector<8x512xf32> to vector<8x128xf32>
    %118 = arith.negf %117 : vector<8x128xf32>
    %119 = math.exp %118 : vector<8x128xf32>
    %cst_45 = arith.constant 1.000000e+00 : f32
    %120 = vector.broadcast %cst_45 : f32 to vector<8x128xf32>
    %121 = arith.addf %120, %119 : vector<8x128xf32>
    %122 = arith.divf %120, %121 : vector<8x128xf32>
    %123 = arith.mulf %114, %91 : vector<8x128xf32>
    %124 = arith.mulf %108, %116 : vector<8x128xf32>
    %125 = arith.addf %123, %124 : vector<8x128xf32>
    %126 = math.tanh %125 : vector<8x128xf32>
    %127 = arith.mulf %122, %126 : vector<8x128xf32>
    %128 = vector.broadcast %c2_i32 : i32 to vector<8x128xi32>
    %129 = arith.cmpi slt, %128, %2 : vector<8x128xi32>
    %130 = arith.select %129, %127, %90 : vector<8x128xi1>, vector<8x128xf32>
    %131 = arith.select %129, %125, %91 : vector<8x128xi1>, vector<8x128xf32>
    %132 = arith.index_cast %c2_i32 : i32 to index
    %c0_46 = arith.constant 0 : index
    %c0_47 = arith.constant 0 : index
    %133 = vector.load %arg8[%132, %c0_46, %c0_47] : memref<8x8x128xf32, #tpu.memory_space<vmem>>, vector<1x8x128xf32>
    %134 = vector.shape_cast %133 : vector<1x8x128xf32> to vector<8x128xf32>
    %135 = vector.shape_cast %130 : vector<8x128xf32> to vector<1x8x128xf32>
    tpu.vector_store %arg8[%132, %c0_46, %c0_47], %135 {strides = array<i32>} : memref<8x8x128xf32, #tpu.memory_space<vmem>>, vector<1x8x128xf32>,
    %c3_i32 = arith.constant 3 : i32
    %136 = arith.index_cast %c3_i32 : i32 to index
    %c0_48 = arith.constant 0 : index
    %c0_49 = arith.constant 0 : index
    %137 = vector.load %arg9[%136, %c0_48, %c0_49] : memref<8x8x512xf32, #tpu.memory_space<vmem>>, vector<1x8x512xf32>
    %138 = vector.shape_cast %137 : vector<1x8x512xf32> to vector<8x512xf32>
    %c0_50 = arith.constant 0 : index
    %c0_51 = arith.constant 0 : index
    %c0_52 = arith.constant 0 : index
    %139 = vector.load %arg3[%c0_50, %c0_51, %c0_52] : memref<2x128x512xf32, #tpu.memory_space<vmem>>, vector<1x128x512xf32>
    %140 = vector.shape_cast %139 : vector<1x128x512xf32> to vector<128x512xf32>
    %cst_53 = arith.constant dense<0.000000e+00> : vector<8x512xf32>
    %141 = tpu.matmul %130, %140, %cst_53 {dimension_numbers = #tpu.dot_dimension_numbers<[1], [0], [0], [1], [0, 0, 1, 1], [], []>} : vector<8x128xf32>, vector<128x512xf32>, vector<8x512xf32> -> vector<8x512xf32>
    %142 = arith.addf %138, %141 : vector<8x512xf32>
    %143 = vector.extract_strided_slice %142 {offsets = [0, 0], sizes = [8, 128], strides = [1, 1]} : vector<8x512xf32> to vector<8x128xf32>
    %144 = arith.negf %143 : vector<8x128xf32>
    %145 = math.exp %144 : vector<8x128xf32>
    %cst_54 = arith.constant 1.000000e+00 : f32
    %146 = vector.broadcast %cst_54 : f32 to vector<8x128xf32>
    %147 = arith.addf %146, %145 : vector<8x128xf32>
    %148 = arith.divf %146, %147 : vector<8x128xf32>
    %149 = vector.extract_strided_slice %142 {offsets = [0, 128], sizes = [8, 128], strides = [1, 1]} : vector<8x512xf32> to vector<8x128xf32>
    %150 = arith.negf %149 : vector<8x128xf32>
    %151 = math.exp %150 : vector<8x128xf32>
    %cst_55 = arith.constant 1.000000e+00 : f32
    %152 = vector.broadcast %cst_55 : f32 to vector<8x128xf32>
    %153 = arith.addf %152, %151 : vector<8x128xf32>
    %154 = arith.divf %152, %153 : vector<8x128xf32>
    %155 = vector.extract_strided_slice %142 {offsets = [0, 256], sizes = [8, 128], strides = [1, 1]} : vector<8x512xf32> to vector<8x128xf32>
    %156 = math.tanh %155 : vector<8x128xf32>
    %157 = vector.extract_strided_slice %142 {offsets = [0, 384], sizes = [8, 128], strides = [1, 1]} : vector<8x512xf32> to vector<8x128xf32>
    %158 = arith.negf %157 : vector<8x128xf32>
    %159 = math.exp %158 : vector<8x128xf32>
    %cst_56 = arith.constant 1.000000e+00 : f32
    %160 = vector.broadcast %cst_56 : f32 to vector<8x128xf32>
    %161 = arith.addf %160, %159 : vector<8x128xf32>
    %162 = arith.divf %160, %161 : vector<8x128xf32>
    %163 = arith.mulf %154, %131 : vector<8x128xf32>
    %164 = arith.mulf %148, %156 : vector<8x128xf32>
    %165 = arith.addf %163, %164 : vector<8x128xf32>
    %166 = math.tanh %165 : vector<8x128xf32>
    %167 = arith.mulf %162, %166 : vector<8x128xf32>
    %168 = vector.broadcast %c3_i32 : i32 to vector<8x128xi32>
    %169 = arith.cmpi slt, %168, %2 : vector<8x128xi32>
    %170 = arith.select %169, %167, %130 : vector<8x128xi1>, vector<8x128xf32>
    %171 = arith.select %169, %165, %131 : vector<8x128xi1>, vector<8x128xf32>
    %172 = arith.index_cast %c3_i32 : i32 to index
    %c0_57 = arith.constant 0 : index
    %c0_58 = arith.constant 0 : index
    %173 = vector.load %arg8[%172, %c0_57, %c0_58] : memref<8x8x128xf32, #tpu.memory_space<vmem>>, vector<1x8x128xf32>
    %174 = vector.shape_cast %173 : vector<1x8x128xf32> to vector<8x128xf32>
    %175 = vector.shape_cast %170 : vector<8x128xf32> to vector<1x8x128xf32>
    tpu.vector_store %arg8[%172, %c0_57, %c0_58], %175 {strides = array<i32>} : memref<8x8x128xf32, #tpu.memory_space<vmem>>, vector<1x8x128xf32>,
    %c4_i32 = arith.constant 4 : i32
    %176 = arith.index_cast %c4_i32 : i32 to index
    %c0_59 = arith.constant 0 : index
    %c0_60 = arith.constant 0 : index
    %177 = vector.load %arg9[%176, %c0_59, %c0_60] : memref<8x8x512xf32, #tpu.memory_space<vmem>>, vector<1x8x512xf32>
    %178 = vector.shape_cast %177 : vector<1x8x512xf32> to vector<8x512xf32>
    %c0_61 = arith.constant 0 : index
    %c0_62 = arith.constant 0 : index
    %c0_63 = arith.constant 0 : index
    %179 = vector.load %arg3[%c0_61, %c0_62, %c0_63] : memref<2x128x512xf32, #tpu.memory_space<vmem>>, vector<1x128x512xf32>
    %180 = vector.shape_cast %179 : vector<1x128x512xf32> to vector<128x512xf32>
    %cst_64 = arith.constant dense<0.000000e+00> : vector<8x512xf32>
    %181 = tpu.matmul %170, %180, %cst_64 {dimension_numbers = #tpu.dot_dimension_numbers<[1], [0], [0], [1], [0, 0, 1, 1], [], []>} : vector<8x128xf32>, vector<128x512xf32>, vector<8x512xf32> -> vector<8x512xf32>
    %182 = arith.addf %178, %181 : vector<8x512xf32>
    %183 = vector.extract_strided_slice %182 {offsets = [0, 0], sizes = [8, 128], strides = [1, 1]} : vector<8x512xf32> to vector<8x128xf32>
    %184 = arith.negf %183 : vector<8x128xf32>
    %185 = math.exp %184 : vector<8x128xf32>
    %cst_65 = arith.constant 1.000000e+00 : f32
    %186 = vector.broadcast %cst_65 : f32 to vector<8x128xf32>
    %187 = arith.addf %186, %185 : vector<8x128xf32>
    %188 = arith.divf %186, %187 : vector<8x128xf32>
    %189 = vector.extract_strided_slice %182 {offsets = [0, 128], sizes = [8, 128], strides = [1, 1]} : vector<8x512xf32> to vector<8x128xf32>
    %190 = arith.negf %189 : vector<8x128xf32>
    %191 = math.exp %190 : vector<8x128xf32>
    %cst_66 = arith.constant 1.000000e+00 : f32
    %192 = vector.broadcast %cst_66 : f32 to vector<8x128xf32>
    %193 = arith.addf %192, %191 : vector<8x128xf32>
    %194 = arith.divf %192, %193 : vector<8x128xf32>
    %195 = vector.extract_strided_slice %182 {offsets = [0, 256], sizes = [8, 128], strides = [1, 1]} : vector<8x512xf32> to vector<8x128xf32>
    %196 = math.tanh %195 : vector<8x128xf32>
    %197 = vector.extract_strided_slice %182 {offsets = [0, 384], sizes = [8, 128], strides = [1, 1]} : vector<8x512xf32> to vector<8x128xf32>
    %198 = arith.negf %197 : vector<8x128xf32>
    %199 = math.exp %198 : vector<8x128xf32>
    %cst_67 = arith.constant 1.000000e+00 : f32
    %200 = vector.broadcast %cst_67 : f32 to vector<8x128xf32>
    %201 = arith.addf %200, %199 : vector<8x128xf32>
    %202 = arith.divf %200, %201 : vector<8x128xf32>
    %203 = arith.mulf %194, %171 : vector<8x128xf32>
    %204 = arith.mulf %188, %196 : vector<8x128xf32>
    %205 = arith.addf %203, %204 : vector<8x128xf32>
    %206 = math.tanh %205 : vector<8x128xf32>
    %207 = arith.mulf %202, %206 : vector<8x128xf32>
    %208 = vector.broadcast %c4_i32 : i32 to vector<8x128xi32>
    %209 = arith.cmpi slt, %208, %2 : vector<8x128xi32>
    %210 = arith.select %209, %207, %170 : vector<8x128xi1>, vector<8x128xf32>
    %211 = arith.select %209, %205, %171 : vector<8x128xi1>, vector<8x128xf32>
    %212 = arith.index_cast %c4_i32 : i32 to index
    %c0_68 = arith.constant 0 : index
    %c0_69 = arith.constant 0 : index
    %213 = vector.load %arg8[%212, %c0_68, %c0_69] : memref<8x8x128xf32, #tpu.memory_space<vmem>>, vector<1x8x128xf32>
    %214 = vector.shape_cast %213 : vector<1x8x128xf32> to vector<8x128xf32>
    %215 = vector.shape_cast %210 : vector<8x128xf32> to vector<1x8x128xf32>
    tpu.vector_store %arg8[%212, %c0_68, %c0_69], %215 {strides = array<i32>} : memref<8x8x128xf32, #tpu.memory_space<vmem>>, vector<1x8x128xf32>,
    %c5_i32 = arith.constant 5 : i32
    %216 = arith.index_cast %c5_i32 : i32 to index
    %c0_70 = arith.constant 0 : index
    %c0_71 = arith.constant 0 : index
    %217 = vector.load %arg9[%216, %c0_70, %c0_71] : memref<8x8x512xf32, #tpu.memory_space<vmem>>, vector<1x8x512xf32>
    %218 = vector.shape_cast %217 : vector<1x8x512xf32> to vector<8x512xf32>
    %c0_72 = arith.constant 0 : index
    %c0_73 = arith.constant 0 : index
    %c0_74 = arith.constant 0 : index
    %219 = vector.load %arg3[%c0_72, %c0_73, %c0_74] : memref<2x128x512xf32, #tpu.memory_space<vmem>>, vector<1x128x512xf32>
    %220 = vector.shape_cast %219 : vector<1x128x512xf32> to vector<128x512xf32>
    %cst_75 = arith.constant dense<0.000000e+00> : vector<8x512xf32>
    %221 = tpu.matmul %210, %220, %cst_75 {dimension_numbers = #tpu.dot_dimension_numbers<[1], [0], [0], [1], [0, 0, 1, 1], [], []>} : vector<8x128xf32>, vector<128x512xf32>, vector<8x512xf32> -> vector<8x512xf32>
    %222 = arith.addf %218, %221 : vector<8x512xf32>
    %223 = vector.extract_strided_slice %222 {offsets = [0, 0], sizes = [8, 128], strides = [1, 1]} : vector<8x512xf32> to vector<8x128xf32>
    %224 = arith.negf %223 : vector<8x128xf32>
    %225 = math.exp %224 : vector<8x128xf32>
    %cst_76 = arith.constant 1.000000e+00 : f32
    %226 = vector.broadcast %cst_76 : f32 to vector<8x128xf32>
    %227 = arith.addf %226, %225 : vector<8x128xf32>
    %228 = arith.divf %226, %227 : vector<8x128xf32>
    %229 = vector.extract_strided_slice %222 {offsets = [0, 128], sizes = [8, 128], strides = [1, 1]} : vector<8x512xf32> to vector<8x128xf32>
    %230 = arith.negf %229 : vector<8x128xf32>
    %231 = math.exp %230 : vector<8x128xf32>
    %cst_77 = arith.constant 1.000000e+00 : f32
    %232 = vector.broadcast %cst_77 : f32 to vector<8x128xf32>
    %233 = arith.addf %232, %231 : vector<8x128xf32>
    %234 = arith.divf %232, %233 : vector<8x128xf32>
    %235 = vector.extract_strided_slice %222 {offsets = [0, 256], sizes = [8, 128], strides = [1, 1]} : vector<8x512xf32> to vector<8x128xf32>
    %236 = math.tanh %235 : vector<8x128xf32>
    %237 = vector.extract_strided_slice %222 {offsets = [0, 384], sizes = [8, 128], strides = [1, 1]} : vector<8x512xf32> to vector<8x128xf32>
    %238 = arith.negf %237 : vector<8x128xf32>
    %239 = math.exp %238 : vector<8x128xf32>
    %cst_78 = arith.constant 1.000000e+00 : f32
    %240 = vector.broadcast %cst_78 : f32 to vector<8x128xf32>
    %241 = arith.addf %240, %239 : vector<8x128xf32>
    %242 = arith.divf %240, %241 : vector<8x128xf32>
    %243 = arith.mulf %234, %211 : vector<8x128xf32>
    %244 = arith.mulf %228, %236 : vector<8x128xf32>
    %245 = arith.addf %243, %244 : vector<8x128xf32>
    %246 = math.tanh %245 : vector<8x128xf32>
    %247 = arith.mulf %242, %246 : vector<8x128xf32>
    %248 = vector.broadcast %c5_i32 : i32 to vector<8x128xi32>
    %249 = arith.cmpi slt, %248, %2 : vector<8x128xi32>
    %250 = arith.select %249, %247, %210 : vector<8x128xi1>, vector<8x128xf32>
    %251 = arith.select %249, %245, %211 : vector<8x128xi1>, vector<8x128xf32>
    %252 = arith.index_cast %c5_i32 : i32 to index
    %c0_79 = arith.constant 0 : index
    %c0_80 = arith.constant 0 : index
    %253 = vector.load %arg8[%252, %c0_79, %c0_80] : memref<8x8x128xf32, #tpu.memory_space<vmem>>, vector<1x8x128xf32>
    %254 = vector.shape_cast %253 : vector<1x8x128xf32> to vector<8x128xf32>
    %255 = vector.shape_cast %250 : vector<8x128xf32> to vector<1x8x128xf32>
    tpu.vector_store %arg8[%252, %c0_79, %c0_80], %255 {strides = array<i32>} : memref<8x8x128xf32, #tpu.memory_space<vmem>>, vector<1x8x128xf32>,
    %c6_i32 = arith.constant 6 : i32
    %256 = arith.index_cast %c6_i32 : i32 to index
    %c0_81 = arith.constant 0 : index
    %c0_82 = arith.constant 0 : index
    %257 = vector.load %arg9[%256, %c0_81, %c0_82] : memref<8x8x512xf32, #tpu.memory_space<vmem>>, vector<1x8x512xf32>
    %258 = vector.shape_cast %257 : vector<1x8x512xf32> to vector<8x512xf32>
    %c0_83 = arith.constant 0 : index
    %c0_84 = arith.constant 0 : index
    %c0_85 = arith.constant 0 : index
    %259 = vector.load %arg3[%c0_83, %c0_84, %c0_85] : memref<2x128x512xf32, #tpu.memory_space<vmem>>, vector<1x128x512xf32>
    %260 = vector.shape_cast %259 : vector<1x128x512xf32> to vector<128x512xf32>
    %cst_86 = arith.constant dense<0.000000e+00> : vector<8x512xf32>
    %261 = tpu.matmul %250, %260, %cst_86 {dimension_numbers = #tpu.dot_dimension_numbers<[1], [0], [0], [1], [0, 0, 1, 1], [], []>} : vector<8x128xf32>, vector<128x512xf32>, vector<8x512xf32> -> vector<8x512xf32>
    %262 = arith.addf %258, %261 : vector<8x512xf32>
    %263 = vector.extract_strided_slice %262 {offsets = [0, 0], sizes = [8, 128], strides = [1, 1]} : vector<8x512xf32> to vector<8x128xf32>
    %264 = arith.negf %263 : vector<8x128xf32>
    %265 = math.exp %264 : vector<8x128xf32>
    %cst_87 = arith.constant 1.000000e+00 : f32
    %266 = vector.broadcast %cst_87 : f32 to vector<8x128xf32>
    %267 = arith.addf %266, %265 : vector<8x128xf32>
    %268 = arith.divf %266, %267 : vector<8x128xf32>
    %269 = vector.extract_strided_slice %262 {offsets = [0, 128], sizes = [8, 128], strides = [1, 1]} : vector<8x512xf32> to vector<8x128xf32>
    %270 = arith.negf %269 : vector<8x128xf32>
    %271 = math.exp %270 : vector<8x128xf32>
    %cst_88 = arith.constant 1.000000e+00 : f32
    %272 = vector.broadcast %cst_88 : f32 to vector<8x128xf32>
    %273 = arith.addf %272, %271 : vector<8x128xf32>
    %274 = arith.divf %272, %273 : vector<8x128xf32>
    %275 = vector.extract_strided_slice %262 {offsets = [0, 256], sizes = [8, 128], strides = [1, 1]} : vector<8x512xf32> to vector<8x128xf32>
    %276 = math.tanh %275 : vector<8x128xf32>
    %277 = vector.extract_strided_slice %262 {offsets = [0, 384], sizes = [8, 128], strides = [1, 1]} : vector<8x512xf32> to vector<8x128xf32>
    %278 = arith.negf %277 : vector<8x128xf32>
    %279 = math.exp %278 : vector<8x128xf32>
    %cst_89 = arith.constant 1.000000e+00 : f32
    %280 = vector.broadcast %cst_89 : f32 to vector<8x128xf32>
    %281 = arith.addf %280, %279 : vector<8x128xf32>
    %282 = arith.divf %280, %281 : vector<8x128xf32>
    %283 = arith.mulf %274, %251 : vector<8x128xf32>
    %284 = arith.mulf %268, %276 : vector<8x128xf32>
    %285 = arith.addf %283, %284 : vector<8x128xf32>
    %286 = math.tanh %285 : vector<8x128xf32>
    %287 = arith.mulf %282, %286 : vector<8x128xf32>
    %288 = vector.broadcast %c6_i32 : i32 to vector<8x128xi32>
    %289 = arith.cmpi slt, %288, %2 : vector<8x128xi32>
    %290 = arith.select %289, %287, %250 : vector<8x128xi1>, vector<8x128xf32>
    %291 = arith.select %289, %285, %251 : vector<8x128xi1>, vector<8x128xf32>
    %292 = arith.index_cast %c6_i32 : i32 to index
    %c0_90 = arith.constant 0 : index
    %c0_91 = arith.constant 0 : index
    %293 = vector.load %arg8[%292, %c0_90, %c0_91] : memref<8x8x128xf32, #tpu.memory_space<vmem>>, vector<1x8x128xf32>
    %294 = vector.shape_cast %293 : vector<1x8x128xf32> to vector<8x128xf32>
    %295 = vector.shape_cast %290 : vector<8x128xf32> to vector<1x8x128xf32>
    tpu.vector_store %arg8[%292, %c0_90, %c0_91], %295 {strides = array<i32>} : memref<8x8x128xf32, #tpu.memory_space<vmem>>, vector<1x8x128xf32>,
    %c7_i32 = arith.constant 7 : i32
    %296 = arith.index_cast %c7_i32 : i32 to index
    %c0_92 = arith.constant 0 : index
    %c0_93 = arith.constant 0 : index
    %297 = vector.load %arg9[%296, %c0_92, %c0_93] : memref<8x8x512xf32, #tpu.memory_space<vmem>>, vector<1x8x512xf32>
    %298 = vector.shape_cast %297 : vector<1x8x512xf32> to vector<8x512xf32>
    %c0_94 = arith.constant 0 : index
    %c0_95 = arith.constant 0 : index
    %c0_96 = arith.constant 0 : index
    %299 = vector.load %arg3[%c0_94, %c0_95, %c0_96] : memref<2x128x512xf32, #tpu.memory_space<vmem>>, vector<1x128x512xf32>
    %300 = vector.shape_cast %299 : vector<1x128x512xf32> to vector<128x512xf32>
    %cst_97 = arith.constant dense<0.000000e+00> : vector<8x512xf32>
    %301 = tpu.matmul %290, %300, %cst_97 {dimension_numbers = #tpu.dot_dimension_numbers<[1], [0], [0], [1], [0, 0, 1, 1], [], []>} : vector<8x128xf32>, vector<128x512xf32>, vector<8x512xf32> -> vector<8x512xf32>
    %302 = arith.addf %298, %301 : vector<8x512xf32>
    %303 = vector.extract_strided_slice %302 {offsets = [0, 0], sizes = [8, 128], strides = [1, 1]} : vector<8x512xf32> to vector<8x128xf32>
    %304 = arith.negf %303 : vector<8x128xf32>
    %305 = math.exp %304 : vector<8x128xf32>
    %cst_98 = arith.constant 1.000000e+00 : f32
    %306 = vector.broadcast %cst_98 : f32 to vector<8x128xf32>
    %307 = arith.addf %306, %305 : vector<8x128xf32>
    %308 = arith.divf %306, %307 : vector<8x128xf32>
    %309 = vector.extract_strided_slice %302 {offsets = [0, 128], sizes = [8, 128], strides = [1, 1]} : vector<8x512xf32> to vector<8x128xf32>
    %310 = arith.negf %309 : vector<8x128xf32>
    %311 = math.exp %310 : vector<8x128xf32>
    %cst_99 = arith.constant 1.000000e+00 : f32
    %312 = vector.broadcast %cst_99 : f32 to vector<8x128xf32>
    %313 = arith.addf %312, %311 : vector<8x128xf32>
    %314 = arith.divf %312, %313 : vector<8x128xf32>
    %315 = vector.extract_strided_slice %302 {offsets = [0, 256], sizes = [8, 128], strides = [1, 1]} : vector<8x512xf32> to vector<8x128xf32>
    %316 = math.tanh %315 : vector<8x128xf32>
    %317 = vector.extract_strided_slice %302 {offsets = [0, 384], sizes = [8, 128], strides = [1, 1]} : vector<8x512xf32> to vector<8x128xf32>
    %318 = arith.negf %317 : vector<8x128xf32>
    %319 = math.exp %318 : vector<8x128xf32>
    %cst_100 = arith.constant 1.000000e+00 : f32
    %320 = vector.broadcast %cst_100 : f32 to vector<8x128xf32>
    %321 = arith.addf %320, %319 : vector<8x128xf32>
    %322 = arith.divf %320, %321 : vector<8x128xf32>
    %323 = arith.mulf %314, %291 : vector<8x128xf32>
    %324 = arith.mulf %308, %316 : vector<8x128xf32>
    %325 = arith.addf %323, %324 : vector<8x128xf32>
    %326 = math.tanh %325 : vector<8x128xf32>
    %327 = arith.mulf %322, %326 : vector<8x128xf32>
    %328 = vector.broadcast %c7_i32 : i32 to vector<8x128xi32>
    %329 = arith.cmpi slt, %328, %2 : vector<8x128xi32>
    %330 = arith.select %329, %327, %290 : vector<8x128xi1>, vector<8x128xf32>
    %331 = arith.select %329, %325, %291 : vector<8x128xi1>, vector<8x128xf32>
    %332 = arith.index_cast %c7_i32 : i32 to index
    %c0_101 = arith.constant 0 : index
    %c0_102 = arith.constant 0 : index
    %333 = vector.load %arg8[%332, %c0_101, %c0_102] : memref<8x8x128xf32, #tpu.memory_space<vmem>>, vector<1x8x128xf32>
    %334 = vector.shape_cast %333 : vector<1x8x128xf32> to vector<8x128xf32>
    %335 = vector.shape_cast %330 : vector<8x128xf32> to vector<1x8x128xf32>
    tpu.vector_store %arg8[%332, %c0_101, %c0_102], %335 {strides = array<i32>} : memref<8x8x128xf32, #tpu.memory_space<vmem>>, vector<1x8x128xf32>,
    %c8_i32 = arith.constant 8 : i32
    %c0_103 = arith.constant 0 : index
    %c0_104 = arith.constant 0 : index
    %c0_105 = arith.constant 0 : index
    %336 = vector.load %arg10[%c0_103, %c0_104, %c0_105] : memref<2x8x128xf32, #tpu.memory_space<vmem>>, vector<1x8x128xf32>
    %337 = vector.shape_cast %336 : vector<1x8x128xf32> to vector<8x128xf32>
    %338 = vector.shape_cast %330 : vector<8x128xf32> to vector<1x8x128xf32>
    tpu.vector_store %arg10[%c0_103, %c0_104, %c0_105], %338 {strides = array<i32>} : memref<2x8x128xf32, #tpu.memory_space<vmem>>, vector<1x8x128xf32>,
    %c0_106 = arith.constant 0 : index
    %c0_107 = arith.constant 0 : index
    %c0_108 = arith.constant 0 : index
    %339 = vector.load %arg8[%c0_106, %c0_107, %c0_108] : memref<8x8x128xf32, #tpu.memory_space<vmem>>, vector<8x8x128xf32>
    %340 = vector.shape_cast %339 : vector<8x8x128xf32> to vector<64x128xf32>
    %c1 = arith.constant 1 : index
    %c0_109 = arith.constant 0 : index
    %c0_110 = arith.constant 0 : index
    %341 = vector.load %arg2[%c1, %c0_109, %c0_110] : memref<2x128x512xf32, #tpu.memory_space<vmem>>, vector<1x128x512xf32>
    %342 = vector.shape_cast %341 : vector<1x128x512xf32> to vector<128x512xf32>
    %cst_111 = arith.constant dense<0.000000e+00> : vector<64x512xf32>
    %343 = tpu.matmul %340, %342, %cst_111 {dimension_numbers = #tpu.dot_dimension_numbers<[1], [0], [0], [1], [0, 0, 1, 1], [], []>} : vector<64x128xf32>, vector<128x512xf32>, vector<64x512xf32> -> vector<64x512xf32>
    %c1_112 = arith.constant 1 : index
    %c0_113 = arith.constant 0 : index
    %c0_114 = arith.constant 0 : index
    %344 = vector.load %arg4[%c1_112, %c0_113, %c0_114] : memref<2x1x512xf32, #tpu.memory_space<vmem>>, vector<1x1x512xf32>
    %345 = vector.shape_cast %344 : vector<1x1x512xf32> to vector<1x512xf32>
    %346 = vector.broadcast %345 : vector<1x512xf32> to vector<64x512xf32>
    %347 = arith.addf %343, %346 : vector<64x512xf32>
    %348 = vector.shape_cast %347 : vector<64x512xf32> to vector<8x8x512xf32>
    %c0_115 = arith.constant 0 : index
    %c0_116 = arith.constant 0 : index
    %c0_117 = arith.constant 0 : index
    %349 = vector.load %arg9[%c0_115, %c0_116, %c0_117] : memref<8x8x512xf32, #tpu.memory_space<vmem>>, vector<8x8x512xf32>
    tpu.vector_store %arg9[%c0_115, %c0_116, %c0_117], %348 {strides = array<i32>} : memref<8x8x512xf32, #tpu.memory_space<vmem>>, vector<8x8x512xf32>,
    %cst_118 = arith.constant 0.000000e+00 : f32
    %350 = vector.broadcast %cst_118 : f32 to vector<8x128xf32>
    %cst_119 = arith.constant 0.000000e+00 : f32
    %351 = vector.broadcast %cst_119 : f32 to vector<8x128xf32>
    %c0_i32_120 = arith.constant 0 : i32
    %352 = arith.index_cast %c0_i32_120 : i32 to index
    %c0_121 = arith.constant 0 : index
    %c0_122 = arith.constant 0 : index
    %353 = vector.load %arg9[%352, %c0_121, %c0_122] : memref<8x8x512xf32, #tpu.memory_space<vmem>>, vector<1x8x512xf32>
    %354 = vector.shape_cast %353 : vector<1x8x512xf32> to vector<8x512xf32>
    %c1_123 = arith.constant 1 : index
    %c0_124 = arith.constant 0 : index
    %c0_125 = arith.constant 0 : index
    %355 = vector.load %arg3[%c1_123, %c0_124, %c0_125] : memref<2x128x512xf32, #tpu.memory_space<vmem>>, vector<1x128x512xf32>
    %356 = vector.shape_cast %355 : vector<1x128x512xf32> to vector<128x512xf32>
    %cst_126 = arith.constant dense<0.000000e+00> : vector<8x512xf32>
    %357 = tpu.matmul %350, %356, %cst_126 {dimension_numbers = #tpu.dot_dimension_numbers<[1], [0], [0], [1], [0, 0, 1, 1], [], []>} : vector<8x128xf32>, vector<128x512xf32>, vector<8x512xf32> -> vector<8x512xf32>
    %358 = arith.addf %354, %357 : vector<8x512xf32>
    %359 = vector.extract_strided_slice %358 {offsets = [0, 0], sizes = [8, 128], strides = [1, 1]} : vector<8x512xf32> to vector<8x128xf32>
    %360 = arith.negf %359 : vector<8x128xf32>
    %361 = math.exp %360 : vector<8x128xf32>
    %cst_127 = arith.constant 1.000000e+00 : f32
    %362 = vector.broadcast %cst_127 : f32 to vector<8x128xf32>
    %363 = arith.addf %362, %361 : vector<8x128xf32>
    %364 = arith.divf %362, %363 : vector<8x128xf32>
    %365 = vector.extract_strided_slice %358 {offsets = [0, 128], sizes = [8, 128], strides = [1, 1]} : vector<8x512xf32> to vector<8x128xf32>
    %366 = arith.negf %365 : vector<8x128xf32>
    %367 = math.exp %366 : vector<8x128xf32>
    %cst_128 = arith.constant 1.000000e+00 : f32
    %368 = vector.broadcast %cst_128 : f32 to vector<8x128xf32>
    %369 = arith.addf %368, %367 : vector<8x128xf32>
    %370 = arith.divf %368, %369 : vector<8x128xf32>
    %371 = vector.extract_strided_slice %358 {offsets = [0, 256], sizes = [8, 128], strides = [1, 1]} : vector<8x512xf32> to vector<8x128xf32>
    %372 = math.tanh %371 : vector<8x128xf32>
    %373 = vector.extract_strided_slice %358 {offsets = [0, 384], sizes = [8, 128], strides = [1, 1]} : vector<8x512xf32> to vector<8x128xf32>
    %374 = arith.negf %373 : vector<8x128xf32>
    %375 = math.exp %374 : vector<8x128xf32>
    %cst_129 = arith.constant 1.000000e+00 : f32
    %376 = vector.broadcast %cst_129 : f32 to vector<8x128xf32>
    %377 = arith.addf %376, %375 : vector<8x128xf32>
    %378 = arith.divf %376, %377 : vector<8x128xf32>
    %379 = arith.mulf %370, %351 : vector<8x128xf32>
    %380 = arith.mulf %364, %372 : vector<8x128xf32>
    %381 = arith.addf %379, %380 : vector<8x128xf32>
    %382 = math.tanh %381 : vector<8x128xf32>
    %383 = arith.mulf %378, %382 : vector<8x128xf32>
    %384 = vector.broadcast %c0_i32_120 : i32 to vector<8x128xi32>
    %385 = arith.cmpi slt, %384, %2 : vector<8x128xi32>
    %386 = arith.select %385, %383, %350 : vector<8x128xi1>, vector<8x128xf32>
    %387 = arith.select %385, %381, %351 : vector<8x128xi1>, vector<8x128xf32>
    %c1_i32_130 = arith.constant 1 : i32
    %388 = arith.index_cast %c1_i32_130 : i32 to index
    %c0_131 = arith.constant 0 : index
    %c0_132 = arith.constant 0 : index
    %389 = vector.load %arg9[%388, %c0_131, %c0_132] : memref<8x8x512xf32, #tpu.memory_space<vmem>>, vector<1x8x512xf32>
    %390 = vector.shape_cast %389 : vector<1x8x512xf32> to vector<8x512xf32>
    %c1_133 = arith.constant 1 : index
    %c0_134 = arith.constant 0 : index
    %c0_135 = arith.constant 0 : index
    %391 = vector.load %arg3[%c1_133, %c0_134, %c0_135] : memref<2x128x512xf32, #tpu.memory_space<vmem>>, vector<1x128x512xf32>
    %392 = vector.shape_cast %391 : vector<1x128x512xf32> to vector<128x512xf32>
    %cst_136 = arith.constant dense<0.000000e+00> : vector<8x512xf32>
    %393 = tpu.matmul %386, %392, %cst_136 {dimension_numbers = #tpu.dot_dimension_numbers<[1], [0], [0], [1], [0, 0, 1, 1], [], []>} : vector<8x128xf32>, vector<128x512xf32>, vector<8x512xf32> -> vector<8x512xf32>
    %394 = arith.addf %390, %393 : vector<8x512xf32>
    %395 = vector.extract_strided_slice %394 {offsets = [0, 0], sizes = [8, 128], strides = [1, 1]} : vector<8x512xf32> to vector<8x128xf32>
    %396 = arith.negf %395 : vector<8x128xf32>
    %397 = math.exp %396 : vector<8x128xf32>
    %cst_137 = arith.constant 1.000000e+00 : f32
    %398 = vector.broadcast %cst_137 : f32 to vector<8x128xf32>
    %399 = arith.addf %398, %397 : vector<8x128xf32>
    %400 = arith.divf %398, %399 : vector<8x128xf32>
    %401 = vector.extract_strided_slice %394 {offsets = [0, 128], sizes = [8, 128], strides = [1, 1]} : vector<8x512xf32> to vector<8x128xf32>
    %402 = arith.negf %401 : vector<8x128xf32>
    %403 = math.exp %402 : vector<8x128xf32>
    %cst_138 = arith.constant 1.000000e+00 : f32
    %404 = vector.broadcast %cst_138 : f32 to vector<8x128xf32>
    %405 = arith.addf %404, %403 : vector<8x128xf32>
    %406 = arith.divf %404, %405 : vector<8x128xf32>
    %407 = vector.extract_strided_slice %394 {offsets = [0, 256], sizes = [8, 128], strides = [1, 1]} : vector<8x512xf32> to vector<8x128xf32>
    %408 = math.tanh %407 : vector<8x128xf32>
    %409 = vector.extract_strided_slice %394 {offsets = [0, 384], sizes = [8, 128], strides = [1, 1]} : vector<8x512xf32> to vector<8x128xf32>
    %410 = arith.negf %409 : vector<8x128xf32>
    %411 = math.exp %410 : vector<8x128xf32>
    %cst_139 = arith.constant 1.000000e+00 : f32
    %412 = vector.broadcast %cst_139 : f32 to vector<8x128xf32>
    %413 = arith.addf %412, %411 : vector<8x128xf32>
    %414 = arith.divf %412, %413 : vector<8x128xf32>
    %415 = arith.mulf %406, %387 : vector<8x128xf32>
    %416 = arith.mulf %400, %408 : vector<8x128xf32>
    %417 = arith.addf %415, %416 : vector<8x128xf32>
    %418 = math.tanh %417 : vector<8x128xf32>
    %419 = arith.mulf %414, %418 : vector<8x128xf32>
    %420 = vector.broadcast %c1_i32_130 : i32 to vector<8x128xi32>
    %421 = arith.cmpi slt, %420, %2 : vector<8x128xi32>
    %422 = arith.select %421, %419, %386 : vector<8x128xi1>, vector<8x128xf32>
    %423 = arith.select %421, %417, %387 : vector<8x128xi1>, vector<8x128xf32>
    %c2_i32_140 = arith.constant 2 : i32
    %424 = arith.index_cast %c2_i32_140 : i32 to index
    %c0_141 = arith.constant 0 : index
    %c0_142 = arith.constant 0 : index
    %425 = vector.load %arg9[%424, %c0_141, %c0_142] : memref<8x8x512xf32, #tpu.memory_space<vmem>>, vector<1x8x512xf32>
    %426 = vector.shape_cast %425 : vector<1x8x512xf32> to vector<8x512xf32>
    %c1_143 = arith.constant 1 : index
    %c0_144 = arith.constant 0 : index
    %c0_145 = arith.constant 0 : index
    %427 = vector.load %arg3[%c1_143, %c0_144, %c0_145] : memref<2x128x512xf32, #tpu.memory_space<vmem>>, vector<1x128x512xf32>
    %428 = vector.shape_cast %427 : vector<1x128x512xf32> to vector<128x512xf32>
    %cst_146 = arith.constant dense<0.000000e+00> : vector<8x512xf32>
    %429 = tpu.matmul %422, %428, %cst_146 {dimension_numbers = #tpu.dot_dimension_numbers<[1], [0], [0], [1], [0, 0, 1, 1], [], []>} : vector<8x128xf32>, vector<128x512xf32>, vector<8x512xf32> -> vector<8x512xf32>
    %430 = arith.addf %426, %429 : vector<8x512xf32>
    %431 = vector.extract_strided_slice %430 {offsets = [0, 0], sizes = [8, 128], strides = [1, 1]} : vector<8x512xf32> to vector<8x128xf32>
    %432 = arith.negf %431 : vector<8x128xf32>
    %433 = math.exp %432 : vector<8x128xf32>
    %cst_147 = arith.constant 1.000000e+00 : f32
    %434 = vector.broadcast %cst_147 : f32 to vector<8x128xf32>
    %435 = arith.addf %434, %433 : vector<8x128xf32>
    %436 = arith.divf %434, %435 : vector<8x128xf32>
    %437 = vector.extract_strided_slice %430 {offsets = [0, 128], sizes = [8, 128], strides = [1, 1]} : vector<8x512xf32> to vector<8x128xf32>
    %438 = arith.negf %437 : vector<8x128xf32>
    %439 = math.exp %438 : vector<8x128xf32>
    %cst_148 = arith.constant 1.000000e+00 : f32
    %440 = vector.broadcast %cst_148 : f32 to vector<8x128xf32>
    %441 = arith.addf %440, %439 : vector<8x128xf32>
    %442 = arith.divf %440, %441 : vector<8x128xf32>
    %443 = vector.extract_strided_slice %430 {offsets = [0, 256], sizes = [8, 128], strides = [1, 1]} : vector<8x512xf32> to vector<8x128xf32>
    %444 = math.tanh %443 : vector<8x128xf32>
    %445 = vector.extract_strided_slice %430 {offsets = [0, 384], sizes = [8, 128], strides = [1, 1]} : vector<8x512xf32> to vector<8x128xf32>
    %446 = arith.negf %445 : vector<8x128xf32>
    %447 = math.exp %446 : vector<8x128xf32>
    %cst_149 = arith.constant 1.000000e+00 : f32
    %448 = vector.broadcast %cst_149 : f32 to vector<8x128xf32>
    %449 = arith.addf %448, %447 : vector<8x128xf32>
    %450 = arith.divf %448, %449 : vector<8x128xf32>
    %451 = arith.mulf %442, %423 : vector<8x128xf32>
    %452 = arith.mulf %436, %444 : vector<8x128xf32>
    %453 = arith.addf %451, %452 : vector<8x128xf32>
    %454 = math.tanh %453 : vector<8x128xf32>
    %455 = arith.mulf %450, %454 : vector<8x128xf32>
    %456 = vector.broadcast %c2_i32_140 : i32 to vector<8x128xi32>
    %457 = arith.cmpi slt, %456, %2 : vector<8x128xi32>
    %458 = arith.select %457, %455, %422 : vector<8x128xi1>, vector<8x128xf32>
    %459 = arith.select %457, %453, %423 : vector<8x128xi1>, vector<8x128xf32>
    %c3_i32_150 = arith.constant 3 : i32
    %460 = arith.index_cast %c3_i32_150 : i32 to index
    %c0_151 = arith.constant 0 : index
    %c0_152 = arith.constant 0 : index
    %461 = vector.load %arg9[%460, %c0_151, %c0_152] : memref<8x8x512xf32, #tpu.memory_space<vmem>>, vector<1x8x512xf32>
    %462 = vector.shape_cast %461 : vector<1x8x512xf32> to vector<8x512xf32>
    %c1_153 = arith.constant 1 : index
    %c0_154 = arith.constant 0 : index
    %c0_155 = arith.constant 0 : index
    %463 = vector.load %arg3[%c1_153, %c0_154, %c0_155] : memref<2x128x512xf32, #tpu.memory_space<vmem>>, vector<1x128x512xf32>
    %464 = vector.shape_cast %463 : vector<1x128x512xf32> to vector<128x512xf32>
    %cst_156 = arith.constant dense<0.000000e+00> : vector<8x512xf32>
    %465 = tpu.matmul %458, %464, %cst_156 {dimension_numbers = #tpu.dot_dimension_numbers<[1], [0], [0], [1], [0, 0, 1, 1], [], []>} : vector<8x128xf32>, vector<128x512xf32>, vector<8x512xf32> -> vector<8x512xf32>
    %466 = arith.addf %462, %465 : vector<8x512xf32>
    %467 = vector.extract_strided_slice %466 {offsets = [0, 0], sizes = [8, 128], strides = [1, 1]} : vector<8x512xf32> to vector<8x128xf32>
    %468 = arith.negf %467 : vector<8x128xf32>
    %469 = math.exp %468 : vector<8x128xf32>
    %cst_157 = arith.constant 1.000000e+00 : f32
    %470 = vector.broadcast %cst_157 : f32 to vector<8x128xf32>
    %471 = arith.addf %470, %469 : vector<8x128xf32>
    %472 = arith.divf %470, %471 : vector<8x128xf32>
    %473 = vector.extract_strided_slice %466 {offsets = [0, 128], sizes = [8, 128], strides = [1, 1]} : vector<8x512xf32> to vector<8x128xf32>
    %474 = arith.negf %473 : vector<8x128xf32>
    %475 = math.exp %474 : vector<8x128xf32>
    %cst_158 = arith.constant 1.000000e+00 : f32
    %476 = vector.broadcast %cst_158 : f32 to vector<8x128xf32>
    %477 = arith.addf %476, %475 : vector<8x128xf32>
    %478 = arith.divf %476, %477 : vector<8x128xf32>
    %479 = vector.extract_strided_slice %466 {offsets = [0, 256], sizes = [8, 128], strides = [1, 1]} : vector<8x512xf32> to vector<8x128xf32>
    %480 = math.tanh %479 : vector<8x128xf32>
    %481 = vector.extract_strided_slice %466 {offsets = [0, 384], sizes = [8, 128], strides = [1, 1]} : vector<8x512xf32> to vector<8x128xf32>
    %482 = arith.negf %481 : vector<8x128xf32>
    %483 = math.exp %482 : vector<8x128xf32>
    %cst_159 = arith.constant 1.000000e+00 : f32
    %484 = vector.broadcast %cst_159 : f32 to vector<8x128xf32>
    %485 = arith.addf %484, %483 : vector<8x128xf32>
    %486 = arith.divf %484, %485 : vector<8x128xf32>
    %487 = arith.mulf %478, %459 : vector<8x128xf32>
    %488 = arith.mulf %472, %480 : vector<8x128xf32>
    %489 = arith.addf %487, %488 : vector<8x128xf32>
    %490 = math.tanh %489 : vector<8x128xf32>
    %491 = arith.mulf %486, %490 : vector<8x128xf32>
    %492 = vector.broadcast %c3_i32_150 : i32 to vector<8x128xi32>
    %493 = arith.cmpi slt, %492, %2 : vector<8x128xi32>
    %494 = arith.select %493, %491, %458 : vector<8x128xi1>, vector<8x128xf32>
    %495 = arith.select %493, %489, %459 : vector<8x128xi1>, vector<8x128xf32>
    %c4_i32_160 = arith.constant 4 : i32
    %496 = arith.index_cast %c4_i32_160 : i32 to index
    %c0_161 = arith.constant 0 : index
    %c0_162 = arith.constant 0 : index
    %497 = vector.load %arg9[%496, %c0_161, %c0_162] : memref<8x8x512xf32, #tpu.memory_space<vmem>>, vector<1x8x512xf32>
    %498 = vector.shape_cast %497 : vector<1x8x512xf32> to vector<8x512xf32>
    %c1_163 = arith.constant 1 : index
    %c0_164 = arith.constant 0 : index
    %c0_165 = arith.constant 0 : index
    %499 = vector.load %arg3[%c1_163, %c0_164, %c0_165] : memref<2x128x512xf32, #tpu.memory_space<vmem>>, vector<1x128x512xf32>
    %500 = vector.shape_cast %499 : vector<1x128x512xf32> to vector<128x512xf32>
    %cst_166 = arith.constant dense<0.000000e+00> : vector<8x512xf32>
    %501 = tpu.matmul %494, %500, %cst_166 {dimension_numbers = #tpu.dot_dimension_numbers<[1], [0], [0], [1], [0, 0, 1, 1], [], []>} : vector<8x128xf32>, vector<128x512xf32>, vector<8x512xf32> -> vector<8x512xf32>
    %502 = arith.addf %498, %501 : vector<8x512xf32>
    %503 = vector.extract_strided_slice %502 {offsets = [0, 0], sizes = [8, 128], strides = [1, 1]} : vector<8x512xf32> to vector<8x128xf32>
    %504 = arith.negf %503 : vector<8x128xf32>
    %505 = math.exp %504 : vector<8x128xf32>
    %cst_167 = arith.constant 1.000000e+00 : f32
    %506 = vector.broadcast %cst_167 : f32 to vector<8x128xf32>
    %507 = arith.addf %506, %505 : vector<8x128xf32>
    %508 = arith.divf %506, %507 : vector<8x128xf32>
    %509 = vector.extract_strided_slice %502 {offsets = [0, 128], sizes = [8, 128], strides = [1, 1]} : vector<8x512xf32> to vector<8x128xf32>
    %510 = arith.negf %509 : vector<8x128xf32>
    %511 = math.exp %510 : vector<8x128xf32>
    %cst_168 = arith.constant 1.000000e+00 : f32
    %512 = vector.broadcast %cst_168 : f32 to vector<8x128xf32>
    %513 = arith.addf %512, %511 : vector<8x128xf32>
    %514 = arith.divf %512, %513 : vector<8x128xf32>
    %515 = vector.extract_strided_slice %502 {offsets = [0, 256], sizes = [8, 128], strides = [1, 1]} : vector<8x512xf32> to vector<8x128xf32>
    %516 = math.tanh %515 : vector<8x128xf32>
    %517 = vector.extract_strided_slice %502 {offsets = [0, 384], sizes = [8, 128], strides = [1, 1]} : vector<8x512xf32> to vector<8x128xf32>
    %518 = arith.negf %517 : vector<8x128xf32>
    %519 = math.exp %518 : vector<8x128xf32>
    %cst_169 = arith.constant 1.000000e+00 : f32
    %520 = vector.broadcast %cst_169 : f32 to vector<8x128xf32>
    %521 = arith.addf %520, %519 : vector<8x128xf32>
    %522 = arith.divf %520, %521 : vector<8x128xf32>
    %523 = arith.mulf %514, %495 : vector<8x128xf32>
    %524 = arith.mulf %508, %516 : vector<8x128xf32>
    %525 = arith.addf %523, %524 : vector<8x128xf32>
    %526 = math.tanh %525 : vector<8x128xf32>
    %527 = arith.mulf %522, %526 : vector<8x128xf32>
    %528 = vector.broadcast %c4_i32_160 : i32 to vector<8x128xi32>
    %529 = arith.cmpi slt, %528, %2 : vector<8x128xi32>
    %530 = arith.select %529, %527, %494 : vector<8x128xi1>, vector<8x128xf32>
    %531 = arith.select %529, %525, %495 : vector<8x128xi1>, vector<8x128xf32>
    %c5_i32_170 = arith.constant 5 : i32
    %532 = arith.index_cast %c5_i32_170 : i32 to index
    %c0_171 = arith.constant 0 : index
    %c0_172 = arith.constant 0 : index
    %533 = vector.load %arg9[%532, %c0_171, %c0_172] : memref<8x8x512xf32, #tpu.memory_space<vmem>>, vector<1x8x512xf32>
    %534 = vector.shape_cast %533 : vector<1x8x512xf32> to vector<8x512xf32>
    %c1_173 = arith.constant 1 : index
    %c0_174 = arith.constant 0 : index
    %c0_175 = arith.constant 0 : index
    %535 = vector.load %arg3[%c1_173, %c0_174, %c0_175] : memref<2x128x512xf32, #tpu.memory_space<vmem>>, vector<1x128x512xf32>
    %536 = vector.shape_cast %535 : vector<1x128x512xf32> to vector<128x512xf32>
    %cst_176 = arith.constant dense<0.000000e+00> : vector<8x512xf32>
    %537 = tpu.matmul %530, %536, %cst_176 {dimension_numbers = #tpu.dot_dimension_numbers<[1], [0], [0], [1], [0, 0, 1, 1], [], []>} : vector<8x128xf32>, vector<128x512xf32>, vector<8x512xf32> -> vector<8x512xf32>
    %538 = arith.addf %534, %537 : vector<8x512xf32>
    %539 = vector.extract_strided_slice %538 {offsets = [0, 0], sizes = [8, 128], strides = [1, 1]} : vector<8x512xf32> to vector<8x128xf32>
    %540 = arith.negf %539 : vector<8x128xf32>
    %541 = math.exp %540 : vector<8x128xf32>
    %cst_177 = arith.constant 1.000000e+00 : f32
    %542 = vector.broadcast %cst_177 : f32 to vector<8x128xf32>
    %543 = arith.addf %542, %541 : vector<8x128xf32>
    %544 = arith.divf %542, %543 : vector<8x128xf32>
    %545 = vector.extract_strided_slice %538 {offsets = [0, 128], sizes = [8, 128], strides = [1, 1]} : vector<8x512xf32> to vector<8x128xf32>
    %546 = arith.negf %545 : vector<8x128xf32>
    %547 = math.exp %546 : vector<8x128xf32>
    %cst_178 = arith.constant 1.000000e+00 : f32
    %548 = vector.broadcast %cst_178 : f32 to vector<8x128xf32>
    %549 = arith.addf %548, %547 : vector<8x128xf32>
    %550 = arith.divf %548, %549 : vector<8x128xf32>
    %551 = vector.extract_strided_slice %538 {offsets = [0, 256], sizes = [8, 128], strides = [1, 1]} : vector<8x512xf32> to vector<8x128xf32>
    %552 = math.tanh %551 : vector<8x128xf32>
    %553 = vector.extract_strided_slice %538 {offsets = [0, 384], sizes = [8, 128], strides = [1, 1]} : vector<8x512xf32> to vector<8x128xf32>
    %554 = arith.negf %553 : vector<8x128xf32>
    %555 = math.exp %554 : vector<8x128xf32>
    %cst_179 = arith.constant 1.000000e+00 : f32
    %556 = vector.broadcast %cst_179 : f32 to vector<8x128xf32>
    %557 = arith.addf %556, %555 : vector<8x128xf32>
    %558 = arith.divf %556, %557 : vector<8x128xf32>
    %559 = arith.mulf %550, %531 : vector<8x128xf32>
    %560 = arith.mulf %544, %552 : vector<8x128xf32>
    %561 = arith.addf %559, %560 : vector<8x128xf32>
    %562 = math.tanh %561 : vector<8x128xf32>
    %563 = arith.mulf %558, %562 : vector<8x128xf32>
    %564 = vector.broadcast %c5_i32_170 : i32 to vector<8x128xi32>
    %565 = arith.cmpi slt, %564, %2 : vector<8x128xi32>
    %566 = arith.select %565, %563, %530 : vector<8x128xi1>, vector<8x128xf32>
    %567 = arith.select %565, %561, %531 : vector<8x128xi1>, vector<8x128xf32>
    %c6_i32_180 = arith.constant 6 : i32
    %568 = arith.index_cast %c6_i32_180 : i32 to index
    %c0_181 = arith.constant 0 : index
    %c0_182 = arith.constant 0 : index
    %569 = vector.load %arg9[%568, %c0_181, %c0_182] : memref<8x8x512xf32, #tpu.memory_space<vmem>>, vector<1x8x512xf32>
    %570 = vector.shape_cast %569 : vector<1x8x512xf32> to vector<8x512xf32>
    %c1_183 = arith.constant 1 : index
    %c0_184 = arith.constant 0 : index
    %c0_185 = arith.constant 0 : index
    %571 = vector.load %arg3[%c1_183, %c0_184, %c0_185] : memref<2x128x512xf32, #tpu.memory_space<vmem>>, vector<1x128x512xf32>
    %572 = vector.shape_cast %571 : vector<1x128x512xf32> to vector<128x512xf32>
    %cst_186 = arith.constant dense<0.000000e+00> : vector<8x512xf32>
    %573 = tpu.matmul %566, %572, %cst_186 {dimension_numbers = #tpu.dot_dimension_numbers<[1], [0], [0], [1], [0, 0, 1, 1], [], []>} : vector<8x128xf32>, vector<128x512xf32>, vector<8x512xf32> -> vector<8x512xf32>
    %574 = arith.addf %570, %573 : vector<8x512xf32>
    %575 = vector.extract_strided_slice %574 {offsets = [0, 0], sizes = [8, 128], strides = [1, 1]} : vector<8x512xf32> to vector<8x128xf32>
    %576 = arith.negf %575 : vector<8x128xf32>
    %577 = math.exp %576 : vector<8x128xf32>
    %cst_187 = arith.constant 1.000000e+00 : f32
    %578 = vector.broadcast %cst_187 : f32 to vector<8x128xf32>
    %579 = arith.addf %578, %577 : vector<8x128xf32>
    %580 = arith.divf %578, %579 : vector<8x128xf32>
    %581 = vector.extract_strided_slice %574 {offsets = [0, 128], sizes = [8, 128], strides = [1, 1]} : vector<8x512xf32> to vector<8x128xf32>
    %582 = arith.negf %581 : vector<8x128xf32>
    %583 = math.exp %582 : vector<8x128xf32>
    %cst_188 = arith.constant 1.000000e+00 : f32
    %584 = vector.broadcast %cst_188 : f32 to vector<8x128xf32>
    %585 = arith.addf %584, %583 : vector<8x128xf32>
    %586 = arith.divf %584, %585 : vector<8x128xf32>
    %587 = vector.extract_strided_slice %574 {offsets = [0, 256], sizes = [8, 128], strides = [1, 1]} : vector<8x512xf32> to vector<8x128xf32>
    %588 = math.tanh %587 : vector<8x128xf32>
    %589 = vector.extract_strided_slice %574 {offsets = [0, 384], sizes = [8, 128], strides = [1, 1]} : vector<8x512xf32> to vector<8x128xf32>
    %590 = arith.negf %589 : vector<8x128xf32>
    %591 = math.exp %590 : vector<8x128xf32>
    %cst_189 = arith.constant 1.000000e+00 : f32
    %592 = vector.broadcast %cst_189 : f32 to vector<8x128xf32>
    %593 = arith.addf %592, %591 : vector<8x128xf32>
    %594 = arith.divf %592, %593 : vector<8x128xf32>
    %595 = arith.mulf %586, %567 : vector<8x128xf32>
    %596 = arith.mulf %580, %588 : vector<8x128xf32>
    %597 = arith.addf %595, %596 : vector<8x128xf32>
    %598 = math.tanh %597 : vector<8x128xf32>
    %599 = arith.mulf %594, %598 : vector<8x128xf32>
    %600 = vector.broadcast %c6_i32_180 : i32 to vector<8x128xi32>
    %601 = arith.cmpi slt, %600, %2 : vector<8x128xi32>
    %602 = arith.select %601, %599, %566 : vector<8x128xi1>, vector<8x128xf32>
    %603 = arith.select %601, %597, %567 : vector<8x128xi1>, vector<8x128xf32>
    %c7_i32_190 = arith.constant 7 : i32
    %604 = arith.index_cast %c7_i32_190 : i32 to index
    %c0_191 = arith.constant 0 : index
    %c0_192 = arith.constant 0 : index
    %605 = vector.load %arg9[%604, %c0_191, %c0_192] : memref<8x8x512xf32, #tpu.memory_space<vmem>>, vector<1x8x512xf32>
    %606 = vector.shape_cast %605 : vector<1x8x512xf32> to vector<8x512xf32>
    %c1_193 = arith.constant 1 : index
    %c0_194 = arith.constant 0 : index
    %c0_195 = arith.constant 0 : index
    %607 = vector.load %arg3[%c1_193, %c0_194, %c0_195] : memref<2x128x512xf32, #tpu.memory_space<vmem>>, vector<1x128x512xf32>
    %608 = vector.shape_cast %607 : vector<1x128x512xf32> to vector<128x512xf32>
    %cst_196 = arith.constant dense<0.000000e+00> : vector<8x512xf32>
    %609 = tpu.matmul %602, %608, %cst_196 {dimension_numbers = #tpu.dot_dimension_numbers<[1], [0], [0], [1], [0, 0, 1, 1], [], []>} : vector<8x128xf32>, vector<128x512xf32>, vector<8x512xf32> -> vector<8x512xf32>
    %610 = arith.addf %606, %609 : vector<8x512xf32>
    %611 = vector.extract_strided_slice %610 {offsets = [0, 0], sizes = [8, 128], strides = [1, 1]} : vector<8x512xf32> to vector<8x128xf32>
    %612 = arith.negf %611 : vector<8x128xf32>
    %613 = math.exp %612 : vector<8x128xf32>
    %cst_197 = arith.constant 1.000000e+00 : f32
    %614 = vector.broadcast %cst_197 : f32 to vector<8x128xf32>
    %615 = arith.addf %614, %613 : vector<8x128xf32>
    %616 = arith.divf %614, %615 : vector<8x128xf32>
    %617 = vector.extract_strided_slice %610 {offsets = [0, 128], sizes = [8, 128], strides = [1, 1]} : vector<8x512xf32> to vector<8x128xf32>
    %618 = arith.negf %617 : vector<8x128xf32>
    %619 = math.exp %618 : vector<8x128xf32>
    %cst_198 = arith.constant 1.000000e+00 : f32
    %620 = vector.broadcast %cst_198 : f32 to vector<8x128xf32>
    %621 = arith.addf %620, %619 : vector<8x128xf32>
    %622 = arith.divf %620, %621 : vector<8x128xf32>
    %623 = vector.extract_strided_slice %610 {offsets = [0, 256], sizes = [8, 128], strides = [1, 1]} : vector<8x512xf32> to vector<8x128xf32>
    %624 = math.tanh %623 : vector<8x128xf32>
    %625 = vector.extract_strided_slice %610 {offsets = [0, 384], sizes = [8, 128], strides = [1, 1]} : vector<8x512xf32> to vector<8x128xf32>
    %626 = arith.negf %625 : vector<8x128xf32>
    %627 = math.exp %626 : vector<8x128xf32>
    %cst_199 = arith.constant 1.000000e+00 : f32
    %628 = vector.broadcast %cst_199 : f32 to vector<8x128xf32>
    %629 = arith.addf %628, %627 : vector<8x128xf32>
    %630 = arith.divf %628, %629 : vector<8x128xf32>
    %631 = arith.mulf %622, %603 : vector<8x128xf32>
    %632 = arith.mulf %616, %624 : vector<8x128xf32>
    %633 = arith.addf %631, %632 : vector<8x128xf32>
    %634 = math.tanh %633 : vector<8x128xf32>
    %635 = arith.mulf %630, %634 : vector<8x128xf32>
    %636 = vector.broadcast %c7_i32_190 : i32 to vector<8x128xi32>
    %637 = arith.cmpi slt, %636, %2 : vector<8x128xi32>
    %638 = arith.select %637, %635, %602 : vector<8x128xi1>, vector<8x128xf32>
    %639 = arith.select %637, %633, %603 : vector<8x128xi1>, vector<8x128xf32>
    %c8_i32_200 = arith.constant 8 : i32
    %c1_201 = arith.constant 1 : index
    %c0_202 = arith.constant 0 : index
    %c0_203 = arith.constant 0 : index
    %640 = vector.load %arg10[%c1_201, %c0_202, %c0_203] : memref<2x8x128xf32, #tpu.memory_space<vmem>>, vector<1x8x128xf32>
    %641 = vector.shape_cast %640 : vector<1x8x128xf32> to vector<8x128xf32>
    %642 = vector.shape_cast %638 : vector<8x128xf32> to vector<1x8x128xf32>
    tpu.vector_store %arg10[%c1_201, %c0_202, %c0_203], %642 {strides = array<i32>} : memref<2x8x128xf32, #tpu.memory_space<vmem>>, vector<1x8x128xf32>,
    %c0_204 = arith.constant 0 : index
    %c0_205 = arith.constant 0 : index
    %c0_206 = arith.constant 0 : index
    %643 = vector.load %arg10[%c0_204, %c0_205, %c0_206] : memref<2x8x128xf32, #tpu.memory_space<vmem>>, vector<2x8x128xf32>
    %644 = vector.shape_cast %643 : vector<2x8x128xf32> to vector<16x128xf32>
    %c0_207 = arith.constant 0 : index
    %c0_208 = arith.constant 0 : index
    %645 = vector.load %arg5[%c0_207, %c0_208] : memref<128x128xf32, #tpu.memory_space<vmem>>, vector<128x128xf32>
    %cst_209 = arith.constant dense<0.000000e+00> : vector<16x128xf32>
    %646 = tpu.matmul %644, %645, %cst_209 {dimension_numbers = #tpu.dot_dimension_numbers<[1], [0], [0], [1], [0, 0, 1, 1], [], []>} : vector<16x128xf32>, vector<128x128xf32>, vector<16x128xf32> -> vector<16x128xf32>
    %c0_210 = arith.constant 0 : index
    %c0_211 = arith.constant 0 : index
    %647 = vector.load %arg6[%c0_210, %c0_211] : memref<1x128xf32, #tpu.memory_space<vmem>>, vector<1x128xf32>
    %648 = vector.broadcast %647 : vector<1x128xf32> to vector<16x128xf32>
    %649 = arith.addf %646, %648 : vector<16x128xf32>
    %c0_212 = arith.constant 0 : index
    %c0_213 = arith.constant 0 : index
    %650 = vector.load %arg7[%c0_212, %c0_213] : memref<16x128xf32, #tpu.memory_space<vmem>>, vector<16x128xf32>
    tpu.vector_store %arg7[%c0_212, %c0_213], %649 {strides = array<i32>} : memref<16x128xf32, #tpu.memory_space<vmem>>, vector<16x128xf32>,
    return
  }
}

</mosaic_0001>

<bundles_post_ra>
// kernel: tpu_custom_call.1
= control target key start
LH: loop header
LB: loop body
LE: loop exit
PB: predicated region body
PF: predicated region fallthrough
CT: control target
= control target key end

     0   :  { %12 = vsyncpa [#allocation6], 0  ;;  %s6762_s0 = inlined_call_operand.vmem [shape: s32[8,1], index: 0, kind: input, shape index: {}]   ;;  %s6763_s1 = inlined_call_operand.hbm [shape: f32[8,8,128], index: 1, kind: input, shape index: {}]   ;;  %s6764_s2 = inlined_call_operand.hbm [shape: f32[2,128,512], index: 2, kind: input, shape index: {}]   ;;  %s6765_s3 = inlined_call_operand.hbm [shape: f32[2,128,512], index: 3, kind: input, shape index: {}]   ;;  %s6766_s4 = inlined_call_operand.vmem [shape: f32[2,1,512], index: 4, kind: input, shape index: {}]   ;;  %s6767_s5 = inlined_call_operand.hbm [shape: f32[128,128], index: 5, kind: input, shape index: {}]   ;;  %s6768_s6 = inlined_call_operand.vmem [shape: f32[1,128], index: 6, kind: input, shape index: {}]   ;;  %s6769_s7 = inlined_call_operand.hbm [shape: f32[16,128], index: 7, kind: output, shape index: {}]  }
   0x1   :  { %13 = vsyncpa [#allocation9], 0 }
   0x2   :  { %14 = vsyncpa [#allocation12], 0  ;;  %s35_s26 = sshll.u32 %s6764_s2, 4  ;;  %s36_s26 = int_to_ptr.hbm [resolvable:$true] %s35_s26 }
   0x3   :  { %15 = vsyncpa [#allocation7], 0  ;;  %s4314_s27 = smov [#allocation8]   ;;  %s22_s8 = sshll.u32 %s6763_s1, 4  ;;  %s23_s8 = int_to_ptr.hbm [resolvable:$true] %s22_s8 }
   0x4   :  { %s37_s28 = sshll.u32 %s4314_s27, 4  ;;  %s4315_s9 = smov 512   ;;  %s38_s28 = int_to_ptr.vmem [resolvable:$true] %s37_s28 }
   0x5   :  { %s4316_s10 = smov 32   ;;  %s4317_s11 = smov [#allocation5]  }
   0x6   :  { %43 = dma.hbm_to_vmem [thread:$0]  %s36_s26, 16384, %s38_s28, [#allocation9], %s4315_s9, %s4315_s9, %s4316_s10  }
   0x7   :  { %s24_s12 = sshll.u32 %s4317_s11, 4  ;;  %s4318_s13 = smov 128   ;;  %s25_s12 = int_to_ptr.vmem [resolvable:$true] %s24_s12 }
   0x8   :  { %s4319_s14 = smov 8   ;;  %s48_s16 = sshll.u32 %s6765_s3, 4  ;;  %s49_s16 = int_to_ptr.hbm [resolvable:$true] %s48_s16 }
   0x9   :  { %30 = dma.hbm_to_vmem [thread:$0]  %s23_s8, 1024, %s25_s12, [#allocation6], %s4318_s13, %s4318_s13, %s4319_s14  }
   0xa   :  { %s4320_s17 = smov [#allocation10]   ;;  %s63_s20 = sshll.u32 %s6767_s5, 4  ;;  %s64_s20 = int_to_ptr.hbm [resolvable:$true] %s63_s20 }
   0xb   :  { %s50_s1 = sshll.u32 %s4320_s17, 4  ;;  %s4321_s21 = smov [#allocation11]   ;;  %s51_s1 = int_to_ptr.vmem [resolvable:$true] %s50_s1 }
   0xc   :  { %56 = dma.hbm_to_vmem [thread:$0]  %s49_s16, 16384, %s51_s1, [#allocation9], %s4315_s9, %s4315_s9, %s4316_s10  }
   0xd   :  { %s65_s22 = sshll.u32 %s4321_s21, 4  ;;  %s66_s22 = int_to_ptr.vmem [resolvable:$true] %s65_s22 }
   0xe   :  { %71 = dma.hbm_to_vmem [thread:$0]  %s64_s20, 2048, %s66_s22, [#allocation12], %s4318_s13, %s4318_s13, %s4319_s14  }
   0xf   :  { %4306 = dma.done.wait [#allocation6], 1024  }
  0x10   :  { %4307 = vsyncadd [#allocation6], 4294966272 }
  0x11   :  { %4308 = dma.done.wait [#allocation9], 32768  }
  0x12   :  { %4309 = vsyncadd [#allocation9], 4294934528 }
  0x13   :  { %4310 = dma.done.wait [#allocation12], 2048  }
  0x14   :  { %4311 = vsyncadd [#allocation12], 4294965248  ;;  %v162_v0 = vld [vmem:[#allocation8 + $0x1e0] sm:$0xff]  ;;  %v164_v1 = vld [vmem:[#allocation8 + $0x1f0] sm:$0xff]  ;;  %s3761_s30 = sshll.u32 %s6769_s7, 4  ;;  %s3762_s30 = int_to_ptr.hbm [resolvable:$true] %s3761_s30 }
  0x15   :  { %v165_v2 = vld [vmem:[#allocation8 + $0x1f8] sm:$0xff]  ;;  %3837 = vmatpush.msra.mxu1 %v162_v0  ;;  %258 = vmatpush.msra.mxu2 %v164_v1  ;;  %v158_v3 = vld [vmem:[#allocation8 + $0x1c0] sm:$0xff]  ;;  %v160_v4 = vld [vmem:[#allocation8 + $0x1d0] sm:$0xff] }
  0x16   :  { %v161_v5 = vld [vmem:[#allocation8 + $0x1d8] sm:$0xff]  ;;  %299 = vmatpush.msra.mxu3 %v165_v2  ;;  %v154_v6 = vld [vmem:[#allocation8 + $0x1a0] sm:$0xff]  ;;  %v156_v7 = vld [vmem:[#allocation8 + $0x1b0] sm:$0xff]  ;;  %176 = vmatpush.msra.mxu0 %v162_v0 }
  0x17   :  { %3838 = vmatpush.msra.mxu1 %v158_v3  ;;  %259 = vmatpush.msra.mxu2 %v160_v4  ;;  %v157_v8 = vld [vmem:[#allocation8 + $0x1b8] sm:$0xff]  ;;  %v150_v9 = vld [vmem:[#allocation8 + $0x180] sm:$0xff]  ;;  %v152_v10 = vld [vmem:[#allocation8 + $0x190] sm:$0xff] }
  0x18   :  { %300 = vmatpush.msra.mxu3 %v161_v5  ;;  %177 = vmatpush.msra.mxu0 %v158_v3  ;;  %v153_v11 = vld [vmem:[#allocation8 + $0x198] sm:$0xff]  ;;  %v146_v12 = vld [vmem:[#allocation8 + $0x160] sm:$0xff]  ;;  %v148_v13 = vld [vmem:[#allocation8 + $0x170] sm:$0xff] }
  0x19   :  { %3839 = vmatpush.msra.mxu1 %v154_v6  ;;  %260 = vmatpush.msra.mxu2 %v156_v7  ;;  %v149_v14 = vld [vmem:[#allocation8 + $0x178] sm:$0xff]  ;;  %v142_v15 = vld [vmem:[#allocation8 + $0x140] sm:$0xff]  ;;  %v144_v16 = vld [vmem:[#allocation8 + $0x150] sm:$0xff] }
  0x1a   :  { %301 = vmatpush.msra.mxu3 %v157_v8  ;;  %178 = vmatpush.msra.mxu0 %v154_v6  ;;  %v145_v17 = vld [vmem:[#allocation8 + $0x158] sm:$0xff]  ;;  %v138_v18 = vld [vmem:[#allocation8 + $0x120] sm:$0xff]  ;;  %v140_v19 = vld [vmem:[#allocation8 + $0x130] sm:$0xff] }
  0x1b   :  { %3840 = vmatpush.msra.mxu1 %v150_v9  ;;  %261 = vmatpush.msra.mxu2 %v152_v10  ;;  %v141_v20 = vld [vmem:[#allocation8 + $0x138] sm:$0xff]  ;;  %v134_v21 = vld [vmem:[#allocation8 + $0x100] sm:$0xff]  ;;  %v136_v22 = vld [vmem:[#allocation8 + $0x110] sm:$0xff] }
  0x1c   :  { %302 = vmatpush.msra.mxu3 %v153_v11  ;;  %179 = vmatpush.msra.mxu0 %v150_v9  ;;  %v137_v23 = vld [vmem:[#allocation8 + $0x118] sm:$0xff]  ;;  %v130_v24 = vld [vmem:[#allocation8 + $0xe0] sm:$0xff]  ;;  %v132_v25 = vld [vmem:[#allocation8 + $0xf0] sm:$0xff] }
  0x1d   :  { %3841 = vmatpush.msra.mxu1 %v146_v12  ;;  %262 = vmatpush.msra.mxu2 %v148_v13  ;;  %v133_v26 = vld [vmem:[#allocation8 + $0xf8] sm:$0xff]  ;;  %v126_v27 = vld [vmem:[#allocation8 + $0xc0] sm:$0xff]  ;;  %v128_v28 = vld [vmem:[#allocation8 + $0xd0] sm:$0xff] }
  0x1e   :  { %303 = vmatpush.msra.mxu3 %v149_v14  ;;  %180 = vmatpush.msra.mxu0 %v146_v12  ;;  %v129_v29 = vld [vmem:[#allocation8 + $0xd8] sm:$0xff]  ;;  %v122_v30 = vld [vmem:[#allocation8 + $0xa0] sm:$0xff]  ;;  %v124_v31 = vld [vmem:[#allocation8 + $0xb0] sm:$0xff] }
  0x1f   :  { %3842 = vmatpush.msra.mxu1 %v142_v15  ;;  %263 = vmatpush.msra.mxu2 %v144_v16  ;;  %v125_v32 = vld [vmem:[#allocation8 + $0xb8] sm:$0xff]  ;;  %v118_v33 = vld [vmem:[#allocation8 + $0x80] sm:$0xff]  ;;  %v120_v34 = vld [vmem:[#allocation8 + $0x90] sm:$0xff] }
  0x20   :  { %304 = vmatpush.msra.mxu3 %v145_v17  ;;  %181 = vmatpush.msra.mxu0 %v142_v15  ;;  %v121_v35 = vld [vmem:[#allocation8 + $0x98] sm:$0xff]  ;;  %v114_v36 = vld [vmem:[#allocation8 + $0x60] sm:$0xff]  ;;  %v116_v37 = vld [vmem:[#allocation8 + $0x70] sm:$0xff] }
  0x21   :  { %3843 = vmatpush.msra.mxu1 %v138_v18  ;;  %264 = vmatpush.msra.mxu2 %v140_v19  ;;  %v117_v38 = vld [vmem:[#allocation8 + $0x78] sm:$0xff]  ;;  %v110_v39 = vld [vmem:[#allocation8 + $0x40] sm:$0xff]  ;;  %v112_v40 = vld [vmem:[#allocation8 + $0x50] sm:$0xff] }
  0x22   :  { %305 = vmatpush.msra.mxu3 %v141_v20  ;;  %182 = vmatpush.msra.mxu0 %v138_v18  ;;  %v113_v41 = vld [vmem:[#allocation8 + $0x58] sm:$0xff]  ;;  %v106_v42 = vld [vmem:[#allocation8 + $0x20] sm:$0xff]  ;;  %v108_v43 = vld [vmem:[#allocation8 + $0x30] sm:$0xff] }
  0x23   :  { %3844 = vmatpush.msra.mxu1 %v134_v21  ;;  %265 = vmatpush.msra.mxu2 %v136_v22  ;;  %v109_v44 = vld [vmem:[#allocation8 + $0x38] sm:$0xff]  ;;  %v102_v45 = vld [vmem:[#allocation8] sm:$0xff]  ;;  %v104_v46 = vld [vmem:[#allocation8 + $0x10] sm:$0xff] }
  0x24   :  { %306 = vmatpush.msra.mxu3 %v137_v23  ;;  %183 = vmatpush.msra.mxu0 %v134_v21  ;;  %v105_v47 = vld [vmem:[#allocation8 + $0x18] sm:$0xff]  ;;  %v4383_v48 = vld [vmem:[#allocation5 + $0x20] sm:$0xff]  ;;  %v163_v49 = vld [vmem:[#allocation8 + $0x1e8] sm:$0xff] }
  0x25   :  { %3845 = vmatpush.msra.mxu1 %v130_v24  ;;  %266 = vmatpush.msra.mxu2 %v132_v25  ;;  %v4385_v50 = vld [vmem:[#allocation5] sm:$0xff]  ;;  %v159_v51 = vld [vmem:[#allocation8 + $0x1c8] sm:$0xff]  ;;  %v4392_v54 = vld [vmem:[#allocation10 + $0x1f0] sm:$0xff] }
  0x26   :  { %307 = vmatpush.msra.mxu3 %v133_v26  ;;  %184 = vmatpush.msra.mxu0 %v130_v24  ;;  %v4389_v52 = vld [vmem:[#allocation10 + $0x1e0] sm:$0xff]  ;;  %v155_v53 = vld [vmem:[#allocation8 + $0x1a8] sm:$0xff]  ;;  %v4394_v55 = vld [vmem:[#allocation10 + $0x1f8] sm:$0xff] }
  0x27   :  { %3846 = vmatpush.msra.mxu1 %v126_v27  ;;  %267 = vmatpush.msra.mxu2 %v128_v28  ;;  %v4397_v56 = vld [vmem:[#allocation10 + $0x1c0] sm:$0xff]  ;;  %v4399_v57 = vld [vmem:[#allocation10 + $0x1d0] sm:$0xff]  ;;  %v151_v58 = vld [vmem:[#allocation8 + $0x188] sm:$0xff] }
  0x28   :  { %308 = vmatpush.msra.mxu3 %v129_v29  ;;  %185 = vmatpush.msra.mxu0 %v126_v27  ;;  %v4403_v59 = vld [vmem:[#allocation10 + $0x1d8] sm:$0xff]  ;;  %v4405_v60 = vld [vmem:[#allocation5 + $0x28] sm:$0xff]  ;;  %v4407_v61 = vld [vmem:[#allocation10 + $0x1a0] sm:$0xff] }
  0x29   :  { %3847 = vmatpush.msra.mxu1 %v122_v30  ;;  %268 = vmatpush.msra.mxu2 %v124_v31  ;;  %v147_v62 = vld [vmem:[#allocation8 + $0x168] sm:$0xff]  ;;  %v4414_v0 = vld [vmem:[#allocation10 + $0x180] sm:$0xff]  ;;  %v4422_v3 = vld [vmem:[#allocation10 + $0x1b0] sm:$0xff] }
  0x2a   :  { %309 = vmatpush.msra.mxu3 %v125_v32  ;;  %186 = vmatpush.msra.mxu0 %v122_v30  ;;  %v4410_v63 = vld [vmem:[#allocation5 + $0x8] sm:$0xff]  ;;  %v4420_v2 = vld [vmem:[#allocation10 + $0x160] sm:$0xff]  ;;  %v4426_v5 = vld [vmem:[#allocation10 + $0x1b8] sm:$0xff] }
  0x2b   :  { %3848 = vmatpush.msra.mxu1 %v118_v33  ;;  %269 = vmatpush.msra.mxu2 %v120_v34  ;;  %v143_v1 = vld [vmem:[#allocation8 + $0x148] sm:$0xff]  ;;  %v4429_v6 = vld [vmem:[#allocation10 + $0x140] sm:$0xff]  ;;  %v4431_v7 = vld [vmem:[#allocation10 + $0x190] sm:$0xff] }
  0x2c   :  { %310 = vmatpush.msra.mxu3 %v121_v35  ;;  %187 = vmatpush.msra.mxu0 %v118_v33  ;;  %v139_v4 = vld [vmem:[#allocation8 + $0x128] sm:$0xff]  ;;  %v4435_v9 = vld [vmem:[#allocation10 + $0x198] sm:$0xff]  ;;  %v4437_v10 = vld [vmem:[#allocation5 + $0x30] sm:$0xff] }
  0x2d   :  { %3849 = vmatpush.msra.mxu1 %v114_v36  ;;  %270 = vmatpush.msra.mxu2 %v116_v37  ;;  %v135_v8 = vld [vmem:[#allocation8 + $0x108] sm:$0xff]  ;;  %v4439_v11 = vld [vmem:[#allocation10 + $0x120] sm:$0xff]  ;;  %v4442_v13 = vld [vmem:[#allocation5 + $0x10] sm:$0xff] }
  0x2e   :  { %311 = vmatpush.msra.mxu3 %v117_v38  ;;  %188 = vmatpush.msra.mxu0 %v114_v36  ;;  %v131_v12 = vld [vmem:[#allocation8 + $0xe8] sm:$0xff]  ;;  %v4446_v14 = vld [vmem:[#allocation10 + $0x100] sm:$0xff]  ;;  %v4454_v17 = vld [vmem:[#allocation10 + $0x170] sm:$0xff] }
  0x2f   :  { %3850 = vmatpush.msra.mxu1 %v110_v39  ;;  %271 = vmatpush.msra.mxu2 %v112_v40  ;;  %v127_v15 = vld [vmem:[#allocation8 + $0xc8] sm:$0xff]  ;;  %v4452_v16 = vld [vmem:[#allocation10 + $0xe0] sm:$0xff]  ;;  %v4458_v19 = vld [vmem:[#allocation10 + $0x178] sm:$0xff] }
  0x30   :  { %312 = vmatpush.msra.mxu3 %v113_v41  ;;  %189 = vmatpush.msra.mxu0 %v110_v39  ;;  %v123_v18 = vld [vmem:[#allocation8 + $0xa8] sm:$0xff]  ;;  %v4461_v20 = vld [vmem:[#allocation10 + $0xc0] sm:$0xff]  ;;  %v4463_v21 = vld [vmem:[#allocation10 + $0x150] sm:$0xff] }
  0x31   :  { %3851 = vmatpush.msra.mxu1 %v106_v42  ;;  %272 = vmatpush.msra.mxu2 %v108_v43  ;;  %v119_v22 = vld [vmem:[#allocation8 + $0x88] sm:$0xff]  ;;  %v4467_v23 = vld [vmem:[#allocation10 + $0x158] sm:$0xff]  ;;  %v4471_v25 = vld [vmem:[#allocation10 + $0xa0] sm:$0xff] }
  0x32   :  { %313 = vmatpush.msra.mxu3 %v109_v44  ;;  %190 = vmatpush.msra.mxu0 %v106_v42  ;;  %v4469_v24 = vld [vmem:[#allocation5 + $0x38] sm:$0xff]  ;;  %v115_v26 = vld [vmem:[#allocation8 + $0x68] sm:$0xff]  ;;  %v4478_v28 = vld [vmem:[#allocation10 + $0x80] sm:$0xff] }
  0x33   :  { %3852 = vmatpush.msra.mxu1 %v102_v45  ;;  %273 = vmatpush.msra.mxu2 %v104_v46  ;;  %v4474_v27 = vld [vmem:[#allocation5 + $0x18] sm:$0xff]  ;;  %v111_v29 = vld [vmem:[#allocation8 + $0x48] sm:$0xff]  ;;  %v4484_v30 = vld [vmem:[#allocation10 + $0x60] sm:$0xff] }
  0x34   :  { %314 = vmatpush.msra.mxu3 %v105_v47  ;;  %204 = vmatmul.f32.vlgmr.msra.gmra.mxu1 %v4383_v48  ;;  %v4486_v31 = vld [vmem:[#allocation10 + $0x130] sm:$0xff]  ;;  %v107_v32 = vld [vmem:[#allocation8 + $0x28] sm:$0xff]  ;;  %v4490_v33 = vld [vmem:[#allocation10 + $0x138] sm:$0xff] }
  0x35   :  { %217 = vmatpush.msrb.mxu1 %v163_v49  ;;  %274 = vmatmul.f32.vlgmr.msra.gmra.mxu2 %v4385_v50  ;;  %v4493_v34 = vld [vmem:[#allocation10 + $0x40] sm:$0xff]  ;;  %v4495_v35 = vld [vmem:[#allocation10 + $0x110] sm:$0xff]  ;;  %v103_v36 = vld [vmem:[#allocation8 + $0x8] sm:$0xff] }
  0x36   :  { %315 = vmatmul.f32.vlgmr.msra.gmra.mxu3 %v4385_v50  ;;  %191 = vmatpush.msra.mxu0 %v102_v45  ;;  %v4499_v37 = vld [vmem:[#allocation10 + $0x118] sm:$0xff]  ;;  %v4502_v38 = vld [vmem:[#allocation10 + $0x20] sm:$0xff]  ;;  %v4504_v39 = vld [vmem:[#allocation10 + $0x1e8] sm:$0xff]  ;;  %v6770_v45 = vmov 0.0  }
  0x37   :  { %218 = vmatpush.msrb.mxu1 %v159_v51  ;;  %192 = vmatmul.f32.vlgmr.msra.gmra.mxu0 %v4385_v50  ;;  %v4509_v40 = vld [vmem:[#allocation10] sm:$0xff]  ;;  %v4512_v41 = vld [vmem:[#allocation10 + $0x1c8] sm:$0xff]  ;;  %v4517_v42 = vld [vmem:[#allocation10 + $0xf0] sm:$0xff] }
  0x38   :  { %440 = vmatpush.msrb.mxu0 %v4389_v52  ;;  %480 = vmatpush.msrb.mxu2 %v4392_v54  ;;  %v4519_v43 = vld [vmem:[#allocation10 + $0xf8] sm:$0xff]  ;;  %v4522_v44 = vld [vmem:[#allocation10 + $0x1a8] sm:$0xff]  ;;  %v4527_v46 = vld [vmem:[#allocation10 + $0xd0] sm:$0xff] }
  0x39   :  { %219 = vmatpush.msrb.mxu1 %v155_v53  ;;  %500 = vmatpush.msrb.mxu3 %v4394_v55  ;;  %v4529_v47 = vld [vmem:[#allocation10 + $0xd8] sm:$0xff]  ;;  %v4531_v49 = vld [vmem:[#allocation10 + $0x188] sm:$0xff]  ;;  %v4544_v53 = vld [vmem:[#allocation10 + $0x90] sm:$0xff] }
  0x3a   :  { %441 = vmatpush.msrb.mxu0 %v4397_v56  ;;  %481 = vmatpush.msrb.mxu2 %v4399_v57  ;;  %v4539_v51 = vld [vmem:[#allocation10 + $0x168] sm:$0xff] }
  0x3b   :  { %220 = vmatpush.msrb.mxu1 %v151_v58  ;;  %501 = vmatpush.msrb.mxu3 %v4403_v59  ;;  %v4548_v58 = vld [vmem:[#allocation10 + $0x148] sm:$0xff] }
  0x3c   :  { %207 = vmatmul.f32.gmra.mxu1 %v4405_v60  ;;  %442 = vmatpush.msrb.mxu0 %v4407_v61 }
  0x3d   :  { %221 = vmatpush.msrb.mxu1 %v147_v62  ;;  %277 = vmatmul.f32.gmra.mxu2 %v4410_v63  ;;  %v4551_v62 = vld [vmem:[#allocation10 + $0xb8] sm:$0xff] }
  0x3e   :  { %318 = vmatmul.f32.gmra.mxu3 %v4410_v63  ;;  %443 = vmatpush.msrb.mxu0 %v4414_v0 }
  0x3f   :  { %222 = vmatpush.msrb.mxu1 %v143_v1  ;;  %195 = vmatmul.f32.gmra.mxu0 %v4410_v63  ;;  %v4559_v1 = vld [vmem:[#allocation10 + $0x98] sm:$0xff] }
  0x40   :  { %444 = vmatpush.msrb.mxu0 %v4420_v2  ;;  %482 = vmatpush.msrb.mxu2 %v4422_v3 }
  0x41   :  { %223 = vmatpush.msrb.mxu1 %v139_v4  ;;  %502 = vmatpush.msrb.mxu3 %v4426_v5  ;;  %v4568_v4 = vld [vmem:[#allocation10 + $0x78] sm:$0xff] }
  0x42   :  { %445 = vmatpush.msrb.mxu0 %v4429_v6  ;;  %483 = vmatpush.msrb.mxu2 %v4431_v7 }
  0x43   :  { %224 = vmatpush.msrb.mxu1 %v135_v8  ;;  %503 = vmatpush.msrb.mxu3 %v4435_v9  ;;  %v4570_v8 = vld [vmem:[#allocation10 + $0x108] sm:$0xff] }
  0x44   :  { %210 = vmatmul.f32.gmra.mxu1 %v4437_v10  ;;  %446 = vmatpush.msrb.mxu0 %v4439_v11 }
  0x45   :  { %225 = vmatpush.msrb.mxu1 %v131_v12  ;;  %280 = vmatmul.f32.gmra.mxu2 %v4442_v13  ;;  %v4575_v12 = vld [vmem:[#allocation10 + $0x30] sm:$0xff] }
  0x46   :  { %321 = vmatmul.f32.gmra.mxu3 %v4442_v13  ;;  %447 = vmatpush.msrb.mxu0 %v4446_v14 }
  0x47   :  { %226 = vmatpush.msrb.mxu1 %v127_v15  ;;  %198 = vmatmul.f32.gmra.mxu0 %v4442_v13  ;;  %v4578_v15 = vld [vmem:[#allocation10 + $0x58] sm:$0xff] }
  0x48   :  { %448 = vmatpush.msrb.mxu0 %v4452_v16  ;;  %484 = vmatpush.msrb.mxu2 %v4454_v17 }
  0x49   :  { %227 = vmatpush.msrb.mxu1 %v123_v18  ;;  %504 = vmatpush.msrb.mxu3 %v4458_v19  ;;  %v4583_v18 = vld [vmem:[#allocation10 + $0x10] sm:$0xff] }
  0x4a   :  { %449 = vmatpush.msrb.mxu0 %v4461_v20  ;;  %485 = vmatpush.msrb.mxu2 %v4463_v21 }
  0x4b   :  { %228 = vmatpush.msrb.mxu1 %v119_v22  ;;  %505 = vmatpush.msrb.mxu3 %v4467_v23  ;;  %v4589_v22 = vld [vmem:[#allocation10 + $0xe8] sm:$0xff] }
  0x4c   :  { %213 = vmatmul.f32.gmra.mxu1 %v4469_v24  ;;  %450 = vmatpush.msrb.mxu0 %v4471_v25 }
  0x4d   :  { %229 = vmatpush.msrb.mxu1 %v115_v26  ;;  %283 = vmatmul.f32.gmra.mxu2 %v4474_v27  ;;  %v4597_v26 = vld [vmem:[#allocation10 + $0xc8] sm:$0xff] }
  0x4e   :  { %324 = vmatmul.f32.gmra.mxu3 %v4474_v27  ;;  %451 = vmatpush.msrb.mxu0 %v4478_v28 }
  0x4f   :  { %230 = vmatpush.msrb.mxu1 %v111_v29  ;;  %201 = vmatmul.f32.gmra.mxu0 %v4474_v27  ;;  %v4607_v29 = vld [vmem:[#allocation10 + $0x88] sm:$0xff] }
  0x50   :  { %452 = vmatpush.msrb.mxu0 %v4484_v30  ;;  %486 = vmatpush.msrb.mxu2 %v4486_v31 }
  0x51   :  { %231 = vmatpush.msrb.mxu1 %v107_v32  ;;  %506 = vmatpush.msrb.mxu3 %v4490_v33  ;;  %v4614_v32 = vld [vmem:[#allocation10 + $0x68] sm:$0xff] }
  0x52   :  { %453 = vmatpush.msrb.mxu0 %v4493_v34  ;;  %487 = vmatpush.msrb.mxu2 %v4495_v35 }
  0x53   :  { %232 = vmatpush.msrb.mxu1 %v103_v36  ;;  %507 = vmatpush.msrb.mxu3 %v4499_v37 }
  0x54   :  { %233 = vmatmul.f32.vlgmr.msrb.gmra.mxu1 %v4385_v50  ;;  %454 = vmatpush.msrb.mxu0 %v4502_v38  ;;  %v4536_v50 = vld [vmem:[#allocation10 + $0xb0] sm:$0xff] }
  0x55   :  { %286 = vmatmul.f32.gmra.mxu2 %v4383_v48  ;;  %460 = vmatpush.msra.mxu1 %v4504_v39 }
  0x56   :  { %327 = vmatmul.f32.gmra.mxu3 %v4383_v48  ;;  %455 = vmatpush.msrb.mxu0 %v4509_v40 }
  0x57   :  { %461 = vmatpush.msra.mxu1 %v4512_v41  ;;  %456 = vmatmul.f32.vlgmr.msrb.gmra.mxu0 %v6770_v45 }
  0x58   :  { %488 = vmatpush.msrb.mxu2 %v4517_v42  ;;  %508 = vmatpush.msrb.mxu3 %v4519_v43 }
  0x59   :  { %462 = vmatpush.msra.mxu1 %v4522_v44  ;;  %660 = vmatpush.msra.mxu0 %v4389_v52  ;;  %v4555_v52 = vld [vmem:[#allocation10 + $0x70] sm:$0xff] }
  0x5a   :  { %489 = vmatpush.msrb.mxu2 %v4527_v46  ;;  %509 = vmatpush.msrb.mxu3 %v4529_v47 }
  0x5b   :  { %463 = vmatpush.msra.mxu1 %v4531_v49  ;;  %661 = vmatpush.msra.mxu0 %v4397_v56  ;;  %v4561_v56 = vld [vmem:[#allocation10 + $0x128] sm:$0xff] }
  0x5c   :  { %236 = vmatmul.f32.gmra.mxu1 %v4410_v63  ;;  %490 = vmatpush.msrb.mxu2 %v4536_v50  ;;  %v4565_v63 = vld [vmem:[#allocation10 + $0x50] sm:$0xff] }
  0x5d   :  { %289 = vmatmul.f32.gmra.mxu2 %v4405_v60  ;;  %464 = vmatpush.msra.mxu1 %v4539_v51 }
  0x5e   :  { %330 = vmatmul.f32.gmra.mxu3 %v4405_v60  ;;  %491 = vmatpush.msrb.mxu2 %v4544_v53 }
  0x5f   :  { %465 = vmatpush.msra.mxu1 %v4548_v58  ;;  %510 = vmatpush.msrb.mxu3 %v4551_v62 }
  0x60   :  { %492 = vmatpush.msrb.mxu2 %v4555_v52  ;;  %662 = vmatpush.msra.mxu0 %v4407_v61  ;;  %v4587_v61 = vld [vmem:[#allocation10 + $0x38] sm:$0xff] }
  0x61   :  { %511 = vmatpush.msrb.mxu3 %v4559_v1  ;;  %466 = vmatpush.msra.mxu1 %v4561_v56 }
  0x62   :  { %493 = vmatpush.msrb.mxu2 %v4565_v63  ;;  %663 = vmatpush.msra.mxu0 %v4414_v0  ;;  %v4595_v0 = vld [vmem:[#allocation10 + $0x18] sm:$0xff] }
  0x63   :  { %512 = vmatpush.msrb.mxu3 %v4568_v4  ;;  %467 = vmatpush.msra.mxu1 %v4570_v8 }
  0x64   :  { %239 = vmatmul.f32.gmra.mxu1 %v4442_v13  ;;  %494 = vmatpush.msrb.mxu2 %v4575_v12  ;;  %v4601_v13 = vld [vmem:[#allocation10 + $0xa8] sm:$0xff] }
  0x65   :  { %292 = vmatmul.f32.gmra.mxu2 %v4437_v10  ;;  %513 = vmatpush.msrb.mxu3 %v4578_v15 }
  0x66   :  { %333 = vmatmul.f32.gmra.mxu3 %v4437_v10  ;;  %495 = vmatpush.msrb.mxu2 %v4583_v18 }
  0x67   :  { %514 = vmatpush.msrb.mxu3 %v4587_v61  ;;  %468 = vmatpush.msra.mxu1 %v4589_v22 }
  0x68   :  { %700 = vmatpush.msra.mxu2 %v4392_v54  ;;  %664 = vmatpush.msra.mxu0 %v4420_v2  ;;  %v4620_v2 = vld [vmem:[#allocation10 + $0x48] sm:$0xff] }
  0x69   :  { %515 = vmatpush.msrb.mxu3 %v4595_v0  ;;  %469 = vmatpush.msra.mxu1 %v4597_v26 }
  0x6a   :  { %701 = vmatpush.msra.mxu2 %v4399_v57  ;;  %665 = vmatpush.msra.mxu0 %v4429_v6  ;;  %v4625_v6 = vld [vmem:[#allocation10 + $0x28] sm:$0xff] }
  0x6b   :  { %720 = vmatpush.msra.mxu3 %v4394_v55  ;;  %470 = vmatpush.msra.mxu1 %v4601_v13 }
  0x6c   :  { %242 = vmatmul.f32.gmra.mxu1 %v4474_v27  ;;  %702 = vmatpush.msra.mxu2 %v4422_v3  ;;  %v4631_v27 = vld [vmem:[#allocation10 + $0x8] sm:$0xff] }
  0x6d   :  { %721 = vmatpush.msra.mxu3 %v4403_v59  ;;  %295 = vmatmul.f32.gmra.mxu2 %v4469_v24 }
  0x6e   :  { %471 = vmatpush.msra.mxu1 %v4607_v29  ;;  %336 = vmatmul.f32.gmra.mxu3 %v4469_v24 }
  0x6f   :  { %722 = vmatpush.msra.mxu3 %v4426_v5  ;;  %703 = vmatpush.msra.mxu2 %v4431_v7 }
  0x70   :  { %472 = vmatpush.msra.mxu1 %v4614_v32  ;;  %666 = vmatpush.msra.mxu0 %v4439_v11 }
  0x71   :  { %723 = vmatpush.msra.mxu3 %v4435_v9  ;;  %704 = vmatpush.msra.mxu2 %v4454_v17 }
  0x72   :  { %473 = vmatpush.msra.mxu1 %v4620_v2  ;;  %667 = vmatpush.msra.mxu0 %v4446_v14 }
  0x73   :  { %724 = vmatpush.msra.mxu3 %v4458_v19  ;;  %705 = vmatpush.msra.mxu2 %v4463_v21 }
  0x74   :  { %474 = vmatpush.msra.mxu1 %v4625_v6  ;;  %668 = vmatpush.msra.mxu0 %v4452_v16 }
  0x75   :  { %245 = vmatmul.f32.gmra.mxu1 %v4383_v48  ;;  %496 = vmatmul.f32.vlgmr.msrb.gmra.mxu2 %v6770_v45  ;;  %v4323_v48 = vmov 0  }
  0x76   :  { %475 = vmatpush.msra.mxu1 %v4631_v27  ;;  %516 = vmatmul.f32.vlgmr.msrb.gmra.mxu3 %v6770_v45 }
  0x77   :  { %725 = vmatpush.msra.mxu3 %v4467_v23  ;;  %706 = vmatpush.msra.mxu2 %v4486_v31 }
  0x78   :  { %680 = vmatpush.msrb.mxu1 %v4504_v39  ;;  %669 = vmatpush.msra.mxu0 %v4461_v20 }
  0x79   :  { %726 = vmatpush.msra.mxu3 %v4490_v33  ;;  %707 = vmatpush.msra.mxu2 %v4495_v35 }
  0x7a   :  { %681 = vmatpush.msrb.mxu1 %v4512_v41  ;;  %670 = vmatpush.msra.mxu0 %v4471_v25 }
  0x7b   :  { %727 = vmatpush.msra.mxu3 %v4499_v37  ;;  %708 = vmatpush.msra.mxu2 %v4517_v42 }
  0x7c   :  { %682 = vmatpush.msrb.mxu1 %v4522_v44  ;;  %671 = vmatpush.msra.mxu0 %v4478_v28 }
  0x7d   :  { %248 = vmatmul.f32.gmra.mxu1 %v4405_v60  ;;  %728 = vmatpush.msra.mxu3 %v4519_v43 }
  0x7e   :  { %683 = vmatpush.msrb.mxu1 %v4531_v49  ;;  %709 = vmatpush.msra.mxu2 %v4527_v46 }
  0x7f   :  { %729 = vmatpush.msra.mxu3 %v4529_v47  ;;  %672 = vmatpush.msra.mxu0 %v4484_v30 }
  0x80   :  { %684 = vmatpush.msrb.mxu1 %v4539_v51  ;;  %710 = vmatpush.msra.mxu2 %v4536_v50 }
  0x81   :  { %730 = vmatpush.msra.mxu3 %v4551_v62  ;;  %673 = vmatpush.msra.mxu0 %v4493_v34  ;;  %v166_v34 = vld [vmem:[%s6766_s4] sm:$0xf] }
  0x82   :  { %685 = vmatpush.msrb.mxu1 %v4548_v58  ;;  %711 = vmatpush.msra.mxu2 %v4544_v53  ;;  %v4785_v36 = vperm.slane %v166_v34, 0 }
  0x83   :  { %731 = vmatpush.msra.mxu3 %v4559_v1  ;;  %674 = vmatpush.msra.mxu0 %v4502_v38 }
  0x84   :  { %686 = vmatpush.msrb.mxu1 %v4561_v56  ;;  %712 = vmatpush.msra.mxu2 %v4555_v52  ;;  %6947 = vst [vmem:[#allocation30_spill] sm:$0xff] %v4785_v36 }
  0x85   :  { %251 = vmatmul.f32.gmra.mxu1 %v4437_v10  ;;  %732 = vmatpush.msra.mxu3 %v4568_v4 }
  0x86   :  { %687 = vmatpush.msrb.mxu1 %v4570_v8  ;;  %713 = vmatpush.msra.mxu2 %v4565_v63 }
  0x87   :  { %733 = vmatpush.msra.mxu3 %v4578_v15  ;;  %675 = vmatpush.msra.mxu0 %v4509_v40 }
  0x88   :  { %688 = vmatpush.msrb.mxu1 %v4589_v22  ;;  %714 = vmatpush.msra.mxu2 %v4575_v12 }
  0x89   :  { %734 = vmatpush.msra.mxu3 %v4587_v61  ;;  %3864 = vset.pattern.permute.xlu0 %v4323_v48 }
  0x8a   :  { %689 = vmatpush.msrb.mxu1 %v4597_v26  ;;  %715 = vmatpush.msra.mxu2 %v4583_v18 }
  0x8b   :  { %735 = vmatpush.msra.mxu3 %v4595_v0 }
  0x8c   :  { %690 = vmatpush.msrb.mxu1 %v4601_v13  ;;  %921 = vmatpush.msrb.mxu2 %v4392_v54  ;;  %v90_v54 = vld [vmem:[%s6762_s0] sm:$0xff] }
  0x8d   :  { %254 = vmatmul.f32.gmra.mxu1 %v4469_v24  ;;  %941 = vmatpush.msrb.mxu3 %v4394_v55 }
  0x8e   :  { %691 = vmatpush.msrb.mxu1 %v4607_v29  ;;  %922 = vmatpush.msrb.mxu2 %v4399_v57 }
  0x8f   :  { %942 = vmatpush.msrb.mxu3 %v4403_v59  ;;  %92 = vperm.xlu0 %3864, %v90_v54  }
  0x90   :  { %692 = vmatpush.msrb.mxu1 %v4614_v32  ;;  %923 = vmatpush.msrb.mxu2 %v4422_v3 }
  0x91   :  { %943 = vmatpush.msrb.mxu3 %v4426_v5 }
  0x92   :  { %693 = vmatpush.msrb.mxu1 %v4620_v2  ;;  %924 = vmatpush.msrb.mxu2 %v4431_v7 }
  0x93   :  { %944 = vmatpush.msrb.mxu3 %v4435_v9 }
  0x94   :  { %694 = vmatpush.msrb.mxu1 %v4625_v6  ;;  %925 = vmatpush.msrb.mxu2 %v4454_v17 }
  0x95   :  { %476 = vmatmul.f32.vlgmr.msra.gmra.mxu1 %v6770_v45  ;;  %945 = vmatpush.msrb.mxu3 %v4458_v19 }
  0x96   :  { %695 = vmatpush.msrb.mxu1 %v4631_v27  ;;  %926 = vmatpush.msrb.mxu2 %v4463_v21 }
  0x97   :  { %946 = vmatpush.msrb.mxu3 %v4467_v23 }
  0x98   :  { %901 = vmatpush.msra.mxu1 %v4504_v39  ;;  %927 = vmatpush.msrb.mxu2 %v4486_v31 }
  0x99   :  { %947 = vmatpush.msrb.mxu3 %v4490_v33 }
  0x9a   :  { %902 = vmatpush.msra.mxu1 %v4512_v41  ;;  %928 = vmatpush.msrb.mxu2 %v4495_v35 }
  0x9b   :  { %948 = vmatpush.msrb.mxu3 %v4499_v37 }
  0x9c   :  { %903 = vmatpush.msra.mxu1 %v4522_v44  ;;  %929 = vmatpush.msrb.mxu2 %v4517_v42 }
  0x9d   :  { %949 = vmatpush.msrb.mxu3 %v4519_v43 }
  0x9e   :  { %904 = vmatpush.msra.mxu1 %v4531_v49  ;;  %930 = vmatpush.msrb.mxu2 %v4527_v46 }
  0x9f   :  { %950 = vmatpush.msrb.mxu3 %v4529_v47  ;;  %v4798_v47 = vperm.slane %v166_v34, 3 }
  0xa0   :  { %905 = vmatpush.msra.mxu1 %v4539_v51  ;;  %931 = vmatpush.msrb.mxu2 %v4536_v50 }
  0xa1   :  { %951 = vmatpush.msrb.mxu3 %v4551_v62  ;;  %6953 = vst [vmem:[#allocation36_spill] sm:$0xff] %v4798_v47  ;;  %v4803_v62 = vperm.slane %v166_v34, 1 }
  0xa2   :  { %906 = vmatpush.msra.mxu1 %v4548_v58  ;;  %932 = vmatpush.msrb.mxu2 %v4544_v53 }
  0xa3   :  { %952 = vmatpush.msrb.mxu3 %v4559_v1  ;;  %6955 = vst [vmem:[#allocation38_spill] sm:$0xff] %v4803_v62 }
  0xa4   :  { %907 = vmatpush.msra.mxu1 %v4561_v56  ;;  %933 = vmatpush.msrb.mxu2 %v4555_v52 }
  0xa5   :  { %953 = vmatpush.msrb.mxu3 %v4568_v4 }
  0xa6   :  { %908 = vmatpush.msra.mxu1 %v4570_v8  ;;  %934 = vmatpush.msrb.mxu2 %v4565_v63 }
  0xa7   :  { %954 = vmatpush.msrb.mxu3 %v4578_v15 }
  0xa8   :  { %909 = vmatpush.msra.mxu1 %v4589_v22  ;;  %935 = vmatpush.msrb.mxu2 %v4575_v12 }
  0xa9   :  { %955 = vmatpush.msrb.mxu3 %v4587_v61 }
  0xaa   :  { %910 = vmatpush.msra.mxu1 %v4597_v26  ;;  %936 = vmatpush.msrb.mxu2 %v4583_v18 }
  0xab   :  { %956 = vmatpush.msrb.mxu3 %v4595_v0 }
  0xac   :  { %911 = vmatpush.msra.mxu1 %v4601_v13  ;;  %v4810_v13 = vperm.slane %v166_v34, 2  ;;  %v4848_v34 = vld [vmem:[#allocation10 + $0x180] sm:$0xff] }
  0xae   :  { %912 = vmatpush.msra.mxu1 %v4607_v29  ;;  %6958 = vst [vmem:[#allocation41_spill] sm:$0xff] %v4810_v13 }
  0xb0   :  { %913 = vmatpush.msra.mxu1 %v4614_v32 }
  0xb1   :  { %v4740_v55 = vpop.f32.mrf.mxu1 }
  0xb2   :  { %914 = vmatpush.msra.mxu1 %v4620_v2  ;;  %6935 = vst [vmem:[#allocation18_spill] sm:$0xff] %v4740_v55  ;;  %v5099_v55 = vld [vmem:[#allocation10 + $0x18] sm:$0xff] }
  0xb4   :  { %915 = vmatpush.msra.mxu1 %v4625_v6  ;;  %v193_v10 = vpop.f32.mrf.mxu0 }
  0xb5   :  { %v194_v37 = vadd.f32 %v193_v10, %v4785_v36 }
  0xb6   :  { %916 = vmatpush.msra.mxu1 %v4631_v27 }
  0xb8   :  { %v275_v9 = vpop.f32.mrf.mxu2 }
  0xb9   :  { %v316_v57 = vpop.f32.mrf.mxu3  ;;  %v4744_v59 = vpop.f32.mrf.mxu1  ;;  %v276_v6 = vadd.f32 %v275_v9, %v4810_v13 }
  0xba   :  { %6936 = vst [vmem:[#allocation19_spill] sm:$0xff] %v4744_v59  ;;  %v317_v50 = vadd.f32 %v316_v57, %v4798_v47  ;;  %v5089_v59 = vld [vmem:[#allocation10 + $0x38] sm:$0xff] }
  0xbc   :  { %v4760_v19 = vpop.f32.mrf.mxu0 }
  0xc0   :  { %v4758_v17 = vpop.f32.mrf.mxu2 }
  0xc1   :  { %v4746_v60 = vpop.f32.mrf.mxu3  ;;  %v4748_v3 = vpop.f32.mrf.mxu1 }
  0xc2   :  { %6937 = vst [vmem:[#allocation20_spill] sm:$0xff] %v4748_v3 }
  0xc4   :  { %v4768_v24 = vpop.f32.mrf.mxu0 }
  0xc8   :  { %v4766_v23 = vpop.f32.mrf.mxu2 }
  0xc9   :  { %v4750_v5 = vpop.f32.mrf.mxu1  ;;  %v4752_v7 = vpop.f32.mrf.mxu3 }
  0xca   :  { %6938 = vst [vmem:[#allocation21_spill] sm:$0xff] %v4750_v5 }
  0xcc   :  { %v4776_v31 = vpop.f32.mrf.mxu0 }
  0xcd   :  { %6944 = vst [vmem:[#allocation27_spill] sm:$0xff] %v4776_v31 }
  0xd0   :  { %v4774_v30 = vpop.f32.mrf.mxu2 }
  0xd1   :  { %v234_v11 = vpop.f32.mrf.mxu1  ;;  %v4754_v14 = vpop.f32.mrf.mxu3  ;;  %6943 = vst [vmem:[#allocation26_spill] sm:$0xff] %v4774_v30 }
  0xd2   :  { %6939 = vst [vmem:[#allocation22_spill] sm:$0xff] %v4754_v14  ;;  %v235_v63 = vadd.f32 %v234_v11, %v4803_v62 }
  0xd4   :  { %v457_v39 = vpop.f32.mrf.mxu0 }
  0xd5   :  { %v520_v41 = vadd.f32 %v457_v39, %v194_v37 }
  0xd7   :  { %v3776_v43 = vmul.f32 -1.442695, %v520_v41 }
  0xd8   :  { %v4788_v38 = vpop.f32.mrf.mxu2 }
  0xd9   :  { %v4756_v16 = vpop.f32.mrf.mxu1  ;;  %v4762_v20 = vpop.f32.mrf.mxu3  ;;  %6948 = vst [vmem:[#allocation31_spill] sm:$0xff] %v4788_v38  ;;  %3866 = vpow2.f32 %v3776_v43 }
  0xda   :  { %6940 = vst [vmem:[#allocation23_spill] sm:$0xff] %v4762_v20 }
  0xdf   :  { %v3867_v51 = vpop.eup %3866 }
  0xe0   :  { %v4796_v46 = vpop.f32.mrf.mxu2  ;;  %v527_v52 = vadd.f32 1.0, %v3867_v51 }
  0xe1   :  { %v4764_v21 = vpop.f32.mrf.mxu1  ;;  %v4770_v25 = vpop.f32.mrf.mxu3  ;;  %6952 = vst [vmem:[#allocation35_spill] sm:$0xff] %v4796_v46  ;;  %v5080_v46 = vld [vmem:[#allocation10 + $0x58] sm:$0xff] }
  0xe2   :  { %6941 = vst [vmem:[#allocation24_spill] sm:$0xff] %v4770_v25  ;;  %3868 = vrcp.f32 %v527_v52  ;;  %vm533_vm0 = vweird.f32 %v527_v52  ;;  %v537_v10 = vand.u32 2147483647, %v527_v52  ;;  %v539_v11 = vand.u32 2147483648, %v527_v52 }
  0xe4   :  { %vm538_vm3 = vcmp.eq.f32.partialorder %v537_v10, 8.507059e+37 }
  0xe8   :  { %v4805_v1 = vpop.f32.mrf.mxu2  ;;  %v3869_v15 = vpop.eup %3868 }
  0xe9   :  { %v4772_v28 = vpop.f32.mrf.mxu1  ;;  %v4783_v35 = vpop.f32.mrf.mxu3  ;;  %6956 = vst [vmem:[#allocation39_spill] sm:$0xff] %v4805_v1  ;;  %v529_v22 = vmul.f32 %v3869_v15, %v527_v52  ;;  %vm534_vm1 = vweird.f32 %v3869_v15 }
  0xea   :  { %6942 = vst [vmem:[#allocation25_spill] sm:$0xff] %v4772_v28  ;;  %vm4813_vm2 = vmor %vm533_vm0, %vm534_vm1 }
  0xeb   :  { %6946 = vst [vmem:[#allocation29_spill] sm:$0xff] %v4783_v35  ;;  %v530_v32 = vsub.f32 1.0, %v529_v22  ;;  %v5069_v35 = vld [vmem:[#allocation10 + $0x70] sm:$0xff] }
  0xed   :  { %v531_v27 = vmul.f32 %v3869_v15, %v530_v32 }
  0xef   :  { %v532_v37 = vadd.f32 %v3869_v15, %v531_v27 }
  0xf0   :  { %v4808_v18 = vpop.f32.mrf.mxu2 }
  0xf1   :  { %v4792_v42 = vpop.f32.mrf.mxu3  ;;  %6957 = vst [vmem:[#allocation40_spill] sm:$0xff] %v4808_v18 }
  0xf2   :  { %v4778_v33 = vpop.f32.mrf.mxu1  ;;  %6950 = vst [vmem:[#allocation33_spill] sm:$0xff] %v4792_v42 }
  0xf3   :  { %6945 = vst [vmem:[#allocation28_spill] sm:$0xff] %v4778_v33  ;;  %v5097_v33 = vld [vmem:[#allocation10 + $0x10] sm:$0xff] }
  0xf8   :  { %v497_v2 = vpop.f32.mrf.mxu2 }
  0xf9   :  { %v517_v49 = vpop.f32.mrf.mxu3  ;;  %v522_v48 = vadd.f32 %v497_v2, %v276_v6 }
  0xfa   :  { %v4790_v40 = vpop.f32.mrf.mxu1  ;;  %v523_v53 = vadd.f32 %v517_v49, %v317_v50  ;;  %v540_v49 = vor.u32 1.1754944e-38, %v539_v11  ;;  %v536_v50 = vsel %vm4813_vm2, %v3869_v15, %v532_v37 }
  0xfb   :  { %6949 = vst [vmem:[#allocation32_spill] sm:$0xff] %v4790_v40 }
  0xfc   :  { %v3778_v56 = vmul.f32 -1.442695, %v523_v53 }
  0xfe   :  { %3870 = vpow2.f32 %v3778_v56 }
 0x101   :  { %v4822_v10 = vpop.permute.xlu0 %92 }
 0x102   :  { %v4794_v44 = vpop.f32.mrf.mxu1  ;;  %6961 = vst [vmem:[#allocation42_spill] sm:$0xff] %v4822_v10  ;;  %vm587_vm12 = vcmp.gt.s32.totalorder %v4822_v10, 0 }
 0x103   :  { %6951 = vst [vmem:[#allocation34_spill] sm:$0xff] %v4794_v44  ;;  %v5071_v44 = vld [vmem:[#allocation10 + $0x78] sm:$0xff] }
 0x104   :  { %v3871_v61 = vpop.eup %3870 }
 0x105   :  { %v566_v0 = vadd.f32 1.0, %v3871_v61 }
 0x107   :  { %v578_v15 = vand.u32 2147483648, %v566_v0  ;;  %vm572_vm9 = vweird.f32 %v566_v0  ;;  %v576_v27 = vand.u32 2147483647, %v566_v0 }
 0x109   :  { %vm577_vm11 = vcmp.eq.f32.partialorder %v576_v27, 8.507059e+37 }
 0x10a   :  { %v4801_v58 = vpop.f32.mrf.mxu1 }
 0x10b   :  { %6954 = vst [vmem:[#allocation37_spill] sm:$0xff] %v4801_v58 }
 0x112   :  { %v477_v4 = vpop.f32.mrf.mxu1 }
 0x113   :  { %v521_v8 = vadd.f32 %v477_v4, %v235_v63  ;;  %v541_v4 = vsel %vm538_vm3, %v540_v49, %v536_v50  ;;  %v4857_v49 = vld [vmem:[#allocation10 + $0x120] sm:$0xff]  ;;  %v197_v50 = vadd.f32 %v4760_v19, %v4785_v36  ;;  %v320_v19 = vadd.f32 %v4746_v60, %v4798_v47 }
 0x115   :  { %v3777_v12 = vmul.f32 -1.442695, %v521_v8 }
 0x117   :  { %3872 = vpow2.f32 %v3777_v12 }
 0x118   :  { %3874 = vrcp.f32 %v566_v0 }
 0x11d   :  { %v3873_v26 = vpop.eup %3872 }
 0x11e   :  { %v546_v29 = vadd.f32 1.0, %v3873_v26  ;;  %v3875_v54 = vpop.eup %3874 }
 0x11f   :  { %v568_v41 = vmul.f32 %v3875_v54, %v566_v0  ;;  %vm573_vm8 = vweird.f32 %v3875_v54  ;;  %v4839_v0 = vld [vmem:[#allocation10 + $0x1e0] sm:$0xff] }
 0x120   :  { %3876 = vrcp.f32 %v546_v29  ;;  %v558_v9 = vand.u32 2147483648, %v546_v29  ;;  %v556_v53 = vand.u32 2147483647, %v546_v29  ;;  %vm552_vm5 = vweird.f32 %v546_v29  ;;  %vm574_vm10 = vmor %vm572_vm9, %vm573_vm8  ;;  %881 = vmatpush.msrb.mxu0 %v4839_v0 }
 0x121   :  { %3878 = vtanh.f32 %v522_v48  ;;  %v569_v56 = vsub.f32 1.0, %v568_v41  ;;  %v579_v48 = vor.u32 1.1754944e-38, %v578_v15  ;;  %v4851_v41 = vld [vmem:[#allocation10 + $0x160] sm:$0xff] }
 0x122   :  { %v559_v8 = vor.u32 1.1754944e-38, %v558_v9  ;;  %vm557_vm7 = vcmp.eq.f32.partialorder %v556_v53, 8.507059e+37  ;;  %v4860_v9 = vld [vmem:[#allocation10 + $0x100] sm:$0xff] }
 0x123   :  { %v570_v61 = vmul.f32 %v3875_v54, %v569_v56  ;;  %v4867_v53 = vld [vmem:[#allocation10 + $0xe0] sm:$0xff] }
 0x124   :  { %v4884_v15 = vld [vmem:[#allocation10 + $0x40] sm:$0xff] }
 0x125   :  { %v571_v6 = vadd.f32 %v3875_v54, %v570_v61 }
 0x126   :  { %v3877_v57 = vpop.eup %3876 }
 0x127   :  { %v548_v39 = vmul.f32 %v3877_v57, %v546_v29  ;;  %vm553_vm4 = vweird.f32 %v3877_v57  ;;  %v3879_v63 = vpop.eup %3878  ;;  %v575_v29 = vsel %vm574_vm10, %v3875_v54, %v571_v6  ;;  %v4842_v54 = vld [vmem:[#allocation10 + $0x1c0] sm:$0xff] }
 0x128   :  { %vm554_vm6 = vmor %vm552_vm5, %vm553_vm4  ;;  %v583_v26 = vmul.f32 %v3879_v63, %v541_v4  ;;  %v580_v11 = vsel %vm577_vm11, %v579_v48, %v575_v29  ;;  %882 = vmatpush.msrb.mxu0 %v4842_v54  ;;  %v4887_v48 = vld [vmem:[#allocation10 + $0x20] sm:$0xff]  ;;  %vm807_vm5 = vcmp.gt.s32.totalorder %v4822_v10, 1 }
 0x129   :  { %v549_v43 = vsub.f32 1.0, %v548_v39  ;;  %v4845_v39 = vld [vmem:[#allocation10 + $0x1a0] sm:$0xff] }
 0x12a   :  { %883 = vmatpush.msrb.mxu0 %v4845_v39 }
 0x12b   :  { %v550_v51 = vmul.f32 %v3877_v57, %v549_v43  ;;  %v4854_v43 = vld [vmem:[#allocation10 + $0x140] sm:$0xff] }
 0x12c   :  { %884 = vmatpush.msrb.mxu0 %v4848_v34 }
 0x12d   :  { %v551_v52 = vadd.f32 %v3877_v57, %v550_v51  ;;  %v238_v51 = vadd.f32 %v4756_v16, %v4803_v62  ;;  %v4876_v16 = vld [vmem:[#allocation10 + $0x80] sm:$0xff] }
 0x12e   :  { %885 = vmatpush.msrb.mxu0 %v4851_v41 }
 0x12f   :  { %v555_v12 = vsel %vm554_vm6, %v3877_v57, %v551_v52 }
 0x130   :  { %v560_v22 = vsel %vm557_vm7, %v559_v8, %v555_v12  ;;  %886 = vmatpush.msrb.mxu0 %v4854_v43  ;;  %v4870_v8 = vld [vmem:[#allocation10 + $0xc0] sm:$0xff] }
 0x131   :  { %v582_v32 = vmul.f32 0.0, %v560_v22  ;;  %v4873_v22 = vld [vmem:[#allocation10 + $0xa0] sm:$0xff] }
 0x132   :  { %887 = vmatpush.msrb.mxu0 %v4857_v49 }
 0x133   :  { %v4819_v2 = vadd.f32 %v583_v26, %v582_v32  ;;  %v4881_v32 = vld [vmem:[#allocation10 + $0x60] sm:$0xff] }
 0x134   :  { %888 = vmatpush.msrb.mxu0 %v4860_v9 }
 0x135   :  { %3880 = vtanh.f32 %v4819_v2 }
 0x136   :  { %889 = vmatpush.msrb.mxu0 %v4867_v53 }
 0x138   :  { %890 = vmatpush.msrb.mxu0 %v4870_v8 }
 0x13a   :  { %891 = vmatpush.msrb.mxu0 %v4873_v22 }
 0x13b   :  { %v3881_v57 = vpop.eup %3880 }
 0x13c   :  { %v4824_v37 = vmul.f32 %v3881_v57, %v580_v11  ;;  %892 = vmatpush.msrb.mxu0 %v4876_v16  ;;  %v4889_v57 = vld [vmem:[#allocation10] sm:$0xff] }
 0x13e   :  { %6962 = vst [vmem:[#allocation43_spill] sm:$0xff] %v4824_v37  ;;  %3779 = vmatmul.msk.f32.vlgmr.msra.gmra.mxu0 %vm587_vm12, %v4824_v37  ;;  %3780 = vmatmul.msk.f32.vlgmr.msrb.gmra.mxu1 %vm587_vm12, %v4824_v37 }
 0x13f   :  { %3781 = vmatmul.msk.f32.vlgmr.msra.gmra.mxu2 %vm587_vm12, %v4824_v37  ;;  %3782 = vmatmul.msk.f32.vlgmr.msra.gmra.mxu3 %vm587_vm12, %v4824_v37 }
 0x140   :  { %893 = vmatpush.msrb.mxu0 %v4881_v32 }
 0x142   :  { %894 = vmatpush.msrb.mxu0 %v4884_v15 }
 0x144   :  { %895 = vmatpush.msrb.mxu0 %v4887_v48 }
 0x146   :  { %896 = vmatpush.msrb.mxu0 %v4889_v57 }
 0x148   :  { %1102 = vmatpush.msra.mxu0 %v4839_v0 }
 0x14a   :  { %1103 = vmatpush.msra.mxu0 %v4842_v54 }
 0x14c   :  { %1104 = vmatpush.msra.mxu0 %v4845_v39 }
 0x14e   :  { %1105 = vmatpush.msra.mxu0 %v4848_v34 }
 0x150   :  { %1106 = vmatpush.msra.mxu0 %v4851_v41 }
 0x152   :  { %1107 = vmatpush.msra.mxu0 %v4854_v43 }
 0x154   :  { %1108 = vmatpush.msra.mxu0 %v4857_v49 }
 0x156   :  { %1109 = vmatpush.msra.mxu0 %v4860_v9 }
 0x158   :  { %1110 = vmatpush.msra.mxu0 %v4867_v53 }
 0x15a   :  { %1111 = vmatpush.msra.mxu0 %v4870_v8 }
 0x15c   :  { %1112 = vmatpush.msra.mxu0 %v4873_v22 }
 0x15e   :  { %1113 = vmatpush.msra.mxu0 %v4876_v16 }
 0x160   :  { %1114 = vmatpush.msra.mxu0 %v4881_v32 }
 0x162   :  { %1115 = vmatpush.msra.mxu0 %v4884_v15 }
 0x164   :  { %1116 = vmatpush.msra.mxu0 %v4887_v48 }
 0x166   :  { %1117 = vmatpush.msra.mxu0 %v4889_v57 }
 0x1bb   :  { %v677_v56 = vpop.f32.mrf.mxu0  ;;  %v697_v52 = vpop.f32.mrf.mxu1 }
 0x1bc   :  { %v740_v63 = vadd.f32 %v677_v56, %v197_v50  ;;  %v741_v4 = vadd.f32 %v697_v52, %v238_v51  ;;  %v279_v52 = vadd.f32 %v4758_v17, %v4810_v13 }
 0x1be   :  { %v3783_v12 = vmul.f32 -1.442695, %v740_v63  ;;  %v3784_v61 = vmul.f32 -1.442695, %v741_v4 }
 0x1c0   :  { %3882 = vpow2.f32 %v3783_v12 }
 0x1c1   :  { %3884 = vpow2.f32 %v3784_v61 }
 0x1c2   :  { %v737_v26 = vpop.f32.mrf.mxu3  ;;  %v717_v51 = vpop.f32.mrf.mxu2 }
 0x1c3   :  { %v743_v6 = vadd.f32 %v737_v26, %v320_v19  ;;  %v742_v12 = vadd.f32 %v717_v51, %v279_v52 }
 0x1c5   :  { %v3785_v27 = vmul.f32 -1.442695, %v743_v6 }
 0x1c6   :  { %v3883_v29 = vpop.eup %3882 }
 0x1c7   :  { %v3885_v60 = vpop.eup %3884  ;;  %v747_v11 = vadd.f32 1.0, %v3883_v29  ;;  %3886 = vpow2.f32 %v3785_v27 }
 0x1c8   :  { %v766_v50 = vadd.f32 1.0, %v3885_v60 }
 0x1c9   :  { %3888 = vrcp.f32 %v747_v11  ;;  %v759_v29 = vand.u32 2147483648, %v747_v11  ;;  %vm753_vm15 = vweird.f32 %v747_v11 }
 0x1ca   :  { %3890 = vrcp.f32 %v766_v50  ;;  %v778_v17 = vand.u32 2147483648, %v766_v50  ;;  %v776_v52 = vand.u32 2147483647, %v766_v50  ;;  %vm772_vm0 = vweird.f32 %v766_v50 }
 0x1cc   :  { %vm777_vm4 = vcmp.eq.f32.partialorder %v776_v52, 8.507059e+37  ;;  %v588_v52 = vsel %vm587_vm12, %v4824_v37, 0.0 }
 0x1cd   :  { %v3887_v56 = vpop.eup %3886 }
 0x1ce   :  { %v4897_v63 = vadd.f32 1.0, %v3887_v56  ;;  %v757_v56 = vand.u32 2147483647, %v747_v11 }
 0x1cf   :  { %v3889_v4 = vpop.eup %3888 }
 0x1d0   :  { %v3891_v61 = vpop.eup %3890  ;;  %v749_v19 = vmul.f32 %v3889_v4, %v747_v11  ;;  %3892 = vrcp.f32 %v4897_v63  ;;  %vm754_vm13 = vweird.f32 %v3889_v4  ;;  %vm758_vm3 = vcmp.eq.f32.partialorder %v757_v56, 8.507059e+37 }
 0x1d1   :  { %v768_v26 = vmul.f32 %v3891_v61, %v766_v50  ;;  %3894 = vtanh.f32 %v742_v12  ;;  %vm773_vm14 = vweird.f32 %v3891_v61  ;;  %vm755_vm1 = vmor %vm753_vm15, %vm754_vm13  ;;  %v589_v11 = vsel %vm587_vm12, %v4819_v2, 0.0 }
 0x1d2   :  { %v750_v6 = vsub.f32 1.0, %v749_v19  ;;  %v760_v19 = vor.u32 1.1754944e-38, %v759_v29  ;;  %vm774_vm2 = vmor %vm772_vm0, %vm773_vm14  ;;  %vm792_vm7 = vweird.f32 %v4897_v63 }
 0x1d3   :  { %v769_v27 = vsub.f32 1.0, %v768_v26 }
 0x1d4   :  { %v751_v60 = vmul.f32 %v3889_v4, %v750_v6  ;;  %v779_v6 = vor.u32 1.1754944e-38, %v778_v17 }
 0x1d5   :  { %v770_v51 = vmul.f32 %v3891_v61, %v769_v27 }
 0x1d6   :  { %v3893_v45 = vpop.eup %3892  ;;  %v752_v18 = vadd.f32 %v3889_v4, %v751_v60 }
 0x1d7   :  { %v771_v26 = vadd.f32 %v3891_v61, %v770_v51  ;;  %v788_v12 = vmul.f32 %v3893_v45, %v4897_v63  ;;  %v3895_v27 = vpop.eup %3894  ;;  %vm793_vm6 = vweird.f32 %v3893_v45 }
 0x1d8   :  { %v756_v42 = vsel %vm755_vm1, %v3889_v4, %v752_v18  ;;  %vm794_vm8 = vmor %vm792_vm7, %vm793_vm6 }
 0x1d9   :  { %v761_v58 = vsel %vm758_vm3, %v760_v19, %v756_v42  ;;  %v775_v5 = vsel %vm774_vm2, %v3891_v61, %v771_v26  ;;  %v789_v60 = vsub.f32 1.0, %v788_v12  ;;  %v798_v42 = vand.u32 2147483648, %v4897_v63  ;;  %v5002_v19 = vld [vmem:[#allocation10 + $0x158] sm:$0xff]  ;;  %v5007_v26 = vld [vmem:[#allocation10 + $0x128] sm:$0xff]  ;;  %v5009_v12 = vld [vmem:[#allocation10 + $0x130] sm:$0xff] }
 0x1da   :  { %v780_v50 = vsel %vm777_vm4, %v779_v6, %v775_v5  ;;  %v803_v29 = vmul.f32 %v3895_v27, %v761_v58  ;;  %v796_v58 = vand.u32 2147483647, %v4897_v63  ;;  %6967 = vst [vmem:[#allocation48_spill] sm:$0xff] %v5002_v19  ;;  %v5011_v6 = vld [vmem:[#allocation10 + $0x138] sm:$0xff]  ;;  %v5016_v27 = vld [vmem:[#allocation10 + $0x108] sm:$0xff]  ;;  %vm1028_vm3 = vcmp.gt.s32.totalorder %v4822_v10, 2 }
 0x1db   :  { %v802_v51 = vmul.f32 %v780_v50, %v589_v11  ;;  %v790_v1 = vmul.f32 %v3893_v45, %v789_v60  ;;  %6968 = vst [vmem:[#allocation49_spill] sm:$0xff] %v5007_v26  ;;  %v5018_v60 = vld [vmem:[#allocation10 + $0x110] sm:$0xff]  ;;  %v200_v50 = vadd.f32 %v4768_v24, %v4785_v36  ;;  %v5038_v24 = vld [vmem:[#allocation10 + $0xc8] sm:$0xff] }
 0x1dc   :  { %vm797_vm9 = vcmp.eq.f32.partialorder %v796_v58, 8.507059e+37  ;;  %6969 = vst [vmem:[#allocation50_spill] sm:$0xff] %v5011_v6 }
 0x1dd   :  { %v804_v18 = vadd.f32 %v803_v29, %v802_v51  ;;  %v791_v4 = vadd.f32 %v3893_v45, %v790_v1  ;;  %v799_v1 = vor.u32 1.1754944e-38, %v798_v42  ;;  %v241_v29 = vadd.f32 %v4764_v21, %v4803_v62  ;;  %v5029_v51 = vld [vmem:[#allocation10 + $0xe8] sm:$0xff]  ;;  %v5040_v21 = vld [vmem:[#allocation10 + $0xd0] sm:$0xff] }
 0x1df   :  { %3896 = vtanh.f32 %v804_v18  ;;  %v4917_v5 = vsel %vm807_vm5, %v804_v18, %v589_v11  ;;  %v795_v2 = vsel %vm794_vm8, %v3893_v45, %v791_v4  ;;  %v4953_v45 = vld [vmem:[#allocation10 + $0x1e8] sm:$0xff]  ;;  %v5020_v11 = vld [vmem:[#allocation10 + $0x118] sm:$0xff]  ;;  %v5031_v18 = vld [vmem:[#allocation10 + $0xf0] sm:$0xff] }
 0x1e0   :  { %v800_v17 = vsel %vm797_vm9, %v799_v1, %v795_v2  ;;  %1122 = vmatpush.msrb.mxu1 %v4953_v45  ;;  %v5033_v4 = vld [vmem:[#allocation10 + $0xf8] sm:$0xff] }
 0x1e5   :  { %v3897_v61 = vpop.eup %3896 }
 0x1e6   :  { %v806_v56 = vmul.f32 %v3897_v61, %v800_v17  ;;  %v5042_v61 = vld [vmem:[#allocation10 + $0xd8] sm:$0xff] }
 0x1e8   :  { %v4930_v63 = vsel %vm807_vm5, %v806_v56, %v588_v52  ;;  %v5047_v52 = vld [vmem:[#allocation10 + $0xa8] sm:$0xff] }
 0x1e9   :  { %897 = vmatmul.f32.vlgmr.msrb.gmra.mxu0 %v4930_v63  ;;  %917 = vmatmul.f32.vlgmr.msra.gmra.mxu1 %v4930_v63 }
 0x1ea   :  { %937 = vmatmul.f32.vlgmr.msrb.gmra.mxu2 %v4930_v63  ;;  %957 = vmatmul.f32.vlgmr.msrb.gmra.mxu3 %v4930_v63 }
 0x1eb   :  { %1323 = vmatpush.msrb.mxu0 %v4839_v0  ;;  %v4955_v0 = vld [vmem:[#allocation10 + $0x1f0] sm:$0xff] }
 0x1ec   :  { %1142 = vmatpush.msra.mxu2 %v4955_v0 }
 0x1ed   :  { %1324 = vmatpush.msrb.mxu0 %v4842_v54  ;;  %v4957_v54 = vld [vmem:[#allocation10 + $0x1f8] sm:$0xff] }
 0x1ee   :  { %1162 = vmatpush.msra.mxu3 %v4957_v54 }
 0x1ef   :  { %1325 = vmatpush.msrb.mxu0 %v4845_v39  ;;  %v4962_v39 = vld [vmem:[#allocation10 + $0x1c8] sm:$0xff] }
 0x1f0   :  { %1123 = vmatpush.msrb.mxu1 %v4962_v39 }
 0x1f1   :  { %1326 = vmatpush.msrb.mxu0 %v4848_v34  ;;  %v4964_v34 = vld [vmem:[#allocation10 + $0x1d0] sm:$0xff] }
 0x1f2   :  { %1143 = vmatpush.msra.mxu2 %v4964_v34 }
 0x1f3   :  { %1327 = vmatpush.msrb.mxu0 %v4851_v41  ;;  %v4966_v41 = vld [vmem:[#allocation10 + $0x1d8] sm:$0xff] }
 0x1f4   :  { %1163 = vmatpush.msra.mxu3 %v4966_v41 }
 0x1f5   :  { %1328 = vmatpush.msrb.mxu0 %v4854_v43  ;;  %v4971_v43 = vld [vmem:[#allocation10 + $0x1a8] sm:$0xff] }
 0x1f6   :  { %1124 = vmatpush.msrb.mxu1 %v4971_v43 }
 0x1f7   :  { %1329 = vmatpush.msrb.mxu0 %v4857_v49  ;;  %v4973_v49 = vld [vmem:[#allocation10 + $0x1b0] sm:$0xff] }
 0x1f8   :  { %1144 = vmatpush.msra.mxu2 %v4973_v49 }
 0x1f9   :  { %1330 = vmatpush.msrb.mxu0 %v4860_v9  ;;  %v4975_v9 = vld [vmem:[#allocation10 + $0x1b8] sm:$0xff] }
 0x1fa   :  { %1164 = vmatpush.msra.mxu3 %v4975_v9 }
 0x1fb   :  { %1331 = vmatpush.msrb.mxu0 %v4867_v53  ;;  %v4980_v53 = vld [vmem:[#allocation10 + $0x188] sm:$0xff] }
 0x1fc   :  { %6963 = vst [vmem:[#allocation44_spill] sm:$0xff] %v4980_v53  ;;  %1125 = vmatpush.msrb.mxu1 %v4980_v53 }
 0x1fd   :  { %1332 = vmatpush.msrb.mxu0 %v4870_v8  ;;  %v4982_v8 = vld [vmem:[#allocation10 + $0x190] sm:$0xff] }
 0x1fe   :  { %1145 = vmatpush.msra.mxu2 %v4982_v8 }
 0x1ff   :  { %1333 = vmatpush.msrb.mxu0 %v4873_v22  ;;  %v4984_v22 = vld [vmem:[#allocation10 + $0x198] sm:$0xff] }
 0x200   :  { %6964 = vst [vmem:[#allocation45_spill] sm:$0xff] %v4984_v22  ;;  %1165 = vmatpush.msra.mxu3 %v4984_v22 }
 0x201   :  { %1334 = vmatpush.msrb.mxu0 %v4876_v16  ;;  %v4989_v16 = vld [vmem:[#allocation10 + $0x168] sm:$0xff] }
 0x202   :  { %1126 = vmatpush.msrb.mxu1 %v4989_v16 }
 0x203   :  { %1335 = vmatpush.msrb.mxu0 %v4881_v32  ;;  %v4991_v32 = vld [vmem:[#allocation10 + $0x170] sm:$0xff] }
 0x204   :  { %1146 = vmatpush.msra.mxu2 %v4991_v32 }
 0x205   :  { %1336 = vmatpush.msrb.mxu0 %v4884_v15  ;;  %v4993_v15 = vld [vmem:[#allocation10 + $0x178] sm:$0xff] }
 0x206   :  { %6965 = vst [vmem:[#allocation46_spill] sm:$0xff] %v4993_v15  ;;  %1166 = vmatpush.msra.mxu3 %v4993_v15 }
 0x207   :  { %1337 = vmatpush.msrb.mxu0 %v4887_v48  ;;  %v4998_v48 = vld [vmem:[#allocation10 + $0x148] sm:$0xff] }
 0x208   :  { %1127 = vmatpush.msrb.mxu1 %v4998_v48  ;;  %1167 = vmatpush.msra.mxu3 %v5002_v19 }
 0x209   :  { %1338 = vmatpush.msrb.mxu0 %v4889_v57  ;;  %v5000_v57 = vld [vmem:[#allocation10 + $0x150] sm:$0xff] }
 0x20a   :  { %6966 = vst [vmem:[#allocation47_spill] sm:$0xff] %v5000_v57  ;;  %1147 = vmatpush.msra.mxu2 %v5000_v57  ;;  %1128 = vmatpush.msrb.mxu1 %v5007_v26 }
 0x20b   :  { %1168 = vmatpush.msra.mxu3 %v5011_v6 }
 0x20c   :  { %1148 = vmatpush.msra.mxu2 %v5009_v12  ;;  %1129 = vmatpush.msrb.mxu1 %v5016_v27 }
 0x20d   :  { %1169 = vmatpush.msra.mxu3 %v5020_v11 }
 0x20e   :  { %1149 = vmatpush.msra.mxu2 %v5018_v60  ;;  %1130 = vmatpush.msrb.mxu1 %v5029_v51 }
 0x20f   :  { %1170 = vmatpush.msra.mxu3 %v5033_v4 }
 0x210   :  { %1150 = vmatpush.msra.mxu2 %v5031_v18  ;;  %1131 = vmatpush.msrb.mxu1 %v5038_v24 }
 0x211   :  { %1171 = vmatpush.msra.mxu3 %v5042_v61 }
 0x212   :  { %1151 = vmatpush.msra.mxu2 %v5040_v21  ;;  %1132 = vmatpush.msrb.mxu1 %v5047_v52 }
 0x266   :  { %v898_v42 = vpop.f32.mrf.mxu0  ;;  %v918_v58 = vpop.f32.mrf.mxu1 }
 0x267   :  { %v961_v2 = vadd.f32 %v898_v42, %v200_v50  ;;  %v962_v1 = vadd.f32 %v918_v58, %v241_v29  ;;  %v5049_v50 = vld [vmem:[#allocation10 + $0xb0] sm:$0xff]  ;;  %v5053_v29 = vld [vmem:[#allocation10 + $0xb8] sm:$0xff]  ;;  %v5056_v42 = vld [vmem:[#allocation10 + $0x88] sm:$0xff] }
 0x268   :  { %1152 = vmatpush.msra.mxu2 %v5049_v50  ;;  %1172 = vmatpush.msra.mxu3 %v5053_v29  ;;  %v5058_v58 = vld [vmem:[#allocation10 + $0x90] sm:$0xff] }
 0x269   :  { %v3786_v17 = vmul.f32 -1.442695, %v961_v2  ;;  %v3787_v56 = vmul.f32 -1.442695, %v962_v1  ;;  %v5060_v2 = vld [vmem:[#allocation10 + $0x98] sm:$0xff]  ;;  %v323_v1 = vadd.f32 %v4752_v7, %v4798_v47  ;;  %1133 = vmatpush.msrb.mxu1 %v5056_v42  ;;  %v5076_v7 = vld [vmem:[#allocation10 + $0x48] sm:$0xff] }
 0x26a   :  { %1153 = vmatpush.msra.mxu2 %v5058_v58  ;;  %1173 = vmatpush.msra.mxu3 %v5060_v2 }
 0x26b   :  { %3898 = vpow2.f32 %v3786_v17  ;;  %v5067_v17 = vld [vmem:[#allocation10 + $0x68] sm:$0xff] }
 0x26c   :  { %3900 = vpow2.f32 %v3787_v56  ;;  %1134 = vmatpush.msrb.mxu1 %v5067_v17  ;;  %1154 = vmatpush.msra.mxu2 %v5069_v35  ;;  %v5078_v56 = vld [vmem:[#allocation10 + $0x50] sm:$0xff] }
 0x26d   :  { %v958_v37 = vpop.f32.mrf.mxu3  ;;  %1174 = vmatpush.msra.mxu3 %v5071_v44 }
 0x26e   :  { %v964_v3 = vadd.f32 %v958_v37, %v323_v1  ;;  %1135 = vmatpush.msrb.mxu1 %v5076_v7  ;;  %1155 = vmatpush.msra.mxu2 %v5078_v56  ;;  %v5085_v37 = vld [vmem:[#allocation10 + $0x28] sm:$0xff]  ;;  %v5087_v1 = vld [vmem:[#allocation10 + $0x30] sm:$0xff] }
 0x26f   :  { %1175 = vmatpush.msra.mxu3 %v5080_v46 }
 0x270   :  { %v3788_v25 = vmul.f32 -1.442695, %v964_v3  ;;  %1136 = vmatpush.msrb.mxu1 %v5085_v37  ;;  %1156 = vmatpush.msra.mxu2 %v5087_v1  ;;  %v5095_v3 = vld [vmem:[#allocation10 + $0x8] sm:$0xff] }
 0x271   :  { %v3899_v40 = vpop.eup %3898  ;;  %1176 = vmatpush.msra.mxu3 %v5089_v59 }
 0x272   :  { %v3901_v38 = vpop.eup %3900  ;;  %v5091_v20 = vadd.f32 1.0, %v3899_v40  ;;  %3902 = vpow2.f32 %v3788_v25  ;;  %1137 = vmatpush.msrb.mxu1 %v5095_v3  ;;  %1157 = vmatpush.msra.mxu2 %v5097_v33  ;;  %v938_v25 = vpop.f32.mrf.mxu2  ;;  %v282_v40 = vadd.f32 %v4766_v23, %v4810_v13 }
 0x273   :  { %v5101_v30 = vadd.f32 1.0, %v3901_v38  ;;  %1177 = vmatpush.msra.mxu3 %v5099_v55 }
 0x274   :  { %3904 = vrcp.f32 %v5091_v20  ;;  %1343 = vmatpush.msra.mxu1 %v4953_v45  ;;  %1363 = vmatpush.msrb.mxu2 %v4955_v0  ;;  %v963_v28 = vadd.f32 %v938_v25, %v282_v40  ;;  %v980_v40 = vand.u32 2147483648, %v5091_v20  ;;  %vm974_vm13 = vweird.f32 %v5091_v20 }
 0x275   :  { %3906 = vrcp.f32 %v5101_v30  ;;  %1383 = vmatpush.msrb.mxu3 %v4957_v54  ;;  %v999_v13 = vand.u32 2147483648, %v5101_v30  ;;  %vm993_vm14 = vweird.f32 %v5101_v30 }
 0x276   :  { %1344 = vmatpush.msra.mxu1 %v4962_v39  ;;  %1364 = vmatpush.msrb.mxu2 %v4964_v34 }
 0x277   :  { %1384 = vmatpush.msrb.mxu3 %v4966_v41 }
 0x278   :  { %v3903_v38 = vpop.eup %3902  ;;  %1345 = vmatpush.msra.mxu1 %v4971_v43  ;;  %1365 = vmatpush.msrb.mxu2 %v4973_v49 }
 0x279   :  { %v5117_v14 = vadd.f32 1.0, %v3903_v38  ;;  %1385 = vmatpush.msrb.mxu3 %v4975_v9 }
 0x27a   :  { %v3905_v47 = vpop.eup %3904  ;;  %1346 = vmatpush.msra.mxu1 %v4980_v53  ;;  %1366 = vmatpush.msrb.mxu2 %v4982_v8  ;;  %v978_v53 = vand.u32 2147483647, %v5091_v20 }
 0x27b   :  { %v3907_v62 = vpop.eup %3906  ;;  %v970_v31 = vmul.f32 %v3905_v47, %v5091_v20  ;;  %3908 = vrcp.f32 %v5117_v14  ;;  %1386 = vmatpush.msrb.mxu3 %v4984_v22  ;;  %vm975_vm10 = vweird.f32 %v3905_v47  ;;  %vm1013_vm6 = vweird.f32 %v5117_v14 }
 0x27c   :  { %v989_v23 = vmul.f32 %v3907_v62, %v5101_v30  ;;  %1347 = vmatpush.msra.mxu1 %v4989_v16  ;;  %3910 = vtanh.f32 %v963_v28  ;;  %1367 = vmatpush.msrb.mxu2 %v4991_v32  ;;  %vm994_vm11 = vweird.f32 %v3907_v62  ;;  %vm976_vm15 = vmor %vm974_vm13, %vm975_vm10  ;;  %vm979_vm1 = vcmp.eq.f32.partialorder %v978_v53, 8.507059e+37 }
 0x27d   :  { %v971_v38 = vsub.f32 1.0, %v970_v31  ;;  %1387 = vmatpush.msrb.mxu3 %v4993_v15  ;;  %v997_v31 = vand.u32 2147483647, %v5101_v30  ;;  %vm995_vm0 = vmor %vm993_vm14, %vm994_vm11  ;;  %v1019_v53 = vand.u32 2147483648, %v5117_v14 }
 0x27e   :  { %v990_v25 = vsub.f32 1.0, %v989_v23  ;;  %1348 = vmatpush.msra.mxu1 %v4998_v48  ;;  %1368 = vmatpush.msrb.mxu2 %v5000_v57 }
 0x27f   :  { %v972_v36 = vmul.f32 %v3905_v47, %v971_v38  ;;  %1388 = vmatpush.msrb.mxu3 %v5002_v19  ;;  %v981_v38 = vor.u32 1.1754944e-38, %v980_v40  ;;  %v1000_v19 = vor.u32 1.1754944e-38, %v999_v13  ;;  %vm998_vm2 = vcmp.eq.f32.partialorder %v997_v31, 8.507059e+37 }
 0x280   :  { %v991_v22 = vmul.f32 %v3907_v62, %v990_v25  ;;  %1349 = vmatpush.msra.mxu1 %v5007_v26  ;;  %1369 = vmatpush.msrb.mxu2 %v5009_v12 }
 0x281   :  { %v3909_v28 = vpop.eup %3908  ;;  %v973_v23 = vadd.f32 %v3905_v47, %v972_v36  ;;  %1389 = vmatpush.msrb.mxu3 %v5011_v6 }
 0x282   :  { %v992_v15 = vadd.f32 %v3907_v62, %v991_v22  ;;  %v1009_v25 = vmul.f32 %v3909_v28, %v5117_v14  ;;  %1350 = vmatpush.msra.mxu1 %v5016_v27  ;;  %v3911_v20 = vpop.eup %3910  ;;  %1370 = vmatpush.msrb.mxu2 %v5018_v60  ;;  %vm1014_vm4 = vweird.f32 %v3909_v28 }
 0x283   :  { %v977_v57 = vsel %vm976_vm15, %v3905_v47, %v973_v23  ;;  %1390 = vmatpush.msrb.mxu3 %v5020_v11  ;;  %vm1015_vm7 = vmor %vm1013_vm6, %vm1014_vm4 }
 0x284   :  { %v982_v36 = vsel %vm979_vm1, %v981_v38, %v977_v57  ;;  %v996_v26 = vsel %vm995_vm0, %v3907_v62, %v992_v15  ;;  %v1010_v30 = vsub.f32 1.0, %v1009_v25  ;;  %1351 = vmatpush.msra.mxu1 %v5029_v51  ;;  %1371 = vmatpush.msrb.mxu2 %v5031_v18  ;;  %v1017_v57 = vand.u32 2147483647, %v5117_v14 }
 0x285   :  { %v1001_v22 = vsel %vm998_vm2, %v1000_v19, %v996_v26  ;;  %v1024_v40 = vmul.f32 %v3911_v20, %v982_v36  ;;  %1391 = vmatpush.msrb.mxu3 %v5033_v4  ;;  %vm1249_vm2 = vcmp.gt.s32.totalorder %v4822_v10, 3 }
 0x286   :  { %v1023_v6 = vmul.f32 %v1001_v22, %v4917_v5  ;;  %v1011_v13 = vmul.f32 %v3909_v28, %v1010_v30  ;;  %1352 = vmatpush.msra.mxu1 %v5038_v24  ;;  %1372 = vmatpush.msrb.mxu2 %v5040_v21  ;;  %vm1018_vm8 = vcmp.eq.f32.partialorder %v1017_v57, 8.507059e+37 }
 0x287   :  { %1392 = vmatpush.msrb.mxu3 %v5042_v61 }
 0x288   :  { %v1025_v47 = vadd.f32 %v1024_v40, %v1023_v6  ;;  %v1012_v62 = vadd.f32 %v3909_v28, %v1011_v13  ;;  %1353 = vmatpush.msra.mxu1 %v5047_v52  ;;  %1373 = vmatpush.msrb.mxu2 %v5049_v50 }
 0x289   :  { %1393 = vmatpush.msrb.mxu3 %v5053_v29 }
 0x28a   :  { %3912 = vtanh.f32 %v1025_v47  ;;  %v5161_v15 = vsel %vm1028_vm3, %v1025_v47, %v4917_v5  ;;  %1354 = vmatpush.msra.mxu1 %v5056_v42  ;;  %1374 = vmatpush.msrb.mxu2 %v5058_v58  ;;  %v1016_v19 = vsel %vm1015_vm7, %v3909_v28, %v1012_v62  ;;  %v1020_v5 = vor.u32 1.1754944e-38, %v1019_v53  ;;  %v6971_v28 = vld [vmem:[#allocation44_spill] sm:$0xff] }
 0x28b   :  { %1394 = vmatpush.msrb.mxu3 %v5060_v2 }
 0x28c   :  { %1355 = vmatpush.msra.mxu1 %v5067_v17  ;;  %1375 = vmatpush.msrb.mxu2 %v5069_v35  ;;  %v1021_v14 = vsel %vm1018_vm8, %v1020_v5, %v1016_v19 }
 0x28d   :  { %1395 = vmatpush.msrb.mxu3 %v5071_v44 }
 0x28e   :  { %1356 = vmatpush.msra.mxu1 %v5076_v7  ;;  %1376 = vmatpush.msrb.mxu2 %v5078_v56 }
 0x28f   :  { %1396 = vmatpush.msrb.mxu3 %v5080_v46 }
 0x290   :  { %v3913_v26 = vpop.eup %3912  ;;  %1357 = vmatpush.msra.mxu1 %v5085_v37  ;;  %1377 = vmatpush.msrb.mxu2 %v5087_v1 }
 0x291   :  { %v1027_v6 = vmul.f32 %v3913_v26, %v1021_v14  ;;  %1397 = vmatpush.msrb.mxu3 %v5089_v59 }
 0x292   :  { %1358 = vmatpush.msra.mxu1 %v5095_v3  ;;  %1378 = vmatpush.msrb.mxu2 %v5097_v33 }
 0x293   :  { %v5182_v31 = vsel %vm1028_vm3, %v1027_v6, %v4930_v63  ;;  %1398 = vmatpush.msrb.mxu3 %v5099_v55 }
 0x294   :  { %6970 = vst [vmem:[#allocation51_spill] sm:$0xff] %v5182_v31  ;;  %1118 = vmatmul.f32.vlgmr.msra.gmra.mxu0 %v5182_v31  ;;  %1138 = vmatmul.f32.vlgmr.msrb.gmra.mxu1 %v5182_v31 }
 0x295   :  { %1158 = vmatmul.f32.vlgmr.msra.gmra.mxu2 %v5182_v31  ;;  %1178 = vmatmul.f32.vlgmr.msra.gmra.mxu3 %v5182_v31 }
 0x296   :  { %1564 = vmatpush.msrb.mxu1 %v4953_v45  ;;  %1584 = vmatpush.msra.mxu2 %v4955_v0  ;;  %v6972_v45 = vld [vmem:[#allocation45_spill] sm:$0xff]  ;;  %v6973_v0 = vld [vmem:[#allocation46_spill] sm:$0xff] }
 0x297   :  { %1604 = vmatpush.msra.mxu3 %v4957_v54  ;;  %v6974_v54 = vld [vmem:[#allocation47_spill] sm:$0xff] }
 0x298   :  { %1565 = vmatpush.msrb.mxu1 %v4962_v39  ;;  %1585 = vmatpush.msra.mxu2 %v4964_v34  ;;  %v6975_v39 = vld [vmem:[#allocation48_spill] sm:$0xff]  ;;  %v6976_v34 = vld [vmem:[#allocation49_spill] sm:$0xff] }
 0x299   :  { %1605 = vmatpush.msra.mxu3 %v4966_v41  ;;  %v6977_v41 = vld [vmem:[#allocation50_spill] sm:$0xff] }
 0x29a   :  { %1566 = vmatpush.msrb.mxu1 %v4971_v43  ;;  %1586 = vmatpush.msra.mxu2 %v4973_v49  ;;  %v6980_v49 = vld [vmem:[#allocation38_spill] sm:$0xff] }
 0x29b   :  { %1606 = vmatpush.msra.mxu3 %v4975_v9  ;;  %v6981_v9 = vld [vmem:[#allocation25_spill] sm:$0xff] }
 0x29c   :  { %1567 = vmatpush.msrb.mxu1 %v6971_v28  ;;  %1587 = vmatpush.msra.mxu2 %v4982_v8  ;;  %v244_v8 = vadd.f32 %v6981_v9, %v6980_v49 }
 0x29d   :  { %1607 = vmatpush.msra.mxu3 %v6972_v45 }
 0x29e   :  { %1568 = vmatpush.msrb.mxu1 %v4989_v16  ;;  %1588 = vmatpush.msra.mxu2 %v4991_v32 }
 0x29f   :  { %1608 = vmatpush.msra.mxu3 %v6973_v0 }
 0x2a0   :  { %1569 = vmatpush.msrb.mxu1 %v4998_v48  ;;  %1589 = vmatpush.msra.mxu2 %v6974_v54 }
 0x2a1   :  { %1609 = vmatpush.msra.mxu3 %v6975_v39 }
 0x2a2   :  { %1570 = vmatpush.msrb.mxu1 %v6976_v34  ;;  %1590 = vmatpush.msra.mxu2 %v5009_v12 }
 0x2a3   :  { %1610 = vmatpush.msra.mxu3 %v6977_v41 }
 0x2a4   :  { %1571 = vmatpush.msrb.mxu1 %v5016_v27  ;;  %1591 = vmatpush.msra.mxu2 %v5018_v60  ;;  %v6983_v60 = vld [vmem:[#allocation22_spill] sm:$0xff] }
 0x2a5   :  { %1611 = vmatpush.msra.mxu3 %v5020_v11 }
 0x2a6   :  { %1572 = vmatpush.msrb.mxu1 %v5029_v51  ;;  %1592 = vmatpush.msra.mxu2 %v5031_v18 }
 0x2a7   :  { %1612 = vmatpush.msra.mxu3 %v5033_v4 }
 0x2a8   :  { %1573 = vmatpush.msrb.mxu1 %v5038_v24  ;;  %1593 = vmatpush.msra.mxu2 %v5040_v21 }
 0x2a9   :  { %1613 = vmatpush.msra.mxu3 %v5042_v61 }
 0x2aa   :  { %1574 = vmatpush.msrb.mxu1 %v5047_v52  ;;  %1594 = vmatpush.msra.mxu2 %v5049_v50  ;;  %v6984_v50 = vld [vmem:[#allocation41_spill] sm:$0xff] }
 0x2ab   :  { %1614 = vmatpush.msra.mxu3 %v5053_v29  ;;  %v6985_v29 = vld [vmem:[#allocation26_spill] sm:$0xff] }
 0x2ac   :  { %1575 = vmatpush.msrb.mxu1 %v5056_v42  ;;  %1595 = vmatpush.msra.mxu2 %v5058_v58  ;;  %v285_v42 = vadd.f32 %v6985_v29, %v6984_v50 }
 0x2ad   :  { %1615 = vmatpush.msra.mxu3 %v5060_v2 }
 0x2ae   :  { %1576 = vmatpush.msrb.mxu1 %v5067_v17  ;;  %1596 = vmatpush.msra.mxu2 %v5069_v35  ;;  %v6978_v35 = vld [vmem:[#allocation30_spill] sm:$0xff] }
 0x2af   :  { %1616 = vmatpush.msra.mxu3 %v5071_v44  ;;  %v6979_v44 = vld [vmem:[#allocation27_spill] sm:$0xff] }
 0x2b0   :  { %1577 = vmatpush.msrb.mxu1 %v5076_v7  ;;  %1597 = vmatpush.msra.mxu2 %v5078_v56  ;;  %v203_v43 = vadd.f32 %v6979_v44, %v6978_v35 }
 0x2b1   :  { %1617 = vmatpush.msra.mxu3 %v5080_v46 }
 0x2b2   :  { %1578 = vmatpush.msrb.mxu1 %v5085_v37  ;;  %1598 = vmatpush.msra.mxu2 %v5087_v1 }
 0x2b3   :  { %1618 = vmatpush.msra.mxu3 %v5089_v59  ;;  %v6982_v59 = vld [vmem:[#allocation36_spill] sm:$0xff] }
 0x2b4   :  { %1579 = vmatpush.msrb.mxu1 %v5095_v3  ;;  %1599 = vmatpush.msra.mxu2 %v5097_v33  ;;  %v326_v11 = vadd.f32 %v6983_v60, %v6982_v59  ;;  %v5275_v60 = vld [vmem:[#allocation10 + $0x160] sm:$0xff] }
 0x2b5   :  { %1619 = vmatpush.msra.mxu3 %v5099_v55 }
 0x311   :  { %v1119_v16 = vpop.f32.mrf.mxu0  ;;  %v1139_v46 = vpop.f32.mrf.mxu1 }
 0x312   :  { %v1182_v32 = vadd.f32 %v1119_v16, %v203_v43  ;;  %v1183_v48 = vadd.f32 %v1139_v46, %v244_v8 }
 0x314   :  { %v3789_v12 = vmul.f32 -1.442695, %v1182_v32  ;;  %v3790_v27 = vmul.f32 -1.442695, %v1183_v48  ;;  %v5266_v48 = vld [vmem:[#allocation10 + $0x1c0] sm:$0xff] }
 0x316   :  { %3914 = vpow2.f32 %v3789_v12  ;;  %v5269_v12 = vld [vmem:[#allocation10 + $0x1a0] sm:$0xff] }
 0x317   :  { %3916 = vpow2.f32 %v3790_v27  ;;  %v5272_v27 = vld [vmem:[#allocation10 + $0x180] sm:$0xff] }
 0x318   :  { %v1179_v33 = vpop.f32.mrf.mxu3  ;;  %v1159_v61 = vpop.f32.mrf.mxu2 }
 0x319   :  { %v1185_v51 = vadd.f32 %v1179_v33, %v326_v11  ;;  %v1184_v17 = vadd.f32 %v1159_v61, %v285_v42  ;;  %v5278_v11 = vld [vmem:[#allocation10 + $0x140] sm:$0xff] }
 0x31a   :  { %v5281_v33 = vld [vmem:[#allocation10 + $0x120] sm:$0xff] }
 0x31b   :  { %v3791_v55 = vmul.f32 -1.442695, %v1185_v51  ;;  %v5284_v51 = vld [vmem:[#allocation10 + $0x100] sm:$0xff] }
 0x31c   :  { %v3915_v18 = vpop.eup %3914 }
 0x31d   :  { %v3917_v4 = vpop.eup %3916  ;;  %v1189_v24 = vadd.f32 1.0, %v3915_v18  ;;  %3918 = vpow2.f32 %v3791_v55  ;;  %v6987_v55 = vld [vmem:[#allocation18_spill] sm:$0xff] }
 0x31e   :  { %v1208_v21 = vadd.f32 1.0, %v3917_v4  ;;  %v206_v18 = vadd.f32 %v6987_v55, %v6978_v35  ;;  %v6988_v4 = vld [vmem:[#allocation28_spill] sm:$0xff] }
 0x31f   :  { %3920 = vrcp.f32 %v1189_v24  ;;  %v1201_v23 = vand.u32 2147483648, %v1189_v24  ;;  %v1199_v20 = vand.u32 2147483647, %v1189_v24  ;;  %vm1195_vm11 = vweird.f32 %v1189_v24 }
 0x320   :  { %3922 = vrcp.f32 %v1208_v21  ;;  %v1220_v38 = vand.u32 2147483648, %v1208_v21  ;;  %v1218_v30 = vand.u32 2147483647, %v1208_v21  ;;  %vm1214_vm13 = vweird.f32 %v1208_v21 }
 0x321   :  { %v1202_v13 = vor.u32 1.1754944e-38, %v1201_v23  ;;  %vm1200_vm0 = vcmp.eq.f32.partialorder %v1199_v20, 8.507059e+37  ;;  %v5305_v23 = vld [vmem:[#allocation10 + $0x60] sm:$0xff] }
 0x322   :  { %v1221_v53 = vor.u32 1.1754944e-38, %v1220_v38  ;;  %vm1219_vm1 = vcmp.eq.f32.partialorder %v1218_v30, 8.507059e+37  ;;  %v5311_v30 = vld [vmem:[#allocation10 + $0x20] sm:$0xff] }
 0x323   :  { %v3919_v52 = vpop.eup %3918 }
 0x324   :  { %v1228_v58 = vadd.f32 1.0, %v3919_v52 }
 0x325   :  { %v3921_v2 = vpop.eup %3920 }
 0x326   :  { %v3923_v7 = vpop.eup %3922  ;;  %v1191_v56 = vmul.f32 %v3921_v2, %v1189_v24  ;;  %3924 = vrcp.f32 %v1228_v58  ;;  %vm1196_vm9 = vweird.f32 %v3921_v2  ;;  %v1240_v34 = vand.u32 2147483648, %v1228_v58 }
 0x327   :  { %v1210_v37 = vmul.f32 %v3923_v7, %v1208_v21  ;;  %3926 = vtanh.f32 %v1184_v17  ;;  %vm1215_vm10 = vweird.f32 %v3923_v7  ;;  %vm1197_vm14 = vmor %vm1195_vm11, %vm1196_vm9  ;;  %vm1234_vm6 = vweird.f32 %v1228_v58  ;;  %v5291_v21 = vld [vmem:[#allocation10 + $0xe0] sm:$0xff] }
 0x328   :  { %v1192_v1 = vsub.f32 1.0, %v1191_v56  ;;  %vm1216_vm15 = vmor %vm1214_vm13, %vm1215_vm10  ;;  %v1238_v44 = vand.u32 2147483647, %v1228_v58  ;;  %v1241_v9 = vor.u32 1.1754944e-38, %v1240_v34  ;;  %v247_v24 = vadd.f32 %v6988_v4, %v6980_v49  ;;  %v5300_v56 = vld [vmem:[#allocation10 + $0x80] sm:$0xff] }
 0x329   :  { %v1211_v3 = vsub.f32 1.0, %v1210_v37  ;;  %v6989_v37 = vld [vmem:[#allocation23_spill] sm:$0xff] }
 0x32a   :  { %v1193_v25 = vmul.f32 %v3921_v2, %v1192_v1  ;;  %vm1239_vm8 = vcmp.eq.f32.partialorder %v1238_v44, 8.507059e+37  ;;  %v329_v1 = vadd.f32 %v6989_v37, %v6982_v59 }
 0x32b   :  { %v1212_v36 = vmul.f32 %v3923_v7, %v1211_v3 }
 0x32c   :  { %v3925_v22 = vpop.eup %3924  ;;  %v1194_v40 = vadd.f32 %v3921_v2, %v1193_v25  ;;  %v5308_v25 = vld [vmem:[#allocation10 + $0x40] sm:$0xff] }
 0x32d   :  { %v1213_v47 = vadd.f32 %v3923_v7, %v1212_v36  ;;  %v1230_v62 = vmul.f32 %v3925_v22, %v1228_v58  ;;  %v3927_v19 = vpop.eup %3926  ;;  %vm1235_vm4 = vweird.f32 %v3925_v22  ;;  %v5294_v58 = vld [vmem:[#allocation10 + $0xc0] sm:$0xff] }
 0x32e   :  { %v1198_v57 = vsel %vm1197_vm14, %v3921_v2, %v1194_v40  ;;  %vm1236_vm7 = vmor %vm1234_vm6, %vm1235_vm4  ;;  %vm1470_vm4 = vcmp.gt.s32.totalorder %v4822_v10, 4 }
 0x32f   :  { %v1203_v5 = vsel %vm1200_vm0, %v1202_v13, %v1198_v57  ;;  %v1217_v26 = vsel %vm1216_vm15, %v3923_v7, %v1213_v47  ;;  %v1231_v14 = vsub.f32 1.0, %v1230_v62  ;;  %v5297_v7 = vld [vmem:[#allocation10 + $0xa0] sm:$0xff]  ;;  %v6990_v57 = vld [vmem:[#allocation31_spill] sm:$0xff] }
 0x330   :  { %v1222_v6 = vsel %vm1219_vm1, %v1221_v53, %v1217_v26  ;;  %v1245_v28 = vmul.f32 %v3927_v19, %v1203_v5  ;;  %v288_v19 = vadd.f32 %v6990_v57, %v6984_v50 }
 0x331   :  { %v1244_v45 = vmul.f32 %v1222_v6, %v5161_v15  ;;  %v1232_v0 = vmul.f32 %v3925_v22, %v1231_v14 }
 0x333   :  { %v1246_v54 = vadd.f32 %v1245_v28, %v1244_v45  ;;  %v1233_v39 = vadd.f32 %v3925_v22, %v1232_v0 }
 0x335   :  { %3928 = vtanh.f32 %v1246_v54  ;;  %v5252_v41 = vsel %vm1249_vm2, %v1246_v54, %v5161_v15  ;;  %v1237_v43 = vsel %vm1236_vm7, %v3925_v22, %v1233_v39  ;;  %v5263_v15 = vld [vmem:[#allocation10 + $0x1e0] sm:$0xff] }
 0x336   :  { %v1242_v16 = vsel %vm1239_vm8, %v1241_v9, %v1237_v43  ;;  %1544 = vmatpush.msra.mxu0 %v5263_v15  ;;  %v5313_v22 = vld [vmem:[#allocation10] sm:$0xff] }
 0x338   :  { %1545 = vmatpush.msra.mxu0 %v5266_v48 }
 0x33a   :  { %1546 = vmatpush.msra.mxu0 %v5269_v12 }
 0x33b   :  { %v3929_v8 = vpop.eup %3928 }
 0x33c   :  { %v1248_v46 = vmul.f32 %v3929_v8, %v1242_v16  ;;  %1547 = vmatpush.msra.mxu0 %v5272_v27 }
 0x33e   :  { %v5257_v32 = vsel %vm1249_vm2, %v1248_v46, %v5182_v31  ;;  %1548 = vmatpush.msra.mxu0 %v5275_v60 }
 0x33f   :  { %6986 = vst [vmem:[#allocation44_spill] sm:$0xff] %v5257_v32  ;;  %1339 = vmatmul.f32.vlgmr.msrb.gmra.mxu0 %v5257_v32  ;;  %1359 = vmatmul.f32.vlgmr.msra.gmra.mxu1 %v5257_v32 }
 0x340   :  { %1379 = vmatmul.f32.vlgmr.msrb.gmra.mxu2 %v5257_v32  ;;  %1399 = vmatmul.f32.vlgmr.msrb.gmra.mxu3 %v5257_v32 }
 0x341   :  { %1549 = vmatpush.msra.mxu0 %v5278_v11 }
 0x343   :  { %1550 = vmatpush.msra.mxu0 %v5281_v33 }
 0x345   :  { %1551 = vmatpush.msra.mxu0 %v5284_v51 }
 0x347   :  { %1552 = vmatpush.msra.mxu0 %v5291_v21 }
 0x349   :  { %1553 = vmatpush.msra.mxu0 %v5294_v58 }
 0x34b   :  { %1554 = vmatpush.msra.mxu0 %v5297_v7 }
 0x34d   :  { %1555 = vmatpush.msra.mxu0 %v5300_v56 }
 0x34f   :  { %1556 = vmatpush.msra.mxu0 %v5305_v23 }
 0x351   :  { %1557 = vmatpush.msra.mxu0 %v5308_v25 }
 0x353   :  { %1558 = vmatpush.msra.mxu0 %v5311_v30 }
 0x355   :  { %1559 = vmatpush.msra.mxu0 %v5313_v22 }
 0x357   :  { %1765 = vmatpush.msrb.mxu0 %v5263_v15 }
 0x359   :  { %1766 = vmatpush.msrb.mxu0 %v5266_v48 }
 0x35b   :  { %1767 = vmatpush.msrb.mxu0 %v5269_v12 }
 0x35d   :  { %1768 = vmatpush.msrb.mxu0 %v5272_v27 }
 0x35f   :  { %1769 = vmatpush.msrb.mxu0 %v5275_v60 }
 0x361   :  { %1770 = vmatpush.msrb.mxu0 %v5278_v11 }
 0x363   :  { %1771 = vmatpush.msrb.mxu0 %v5281_v33 }
 0x365   :  { %1772 = vmatpush.msrb.mxu0 %v5284_v51 }
 0x367   :  { %1773 = vmatpush.msrb.mxu0 %v5291_v21 }
 0x369   :  { %1774 = vmatpush.msrb.mxu0 %v5294_v58 }
 0x36b   :  { %1775 = vmatpush.msrb.mxu0 %v5297_v7 }
 0x36d   :  { %1776 = vmatpush.msrb.mxu0 %v5300_v56 }
 0x36f   :  { %1777 = vmatpush.msrb.mxu0 %v5305_v23 }
 0x371   :  { %1778 = vmatpush.msrb.mxu0 %v5308_v25 }
 0x373   :  { %1779 = vmatpush.msrb.mxu0 %v5311_v30 }
 0x375   :  { %1780 = vmatpush.msrb.mxu0 %v5313_v22 }
 0x3bc   :  { %v1340_v61 = vpop.f32.mrf.mxu0  ;;  %v1360_v52 = vpop.f32.mrf.mxu1 }
 0x3bd   :  { %v1403_v29 = vadd.f32 %v1340_v61, %v206_v18  ;;  %v1404_v42 = vadd.f32 %v1360_v52, %v247_v24 }
 0x3bf   :  { %v3792_v2 = vmul.f32 -1.442695, %v1403_v29  ;;  %v3793_v17 = vmul.f32 -1.442695, %v1404_v42 }
 0x3c1   :  { %3930 = vpow2.f32 %v3792_v2 }
 0x3c2   :  { %3932 = vpow2.f32 %v3793_v17 }
 0x3c3   :  { %v1400_v3 = vpop.f32.mrf.mxu3  ;;  %v1380_v62 = vpop.f32.mrf.mxu2 }
 0x3c4   :  { %v1406_v38 = vadd.f32 %v1400_v3, %v329_v1  ;;  %v1405_v14 = vadd.f32 %v1380_v62, %v288_v19 }
 0x3c6   :  { %v3794_v20 = vmul.f32 -1.442695, %v1406_v38 }
 0x3c7   :  { %v3931_v36 = vpop.eup %3930 }
 0x3c8   :  { %v3933_v40 = vpop.eup %3932  ;;  %v1410_v13 = vadd.f32 1.0, %v3931_v36  ;;  %3934 = vpow2.f32 %v3794_v20 }
 0x3c9   :  { %v1429_v47 = vadd.f32 1.0, %v3933_v40 }
 0x3ca   :  { %3936 = vrcp.f32 %v1410_v13  ;;  %v1422_v39 = vand.u32 2147483648, %v1410_v13  ;;  %v1420_v43 = vand.u32 2147483647, %v1410_v13  ;;  %vm1416_vm11 = vweird.f32 %v1410_v13 }
 0x3cb   :  { %3938 = vrcp.f32 %v1429_v47  ;;  %v1441_v34 = vand.u32 2147483648, %v1429_v47  ;;  %v1439_v8 = vand.u32 2147483647, %v1429_v47  ;;  %vm1435_vm13 = vweird.f32 %v1429_v47 }
 0x3cc   :  { %v1423_v55 = vor.u32 1.1754944e-38, %v1422_v39  ;;  %vm1421_vm0 = vcmp.eq.f32.partialorder %v1420_v43, 8.507059e+37  ;;  %v6991_v39 = vld [vmem:[#allocation19_spill] sm:$0xff] }
 0x3cd   :  { %v1442_v24 = vor.u32 1.1754944e-38, %v1441_v34  ;;  %vm1440_vm1 = vcmp.eq.f32.partialorder %v1439_v8, 8.507059e+37  ;;  %v209_v34 = vadd.f32 %v6991_v39, %v6978_v35  ;;  %v5445_v8 = vld [vmem:[#allocation10 + $0xf0] sm:$0xff] }
 0x3ce   :  { %v3935_v53 = vpop.eup %3934  ;;  %v5492_v39 = vld [vmem:[#allocation10 + $0x50] sm:$0xff] }
 0x3cf   :  { %v1449_v5 = vadd.f32 1.0, %v3935_v53 }
 0x3d0   :  { %v3937_v26 = vpop.eup %3936 }
 0x3d1   :  { %v3939_v6 = vpop.eup %3938  ;;  %v1412_v28 = vmul.f32 %v3937_v26, %v1410_v13  ;;  %3940 = vrcp.f32 %v1449_v5  ;;  %vm1417_vm9 = vweird.f32 %v3937_v26  ;;  %v1461_v36 = vand.u32 2147483648, %v1449_v5 }
 0x3d2   :  { %v1431_v45 = vmul.f32 %v3939_v6, %v1429_v47  ;;  %3942 = vtanh.f32 %v1405_v14  ;;  %vm1436_vm10 = vweird.f32 %v3939_v6  ;;  %vm1418_vm14 = vmor %vm1416_vm11, %vm1417_vm9  ;;  %vm1455_vm7 = vweird.f32 %v1449_v5  ;;  %v5421_v14 = vld [vmem:[#allocation10 + $0x128] sm:$0xff] }
 0x3d3   :  { %v1413_v0 = vsub.f32 1.0, %v1412_v28  ;;  %vm1437_vm15 = vmor %vm1435_vm13, %vm1436_vm10  ;;  %v1459_v13 = vand.u32 2147483647, %v1449_v5  ;;  %v1462_v62 = vor.u32 1.1754944e-38, %v1461_v36  ;;  %v5425_v28 = vld [vmem:[#allocation10 + $0x138] sm:$0xff] }
 0x3d4   :  { %v1432_v54 = vsub.f32 1.0, %v1431_v45  ;;  %v5430_v45 = vld [vmem:[#allocation10 + $0x108] sm:$0xff] }
 0x3d5   :  { %v1414_v44 = vmul.f32 %v3937_v26, %v1413_v0  ;;  %vm1460_vm9 = vcmp.eq.f32.partialorder %v1459_v13, 8.507059e+37  ;;  %v5432_v0 = vld [vmem:[#allocation10 + $0x110] sm:$0xff] }
 0x3d6   :  { %v1433_v9 = vmul.f32 %v3939_v6, %v1432_v54  ;;  %v5434_v54 = vld [vmem:[#allocation10 + $0x118] sm:$0xff] }
 0x3d7   :  { %v3941_v16 = vpop.eup %3940  ;;  %v1415_v46 = vadd.f32 %v3937_v26, %v1414_v44  ;;  %v6992_v44 = vld [vmem:[#allocation32_spill] sm:$0xff] }
 0x3d8   :  { %v1434_v18 = vadd.f32 %v3939_v6, %v1433_v9  ;;  %v1451_v4 = vmul.f32 %v3941_v16, %v1449_v5  ;;  %v3943_v52 = vpop.eup %3942  ;;  %vm1456_vm6 = vweird.f32 %v3941_v16  ;;  %v5414_v5 = vld [vmem:[#allocation10 + $0x150] sm:$0xff]  ;;  %v250_v43 = vadd.f32 %v6992_v44, %v6980_v49  ;;  %v5443_v9 = vld [vmem:[#allocation10 + $0xe8] sm:$0xff] }
 0x3d9   :  { %v1419_v61 = vsel %vm1418_vm14, %v3937_v26, %v1415_v46  ;;  %vm1457_vm8 = vmor %vm1455_vm7, %vm1456_vm6  ;;  %v5416_v26 = vld [vmem:[#allocation10 + $0x158] sm:$0xff]  ;;  %vm1691_vm7 = vcmp.gt.s32.totalorder %v4822_v10, 5 }
 0x3da   :  { %v1424_v29 = vsel %vm1421_vm0, %v1423_v55, %v1419_v61  ;;  %v1438_v42 = vsel %vm1437_vm15, %v3939_v6, %v1434_v18  ;;  %v1452_v2 = vsub.f32 1.0, %v1451_v4  ;;  %v5423_v6 = vld [vmem:[#allocation10 + $0x130] sm:$0xff] }
 0x3db   :  { %v1443_v17 = vsel %vm1440_vm1, %v1442_v24, %v1438_v42  ;;  %v1466_v37 = vmul.f32 %v3943_v52, %v1424_v29  ;;  %v5452_v24 = vld [vmem:[#allocation10 + $0xc8] sm:$0xff]  ;;  %v5454_v61 = vld [vmem:[#allocation10 + $0xd0] sm:$0xff]  ;;  %v5456_v52 = vld [vmem:[#allocation10 + $0xd8] sm:$0xff] }
 0x3dc   :  { %v1465_v1 = vmul.f32 %v1443_v17, %v5252_v41  ;;  %v1453_v3 = vmul.f32 %v3941_v16, %v1452_v2  ;;  %v5461_v2 = vld [vmem:[#allocation10 + $0xa8] sm:$0xff]  ;;  %v5463_v17 = vld [vmem:[#allocation10 + $0xb0] sm:$0xff] }
 0x3de   :  { %v1467_v38 = vadd.f32 %v1466_v37, %v1465_v1  ;;  %v1454_v20 = vadd.f32 %v3941_v16, %v1453_v3  ;;  %v5467_v37 = vld [vmem:[#allocation10 + $0xb8] sm:$0xff]  ;;  %v5470_v1 = vld [vmem:[#allocation10 + $0x88] sm:$0xff]  ;;  %v5472_v3 = vld [vmem:[#allocation10 + $0x90] sm:$0xff] }
 0x3e0   :  { %3944 = vtanh.f32 %v1467_v38  ;;  %v5335_v40 = vsel %vm1470_vm4, %v1467_v38, %v5252_v41  ;;  %v1458_v47 = vsel %vm1457_vm8, %v3941_v16, %v1454_v20  ;;  %v5447_v16 = vld [vmem:[#allocation10 + $0xf8] sm:$0xff]  ;;  %v6993_v20 = vld [vmem:[#allocation24_spill] sm:$0xff] }
 0x3e1   :  { %v1463_v57 = vsel %vm1460_vm9, %v1462_v62, %v1458_v47  ;;  %v5474_v38 = vld [vmem:[#allocation10 + $0x98] sm:$0xff]  ;;  %v332_v36 = vadd.f32 %v6993_v20, %v6982_v59  ;;  %v5481_v47 = vld [vmem:[#allocation10 + $0x68] sm:$0xff]  ;;  %v5483_v62 = vld [vmem:[#allocation10 + $0x70] sm:$0xff] }
 0x3e2   :  { %v5511_v20 = vld [vmem:[#allocation10 + $0x10] sm:$0xff] }
 0x3e6   :  { %v3945_v53 = vpop.eup %3944 }
 0x3e7   :  { %v1469_v19 = vmul.f32 %v3945_v53, %v1463_v57  ;;  %v5485_v53 = vld [vmem:[#allocation10 + $0x78] sm:$0xff] }
 0x3e9   :  { %v5344_v41 = vsel %vm1470_vm4, %v1469_v19, %v5257_v32  ;;  %v5490_v19 = vld [vmem:[#allocation10 + $0x48] sm:$0xff] }
 0x3ea   :  { %1560 = vmatmul.f32.vlgmr.msra.gmra.mxu0 %v5344_v41  ;;  %1580 = vmatmul.f32.vlgmr.msrb.gmra.mxu1 %v5344_v41 }
 0x3eb   :  { %1600 = vmatmul.f32.vlgmr.msra.gmra.mxu2 %v5344_v41  ;;  %1620 = vmatmul.f32.vlgmr.msra.gmra.mxu3 %v5344_v41 }
 0x3ec   :  { %1986 = vmatpush.msra.mxu0 %v5263_v15  ;;  %v5367_v15 = vld [vmem:[#allocation10 + $0x1e8] sm:$0xff] }
 0x3ed   :  { %1785 = vmatpush.msra.mxu1 %v5367_v15 }
 0x3ee   :  { %1987 = vmatpush.msra.mxu0 %v5266_v48  ;;  %v5369_v48 = vld [vmem:[#allocation10 + $0x1f0] sm:$0xff] }
 0x3ef   :  { %1805 = vmatpush.msrb.mxu2 %v5369_v48 }
 0x3f0   :  { %1988 = vmatpush.msra.mxu0 %v5269_v12  ;;  %v5371_v12 = vld [vmem:[#allocation10 + $0x1f8] sm:$0xff] }
 0x3f1   :  { %1825 = vmatpush.msrb.mxu3 %v5371_v12 }
 0x3f2   :  { %1989 = vmatpush.msra.mxu0 %v5272_v27  ;;  %v5376_v27 = vld [vmem:[#allocation10 + $0x1c8] sm:$0xff] }
 0x3f3   :  { %1786 = vmatpush.msra.mxu1 %v5376_v27 }
 0x3f4   :  { %1990 = vmatpush.msra.mxu0 %v5275_v60  ;;  %v5378_v60 = vld [vmem:[#allocation10 + $0x1d0] sm:$0xff] }
 0x3f5   :  { %1806 = vmatpush.msrb.mxu2 %v5378_v60 }
 0x3f6   :  { %1991 = vmatpush.msra.mxu0 %v5278_v11  ;;  %v5380_v11 = vld [vmem:[#allocation10 + $0x1d8] sm:$0xff] }
 0x3f7   :  { %1826 = vmatpush.msrb.mxu3 %v5380_v11 }
 0x3f8   :  { %1992 = vmatpush.msra.mxu0 %v5281_v33  ;;  %v5385_v33 = vld [vmem:[#allocation10 + $0x1a8] sm:$0xff] }
 0x3f9   :  { %1787 = vmatpush.msra.mxu1 %v5385_v33 }
 0x3fa   :  { %1993 = vmatpush.msra.mxu0 %v5284_v51  ;;  %v5387_v51 = vld [vmem:[#allocation10 + $0x1b0] sm:$0xff] }
 0x3fb   :  { %1807 = vmatpush.msrb.mxu2 %v5387_v51 }
 0x3fc   :  { %1994 = vmatpush.msra.mxu0 %v5291_v21  ;;  %v5389_v21 = vld [vmem:[#allocation10 + $0x1b8] sm:$0xff] }
 0x3fd   :  { %1827 = vmatpush.msrb.mxu3 %v5389_v21 }
 0x3fe   :  { %1995 = vmatpush.msra.mxu0 %v5294_v58  ;;  %v5394_v58 = vld [vmem:[#allocation10 + $0x188] sm:$0xff] }
 0x3ff   :  { %1788 = vmatpush.msra.mxu1 %v5394_v58 }
 0x400   :  { %1996 = vmatpush.msra.mxu0 %v5297_v7  ;;  %v5396_v7 = vld [vmem:[#allocation10 + $0x190] sm:$0xff] }
 0x401   :  { %1808 = vmatpush.msrb.mxu2 %v5396_v7 }
 0x402   :  { %1997 = vmatpush.msra.mxu0 %v5300_v56  ;;  %v5398_v56 = vld [vmem:[#allocation10 + $0x198] sm:$0xff] }
 0x403   :  { %1828 = vmatpush.msrb.mxu3 %v5398_v56 }
 0x404   :  { %1998 = vmatpush.msra.mxu0 %v5305_v23  ;;  %v5403_v23 = vld [vmem:[#allocation10 + $0x168] sm:$0xff] }
 0x405   :  { %1789 = vmatpush.msra.mxu1 %v5403_v23 }
 0x406   :  { %1999 = vmatpush.msra.mxu0 %v5308_v25  ;;  %v5405_v25 = vld [vmem:[#allocation10 + $0x170] sm:$0xff] }
 0x407   :  { %1809 = vmatpush.msrb.mxu2 %v5405_v25 }
 0x408   :  { %2000 = vmatpush.msra.mxu0 %v5311_v30  ;;  %v5407_v30 = vld [vmem:[#allocation10 + $0x178] sm:$0xff] }
 0x409   :  { %1829 = vmatpush.msrb.mxu3 %v5407_v30  ;;  %1810 = vmatpush.msrb.mxu2 %v5414_v5 }
 0x40a   :  { %2001 = vmatpush.msra.mxu0 %v5313_v22  ;;  %v5412_v22 = vld [vmem:[#allocation10 + $0x148] sm:$0xff] }
 0x40b   :  { %1790 = vmatpush.msra.mxu1 %v5412_v22  ;;  %1830 = vmatpush.msrb.mxu3 %v5416_v26 }
 0x40c   :  { %1811 = vmatpush.msrb.mxu2 %v5423_v6 }
 0x40d   :  { %1791 = vmatpush.msra.mxu1 %v5421_v14  ;;  %1831 = vmatpush.msrb.mxu3 %v5425_v28 }
 0x40e   :  { %1812 = vmatpush.msrb.mxu2 %v5432_v0 }
 0x40f   :  { %1792 = vmatpush.msra.mxu1 %v5430_v45  ;;  %1832 = vmatpush.msrb.mxu3 %v5434_v54 }
 0x410   :  { %1813 = vmatpush.msrb.mxu2 %v5445_v8 }
 0x411   :  { %1793 = vmatpush.msra.mxu1 %v5443_v9  ;;  %1833 = vmatpush.msrb.mxu3 %v5447_v16 }
 0x412   :  { %1814 = vmatpush.msrb.mxu2 %v5454_v61 }
 0x413   :  { %1794 = vmatpush.msra.mxu1 %v5452_v24  ;;  %1834 = vmatpush.msrb.mxu3 %v5456_v52 }
 0x414   :  { %1815 = vmatpush.msrb.mxu2 %v5463_v17 }
 0x415   :  { %1795 = vmatpush.msra.mxu1 %v5461_v2  ;;  %1835 = vmatpush.msrb.mxu3 %v5467_v37 }
 0x416   :  { %1816 = vmatpush.msrb.mxu2 %v5472_v3 }
 0x417   :  { %1796 = vmatpush.msra.mxu1 %v5470_v1  ;;  %1836 = vmatpush.msrb.mxu3 %v5474_v38 }
 0x418   :  { %1817 = vmatpush.msrb.mxu2 %v5483_v62 }
 0x419   :  { %1797 = vmatpush.msra.mxu1 %v5481_v47  ;;  %1837 = vmatpush.msrb.mxu3 %v5485_v53 }
 0x41a   :  { %1818 = vmatpush.msrb.mxu2 %v5492_v39 }
 0x41b   :  { %1798 = vmatpush.msra.mxu1 %v5490_v19 }
 0x467   :  { %v1561_v46 = vpop.f32.mrf.mxu0  ;;  %v1581_v55 = vpop.f32.mrf.mxu1 }
 0x468   :  { %v1624_v18 = vadd.f32 %v1561_v46, %v209_v34  ;;  %v1625_v4 = vadd.f32 %v1581_v55, %v250_v43  ;;  %v5494_v34 = vld [vmem:[#allocation10 + $0x58] sm:$0xff]  ;;  %v5499_v46 = vld [vmem:[#allocation10 + $0x28] sm:$0xff]  ;;  %v5501_v55 = vld [vmem:[#allocation10 + $0x30] sm:$0xff] }
 0x469   :  { %1838 = vmatpush.msrb.mxu3 %v5494_v34  ;;  %1799 = vmatpush.msra.mxu1 %v5499_v46 }
 0x46a   :  { %v3795_v29 = vmul.f32 -1.442695, %v1624_v18  ;;  %v3796_v42 = vmul.f32 -1.442695, %v1625_v4  ;;  %v5503_v18 = vld [vmem:[#allocation10 + $0x38] sm:$0xff]  ;;  %1819 = vmatpush.msrb.mxu2 %v5501_v55 }
 0x46b   :  { %1839 = vmatpush.msrb.mxu3 %v5503_v18 }
 0x46c   :  { %3946 = vpow2.f32 %v3795_v29  ;;  %1820 = vmatpush.msrb.mxu2 %v5511_v20 }
 0x46d   :  { %3948 = vpow2.f32 %v3796_v42  ;;  %v5509_v42 = vld [vmem:[#allocation10 + $0x8] sm:$0xff] }
 0x46e   :  { %v1621_v13 = vpop.f32.mrf.mxu3  ;;  %1800 = vmatpush.msra.mxu1 %v5509_v42  ;;  %2026 = vmatpush.msra.mxu2 %v5369_v48 }
 0x46f   :  { %v1627_v57 = vadd.f32 %v1621_v13, %v332_v36  ;;  %v5513_v36 = vld [vmem:[#allocation10 + $0x18] sm:$0xff] }
 0x470   :  { %1840 = vmatpush.msrb.mxu3 %v5513_v36  ;;  %2006 = vmatpush.msrb.mxu1 %v5367_v15 }
 0x471   :  { %v3797_v44 = vmul.f32 -1.442695, %v1627_v57  ;;  %v1601_v57 = vpop.f32.mrf.mxu2  ;;  %2027 = vmatpush.msra.mxu2 %v5378_v60 }
 0x472   :  { %v3947_v43 = vpop.eup %3946  ;;  %2046 = vmatpush.msra.mxu3 %v5371_v12  ;;  %2007 = vmatpush.msrb.mxu1 %v5376_v27 }
 0x473   :  { %v3949_v4 = vpop.eup %3948  ;;  %v5505_v29 = vadd.f32 1.0, %v3947_v43  ;;  %3950 = vpow2.f32 %v3797_v44  ;;  %v6994_v43 = vld [vmem:[#allocation35_spill] sm:$0xff]  ;;  %2028 = vmatpush.msra.mxu2 %v5387_v51 }
 0x474   :  { %v5515_v13 = vadd.f32 1.0, %v3949_v4  ;;  %v291_v4 = vadd.f32 %v6994_v43, %v6984_v50  ;;  %2047 = vmatpush.msra.mxu3 %v5380_v11  ;;  %2008 = vmatpush.msrb.mxu1 %v5385_v33 }
 0x475   :  { %3952 = vrcp.f32 %v5505_v29  ;;  %2029 = vmatpush.msra.mxu2 %v5396_v7  ;;  %v1643_v33 = vand.u32 2147483648, %v5505_v29  ;;  %vm1637_vm13 = vweird.f32 %v5505_v29 }
 0x476   :  { %3954 = vrcp.f32 %v5515_v13  ;;  %v1626_v31 = vadd.f32 %v1601_v57, %v291_v4  ;;  %2048 = vmatpush.msra.mxu3 %v5389_v21  ;;  %2009 = vmatpush.msrb.mxu1 %v5394_v58  ;;  %v1662_v51 = vand.u32 2147483648, %v5515_v13  ;;  %v1641_v58 = vand.u32 2147483647, %v5505_v29  ;;  %v6996_v4 = vld [vmem:[#allocation34_spill] sm:$0xff] }
 0x477   :  { %2030 = vmatpush.msra.mxu2 %v5405_v25  ;;  %vm1656_vm14 = vweird.f32 %v5515_v13  ;;  %v1644_v25 = vor.u32 1.1754944e-38, %v1643_v33  ;;  %v2194_v33 = vld [vmem:[#allocation8 + $0x378] sm:$0xff] }
 0x478   :  { %2049 = vmatpush.msra.mxu3 %v5398_v56  ;;  %2010 = vmatpush.msrb.mxu1 %v5403_v23  ;;  %v1660_v56 = vand.u32 2147483647, %v5515_v13  ;;  %vm1642_vm1 = vcmp.eq.f32.partialorder %v1641_v58, 8.507059e+37  ;;  %v2187_v58 = vld [vmem:[#allocation8 + $0x340] sm:$0xff] }
 0x479   :  { %v3951_v44 = vpop.eup %3950  ;;  %2031 = vmatpush.msra.mxu2 %v5414_v5  ;;  %v1663_v5 = vor.u32 1.1754944e-38, %v1662_v51 }
 0x47a   :  { %v5531_v32 = vadd.f32 1.0, %v3951_v44  ;;  %2050 = vmatpush.msra.mxu3 %v5407_v30  ;;  %2011 = vmatpush.msrb.mxu1 %v5412_v22  ;;  %vm1661_vm6 = vcmp.eq.f32.partialorder %v1660_v56, 8.507059e+37  ;;  %v2189_v56 = vld [vmem:[#allocation8 + $0x350] sm:$0xff] }
 0x47b   :  { %v3953_v15 = vpop.eup %3952  ;;  %2032 = vmatpush.msra.mxu2 %v5423_v6 }
 0x47c   :  { %v3955_v48 = vpop.eup %3954  ;;  %v1633_v12 = vmul.f32 %v3953_v15, %v5505_v29  ;;  %3956 = vrcp.f32 %v5531_v32  ;;  %vm1638_vm10 = vweird.f32 %v3953_v15  ;;  %2051 = vmatpush.msra.mxu3 %v5416_v26  ;;  %2012 = vmatpush.msrb.mxu1 %v5421_v14  ;;  %vm1676_vm9 = vweird.f32 %v5531_v32 }
 0x47d   :  { %v1652_v27 = vmul.f32 %v3955_v48, %v5515_v13  ;;  %3958 = vtanh.f32 %v1626_v31  ;;  %vm1657_vm11 = vweird.f32 %v3955_v48  ;;  %vm1639_vm15 = vmor %vm1637_vm13, %vm1638_vm10  ;;  %2033 = vmatpush.msra.mxu2 %v5432_v0 }
 0x47e   :  { %v1634_v60 = vsub.f32 1.0, %v1633_v12  ;;  %2052 = vmatpush.msra.mxu3 %v5425_v28  ;;  %vm1658_vm0 = vmor %vm1656_vm14, %vm1657_vm11  ;;  %2013 = vmatpush.msrb.mxu1 %v5430_v45  ;;  %v2192_v12 = vld [vmem:[#allocation8 + $0x368] sm:$0xff] }
 0x47f   :  { %v1653_v11 = vsub.f32 1.0, %v1652_v27  ;;  %2034 = vmatpush.msra.mxu2 %v5445_v8  ;;  %v1680_v8 = vand.u32 2147483647, %v5531_v32  ;;  %v2193_v27 = vld [vmem:[#allocation8 + $0x370] sm:$0xff] }
 0x480   :  { %v1635_v21 = vmul.f32 %v3953_v15, %v1634_v60  ;;  %2053 = vmatpush.msra.mxu3 %v5434_v54  ;;  %2014 = vmatpush.msrb.mxu1 %v5443_v9  ;;  %v1682_v54 = vand.u32 2147483648, %v5531_v32 }
 0x481   :  { %v1654_v7 = vmul.f32 %v3955_v48, %v1653_v11  ;;  %2035 = vmatpush.msra.mxu2 %v5454_v61  ;;  %vm1681_vm11 = vcmp.eq.f32.partialorder %v1680_v8, 8.507059e+37  ;;  %v2178_v8 = vld [vmem:[#allocation8 + $0x2f8] sm:$0xff] }
 0x482   :  { %v3957_v31 = vpop.eup %3956  ;;  %v1636_v23 = vadd.f32 %v3953_v15, %v1635_v21  ;;  %2054 = vmatpush.msra.mxu3 %v5447_v16  ;;  %2015 = vmatpush.msrb.mxu1 %v5452_v24 }
 0x483   :  { %v1655_v30 = vadd.f32 %v3955_v48, %v1654_v7  ;;  %v1672_v22 = vmul.f32 %v3957_v31, %v5531_v32  ;;  %v3959_v29 = vpop.eup %3958  ;;  %vm1677_vm8 = vweird.f32 %v3957_v31  ;;  %2036 = vmatpush.msra.mxu2 %v5463_v17  ;;  %v2208_v17 = vld [vmem:[#allocation8 + $0x3e8] sm:$0xff] }
 0x484   :  { %v1640_v26 = vsel %vm1639_vm15, %v3953_v15, %v1636_v23  ;;  %2055 = vmatpush.msra.mxu3 %v5456_v52  ;;  %2016 = vmatpush.msrb.mxu1 %v5461_v2  ;;  %vm1678_vm10 = vmor %vm1676_vm9, %vm1677_vm8  ;;  %v2207_v2 = vld [vmem:[#allocation8 + $0x3e0] sm:$0xff]  ;;  %v253_v15 = vadd.f32 %v6996_v4, %v6980_v49  ;;  %v2188_v7 = vld [vmem:[#allocation8 + $0x348] sm:$0xff] }
 0x485   :  { %v1645_v14 = vsel %vm1642_vm1, %v1644_v25, %v1640_v26  ;;  %v1659_v57 = vsel %vm1658_vm0, %v3955_v48, %v1655_v30  ;;  %v1673_v13 = vsub.f32 1.0, %v1672_v22  ;;  %2037 = vmatpush.msra.mxu2 %v5472_v3  ;;  %v2203_v3 = vld [vmem:[#allocation8 + $0x3c0] sm:$0xff]  ;;  %v2184_v22 = vld [vmem:[#allocation8 + $0x328] sm:$0xff]  ;;  %v2186_v26 = vld [vmem:[#allocation8 + $0x338] sm:$0xff] }
 0x486   :  { %v1664_v44 = vsel %vm1661_vm6, %v1663_v5, %v1659_v57  ;;  %v1687_v6 = vmul.f32 %v3959_v29, %v1645_v14  ;;  %2056 = vmatpush.msra.mxu3 %v5467_v37  ;;  %2017 = vmatpush.msrb.mxu1 %v5470_v1  ;;  %v2209_v37 = vld [vmem:[#allocation8 + $0x3f0] sm:$0xff]  ;;  %v2210_v1 = vld [vmem:[#allocation8 + $0x3f8] sm:$0xff]  ;;  %v2191_v48 = vld [vmem:[#allocation8 + $0x360] sm:$0xff] }
 0x487   :  { %v1686_v28 = vmul.f32 %v1664_v44, %v5335_v40  ;;  %v1674_v43 = vmul.f32 %v3957_v31, %v1673_v13  ;;  %2038 = vmatpush.msra.mxu2 %v5483_v62  ;;  %v2206_v62 = vld [vmem:[#allocation8 + $0x3d8] sm:$0xff]  ;;  %v2183_v30 = vld [vmem:[#allocation8 + $0x320] sm:$0xff]  ;;  %v2185_v5 = vld [vmem:[#allocation8 + $0x330] sm:$0xff] }
 0x488   :  { %2057 = vmatpush.msra.mxu3 %v5474_v38  ;;  %2018 = vmatpush.msrb.mxu1 %v5481_v47  ;;  %v2204_v38 = vld [vmem:[#allocation8 + $0x3c8] sm:$0xff]  ;;  %v2205_v47 = vld [vmem:[#allocation8 + $0x3d0] sm:$0xff]  ;;  %v2179_v29 = vld [vmem:[#allocation8 + $0x300] sm:$0xff] }
 0x489   :  { %v1688_v45 = vadd.f32 %v1687_v6, %v1686_v28  ;;  %v1675_v0 = vadd.f32 %v3957_v31, %v1674_v43  ;;  %2039 = vmatpush.msra.mxu2 %v5492_v39  ;;  %v2201_v39 = vld [vmem:[#allocation8 + $0x3b0] sm:$0xff]  ;;  %v2180_v14 = vld [vmem:[#allocation8 + $0x308] sm:$0xff]  ;;  %v2182_v6 = vld [vmem:[#allocation8 + $0x318] sm:$0xff] }
 0x48a   :  { %2058 = vmatpush.msra.mxu3 %v5485_v53  ;;  %2019 = vmatpush.msrb.mxu1 %v5490_v19  ;;  %v2199_v53 = vld [vmem:[#allocation8 + $0x3a0] sm:$0xff]  ;;  %v2200_v19 = vld [vmem:[#allocation8 + $0x3a8] sm:$0xff]  ;;  %v2181_v57 = vld [vmem:[#allocation8 + $0x310] sm:$0xff] }
 0x48b   :  { %3960 = vtanh.f32 %v1688_v45  ;;  %v5575_v9 = vsel %vm1691_vm7, %v1688_v45, %v5335_v40  ;;  %v1679_v16 = vsel %vm1678_vm10, %v3957_v31, %v1675_v0  ;;  %v1683_v40 = vor.u32 1.1754944e-38, %v1682_v54  ;;  %2040 = vmatpush.msra.mxu2 %v5501_v55  ;;  %v2196_v55 = vld [vmem:[#allocation8 + $0x388] sm:$0xff]  ;;  %v2190_v31 = vld [vmem:[#allocation8 + $0x358] sm:$0xff]  ;;  %v2175_v43 = vld [vmem:[#allocation8 + $0x2e0] sm:$0xff] }
 0x48c   :  { %2059 = vmatpush.msra.mxu3 %v5494_v34  ;;  %2020 = vmatpush.msrb.mxu1 %v5499_v46  ;;  %v2202_v34 = vld [vmem:[#allocation8 + $0x3b8] sm:$0xff]  ;;  %v2195_v46 = vld [vmem:[#allocation8 + $0x380] sm:$0xff]  ;;  %v6997_v13 = vld [vmem:[#allocation29_spill] sm:$0xff]  ;;  %vm1912_vm10 = vcmp.gt.s32.totalorder %v4822_v10, 6 }
 0x48d   :  { %v1684_v32 = vsel %vm1681_vm11, %v1683_v40, %v1679_v16  ;;  %2041 = vmatpush.msra.mxu2 %v5511_v20  ;;  %v6995_v20 = vld [vmem:[#allocation20_spill] sm:$0xff]  ;;  %v335_v44 = vadd.f32 %v6997_v13, %v6982_v59  ;;  %v2176_v45 = vld [vmem:[#allocation8 + $0x2e8] sm:$0xff]  ;;  %v2177_v0 = vld [vmem:[#allocation8 + $0x2f0] sm:$0xff] }
 0x48e   :  { %2060 = vmatpush.msra.mxu3 %v5503_v18  ;;  %2021 = vmatpush.msrb.mxu1 %v5509_v42  ;;  %v2197_v18 = vld [vmem:[#allocation8 + $0x390] sm:$0xff]  ;;  %v2198_v42 = vld [vmem:[#allocation8 + $0x398] sm:$0xff]  ;;  %v2171_v16 = vld [vmem:[#allocation8 + $0x2c0] sm:$0xff] }
 0x48f   :  { %v2172_v40 = vld [vmem:[#allocation8 + $0x2c8] sm:$0xff] }
 0x490   :  { %2061 = vmatpush.msra.mxu3 %v5513_v36  ;;  %v212_v36 = vadd.f32 %v6995_v20, %v6978_v35  ;;  %v2155_v20 = vld [vmem:[#allocation8 + $0x240] sm:$0xff] }
 0x491   :  { %v3961_v24 = vpop.eup %3960 }
 0x492   :  { %v1690_v61 = vmul.f32 %v3961_v24, %v1684_v32  ;;  %v2173_v24 = vld [vmem:[#allocation8 + $0x2d0] sm:$0xff] }
 0x494   :  { %v5596_v52 = vsel %vm1691_vm7, %v1690_v61, %v5344_v41  ;;  %v2174_v61 = vld [vmem:[#allocation8 + $0x2d8] sm:$0xff] }
 0x495   :  { %1781 = vmatmul.f32.vlgmr.msrb.gmra.mxu0 %v5596_v52  ;;  %1801 = vmatmul.f32.vlgmr.msra.gmra.mxu1 %v5596_v52 }
 0x496   :  { %1821 = vmatmul.f32.vlgmr.msrb.gmra.mxu2 %v5596_v52  ;;  %1841 = vmatmul.f32.vlgmr.msrb.gmra.mxu3 %v5596_v52 }
 0x497   :  { %2222 = vmatpush.msrb.mxu0 %v2207_v2  ;;  %2263 = vmatpush.msra.mxu1 %v2208_v17  ;;  %v2167_v17 = vld [vmem:[#allocation8 + $0x2a0] sm:$0xff] }
 0x498   :  { %2304 = vmatpush.msrb.mxu2 %v2209_v37  ;;  %2345 = vmatpush.msrb.mxu3 %v2210_v1  ;;  %v2168_v37 = vld [vmem:[#allocation8 + $0x2a8] sm:$0xff]  ;;  %v2169_v1 = vld [vmem:[#allocation8 + $0x2b0] sm:$0xff] }
 0x499   :  { %2223 = vmatpush.msrb.mxu0 %v2203_v3  ;;  %2264 = vmatpush.msra.mxu1 %v2204_v38 }
 0x49a   :  { %2305 = vmatpush.msrb.mxu2 %v2205_v47  ;;  %2346 = vmatpush.msrb.mxu3 %v2206_v62  ;;  %v2170_v47 = vld [vmem:[#allocation8 + $0x2b8] sm:$0xff]  ;;  %v2163_v62 = vld [vmem:[#allocation8 + $0x280] sm:$0xff] }
 0x49b   :  { %2224 = vmatpush.msrb.mxu0 %v2199_v53  ;;  %2265 = vmatpush.msra.mxu1 %v2200_v19  ;;  %v2164_v53 = vld [vmem:[#allocation8 + $0x288] sm:$0xff] }
 0x49c   :  { %2306 = vmatpush.msrb.mxu2 %v2201_v39  ;;  %2347 = vmatpush.msrb.mxu3 %v2202_v34  ;;  %v2165_v39 = vld [vmem:[#allocation8 + $0x290] sm:$0xff]  ;;  %v2166_v34 = vld [vmem:[#allocation8 + $0x298] sm:$0xff] }
 0x49d   :  { %2225 = vmatpush.msrb.mxu0 %v2195_v46  ;;  %2266 = vmatpush.msra.mxu1 %v2196_v55  ;;  %v2159_v46 = vld [vmem:[#allocation8 + $0x260] sm:$0xff]  ;;  %v2160_v55 = vld [vmem:[#allocation8 + $0x268] sm:$0xff] }
 0x49e   :  { %2307 = vmatpush.msrb.mxu2 %v2197_v18  ;;  %2348 = vmatpush.msrb.mxu3 %v2198_v42  ;;  %v2161_v18 = vld [vmem:[#allocation8 + $0x270] sm:$0xff]  ;;  %v2162_v42 = vld [vmem:[#allocation8 + $0x278] sm:$0xff] }
 0x49f   :  { %2226 = vmatpush.msrb.mxu0 %v2191_v48  ;;  %2267 = vmatpush.msra.mxu1 %v2192_v12  ;;  %v2158_v48 = vld [vmem:[#allocation8 + $0x258] sm:$0xff]  ;;  %v2151_v12 = vld [vmem:[#allocation8 + $0x220] sm:$0xff] }
 0x4a0   :  { %2308 = vmatpush.msrb.mxu2 %v2193_v27  ;;  %2349 = vmatpush.msrb.mxu3 %v2194_v33  ;;  %v2152_v33 = vld [vmem:[#allocation8 + $0x228] sm:$0xff] }
 0x4a1   :  { %2227 = vmatpush.msrb.mxu0 %v2187_v58  ;;  %2268 = vmatpush.msra.mxu1 %v2188_v7  ;;  %v2147_v7 = vld [vmem:[#allocation8 + $0x200] sm:$0xff] }
 0x4a2   :  { %2309 = vmatpush.msrb.mxu2 %v2189_v56  ;;  %2350 = vmatpush.msrb.mxu3 %v2190_v31  ;;  %v2148_v56 = vld [vmem:[#allocation8 + $0x208] sm:$0xff] }
 0x4a3   :  { %2228 = vmatpush.msrb.mxu0 %v2183_v30  ;;  %2269 = vmatpush.msra.mxu1 %v2184_v22  ;;  %v2150_v30 = vld [vmem:[#allocation8 + $0x218] sm:$0xff] }
 0x4a4   :  { %2310 = vmatpush.msrb.mxu2 %v2185_v5  ;;  %2351 = vmatpush.msrb.mxu3 %v2186_v26 }
 0x4a5   :  { %2229 = vmatpush.msrb.mxu0 %v2179_v29  ;;  %2270 = vmatpush.msra.mxu1 %v2180_v14 }
 0x4a6   :  { %2311 = vmatpush.msrb.mxu2 %v2181_v57  ;;  %2352 = vmatpush.msrb.mxu3 %v2182_v6 }
 0x4a7   :  { %2230 = vmatpush.msrb.mxu0 %v2175_v43  ;;  %2271 = vmatpush.msra.mxu1 %v2176_v45 }
 0x4a8   :  { %2312 = vmatpush.msrb.mxu2 %v2177_v0  ;;  %2353 = vmatpush.msrb.mxu3 %v2178_v8 }
 0x4a9   :  { %2231 = vmatpush.msrb.mxu0 %v2171_v16  ;;  %2272 = vmatpush.msra.mxu1 %v2172_v40 }
 0x4aa   :  { %2313 = vmatpush.msrb.mxu2 %v2173_v24  ;;  %2354 = vmatpush.msrb.mxu3 %v2174_v61 }
 0x4ab   :  { %2232 = vmatpush.msrb.mxu0 %v2167_v17  ;;  %2273 = vmatpush.msra.mxu1 %v2168_v37 }
 0x4ac   :  { %2314 = vmatpush.msrb.mxu2 %v2169_v1  ;;  %2355 = vmatpush.msrb.mxu3 %v2170_v47 }
 0x4ad   :  { %2233 = vmatpush.msrb.mxu0 %v2163_v62  ;;  %2274 = vmatpush.msra.mxu1 %v2164_v53 }
 0x4ae   :  { %2315 = vmatpush.msrb.mxu2 %v2165_v39  ;;  %2356 = vmatpush.msrb.mxu3 %v2166_v34 }
 0x4af   :  { %2234 = vmatpush.msrb.mxu0 %v2159_v46  ;;  %2275 = vmatpush.msra.mxu1 %v2160_v55 }
 0x4b0   :  { %2316 = vmatpush.msrb.mxu2 %v2161_v18  ;;  %2357 = vmatpush.msrb.mxu3 %v2162_v42 }
 0x4b1   :  { %2235 = vmatpush.msrb.mxu0 %v2155_v20 }
 0x4b2   :  { %2358 = vmatpush.msrb.mxu3 %v2158_v48  ;;  %v5674_v48 = vld [vmem:[#allocation10 + $0x3c0] sm:$0xff] }
 0x4b3   :  { %2236 = vmatpush.msrb.mxu0 %v2151_v12  ;;  %7003 = vst [vmem:[#allocation47_spill] sm:$0xff] %v5674_v48  ;;  %v5678_v12 = vld [vmem:[#allocation10 + $0x3c8] sm:$0xff] }
 0x4b4   :  { %7004 = vst [vmem:[#allocation48_spill] sm:$0xff] %v5678_v12 }
 0x4b5   :  { %2237 = vmatpush.msrb.mxu0 %v2147_v7  ;;  %v5719_v7 = vld [vmem:[#allocation10 + $0x3b8] sm:$0xff] }
 0x512   :  { %v1782_v60 = vpop.f32.mrf.mxu0  ;;  %v1802_v11 = vpop.f32.mrf.mxu1 }
 0x513   :  { %v1845_v51 = vadd.f32 %v1782_v60, %v212_v36  ;;  %v1846_v21 = vadd.f32 %v1802_v11, %v253_v15  ;;  %v2156_v36 = vld [vmem:[#allocation8 + $0x248] sm:$0xff]  ;;  %v2157_v15 = vld [vmem:[#allocation8 + $0x250] sm:$0xff]  ;;  %v6998_v60 = vld [vmem:[#allocation39_spill] sm:$0xff] }
 0x514   :  { %v294_v11 = vadd.f32 %v6998_v60, %v6984_v50  ;;  %2276 = vmatpush.msra.mxu1 %v2156_v36  ;;  %2317 = vmatpush.msrb.mxu2 %v2157_v15  ;;  %v7000_v36 = vld [vmem:[#allocation51_spill] sm:$0xff]  ;;  %v5672_v15 = vld [vmem:[#allocation10 + $0x3e8] sm:$0xff] }
 0x515   :  { %v3798_v23 = vmul.f32 -1.442695, %v1845_v51  ;;  %v3799_v25 = vmul.f32 -1.442695, %v1846_v21  ;;  %v2153_v51 = vld [vmem:[#allocation8 + $0x230] sm:$0xff]  ;;  %v2154_v21 = vld [vmem:[#allocation8 + $0x238] sm:$0xff] }
 0x516   :  { %2277 = vmatpush.msra.mxu1 %v2152_v33  ;;  %2318 = vmatpush.msrb.mxu2 %v2153_v51  ;;  %7002 = vst [vmem:[#allocation46_spill] sm:$0xff] %v5672_v15  ;;  %v5685_v60 = vld [vmem:[#allocation10 + $0x3a8] sm:$0xff]  ;;  %v7007_v33 = vld [vmem:[#allocation44_spill] sm:$0xff]  ;;  %v5710_v51 = vld [vmem:[#allocation10 + $0x3f0] sm:$0xff] }
 0x517   :  { %3962 = vpow2.f32 %v3798_v23  ;;  %2359 = vmatpush.msrb.mxu3 %v2154_v21  ;;  %v5715_v21 = vld [vmem:[#allocation10 + $0x380] sm:$0xff] }
 0x518   :  { %3964 = vpow2.f32 %v3799_v25  ;;  %v2149_v25 = vld [vmem:[#allocation8 + $0x210] sm:$0xff]  ;;  %2278 = vmatpush.msra.mxu1 %v2148_v56  ;;  %v5726_v56 = vld [vmem:[#allocation10 + $0x368] sm:$0xff] }
 0x519   :  { %v1842_v28 = vpop.f32.mrf.mxu3  ;;  %v1822_v4 = vpop.f32.mrf.mxu2  ;;  %2319 = vmatpush.msrb.mxu2 %v2149_v25  ;;  %2360 = vmatpush.msrb.mxu3 %v2150_v30  ;;  %v5736_v25 = vld [vmem:[#allocation10 + $0x390] sm:$0xff]  ;;  %v7008_v30 = vld [vmem:[#allocation21_spill] sm:$0xff] }
 0x51a   :  { %v1848_v54 = vadd.f32 %v1842_v28, %v335_v44  ;;  %v1847_v23 = vadd.f32 %v1822_v4, %v294_v11  ;;  %v5670_v4 = vld [vmem:[#allocation10 + $0x3e0] sm:$0xff]  ;;  %v5687_v11 = vld [vmem:[#allocation10 + $0x3d8] sm:$0xff] }
 0x51b   :  { %7001 = vst [vmem:[#allocation45_spill] sm:$0xff] %v5670_v4 }
 0x51c   :  { %v3800_v32 = vmul.f32 -1.442695, %v1848_v54  ;;  %7006 = vst [vmem:[#allocation50_spill] sm:$0xff] %v5687_v11 }
 0x51d   :  { %v3963_v2 = vpop.eup %3962 }
 0x51e   :  { %v3965_v3 = vpop.eup %3964  ;;  %v5611_v38 = vadd.f32 1.0, %v3963_v2  ;;  %3966 = vpow2.f32 %v3800_v32 }
 0x51f   :  { %v5613_v19 = vadd.f32 1.0, %v3965_v3 }
 0x520   :  { %3968 = vrcp.f32 %v5611_v38  ;;  %v1864_v57 = vand.u32 2147483648, %v5611_v38  ;;  %v1862_v6 = vand.u32 2147483647, %v5611_v38  ;;  %vm1858_vm15 = vweird.f32 %v5611_v38 }
 0x521   :  { %3970 = vrcp.f32 %v5613_v19  ;;  %v1883_v13 = vand.u32 2147483648, %v5613_v19  ;;  %v1881_v43 = vand.u32 2147483647, %v5613_v19  ;;  %vm1877_vm0 = vweird.f32 %v5613_v19 }
 0x522   :  { %v1865_v54 = vor.u32 1.1754944e-38, %v1864_v57  ;;  %vm1863_vm8 = vcmp.eq.f32.partialorder %v1862_v6, 8.507059e+37 }
 0x523   :  { %v1884_v40 = vor.u32 1.1754944e-38, %v1883_v13  ;;  %vm1882_vm9 = vcmp.eq.f32.partialorder %v1881_v43, 8.507059e+37  ;;  %v5752_v43 = vld [vmem:[#allocation10 + $0x348] sm:$0xff] }
 0x524   :  { %v3967_v27 = vpop.eup %3966 }
 0x525   :  { %v5619_v58 = vadd.f32 1.0, %v3967_v27  ;;  %v5683_v27 = vld [vmem:[#allocation10 + $0x3a0] sm:$0xff] }
 0x526   :  { %v3969_v31 = vpop.eup %3968  ;;  %7005 = vst [vmem:[#allocation49_spill] sm:$0xff] %v5683_v27 }
 0x527   :  { %v3971_v22 = vpop.eup %3970  ;;  %v1854_v5 = vmul.f32 %v3969_v31, %v5611_v38  ;;  %3972 = vrcp.f32 %v5619_v58  ;;  %vm1859_vm13 = vweird.f32 %v3969_v31  ;;  %v1903_v53 = vand.u32 2147483648, %v5619_v58 }
 0x528   :  { %v1873_v26 = vmul.f32 %v3971_v22, %v5613_v19  ;;  %3974 = vtanh.f32 %v1847_v23  ;;  %vm1878_vm14 = vweird.f32 %v3971_v22  ;;  %vm1860_vm1 = vmor %vm1858_vm15, %vm1859_vm13  ;;  %vm1897_vm13 = vweird.f32 %v5619_v58  ;;  %v5734_v23 = vld [vmem:[#allocation10 + $0x398] sm:$0xff] }
 0x529   :  { %v1855_v29 = vsub.f32 1.0, %v1854_v5  ;;  %vm1879_vm6 = vmor %vm1877_vm0, %vm1878_vm14  ;;  %v1901_v39 = vand.u32 2147483647, %v5619_v58  ;;  %v1904_v46 = vor.u32 1.1754944e-38, %v1903_v53  ;;  %v7009_v5 = vld [vmem:[#allocation37_spill] sm:$0xff] }
 0x52a   :  { %v1874_v14 = vsub.f32 1.0, %v1873_v26  ;;  %v256_v26 = vadd.f32 %v7009_v5, %v6980_v49  ;;  %v5758_v49 = vld [vmem:[#allocation10 + $0x350] sm:$0xff]  ;;  %v5822_v5 = vld [vmem:[#allocation10 + $0x298] sm:$0xff] }
 0x52b   :  { %v1856_v44 = vmul.f32 %v3969_v31, %v1855_v29  ;;  %vm1902_vm15 = vcmp.eq.f32.partialorder %v1901_v39, 8.507059e+37  ;;  %v5744_v29 = vld [vmem:[#allocation10 + $0x378] sm:$0xff]  ;;  %v5798_v39 = vld [vmem:[#allocation10 + $0x310] sm:$0xff]  ;;  %7017 = vst [vmem:[#allocation41_spill] sm:$0xff] %v5822_v5 }
 0x52c   :  { %v1875_v28 = vmul.f32 %v3971_v22, %v1874_v14  ;;  %v5746_v14 = vld [vmem:[#allocation10 + $0x370] sm:$0xff] }
 0x52d   :  { %v3973_v45 = vpop.eup %3972  ;;  %v1857_v0 = vadd.f32 %v3969_v31, %v1856_v44 }
 0x52e   :  { %v1876_v8 = vadd.f32 %v3971_v22, %v1875_v28  ;;  %v1893_v16 = vmul.f32 %v3973_v45, %v5619_v58  ;;  %v3975_v32 = vpop.eup %3974  ;;  %vm1898_vm11 = vweird.f32 %v3973_v45  ;;  %v5717_v58 = vld [vmem:[#allocation10 + $0x388] sm:$0xff]  ;;  %v5750_v28 = vld [vmem:[#allocation10 + $0x340] sm:$0xff] }
 0x52f   :  { %v1861_v24 = vsel %vm1860_vm1, %v3969_v31, %v1857_v0  ;;  %vm1899_vm14 = vmor %vm1897_vm13, %vm1898_vm11  ;;  %v5728_v31 = vld [vmem:[#allocation10 + $0x3b0] sm:$0xff] }
 0x530   :  { %v1866_v61 = vsel %vm1863_vm8, %v1865_v54, %v1861_v24  ;;  %v1880_v2 = vsel %vm1879_vm6, %v3971_v22, %v1876_v8  ;;  %v1894_v17 = vsub.f32 1.0, %v1893_v16  ;;  %v215_v22 = vadd.f32 %v7008_v30, %v6978_v35  ;;  %v5754_v35 = vld [vmem:[#allocation10 + $0x358] sm:$0xff]  ;;  %v5760_v54 = vld [vmem:[#allocation10 + $0x320] sm:$0xff]  ;;  %v5762_v8 = vld [vmem:[#allocation10 + $0x328] sm:$0xff] }
 0x531   :  { %v1885_v37 = vsel %vm1882_vm9, %v1884_v40, %v1880_v2  ;;  %v1908_v1 = vmul.f32 %v3975_v32, %v1866_v61  ;;  %v5768_v16 = vld [vmem:[#allocation10 + $0x300] sm:$0xff]  ;;  %v5770_v40 = vld [vmem:[#allocation10 + $0x308] sm:$0xff]  ;;  %v5772_v24 = vld [vmem:[#allocation10 + $0x338] sm:$0xff] }
 0x532   :  { %v1907_v3 = vmul.f32 %v1885_v37, %v5575_v9  ;;  %v1895_v38 = vmul.f32 %v3973_v45, %v1894_v17  ;;  %v5775_v32 = vld [vmem:[#allocation10 + $0x2e0] sm:$0xff]  ;;  %v5777_v61 = vld [vmem:[#allocation10 + $0x2e8] sm:$0xff]  ;;  %v5779_v2 = vld [vmem:[#allocation10 + $0x318] sm:$0xff] }
 0x533   :  { %v7010_v17 = vld [vmem:[#allocation33_spill] sm:$0xff] }
 0x534   :  { %v1909_v47 = vadd.f32 %v1908_v1, %v1907_v3  ;;  %v1896_v62 = vadd.f32 %v3973_v45, %v1895_v38  ;;  %v338_v37 = vadd.f32 %v7010_v17, %v6982_v59  ;;  %v5785_v1 = vld [vmem:[#allocation10 + $0x2f8] sm:$0xff]  ;;  %v5788_v38 = vld [vmem:[#allocation10 + $0x2c0] sm:$0xff]  ;;  %v5846_v17 = vld [vmem:[#allocation10 + $0x248] sm:$0xff] }
 0x535   :  { %v5796_v59 = vld [vmem:[#allocation10 + $0x2d8] sm:$0xff]  ;;  %7024 = vst [vmem:[#allocation32_spill] sm:$0xff] %v5846_v17 }
 0x536   :  { %3976 = vtanh.f32 %v1909_v47  ;;  %v5637_v19 = vsel %vm1912_vm10, %v1909_v47, %v5575_v9  ;;  %v1900_v34 = vsel %vm1899_vm14, %v3973_v45, %v1896_v62  ;;  %v6999_v9 = vld [vmem:[#allocation43_spill] sm:$0xff]  ;;  %v5790_v47 = vld [vmem:[#allocation10 + $0x2c8] sm:$0xff]  ;;  %v5792_v62 = vld [vmem:[#allocation10 + $0x330] sm:$0xff]  ;;  %7011 = vst [vmem:[#allocation30_spill] sm:$0xff] %v5796_v59 }
 0x537   :  { %v1905_v18 = vsel %vm1902_vm15, %v1904_v46, %v1900_v34  ;;  %v5802_v34 = vld [vmem:[#allocation10 + $0x2a0] sm:$0xff]  ;;  %v5804_v46 = vld [vmem:[#allocation10 + $0x2a8] sm:$0xff] }
 0x538   :  { %7012 = vst [vmem:[#allocation27_spill] sm:$0xff] %v5802_v34 }
 0x539   :  { %7013 = vst [vmem:[#allocation38_spill] sm:$0xff] %v5804_v46 }
 0x53c   :  { %v3977_v55 = vpop.eup %3976 }
 0x53d   :  { %v1911_v42 = vmul.f32 %v3977_v55, %v1905_v18  ;;  %v5808_v18 = vld [vmem:[#allocation10 + $0x2b8] sm:$0xff] }
 0x53e   :  { %7014 = vst [vmem:[#allocation25_spill] sm:$0xff] %v5808_v18 }
 0x53f   :  { %v5644_v20 = vsel %vm1912_vm10, %v1911_v42, %v5596_v52  ;;  %v5810_v42 = vld [vmem:[#allocation10 + $0x2f0] sm:$0xff] }
 0x540   :  { %2002 = vmatmul.f32.vlgmr.msra.gmra.mxu0 %v5644_v20  ;;  %2022 = vmatmul.f32.vlgmr.msrb.gmra.mxu1 %v5644_v20 }
 0x541   :  { %2042 = vmatmul.f32.vlgmr.msra.gmra.mxu2 %v5644_v20  ;;  %2062 = vmatmul.f32.vlgmr.msra.gmra.mxu3 %v5644_v20 }
 0x542   :  { %2487 = vmatpush.msra.mxu0 %v5670_v4  ;;  %2507 = vmatpush.msrb.mxu1 %v5672_v15 }
 0x543   :  { %2527 = vmatpush.msra.mxu2 %v5710_v51 }
 0x544   :  { %2488 = vmatpush.msra.mxu0 %v5674_v48  ;;  %2508 = vmatpush.msrb.mxu1 %v5678_v12 }
 0x546   :  { %2489 = vmatpush.msra.mxu0 %v5683_v27  ;;  %2509 = vmatpush.msrb.mxu1 %v5685_v60 }
 0x548   :  { %3833 = vmatmul.msk.f32.vlgmr.msrb.gmra.mxu0 %vm587_vm12, %v6999_v9  ;;  %3834 = vmatmul.msk.f32.vlgmr.msra.gmra.mxu1 %vm587_vm12, %v6999_v9 }
 0x549   :  { %3835 = vmatmul.msk.f32.vlgmr.msrb.gmra.mxu2 %vm587_vm12, %v6999_v9  ;;  %3836 = vmatmul.msk.f32.vlgmr.msrb.gmra.mxu3 %vm587_vm12, %v6999_v9 }
 0x54a   :  { %2490 = vmatpush.msra.mxu0 %v5715_v21  ;;  %2510 = vmatpush.msrb.mxu1 %v5717_v58 }
 0x54c   :  { %2511 = vmatpush.msrb.mxu1 %v5726_v56 }
 0x54e   :  { %2512 = vmatpush.msrb.mxu1 %v5752_v43 }
 0x550   :  { %2241 = vmatmul.f32.gmra.mxu0 %v4930_v63  ;;  %2282 = vmatmul.f32.gmra.mxu1 %v4930_v63 }
 0x551   :  { %2323 = vmatmul.f32.gmra.mxu2 %v4930_v63  ;;  %2364 = vmatmul.f32.gmra.mxu3 %v4930_v63  ;;  %v5680_v63 = vld [vmem:[#allocation10 + $0x3f8] sm:$0xff] }
 0x552   :  { %2547 = vmatpush.msra.mxu3 %v5680_v63  ;;  %2513 = vmatpush.msrb.mxu1 %v5762_v8 }
 0x554   :  { %2548 = vmatpush.msra.mxu3 %v5687_v11  ;;  %2514 = vmatpush.msrb.mxu1 %v5770_v40 }
 0x556   :  { %2549 = vmatpush.msra.mxu3 %v5719_v7  ;;  %2515 = vmatpush.msrb.mxu1 %v5777_v61 }
 0x558   :  { %2244 = vmatmul.f32.gmra.mxu0 %v7000_v36  ;;  %2285 = vmatmul.f32.gmra.mxu1 %v7000_v36 }
 0x559   :  { %2326 = vmatmul.f32.gmra.mxu2 %v7000_v36  ;;  %2367 = vmatmul.f32.gmra.mxu3 %v7000_v36  ;;  %v5814_v36 = vld [vmem:[#allocation10 + $0x280] sm:$0xff] }
 0x55a   :  { %2550 = vmatpush.msra.mxu3 %v5734_v23  ;;  %2516 = vmatpush.msrb.mxu1 %v5790_v47  ;;  %7015 = vst [vmem:[#allocation36_spill] sm:$0xff] %v5814_v36 }
 0x55c   :  { %2551 = vmatpush.msra.mxu3 %v5744_v29  ;;  %2517 = vmatpush.msrb.mxu1 %v5804_v46 }
 0x55e   :  { %2552 = vmatpush.msra.mxu3 %v5754_v35 }
 0x560   :  { %2247 = vmatmul.f32.gmra.mxu0 %v7007_v33  ;;  %2288 = vmatmul.f32.gmra.mxu1 %v7007_v33 }
 0x561   :  { %2329 = vmatmul.f32.gmra.mxu2 %v7007_v33  ;;  %2370 = vmatmul.f32.gmra.mxu3 %v7007_v33  ;;  %v5816_v33 = vld [vmem:[#allocation10 + $0x288] sm:$0xff] }
 0x562   :  { %2553 = vmatpush.msra.mxu3 %v5772_v24  ;;  %7016 = vst [vmem:[#allocation22_spill] sm:$0xff] %v5816_v33  ;;  %2518 = vmatpush.msrb.mxu1 %v5816_v33 }
 0x564   :  { %2554 = vmatpush.msra.mxu3 %v5779_v2 }
 0x566   :  { %2555 = vmatpush.msra.mxu3 %v5785_v1 }
 0x568   :  { %2250 = vmatmul.f32.gmra.mxu0 %v5344_v41  ;;  %2291 = vmatmul.f32.gmra.mxu1 %v5344_v41 }
 0x569   :  { %2332 = vmatmul.f32.gmra.mxu2 %v5344_v41  ;;  %2373 = vmatmul.f32.gmra.mxu3 %v5344_v41  ;;  %v5713_v41 = vld [vmem:[#allocation10 + $0x3d0] sm:$0xff] }
 0x56a   :  { %2528 = vmatpush.msra.mxu2 %v5713_v41  ;;  %2556 = vmatpush.msra.mxu3 %v5796_v59 }
 0x56c   :  { %2529 = vmatpush.msra.mxu2 %v5728_v31  ;;  %2557 = vmatpush.msra.mxu3 %v5808_v18 }
 0x56e   :  { %2530 = vmatpush.msra.mxu2 %v5736_v25  ;;  %2558 = vmatpush.msra.mxu3 %v5822_v5  ;;  %v7029_v5 = vld [vmem:[#allocation40_spill] sm:$0xff] }
 0x56f   :  { %v297_v33 = vadd.f32 %v7029_v5, %v6984_v50  ;;  %v5878_v5 = vld [vmem:[#allocation10 + $0x250] sm:$0xff] }
 0x570   :  { %2253 = vmatmul.f32.gmra.mxu0 %v5596_v52  ;;  %2294 = vmatmul.f32.gmra.mxu1 %v5596_v52  ;;  %7034 = vst [vmem:[#allocation44_spill] sm:$0xff] %v5878_v5 }
 0x571   :  { %2335 = vmatmul.f32.gmra.mxu2 %v5596_v52  ;;  %2376 = vmatmul.f32.gmra.mxu3 %v5596_v52  ;;  %v5724_v52 = vld [vmem:[#allocation10 + $0x360] sm:$0xff] }
 0x572   :  { %2491 = vmatpush.msra.mxu0 %v5724_v52  ;;  %2531 = vmatpush.msra.mxu2 %v5746_v14 }
 0x574   :  { %2492 = vmatpush.msra.mxu0 %v5750_v28  ;;  %2532 = vmatpush.msra.mxu2 %v5758_v49 }
 0x576   :  { %2493 = vmatpush.msra.mxu0 %v5760_v54  ;;  %2533 = vmatpush.msra.mxu2 %v5792_v62 }
 0x578   :  { %2256 = vmatmul.f32.gmra.mxu0 %v5644_v20  ;;  %2297 = vmatmul.f32.gmra.mxu1 %v5644_v20 }
 0x579   :  { %2338 = vmatmul.f32.gmra.mxu2 %v5644_v20  ;;  %2379 = vmatmul.f32.gmra.mxu3 %v5644_v20 }
 0x57a   :  { %2494 = vmatpush.msra.mxu0 %v5768_v16  ;;  %2534 = vmatpush.msra.mxu2 %v5798_v39 }
 0x57c   :  { %2495 = vmatpush.msra.mxu0 %v5775_v32  ;;  %2535 = vmatpush.msra.mxu2 %v5810_v42 }
 0x57e   :  { %2496 = vmatpush.msra.mxu0 %v5788_v38 }
 0x580   :  { %2497 = vmatpush.msra.mxu0 %v5802_v34 }
 0x582   :  { %2498 = vmatpush.msra.mxu0 %v5814_v36 }
 0x5bd   :  { %v2003_v57 = vpop.f32.mrf.mxu0  ;;  %v2023_v13 = vpop.f32.mrf.mxu1 }
 0x5be   :  { %v2066_v44 = vadd.f32 %v2003_v57, %v215_v22  ;;  %v2067_v6 = vadd.f32 %v2023_v13, %v256_v26  ;;  %v5824_v26 = vld [vmem:[#allocation10 + $0x2d0] sm:$0xff]  ;;  %v5830_v13 = vld [vmem:[#allocation10 + $0x260] sm:$0xff] }
 0x5bf   :  { %7018 = vst [vmem:[#allocation26_spill] sm:$0xff] %v5824_v26  ;;  %2536 = vmatpush.msra.mxu2 %v5824_v26  ;;  %2499 = vmatpush.msra.mxu0 %v5830_v13 }
 0x5c0   :  { %v3801_v45 = vmul.f32 -1.442695, %v2066_v44  ;;  %v3802_v0 = vmul.f32 -1.442695, %v2067_v6  ;;  %7019 = vst [vmem:[#allocation18_spill] sm:$0xff] %v5830_v13  ;;  %v5832_v44 = vld [vmem:[#allocation10 + $0x268] sm:$0xff] }
 0x5c1   :  { %7020 = vst [vmem:[#allocation28_spill] sm:$0xff] %v5832_v44  ;;  %v5837_v6 = vld [vmem:[#allocation10 + $0x2b0] sm:$0xff]  ;;  %2519 = vmatpush.msrb.mxu1 %v5832_v44  ;;  %v5866_v13 = vld [vmem:[#allocation10 + $0x238] sm:$0xff] }
 0x5c2   :  { %3978 = vpow2.f32 %v3801_v45  ;;  %7021 = vst [vmem:[#allocation23_spill] sm:$0xff] %v5837_v6  ;;  %v5839_v45 = vld [vmem:[#allocation10 + $0x278] sm:$0xff]  ;;  %2537 = vmatpush.msra.mxu2 %v5837_v6  ;;  %v5864_v44 = vld [vmem:[#allocation10 + $0x270] sm:$0xff]  ;;  %v5874_v6 = vld [vmem:[#allocation10 + $0x208] sm:$0xff] }
 0x5c3   :  { %3980 = vpow2.f32 %v3802_v0  ;;  %7022 = vst [vmem:[#allocation31_spill] sm:$0xff] %v5839_v45  ;;  %v5844_v0 = vld [vmem:[#allocation10 + $0x240] sm:$0xff]  ;;  %2559 = vmatpush.msra.mxu3 %v5839_v45  ;;  %2520 = vmatpush.msrb.mxu1 %v5846_v17  ;;  %v5880_v17 = vld [vmem:[#allocation10 + $0x218] sm:$0xff] }
 0x5c4   :  { %v2063_v3 = vpop.f32.mrf.mxu3  ;;  %7023 = vst [vmem:[#allocation19_spill] sm:$0xff] %v5844_v0  ;;  %2500 = vmatpush.msra.mxu0 %v5844_v0  ;;  %v5872_v45 = vld [vmem:[#allocation10 + $0x200] sm:$0xff] }
 0x5c5   :  { %v2069_v53 = vadd.f32 %v2063_v3, %v338_v37  ;;  %v5850_v37 = vld [vmem:[#allocation10 + $0x290] sm:$0xff]  ;;  %v5852_v3 = vld [vmem:[#allocation10 + $0x258] sm:$0xff]  ;;  %7030 = vst [vmem:[#allocation29_spill] sm:$0xff] %v5864_v44 }
 0x5c6   :  { %7025 = vst [vmem:[#allocation24_spill] sm:$0xff] %v5850_v37  ;;  %2538 = vmatpush.msra.mxu2 %v5850_v37  ;;  %2560 = vmatpush.msra.mxu3 %v5852_v3 }
 0x5c7   :  { %v3803_v55 = vmul.f32 -1.442695, %v2069_v53  ;;  %7026 = vst [vmem:[#allocation35_spill] sm:$0xff] %v5852_v3  ;;  %v2043_v53 = vpop.f32.mrf.mxu2 }
 0x5c8   :  { %v3979_v9 = vpop.eup %3978  ;;  %7031 = vst [vmem:[#allocation39_spill] sm:$0xff] %v5866_v13  ;;  %v2068_v50 = vadd.f32 %v2043_v53, %v297_v33  ;;  %2539 = vmatpush.msra.mxu2 %v5864_v44  ;;  %2561 = vmatpush.msra.mxu3 %v5866_v13  ;;  %v5889_v33 = vld [vmem:[#allocation10 + $0x230] sm:$0xff] }
 0x5c9   :  { %v3981_v30 = vpop.eup %3980  ;;  %v5818_v22 = vadd.f32 1.0, %v3979_v9  ;;  %3982 = vpow2.f32 %v3803_v55  ;;  %v5856_v55 = vld [vmem:[#allocation10 + $0x220] sm:$0xff]  ;;  %v5858_v9 = vld [vmem:[#allocation10 + $0x228] sm:$0xff]  ;;  %7032 = vst [vmem:[#allocation43_spill] sm:$0xff] %v5872_v45  ;;  %v5894_v44 = vld [vmem:[#allocation10 + $0x210] sm:$0xff] }
 0x5ca   :  { %v5826_v57 = vadd.f32 1.0, %v3981_v30  ;;  %7027 = vst [vmem:[#allocation20_spill] sm:$0xff] %v5856_v55  ;;  %2501 = vmatpush.msra.mxu0 %v5856_v55  ;;  %2521 = vmatpush.msrb.mxu1 %v5858_v9 }
 0x5cb   :  { %3984 = vrcp.f32 %v5818_v22  ;;  %7028 = vst [vmem:[#allocation34_spill] sm:$0xff] %v5858_v9  ;;  %2540 = vmatpush.msra.mxu2 %v5878_v5  ;;  %2562 = vmatpush.msra.mxu3 %v5880_v17  ;;  %v2085_v55 = vand.u32 2147483648, %v5818_v22  ;;  %vm2079_vm6 = vweird.f32 %v5818_v22 }
 0x5cc   :  { %3986 = vrcp.f32 %v5826_v57  ;;  %7033 = vst [vmem:[#allocation51_spill] sm:$0xff] %v5874_v6  ;;  %2502 = vmatpush.msra.mxu0 %v5872_v45  ;;  %2522 = vmatpush.msrb.mxu1 %v5874_v6  ;;  %v2104_v45 = vand.u32 2147483648, %v5826_v57  ;;  %vm2098_vm8 = vweird.f32 %v5826_v57 }
 0x5cd   :  { %7035 = vst [vmem:[#allocation21_spill] sm:$0xff] %v5880_v17  ;;  %2541 = vmatpush.msra.mxu2 %v5889_v33  ;;  %2700 = vmatpush.msrb.mxu3 %v5680_v63 }
 0x5ce   :  { %7036 = vst [vmem:[#allocation37_spill] sm:$0xff] %v5889_v33  ;;  %2640 = vmatpush.msrb.mxu0 %v5670_v4  ;;  %2660 = vmatpush.msra.mxu1 %v5672_v15 }
 0x5cf   :  { %v3983_v30 = vpop.eup %3982  ;;  %7037 = vst [vmem:[#allocation33_spill] sm:$0xff] %v5894_v44  ;;  %2542 = vmatpush.msra.mxu2 %v5894_v44  ;;  %2701 = vmatpush.msrb.mxu3 %v5687_v11 }
 0x5d0   :  { %v5868_v36 = vadd.f32 1.0, %v3983_v30  ;;  %2641 = vmatpush.msrb.mxu0 %v5674_v48  ;;  %2661 = vmatpush.msra.mxu1 %v5678_v12 }
 0x5d1   :  { %v3985_v18 = vpop.eup %3984  ;;  %2680 = vmatpush.msrb.mxu2 %v5710_v51  ;;  %2702 = vmatpush.msrb.mxu3 %v5719_v7 }
 0x5d2   :  { %v3987_v30 = vpop.eup %3986  ;;  %v2075_v0 = vmul.f32 %v3985_v18, %v5818_v22  ;;  %3988 = vrcp.f32 %v5868_v36  ;;  %vm2080_vm0 = vweird.f32 %v3985_v18  ;;  %2642 = vmatpush.msrb.mxu0 %v5683_v27  ;;  %2662 = vmatpush.msra.mxu1 %v5685_v60 }
 0x5d3   :  { %v2094_v3 = vmul.f32 %v3987_v30, %v5826_v57  ;;  %3990 = vtanh.f32 %v2068_v50  ;;  %vm2099_vm1 = vweird.f32 %v3987_v30  ;;  %v2102_v50 = vand.u32 2147483647, %v5826_v57  ;;  %vm2081_vm9 = vmor %vm2079_vm6, %vm2080_vm0  ;;  %2681 = vmatpush.msrb.mxu2 %v5713_v41  ;;  %2703 = vmatpush.msrb.mxu3 %v5734_v23 }
 0x5d4   :  { %v2076_v53 = vsub.f32 1.0, %v2075_v0  ;;  %v2083_v0 = vand.u32 2147483647, %v5818_v22  ;;  %vm2100_vm11 = vmor %vm2098_vm8, %vm2099_vm1  ;;  %v2105_v22 = vor.u32 1.1754944e-38, %v2104_v45  ;;  %2643 = vmatpush.msrb.mxu0 %v5715_v21  ;;  %2663 = vmatpush.msra.mxu1 %v5717_v58  ;;  %vm2118_vm0 = vweird.f32 %v5868_v36 }
 0x5d5   :  { %v2095_v9 = vsub.f32 1.0, %v2094_v3  ;;  %vm2103_vm14 = vcmp.eq.f32.partialorder %v2102_v50, 8.507059e+37  ;;  %2682 = vmatpush.msrb.mxu2 %v5728_v31  ;;  %2704 = vmatpush.msrb.mxu3 %v5744_v29  ;;  %vm6874_vm8 = vcmp.gt.s32.totalorder %v4822_v10, 7  ;;  %v7039_v50 = vld [vmem:[#allocation25_spill] sm:$0xff] }
 0x5d6   :  { %v2077_v6 = vmul.f32 %v3985_v18, %v2076_v53  ;;  %vm2084_vm13 = vcmp.eq.f32.partialorder %v2083_v0, 8.507059e+37  ;;  %2644 = vmatpush.msrb.mxu0 %v5724_v52  ;;  %2664 = vmatpush.msra.mxu1 %v5726_v56  ;;  %v7061_v10 = vld [vmem:[#allocation49_spill] sm:$0xff] }
 0x5d7   :  { %v2096_v3 = vmul.f32 %v3987_v30, %v2095_v9  ;;  %v2086_v9 = vor.u32 1.1754944e-38, %v2085_v55  ;;  %2683 = vmatpush.msrb.mxu2 %v5736_v25  ;;  %2705 = vmatpush.msrb.mxu3 %v5754_v35 }
 0x5d8   :  { %v5905_v4 = vpop.eup %3988  ;;  %v2078_v15 = vadd.f32 %v3985_v18, %v2077_v6  ;;  %2645 = vmatpush.msrb.mxu0 %v5750_v28  ;;  %2665 = vmatpush.msra.mxu1 %v5752_v43 }
 0x5d9   :  { %v2097_v53 = vadd.f32 %v3987_v30, %v2096_v3  ;;  %v2114_v48 = vmul.f32 %v5905_v4, %v5868_v36  ;;  %v3991_v57 = vpop.eup %3990  ;;  %vm2119_vm15 = vweird.f32 %v5905_v4  ;;  %2684 = vmatpush.msrb.mxu2 %v5746_v14  ;;  %2706 = vmatpush.msrb.mxu3 %v5772_v24 }
 0x5da   :  { %v2082_v6 = vsel %vm2081_vm9, %v3985_v18, %v2078_v15  ;;  %2646 = vmatpush.msrb.mxu0 %v5760_v54  ;;  %2666 = vmatpush.msra.mxu1 %v5762_v8  ;;  %vm2120_vm1 = vmor %vm2118_vm0, %vm2119_vm15 }
 0x5db   :  { %v2087_v11 = vsel %vm2084_vm13, %v2086_v9, %v2082_v6  ;;  %v2101_v55 = vsel %vm2100_vm11, %v3987_v30, %v2097_v53  ;;  %v2115_v3 = vsub.f32 1.0, %v2114_v48  ;;  %2685 = vmatpush.msrb.mxu2 %v5758_v49  ;;  %2707 = vmatpush.msrb.mxu3 %v5779_v2  ;;  %v7040_v9 = vld [vmem:[#allocation36_spill] sm:$0xff]  ;;  %v7042_v53 = vld [vmem:[#allocation23_spill] sm:$0xff]  ;;  %v7044_v6 = vld [vmem:[#allocation18_spill] sm:$0xff] }
 0x5dc   :  { %v2106_v12 = vsel %vm2103_vm14, %v2105_v22, %v2101_v55  ;;  %v2129_v27 = vmul.f32 %v3991_v57, %v2087_v11  ;;  %2647 = vmatpush.msrb.mxu0 %v5768_v16  ;;  %2667 = vmatpush.msra.mxu1 %v5770_v40  ;;  %v7043_v22 = vld [vmem:[#allocation41_spill] sm:$0xff]  ;;  %v7045_v57 = vld [vmem:[#allocation28_spill] sm:$0xff]  ;;  %v7046_v55 = vld [vmem:[#allocation31_spill] sm:$0xff] }
 0x5dd   :  { %v2128_v15 = vmul.f32 %v2106_v12, %v5637_v19  ;;  %v2116_v18 = vmul.f32 %v5905_v4, %v2115_v3  ;;  %v2124_v19 = vand.u32 2147483648, %v5868_v36  ;;  %v2122_v12 = vand.u32 2147483647, %v5868_v36  ;;  %2686 = vmatpush.msrb.mxu2 %v5792_v62  ;;  %2708 = vmatpush.msrb.mxu3 %v5785_v1  ;;  %v7047_v3 = vld [vmem:[#allocation19_spill] sm:$0xff] }
 0x5de   :  { %2648 = vmatpush.msrb.mxu0 %v5775_v32  ;;  %2668 = vmatpush.msra.mxu1 %v5777_v61 }
 0x5df   :  { %v2130_v48 = vadd.f32 %v2129_v27, %v2128_v15  ;;  %v2117_v11 = vadd.f32 %v5905_v4, %v2116_v18  ;;  %v2125_v45 = vor.u32 1.1754944e-38, %v2124_v19  ;;  %vm2123_vm6 = vcmp.eq.f32.partialorder %v2122_v12, 8.507059e+37  ;;  %2687 = vmatpush.msrb.mxu2 %v5798_v39  ;;  %2709 = vmatpush.msrb.mxu3 %v5796_v59  ;;  %v7048_v15 = vld [vmem:[#allocation32_spill] sm:$0xff]  ;;  %v7053_v12 = vld [vmem:[#allocation34_spill] sm:$0xff] }
 0x5e0   :  { %2649 = vmatpush.msrb.mxu0 %v5788_v38  ;;  %2669 = vmatpush.msra.mxu1 %v5790_v47  ;;  %v7049_v18 = vmov 0.0   ;;  %v7052_v19 = vld [vmem:[#allocation20_spill] sm:$0xff] }
 0x5e1   :  { %3992 = vtanh.f32 %v2130_v48  ;;  %v2121_v27 = vsel %vm2120_vm1, %v5905_v4, %v2117_v11  ;;  %2688 = vmatpush.msrb.mxu2 %v5810_v42  ;;  %2710 = vmatpush.msrb.mxu3 %v7039_v50  ;;  %v7050_v48 = vld [vmem:[#allocation29_spill] sm:$0xff]  ;;  %v7051_v11 = vld [vmem:[#allocation35_spill] sm:$0xff] }
 0x5e2   :  { %v2126_v30 = vsel %vm2123_vm6, %v2125_v45, %v2121_v27  ;;  %2650 = vmatpush.msrb.mxu0 %v5802_v34  ;;  %2670 = vmatpush.msra.mxu1 %v5804_v46  ;;  %v7054_v27 = vld [vmem:[#allocation43_spill] sm:$0xff] }
 0x5e3   :  { %2689 = vmatpush.msrb.mxu2 %v5824_v26  ;;  %2711 = vmatpush.msrb.mxu3 %v7043_v22  ;;  %v7055_v45 = vld [vmem:[#allocation51_spill] sm:$0xff] }
 0x5e4   :  { %2651 = vmatpush.msrb.mxu0 %v7040_v9 }
 0x5e5   :  { %2690 = vmatpush.msrb.mxu2 %v7042_v53  ;;  %2712 = vmatpush.msrb.mxu3 %v7046_v55 }
 0x5e6   :  { %2652 = vmatpush.msrb.mxu0 %v7044_v6 }
 0x5e7   :  { %v3993_v36 = vpop.eup %3992  ;;  %2691 = vmatpush.msrb.mxu2 %v5850_v37  ;;  %2713 = vmatpush.msrb.mxu3 %v7051_v11 }
 0x5e8   :  { %v2132_v4 = vmul.f32 %v3993_v36, %v2126_v30  ;;  %2653 = vmatpush.msrb.mxu0 %v7047_v3  ;;  %v7056_v36 = vld [vmem:[#allocation45_spill] sm:$0xff]  ;;  %v7057_v30 = vld [vmem:[#allocation46_spill] sm:$0xff] }
 0x5e9   :  { %2692 = vmatpush.msrb.mxu2 %v7050_v48  ;;  %2714 = vmatpush.msrb.mxu3 %v5866_v13 }
 0x5ea   :  { %v5960_v0 = vsel %vm6874_vm8, %v2132_v4, %v5644_v20  ;;  %v7041_v20 = vld [vmem:[#allocation22_spill] sm:$0xff]  ;;  %2654 = vmatpush.msrb.mxu0 %v7052_v19  ;;  %v7058_v4 = vld [vmem:[#allocation47_spill] sm:$0xff] }
 0x5eb   :  { %7038 = vst [vmem:[#allocation40_spill] sm:$0xff] %v5960_v0  ;;  %2259 = vmatmul.f32.gmra.mxu0 %v5960_v0  ;;  %2300 = vmatmul.f32.gmra.mxu1 %v5960_v0 }
 0x5ec   :  { %2341 = vmatmul.f32.gmra.mxu2 %v5960_v0  ;;  %2382 = vmatmul.f32.gmra.mxu3 %v5960_v0  ;;  %v7060_v0 = vld [vmem:[#allocation50_spill] sm:$0xff] }
 0x5ed   :  { %2671 = vmatpush.msra.mxu1 %v7041_v20  ;;  %2693 = vmatpush.msrb.mxu2 %v5878_v5 }
 0x5ee   :  { %2655 = vmatpush.msrb.mxu0 %v7054_v27  ;;  %2715 = vmatpush.msrb.mxu3 %v5880_v17 }
 0x5ef   :  { %2672 = vmatpush.msra.mxu1 %v7045_v57  ;;  %2694 = vmatpush.msrb.mxu2 %v5889_v33 }
 0x5f1   :  { %2673 = vmatpush.msra.mxu1 %v7048_v15  ;;  %2695 = vmatpush.msrb.mxu2 %v5894_v44 }
 0x5f3   :  { %2503 = vmatmul.f32.vlgmr.msra.gmra.mxu0 %v7049_v18  ;;  %2523 = vmatmul.f32.vlgmr.msrb.gmra.mxu1 %v7049_v18 }
 0x5f4   :  { %2543 = vmatmul.f32.vlgmr.msra.gmra.mxu2 %v7049_v18  ;;  %2563 = vmatmul.f32.vlgmr.msra.gmra.mxu3 %v7049_v18  ;;  %v7059_v18 = vld [vmem:[#allocation48_spill] sm:$0xff] }
 0x5f5   :  { %2674 = vmatpush.msra.mxu1 %v7053_v12  ;;  %2793 = vmatpush.msra.mxu0 %v7056_v36 }
 0x5f6   :  { %2853 = vmatpush.msra.mxu3 %v5680_v63  ;;  %2833 = vmatpush.msra.mxu2 %v5710_v51 }
 0x5f7   :  { %2675 = vmatpush.msra.mxu1 %v7055_v45  ;;  %2794 = vmatpush.msra.mxu0 %v7058_v4 }
 0x5f8   :  { %2854 = vmatpush.msra.mxu3 %v7060_v0  ;;  %2834 = vmatpush.msra.mxu2 %v5713_v41 }
 0x5f9   :  { %2813 = vmatpush.msrb.mxu1 %v7057_v30  ;;  %2795 = vmatpush.msra.mxu0 %v7061_v10 }
 0x5fa   :  { %2855 = vmatpush.msra.mxu3 %v5719_v7  ;;  %2835 = vmatpush.msra.mxu2 %v5728_v31 }
 0x5fb   :  { %2814 = vmatpush.msrb.mxu1 %v7059_v18  ;;  %2796 = vmatpush.msra.mxu0 %v5715_v21 }
 0x5fc   :  { %2856 = vmatpush.msra.mxu3 %v5734_v23  ;;  %2836 = vmatpush.msra.mxu2 %v5736_v25 }
 0x5fd   :  { %2815 = vmatpush.msrb.mxu1 %v5685_v60  ;;  %2797 = vmatpush.msra.mxu0 %v5724_v52 }
 0x5fe   :  { %2857 = vmatpush.msra.mxu3 %v5744_v29  ;;  %2837 = vmatpush.msra.mxu2 %v5746_v14 }
 0x5ff   :  { %2816 = vmatpush.msrb.mxu1 %v5717_v58  ;;  %2798 = vmatpush.msra.mxu0 %v5750_v28 }
 0x600   :  { %2858 = vmatpush.msra.mxu3 %v5754_v35  ;;  %2838 = vmatpush.msra.mxu2 %v5758_v49 }
 0x601   :  { %2817 = vmatpush.msrb.mxu1 %v5726_v56  ;;  %2799 = vmatpush.msra.mxu0 %v5760_v54 }
 0x602   :  { %2859 = vmatpush.msra.mxu3 %v5772_v24  ;;  %2839 = vmatpush.msra.mxu2 %v5792_v62 }
 0x603   :  { %2818 = vmatpush.msrb.mxu1 %v5752_v43  ;;  %2800 = vmatpush.msra.mxu0 %v5768_v16 }
 0x604   :  { %2860 = vmatpush.msra.mxu3 %v5779_v2  ;;  %2840 = vmatpush.msra.mxu2 %v5798_v39 }
 0x605   :  { %2819 = vmatpush.msrb.mxu1 %v5762_v8  ;;  %2801 = vmatpush.msra.mxu0 %v5775_v32 }
 0x606   :  { %2861 = vmatpush.msra.mxu3 %v5785_v1  ;;  %2841 = vmatpush.msra.mxu2 %v5810_v42 }
 0x607   :  { %2820 = vmatpush.msrb.mxu1 %v5770_v40  ;;  %2802 = vmatpush.msra.mxu0 %v5788_v38 }
 0x608   :  { %2862 = vmatpush.msra.mxu3 %v5796_v59  ;;  %2842 = vmatpush.msra.mxu2 %v5824_v26 }
 0x609   :  { %2821 = vmatpush.msrb.mxu1 %v5777_v61  ;;  %2803 = vmatpush.msra.mxu0 %v5802_v34 }
 0x60a   :  { %2863 = vmatpush.msra.mxu3 %v7039_v50  ;;  %2843 = vmatpush.msra.mxu2 %v7042_v53 }
 0x60b   :  { %2822 = vmatpush.msrb.mxu1 %v5790_v47  ;;  %2804 = vmatpush.msra.mxu0 %v7040_v9 }
 0x60c   :  { %2864 = vmatpush.msra.mxu3 %v7043_v22  ;;  %2844 = vmatpush.msra.mxu2 %v5850_v37 }
 0x60d   :  { %2823 = vmatpush.msrb.mxu1 %v5804_v46  ;;  %2805 = vmatpush.msra.mxu0 %v7044_v6 }
 0x60e   :  { %2865 = vmatpush.msra.mxu3 %v7046_v55  ;;  %2845 = vmatpush.msra.mxu2 %v7050_v48 }
 0x60f   :  { %2824 = vmatpush.msrb.mxu1 %v7041_v20  ;;  %2806 = vmatpush.msra.mxu0 %v7047_v3  ;;  %v2362_v3 = vpop.f32.mrf.mxu3 }
 0x610   :  { %2866 = vmatpush.msra.mxu3 %v7051_v11  ;;  %2846 = vmatpush.msra.mxu2 %v5878_v5  ;;  %v2280_v11 = vpop.f32.mrf.mxu1 }
 0x611   :  { %2825 = vmatpush.msrb.mxu1 %v7045_v57  ;;  %2807 = vmatpush.msra.mxu0 %v7052_v19 }
 0x612   :  { %2867 = vmatpush.msra.mxu3 %v5866_v13  ;;  %2847 = vmatpush.msra.mxu2 %v5889_v33 }
 0x613   :  { %2826 = vmatpush.msrb.mxu1 %v7048_v15  ;;  %2808 = vmatpush.msra.mxu0 %v7054_v27  ;;  %v2239_v15 = vpop.f32.mrf.mxu0 }
 0x614   :  { %2868 = vmatpush.msra.mxu3 %v5880_v17  ;;  %2848 = vmatpush.msra.mxu2 %v5894_v44 }
 0x615   :  { %2827 = vmatpush.msrb.mxu1 %v7053_v12  ;;  %v2321_v12 = vpop.f32.mrf.mxu2 }
 0x617   :  { %2828 = vmatpush.msrb.mxu1 %v7055_v45  ;;  %v6063_v55 = vpop.f32.mrf.mxu3 }
 0x618   :  { %v6061_v19 = vpop.f32.mrf.mxu1  ;;  %7064 = vst [vmem:[#allocation47_spill] sm:$0xff] %v6063_v55 }
 0x619   :  { %7063 = vst [vmem:[#allocation46_spill] sm:$0xff] %v6061_v19 }
 0x61b   :  { %v6059_v5 = vpop.f32.mrf.mxu0 }
 0x61c   :  { %7062 = vst [vmem:[#allocation45_spill] sm:$0xff] %v6059_v5 }
 0x61d   :  { %v6069_v27 = vpop.f32.mrf.mxu2 }
 0x61e   :  { %7067 = vst [vmem:[#allocation49_spill] sm:$0xff] %v6069_v27 }
 0x61f   :  { %v6071_v45 = vpop.f32.mrf.mxu3 }
 0x620   :  { %v6067_v33 = vpop.f32.mrf.mxu1  ;;  %7068 = vst [vmem:[#allocation52_spill] sm:$0xff] %v6071_v45 }
 0x621   :  { %7066 = vst [vmem:[#allocation50_spill] sm:$0xff] %v6067_v33 }
 0x623   :  { %v6065_v13 = vpop.f32.mrf.mxu0 }
 0x624   :  { %7065 = vst [vmem:[#allocation48_spill] sm:$0xff] %v6065_v13 }
 0x625   :  { %v6077_v48 = vpop.f32.mrf.mxu2 }
 0x626   :  { %7071 = vst [vmem:[#allocation55_spill] sm:$0xff] %v6077_v48 }
 0x627   :  { %v6079_v5 = vpop.f32.mrf.mxu3 }
 0x628   :  { %v6075_v44 = vpop.f32.mrf.mxu1  ;;  %7072 = vst [vmem:[#allocation56_spill] sm:$0xff] %v6079_v5 }
 0x629   :  { %7070 = vst [vmem:[#allocation54_spill] sm:$0xff] %v6075_v44 }
 0x62b   :  { %v6073_v17 = vpop.f32.mrf.mxu0 }
 0x62c   :  { %7069 = vst [vmem:[#allocation53_spill] sm:$0xff] %v6073_v17 }
 0x62d   :  { %v6085_v55 = vpop.f32.mrf.mxu2 }
 0x62e   :  { %7075 = vst [vmem:[#allocation59_spill] sm:$0xff] %v6085_v55 }
 0x62f   :  { %v6087_v13 = vpop.f32.mrf.mxu3 }
 0x630   :  { %v6083_v57 = vpop.f32.mrf.mxu1  ;;  %7076 = vst [vmem:[#allocation60_spill] sm:$0xff] %v6087_v13  ;;  %v3804_v13 = vld [vmem:[%s6766_s4 + $0x4] sm:$0xf] }
 0x631   :  { %7074 = vst [vmem:[#allocation58_spill] sm:$0xff] %v6083_v57  ;;  %v6122_v37 = vperm.slane %v3804_v13, 3 }
 0x633   :  { %v6081_v19 = vpop.f32.mrf.mxu0  ;;  %7091 = vst [vmem:[#allocation75_spill] sm:$0xff] %v6122_v37  ;;  %v2363_v20 = vadd.f32 %v2362_v3, %v6122_v37 }
 0x634   :  { %7073 = vst [vmem:[#allocation57_spill] sm:$0xff] %v6081_v19 }
 0x635   :  { %v6093_v45 = vpop.f32.mrf.mxu2 }
 0x636   :  { %7079 = vst [vmem:[#allocation63_spill] sm:$0xff] %v6093_v45  ;;  %v6114_v45 = vperm.slane %v3804_v13, 1 }
 0x637   :  { %v6095_v17 = vpop.f32.mrf.mxu3 }
 0x638   :  { %v6091_v27 = vpop.f32.mrf.mxu1  ;;  %7080 = vst [vmem:[#allocation64_spill] sm:$0xff] %v6095_v17 }
 0x639   :  { %7078 = vst [vmem:[#allocation62_spill] sm:$0xff] %v6091_v27  ;;  %v6112_v27 = vperm.slane %v3804_v13, 0 }
 0x63a   :  { %7088 = vst [vmem:[#allocation72_spill] sm:$0xff] %v6114_v45 }
 0x63b   :  { %v6089_v33 = vpop.f32.mrf.mxu0  ;;  %7087 = vst [vmem:[#allocation71_spill] sm:$0xff] %v6112_v27 }
 0x63c   :  { %7077 = vst [vmem:[#allocation61_spill] sm:$0xff] %v6089_v33 }
 0x63d   :  { %v6101_v5 = vpop.f32.mrf.mxu2 }
 0x63e   :  { %7083 = vst [vmem:[#allocation67_spill] sm:$0xff] %v6101_v5 }
 0x63f   :  { %v6103_v19 = vpop.f32.mrf.mxu3 }
 0x640   :  { %v6099_v48 = vpop.f32.mrf.mxu1  ;;  %7084 = vst [vmem:[#allocation68_spill] sm:$0xff] %v6103_v19 }
 0x641   :  { %7082 = vst [vmem:[#allocation66_spill] sm:$0xff] %v6099_v48  ;;  %v2281_v48 = vadd.f32 %v2280_v11, %v6114_v45 }
 0x643   :  { %v6097_v44 = vpop.f32.mrf.mxu0 }
 0x644   :  { %7081 = vst [vmem:[#allocation65_spill] sm:$0xff] %v6097_v44  ;;  %v2240_v44 = vadd.f32 %v2239_v15, %v6112_v27 }
 0x645   :  { %v6118_v17 = vpop.f32.mrf.mxu2 }
 0x646   :  { %7089 = vst [vmem:[#allocation73_spill] sm:$0xff] %v6118_v17 }
 0x668   :  { %v6108_v57 = vpop.f32.mrf.mxu0  ;;  %v6110_v33 = vpop.f32.mrf.mxu1 }
 0x669   :  { %7085 = vst [vmem:[#allocation69_spill] sm:$0xff] %v6108_v57 }
 0x66a   :  { %7086 = vst [vmem:[#allocation70_spill] sm:$0xff] %v6110_v33 }
 0x66f   :  { %v6120_v5 = vpop.f32.mrf.mxu3  ;;  %v6125_v9 = vpop.f32.mrf.mxu2 }
 0x670   :  { %7090 = vst [vmem:[#allocation74_spill] sm:$0xff] %v6120_v5  ;;  %v2504_v19 = vpop.f32.mrf.mxu0  ;;  %v2524_v55 = vpop.f32.mrf.mxu1 }
 0x671   :  { %v2567_v6 = vadd.f32 %v2504_v19, %v2240_v44  ;;  %v2568_v22 = vadd.f32 %v2524_v55, %v2281_v48  ;;  %7092 = vst [vmem:[#allocation76_spill] sm:$0xff] %v6125_v9  ;;  %v6127_v44 = vperm.slane %v3804_v13, 2 }
 0x673   :  { %v3805_v57 = vmul.f32 -1.442695, %v2567_v6  ;;  %v3806_v33 = vmul.f32 -1.442695, %v2568_v22  ;;  %7093 = vst [vmem:[#allocation77_spill] sm:$0xff] %v6127_v44 }
 0x675   :  { %3994 = vpow2.f32 %v3805_v57  ;;  %v2322_v57 = vadd.f32 %v2321_v12, %v6127_v44 }
 0x676   :  { %3996 = vpow2.f32 %v3806_v33 }
 0x677   :  { %v2564_v15 = vpop.f32.mrf.mxu3  ;;  %v2544_v6 = vpop.f32.mrf.mxu2 }
 0x678   :  { %v2570_v11 = vadd.f32 %v2564_v15, %v2363_v20  ;;  %v2569_v3 = vadd.f32 %v2544_v6, %v2322_v57 }
 0x67a   :  { %v3807_v45 = vmul.f32 -1.442695, %v2570_v11 }
 0x67b   :  { %v3995_v17 = vpop.eup %3994 }
 0x67c   :  { %v3997_v27 = vpop.eup %3996  ;;  %v2574_v5 = vadd.f32 1.0, %v3995_v17  ;;  %3998 = vpow2.f32 %v3807_v45 }
 0x67d   :  { %v2593_v50 = vadd.f32 1.0, %v3997_v27 }
 0x67e   :  { %4000 = vrcp.f32 %v2574_v5  ;;  %v2586_v17 = vand.u32 2147483648, %v2574_v5  ;;  %v2584_v45 = vand.u32 2147483647, %v2574_v5  ;;  %vm2580_vm13 = vweird.f32 %v2574_v5 }
 0x67f   :  { %4002 = vrcp.f32 %v2593_v50  ;;  %v2605_v27 = vand.u32 2147483648, %v2593_v50  ;;  %v2603_v37 = vand.u32 2147483647, %v2593_v50  ;;  %vm2599_vm14 = vweird.f32 %v2593_v50 }
 0x680   :  { %v2587_v6 = vor.u32 1.1754944e-38, %v2586_v17  ;;  %vm2585_vm0 = vcmp.eq.f32.partialorder %v2584_v45, 8.507059e+37 }
 0x681   :  { %v2606_v44 = vor.u32 1.1754944e-38, %v2605_v27  ;;  %vm2604_vm6 = vcmp.eq.f32.partialorder %v2603_v37, 8.507059e+37 }
 0x682   :  { %v3999_v22 = vpop.eup %3998 }
 0x683   :  { %v2613_v55 = vadd.f32 1.0, %v3999_v22 }
 0x684   :  { %v4001_v33 = vpop.eup %4000 }
 0x685   :  { %v4003_v48 = vpop.eup %4002  ;;  %v2576_v19 = vmul.f32 %v4001_v33, %v2574_v5  ;;  %4004 = vrcp.f32 %v2613_v55  ;;  %vm2581_vm9 = vweird.f32 %v4001_v33 }
 0x686   :  { %v2595_v20 = vmul.f32 %v4003_v48, %v2593_v50  ;;  %4006 = vtanh.f32 %v2569_v3  ;;  %vm2600_vm11 = vweird.f32 %v4003_v48  ;;  %vm2582_vm15 = vmor %vm2580_vm13, %vm2581_vm9  ;;  %v2625_v50 = vand.u32 2147483648, %v2613_v55 }
 0x687   :  { %v2577_v15 = vsub.f32 1.0, %v2576_v19  ;;  %vm2601_vm1 = vmor %vm2599_vm14, %vm2600_vm11  ;;  %vm2619_vm9 = vweird.f32 %v2613_v55 }
 0x688   :  { %v2596_v11 = vsub.f32 1.0, %v2595_v20  ;;  %v2626_v17 = vor.u32 1.1754944e-38, %v2625_v50 }
 0x689   :  { %v2578_v13 = vmul.f32 %v4001_v33, %v2577_v15 }
 0x68a   :  { %v2597_v9 = vmul.f32 %v4003_v48, %v2596_v11 }
 0x68b   :  { %v4005_v53 = vpop.eup %4004  ;;  %v2579_v12 = vadd.f32 %v4001_v33, %v2578_v13 }
 0x68c   :  { %v2598_v22 = vadd.f32 %v4003_v48, %v2597_v9  ;;  %v2615_v57 = vmul.f32 %v4005_v53, %v2613_v55  ;;  %v4007_v3 = vpop.eup %4006  ;;  %vm2620_vm8 = vweird.f32 %v4005_v53  ;;  %v2623_v9 = vand.u32 2147483647, %v2613_v55 }
 0x68d   :  { %v2583_v19 = vsel %vm2582_vm15, %v4001_v33, %v2579_v12  ;;  %vm2621_vm13 = vmor %vm2619_vm9, %vm2620_vm8 }
 0x68e   :  { %v2588_v20 = vsel %vm2585_vm0, %v2587_v6, %v2583_v19  ;;  %v2602_v15 = vsel %vm2601_vm1, %v4003_v48, %v2598_v22  ;;  %v2616_v46 = vsub.f32 1.0, %v2615_v57  ;;  %vm2624_vm11 = vcmp.eq.f32.partialorder %v2623_v9, 8.507059e+37 }
 0x68f   :  { %v2607_v11 = vsel %vm2604_vm6, %v2606_v44, %v2602_v15  ;;  %v2630_v34 = vmul.f32 %v4007_v3, %v2588_v20  ;;  %v7094_v44 = vld [vmem:[#allocation42_spill] sm:$0xff]  ;;  %v7127_v3 = vld [vmem:[#allocation77_spill] sm:$0xff] }
 0x690   :  { %v2629_v59 = vmul.f32 0.0, %v2607_v11  ;;  %v2617_v26 = vmul.f32 %v4005_v53, %v2616_v46  ;;  %v7128_v20 = vld [vmem:[#allocation49_spill] sm:$0xff] }
 0x691   :  { %v2325_v15 = vadd.f32 %v7128_v20, %v7127_v3  ;;  %v6282_v20 = vld [vmem:[#allocation10 + $0x398] sm:$0xff] }
 0x692   :  { %v6130_v13 = vadd.f32 %v2630_v34, %v2629_v59  ;;  %v2618_v5 = vadd.f32 %v4005_v53, %v2617_v26 }
 0x694   :  { %4008 = vtanh.f32 %v6130_v13  ;;  %v2622_v33 = vsel %vm2621_vm13, %v4005_v53, %v2618_v5  ;;  %v7125_v53 = vld [vmem:[#allocation75_spill] sm:$0xff] }
 0x695   :  { %v2627_v37 = vsel %vm2624_vm11, %v2626_v17, %v2622_v33 }
 0x69a   :  { %v4009_v48 = vpop.eup %4008 }
 0x69b   :  { %v6133_v27 = vmul.f32 %v4009_v48, %v2627_v37 }
 0x69d   :  { %3808 = vmatmul.msk.f32.vlgmr.msrb.gmra.mxu0 %vm587_vm12, %v6133_v27  ;;  %3809 = vmatmul.msk.f32.vlgmr.msra.gmra.mxu1 %vm587_vm12, %v6133_v27 }
 0x69e   :  { %3810 = vmatmul.msk.f32.vlgmr.msrb.gmra.mxu2 %vm587_vm12, %v6133_v27  ;;  %3811 = vmatmul.msk.f32.vlgmr.msrb.gmra.mxu3 %vm587_vm12, %v6133_v27 }
 0x69f   :  { %2946 = vmatpush.msrb.mxu0 %v7056_v36  ;;  %2966 = vmatpush.msra.mxu1 %v7057_v30  ;;  %v7126_v36 = vld [vmem:[#allocation47_spill] sm:$0xff] }
 0x6a0   :  { %2986 = vmatpush.msrb.mxu2 %v5710_v51  ;;  %3006 = vmatpush.msrb.mxu3 %v5680_v63  ;;  %v7096_v63 = vld [vmem:[#allocation30_spill] sm:$0xff]  ;;  %v2366_v30 = vadd.f32 %v7126_v36, %v7125_v53  ;;  %v6249_v36 = vld [vmem:[#allocation10 + $0x3c0] sm:$0xff] }
 0x6a1   :  { %2947 = vmatpush.msrb.mxu0 %v7058_v4  ;;  %2967 = vmatpush.msra.mxu1 %v7059_v18  ;;  %v7098_v51 = vld [vmem:[#allocation38_spill] sm:$0xff] }
 0x6a2   :  { %2987 = vmatpush.msrb.mxu2 %v5713_v41  ;;  %3007 = vmatpush.msrb.mxu3 %v7060_v0  ;;  %v7099_v41 = vld [vmem:[#allocation23_spill] sm:$0xff] }
 0x6a3   :  { %2948 = vmatpush.msrb.mxu0 %v7061_v10  ;;  %2968 = vmatpush.msra.mxu1 %v5685_v60  ;;  %v7095_v10 = vld [vmem:[#allocation26_spill] sm:$0xff]  ;;  %v7097_v60 = vld [vmem:[#allocation27_spill] sm:$0xff] }
 0x6a4   :  { %2988 = vmatpush.msrb.mxu2 %v5728_v31  ;;  %3008 = vmatpush.msrb.mxu3 %v5719_v7  ;;  %v7102_v7 = vld [vmem:[#allocation22_spill] sm:$0xff] }
 0x6a5   :  { %2949 = vmatpush.msrb.mxu0 %v5715_v21  ;;  %2969 = vmatpush.msra.mxu1 %v5717_v58  ;;  %v7100_v21 = vld [vmem:[#allocation25_spill] sm:$0xff]  ;;  %v7101_v58 = vld [vmem:[#allocation36_spill] sm:$0xff]  ;;  %v7105_v31 = vld [vmem:[#allocation18_spill] sm:$0xff] }
 0x6a6   :  { %2989 = vmatpush.msrb.mxu2 %v5736_v25  ;;  %3009 = vmatpush.msrb.mxu3 %v5734_v23  ;;  %v7106_v23 = vld [vmem:[#allocation28_spill] sm:$0xff]  ;;  %v7107_v25 = vld [vmem:[#allocation29_spill] sm:$0xff] }
 0x6a7   :  { %2950 = vmatpush.msrb.mxu0 %v5724_v52  ;;  %2970 = vmatpush.msra.mxu1 %v5726_v56  ;;  %v7103_v52 = vld [vmem:[#allocation24_spill] sm:$0xff]  ;;  %v7104_v56 = vld [vmem:[#allocation41_spill] sm:$0xff] }
 0x6a8   :  { %2990 = vmatpush.msrb.mxu2 %v5746_v14  ;;  %3010 = vmatpush.msrb.mxu3 %v5744_v29  ;;  %v7108_v29 = vld [vmem:[#allocation31_spill] sm:$0xff] }
 0x6a9   :  { %2951 = vmatpush.msrb.mxu0 %v5750_v28  ;;  %2971 = vmatpush.msra.mxu1 %v5752_v43  ;;  %v7109_v14 = vld [vmem:[#allocation19_spill] sm:$0xff]  ;;  %v7110_v28 = vld [vmem:[#allocation32_spill] sm:$0xff] }
 0x6aa   :  { %2991 = vmatpush.msrb.mxu2 %v5758_v49  ;;  %3011 = vmatpush.msrb.mxu3 %v5754_v35  ;;  %v7111_v43 = vld [vmem:[#allocation44_spill] sm:$0xff]  ;;  %v7112_v35 = vld [vmem:[#allocation35_spill] sm:$0xff] }
 0x6ab   :  { %2952 = vmatpush.msrb.mxu0 %v5760_v54  ;;  %2972 = vmatpush.msra.mxu1 %v5762_v8  ;;  %v7113_v49 = vld [vmem:[#allocation20_spill] sm:$0xff]  ;;  %v7114_v54 = vld [vmem:[#allocation34_spill] sm:$0xff]  ;;  %v7115_v8 = vld [vmem:[#allocation37_spill] sm:$0xff] }
 0x6ac   :  { %2992 = vmatpush.msrb.mxu2 %v5792_v62  ;;  %3012 = vmatpush.msrb.mxu3 %v5772_v24  ;;  %v7118_v24 = vld [vmem:[#allocation51_spill] sm:$0xff]  ;;  %v7124_v62 = vld [vmem:[#allocation46_spill] sm:$0xff] }
 0x6ad   :  { %2953 = vmatpush.msrb.mxu0 %v5768_v16  ;;  %2973 = vmatpush.msra.mxu1 %v5770_v40  ;;  %v7116_v16 = vld [vmem:[#allocation39_spill] sm:$0xff] }
 0x6ae   :  { %2993 = vmatpush.msrb.mxu2 %v5798_v39  ;;  %3013 = vmatpush.msrb.mxu3 %v5779_v2  ;;  %v7117_v40 = vld [vmem:[#allocation43_spill] sm:$0xff] }
 0x6af   :  { %2954 = vmatpush.msrb.mxu0 %v5775_v32  ;;  %2974 = vmatpush.msra.mxu1 %v5777_v61  ;;  %v7119_v32 = vld [vmem:[#allocation33_spill] sm:$0xff]  ;;  %v7121_v2 = vld [vmem:[#allocation71_spill] sm:$0xff] }
 0x6b0   :  { %2994 = vmatpush.msrb.mxu2 %v5810_v42  ;;  %3014 = vmatpush.msrb.mxu3 %v5785_v1  ;;  %v7120_v61 = vld [vmem:[#allocation21_spill] sm:$0xff] }
 0x6b1   :  { %2955 = vmatpush.msrb.mxu0 %v5788_v38  ;;  %2975 = vmatpush.msra.mxu1 %v5790_v47  ;;  %v7122_v1 = vld [vmem:[#allocation45_spill] sm:$0xff]  ;;  %v7123_v47 = vld [vmem:[#allocation72_spill] sm:$0xff] }
 0x6b2   :  { %2995 = vmatpush.msrb.mxu2 %v7095_v10  ;;  %3015 = vmatpush.msrb.mxu3 %v7096_v63  ;;  %v2243_v38 = vadd.f32 %v7122_v1, %v7121_v2  ;;  %v2284_v59 = vadd.f32 %v7124_v62, %v7123_v47 }
 0x6b3   :  { %2956 = vmatpush.msrb.mxu0 %v7097_v60  ;;  %2976 = vmatpush.msra.mxu1 %v7098_v51 }
 0x6b4   :  { %2996 = vmatpush.msrb.mxu2 %v7099_v41  ;;  %3016 = vmatpush.msrb.mxu3 %v7100_v21 }
 0x6b5   :  { %2957 = vmatpush.msrb.mxu0 %v7101_v58  ;;  %2977 = vmatpush.msra.mxu1 %v7102_v7 }
 0x6b6   :  { %2997 = vmatpush.msrb.mxu2 %v7103_v52  ;;  %3017 = vmatpush.msrb.mxu3 %v7104_v56 }
 0x6b7   :  { %2958 = vmatpush.msrb.mxu0 %v7105_v31  ;;  %2978 = vmatpush.msra.mxu1 %v7106_v23 }
 0x6b8   :  { %2998 = vmatpush.msrb.mxu2 %v7107_v25  ;;  %3018 = vmatpush.msrb.mxu3 %v7108_v29 }
 0x6b9   :  { %2959 = vmatpush.msrb.mxu0 %v7109_v14  ;;  %2979 = vmatpush.msra.mxu1 %v7110_v28 }
 0x6ba   :  { %2999 = vmatpush.msrb.mxu2 %v7111_v43  ;;  %3019 = vmatpush.msrb.mxu3 %v7112_v35  ;;  %v2635_v35 = vsel %vm587_vm12, %v6130_v13, 0.0 }
 0x6bb   :  { %2960 = vmatpush.msrb.mxu0 %v7113_v49  ;;  %2980 = vmatpush.msra.mxu1 %v7114_v54 }
 0x6bc   :  { %3000 = vmatpush.msrb.mxu2 %v7115_v8  ;;  %3020 = vmatpush.msrb.mxu3 %v7116_v16 }
 0x6bd   :  { %2961 = vmatpush.msrb.mxu0 %v7117_v40  ;;  %2981 = vmatpush.msra.mxu1 %v7118_v24 }
 0x6be   :  { %3001 = vmatpush.msrb.mxu2 %v7119_v32  ;;  %3021 = vmatpush.msrb.mxu3 %v7120_v61 }
 0x71a   :  { %v2657_v39 = vpop.f32.mrf.mxu0  ;;  %v2677_v34 = vpop.f32.mrf.mxu1 }
 0x71b   :  { %v2720_v46 = vadd.f32 %v2657_v39, %v2243_v38  ;;  %v2721_v42 = vadd.f32 %v2677_v34, %v2284_v59  ;;  %v2634_v34 = vsel %vm587_vm12, %v6133_v27, 0.0  ;;  %v6243_v27 = vld [vmem:[#allocation10 + $0x3f0] sm:$0xff] }
 0x71d   :  { %v3812_v26 = vmul.f32 -1.442695, %v2720_v46  ;;  %v3813_v0 = vmul.f32 -1.442695, %v2721_v42  ;;  %v6237_v42 = vld [vmem:[#allocation10 + $0x3e0] sm:$0xff] }
 0x71f   :  { %4010 = vpow2.f32 %v3812_v26  ;;  %v6240_v26 = vld [vmem:[#allocation10 + $0x3e8] sm:$0xff] }
 0x720   :  { %4012 = vpow2.f32 %v3813_v0  ;;  %v6246_v0 = vld [vmem:[#allocation10 + $0x3f8] sm:$0xff] }
 0x721   :  { %v2717_v4 = vpop.f32.mrf.mxu3  ;;  %v2697_v57 = vpop.f32.mrf.mxu2 }
 0x722   :  { %v2723_v18 = vadd.f32 %v2717_v4, %v2366_v30  ;;  %v2722_v50 = vadd.f32 %v2697_v57, %v2325_v15  ;;  %v6252_v30 = vld [vmem:[#allocation10 + $0x3c8] sm:$0xff]  ;;  %v6255_v4 = vld [vmem:[#allocation10 + $0x3d0] sm:$0xff]  ;;  %v6285_v15 = vld [vmem:[#allocation10 + $0x360] sm:$0xff] }
 0x723   :  { %v6276_v57 = vld [vmem:[#allocation10 + $0x388] sm:$0xff] }
 0x724   :  { %v3814_v55 = vmul.f32 -1.442695, %v2723_v18  ;;  %v6258_v18 = vld [vmem:[#allocation10 + $0x3d8] sm:$0xff] }
 0x725   :  { %v4011_v45 = vpop.eup %4010 }
 0x726   :  { %v4013_v12 = vpop.eup %4012  ;;  %v2727_v6 = vadd.f32 1.0, %v4011_v45  ;;  %4014 = vpow2.f32 %v3814_v55  ;;  %v6261_v55 = vld [vmem:[#allocation10 + $0x3a0] sm:$0xff]  ;;  %v6264_v45 = vld [vmem:[#allocation10 + $0x3a8] sm:$0xff] }
 0x727   :  { %v2746_v22 = vadd.f32 1.0, %v4013_v12  ;;  %v6267_v12 = vld [vmem:[#allocation10 + $0x3b0] sm:$0xff] }
 0x728   :  { %4016 = vrcp.f32 %v2727_v6  ;;  %v2739_v10 = vand.u32 2147483648, %v2727_v6  ;;  %v2737_v51 = vand.u32 2147483647, %v2727_v6  ;;  %vm2733_vm15 = vweird.f32 %v2727_v6 }
 0x729   :  { %4018 = vrcp.f32 %v2746_v22  ;;  %v2758_v63 = vand.u32 2147483648, %v2746_v22  ;;  %v2756_v21 = vand.u32 2147483647, %v2746_v22  ;;  %vm2752_vm0 = vweird.f32 %v2746_v22 }
 0x72a   :  { %v2740_v52 = vor.u32 1.1754944e-38, %v2739_v10  ;;  %vm2738_vm9 = vcmp.eq.f32.partialorder %v2737_v51, 8.507059e+37  ;;  %v6312_v10 = vld [vmem:[#allocation10 + $0x328] sm:$0xff]  ;;  %v6321_v51 = vld [vmem:[#allocation10 + $0x300] sm:$0xff] }
 0x72b   :  { %v2759_v23 = vor.u32 1.1754944e-38, %v2758_v63  ;;  %vm2757_vm13 = vcmp.eq.f32.partialorder %v2756_v21, 8.507059e+37  ;;  %v6315_v63 = vld [vmem:[#allocation10 + $0x330] sm:$0xff] }
 0x72c   :  { %v4015_v19 = vpop.eup %4014  ;;  %v6327_v21 = vld [vmem:[#allocation10 + $0x310] sm:$0xff] }
 0x72d   :  { %v2766_v11 = vadd.f32 1.0, %v4015_v19  ;;  %v6279_v19 = vld [vmem:[#allocation10 + $0x390] sm:$0xff] }
 0x72e   :  { %v4017_v5 = vpop.eup %4016 }
 0x72f   :  { %v4019_v9 = vpop.eup %4018  ;;  %v2729_v33 = vmul.f32 %v4017_v5, %v2727_v6  ;;  %4020 = vrcp.f32 %v2766_v11  ;;  %vm2734_vm8 = vweird.f32 %v4017_v5  ;;  %v2778_v32 = vand.u32 2147483648, %v2766_v11  ;;  %v6270_v6 = vld [vmem:[#allocation10 + $0x3b8] sm:$0xff] }
 0x730   :  { %v2748_v17 = vmul.f32 %v4019_v9, %v2746_v22  ;;  %4022 = vtanh.f32 %v2722_v50  ;;  %vm2753_vm14 = vweird.f32 %v4019_v9  ;;  %vm2735_vm1 = vmor %vm2733_vm15, %vm2734_vm8  ;;  %vm2772_vm8 = vweird.f32 %v2766_v11  ;;  %v6273_v22 = vld [vmem:[#allocation10 + $0x380] sm:$0xff]  ;;  %v6294_v50 = vld [vmem:[#allocation10 + $0x378] sm:$0xff] }
 0x731   :  { %v2730_v48 = vsub.f32 1.0, %v2729_v33  ;;  %vm2754_vm6 = vmor %vm2752_vm0, %vm2753_vm14  ;;  %v2776_v1 = vand.u32 2147483647, %v2766_v11  ;;  %v2779_v62 = vor.u32 1.1754944e-38, %v2778_v32  ;;  %v6300_v33 = vld [vmem:[#allocation10 + $0x348] sm:$0xff] }
 0x732   :  { %v2749_v37 = vsub.f32 1.0, %v2748_v17  ;;  %v6303_v17 = vld [vmem:[#allocation10 + $0x350] sm:$0xff]  ;;  %v6384_v32 = vld [vmem:[#allocation10 + $0x268] sm:$0xff] }
 0x733   :  { %v2731_v60 = vmul.f32 %v4017_v5, %v2730_v48  ;;  %vm2777_vm15 = vcmp.eq.f32.partialorder %v2776_v1, 8.507059e+37  ;;  %v6306_v48 = vld [vmem:[#allocation10 + $0x358] sm:$0xff]  ;;  %7142 = vst [vmem:[#allocation29_spill] sm:$0xff] %v6384_v32  ;;  %v6387_v1 = vld [vmem:[#allocation10 + $0x270] sm:$0xff] }
 0x734   :  { %v2750_v41 = vmul.f32 %v4019_v9, %v2749_v37  ;;  %v6309_v37 = vld [vmem:[#allocation10 + $0x320] sm:$0xff]  ;;  %7143 = vst [vmem:[#allocation31_spill] sm:$0xff] %v6387_v1 }
 0x735   :  { %v4021_v58 = vpop.eup %4020  ;;  %v2732_v7 = vadd.f32 %v4017_v5, %v2731_v60  ;;  %v6318_v60 = vld [vmem:[#allocation10 + $0x338] sm:$0xff] }
 0x736   :  { %v2751_v56 = vadd.f32 %v4019_v9, %v2750_v41  ;;  %v2768_v31 = vmul.f32 %v4021_v58, %v2766_v11  ;;  %v4023_v29 = vpop.eup %4022  ;;  %vm2773_vm11 = vweird.f32 %v4021_v58  ;;  %v6288_v11 = vld [vmem:[#allocation10 + $0x368] sm:$0xff] }
 0x737   :  { %v2736_v25 = vsel %vm2735_vm1, %v4017_v5, %v2732_v7  ;;  %vm2774_vm14 = vmor %vm2772_vm8, %vm2773_vm11  ;;  %v6291_v5 = vld [vmem:[#allocation10 + $0x370] sm:$0xff]  ;;  %v6324_v41 = vld [vmem:[#allocation10 + $0x308] sm:$0xff] }
 0x738   :  { %v2741_v14 = vsel %vm2738_vm9, %v2740_v52, %v2736_v25  ;;  %v2755_v28 = vsel %vm2754_vm6, %v4019_v9, %v2751_v56  ;;  %v2769_v43 = vsub.f32 1.0, %v2768_v31  ;;  %v6297_v9 = vld [vmem:[#allocation10 + $0x340] sm:$0xff]  ;;  %v6336_v52 = vld [vmem:[#allocation10 + $0x2e8] sm:$0xff]  ;;  %v6339_v56 = vld [vmem:[#allocation10 + $0x2f0] sm:$0xff] }
 0x739   :  { %v2760_v49 = vsel %vm2757_vm13, %v2759_v23, %v2755_v28  ;;  %v2783_v54 = vmul.f32 %v4023_v29, %v2741_v14  ;;  %v6333_v7 = vld [vmem:[#allocation10 + $0x2e0] sm:$0xff]  ;;  %v6342_v31 = vld [vmem:[#allocation10 + $0x2f8] sm:$0xff]  ;;  %v6348_v25 = vld [vmem:[#allocation10 + $0x2c8] sm:$0xff] }
 0x73a   :  { %v2782_v8 = vmul.f32 %v2760_v49, %v2635_v35  ;;  %v2770_v16 = vmul.f32 %v4021_v58, %v2769_v43  ;;  %v6345_v23 = vld [vmem:[#allocation10 + $0x2c0] sm:$0xff]  ;;  %7130 = vst [vmem:[#allocation26_spill] sm:$0xff] %v6348_v25  ;;  %v6351_v29 = vld [vmem:[#allocation10 + $0x2d0] sm:$0xff]  ;;  %v6354_v14 = vld [vmem:[#allocation10 + $0x2d8] sm:$0xff] }
 0x73b   :  { %7129 = vst [vmem:[#allocation42_spill] sm:$0xff] %v6345_v23  ;;  %v6357_v28 = vld [vmem:[#allocation10 + $0x2a0] sm:$0xff]  ;;  %v6360_v43 = vld [vmem:[#allocation10 + $0x2a8] sm:$0xff]  ;;  %v6366_v49 = vld [vmem:[#allocation10 + $0x2b8] sm:$0xff] }
 0x73c   :  { %v2784_v40 = vadd.f32 %v2783_v54, %v2782_v8  ;;  %v2771_v24 = vadd.f32 %v4021_v58, %v2770_v16  ;;  %7131 = vst [vmem:[#allocation30_spill] sm:$0xff] %v6351_v29  ;;  %v6369_v54 = vld [vmem:[#allocation10 + $0x280] sm:$0xff]  ;;  %v6372_v8 = vld [vmem:[#allocation10 + $0x288] sm:$0xff]  ;;  %v6375_v16 = vld [vmem:[#allocation10 + $0x290] sm:$0xff] }
 0x73d   :  { %7132 = vst [vmem:[#allocation27_spill] sm:$0xff] %v6354_v14 }
 0x73e   :  { %4024 = vtanh.f32 %v2784_v40  ;;  %v6224_v61 = vsel %vm807_vm5, %v2784_v40, %v2635_v35  ;;  %v2775_v38 = vsel %vm2774_vm14, %v4021_v58, %v2771_v24  ;;  %v6330_v58 = vld [vmem:[#allocation10 + $0x318] sm:$0xff]  ;;  %7133 = vst [vmem:[#allocation38_spill] sm:$0xff] %v6357_v28  ;;  %v6363_v35 = vld [vmem:[#allocation10 + $0x2b0] sm:$0xff]  ;;  %v6381_v24 = vld [vmem:[#allocation10 + $0x260] sm:$0xff] }
 0x73f   :  { %v2780_v59 = vsel %vm2777_vm15, %v2779_v62, %v2775_v38  ;;  %7134 = vst [vmem:[#allocation23_spill] sm:$0xff] %v6360_v43  ;;  %v6378_v40 = vld [vmem:[#allocation10 + $0x298] sm:$0xff]  ;;  %v6393_v62 = vld [vmem:[#allocation10 + $0x240] sm:$0xff] }
 0x740   :  { %7135 = vst [vmem:[#allocation25_spill] sm:$0xff] %v6363_v35  ;;  %v6390_v38 = vld [vmem:[#allocation10 + $0x278] sm:$0xff] }
 0x741   :  { %7136 = vst [vmem:[#allocation36_spill] sm:$0xff] %v6366_v49 }
 0x742   :  { %7137 = vst [vmem:[#allocation22_spill] sm:$0xff] %v6369_v54 }
 0x743   :  { %7138 = vst [vmem:[#allocation24_spill] sm:$0xff] %v6372_v8 }
 0x744   :  { %v4025_v13 = vpop.eup %4024  ;;  %7139 = vst [vmem:[#allocation41_spill] sm:$0xff] %v6375_v16 }
 0x745   :  { %v2786_v39 = vmul.f32 %v4025_v13, %v2780_v59  ;;  %7140 = vst [vmem:[#allocation18_spill] sm:$0xff] %v6378_v40  ;;  %v6396_v13 = vld [vmem:[#allocation10 + $0x248] sm:$0xff]  ;;  %v6399_v59 = vld [vmem:[#allocation10 + $0x250] sm:$0xff] }
 0x746   :  { %7141 = vst [vmem:[#allocation28_spill] sm:$0xff] %v6381_v24 }
 0x747   :  { %v6231_v46 = vsel %vm807_vm5, %v2786_v39, %v2634_v34  ;;  %7144 = vst [vmem:[#allocation19_spill] sm:$0xff] %v6390_v38  ;;  %v6402_v39 = vld [vmem:[#allocation10 + $0x258] sm:$0xff]  ;;  %v6405_v34 = vld [vmem:[#allocation10 + $0x220] sm:$0xff] }
 0x748   :  { %2809 = vmatmul.f32.vlgmr.msra.gmra.mxu0 %v6231_v46  ;;  %2829 = vmatmul.f32.vlgmr.msrb.gmra.mxu1 %v6231_v46  ;;  %7145 = vst [vmem:[#allocation32_spill] sm:$0xff] %v6393_v62 }
 0x749   :  { %2849 = vmatmul.f32.vlgmr.msra.gmra.mxu2 %v6231_v46  ;;  %2869 = vmatmul.f32.vlgmr.msra.gmra.mxu3 %v6231_v46  ;;  %7146 = vst [vmem:[#allocation44_spill] sm:$0xff] %v6396_v13 }
 0x74a   :  { %3099 = vmatpush.msra.mxu0 %v6237_v42  ;;  %3119 = vmatpush.msrb.mxu1 %v6240_v26  ;;  %7147 = vst [vmem:[#allocation35_spill] sm:$0xff] %v6399_v59 }
 0x74b   :  { %3139 = vmatpush.msra.mxu2 %v6243_v27  ;;  %3159 = vmatpush.msra.mxu3 %v6246_v0  ;;  %7148 = vst [vmem:[#allocation20_spill] sm:$0xff] %v6402_v39 }
 0x74c   :  { %3100 = vmatpush.msra.mxu0 %v6249_v36  ;;  %3120 = vmatpush.msrb.mxu1 %v6252_v30  ;;  %7149 = vst [vmem:[#allocation34_spill] sm:$0xff] %v6405_v34 }
 0x74d   :  { %3140 = vmatpush.msra.mxu2 %v6255_v4  ;;  %3160 = vmatpush.msra.mxu3 %v6258_v18 }
 0x74e   :  { %3101 = vmatpush.msra.mxu0 %v6261_v55  ;;  %3121 = vmatpush.msrb.mxu1 %v6264_v45 }
 0x74f   :  { %3141 = vmatpush.msra.mxu2 %v6267_v12  ;;  %3161 = vmatpush.msra.mxu3 %v6270_v6 }
 0x750   :  { %3102 = vmatpush.msra.mxu0 %v6273_v22  ;;  %3122 = vmatpush.msrb.mxu1 %v6276_v57 }
 0x751   :  { %3142 = vmatpush.msra.mxu2 %v6279_v19  ;;  %3162 = vmatpush.msra.mxu3 %v6282_v20 }
 0x752   :  { %3103 = vmatpush.msra.mxu0 %v6285_v15  ;;  %3123 = vmatpush.msrb.mxu1 %v6288_v11 }
 0x753   :  { %3143 = vmatpush.msra.mxu2 %v6291_v5  ;;  %3163 = vmatpush.msra.mxu3 %v6294_v50 }
 0x754   :  { %3104 = vmatpush.msra.mxu0 %v6297_v9  ;;  %3124 = vmatpush.msrb.mxu1 %v6300_v33 }
 0x755   :  { %3144 = vmatpush.msra.mxu2 %v6303_v17  ;;  %3164 = vmatpush.msra.mxu3 %v6306_v48 }
 0x756   :  { %3105 = vmatpush.msra.mxu0 %v6309_v37  ;;  %3125 = vmatpush.msrb.mxu1 %v6312_v10 }
 0x757   :  { %3145 = vmatpush.msra.mxu2 %v6315_v63  ;;  %3165 = vmatpush.msra.mxu3 %v6318_v60 }
 0x758   :  { %3106 = vmatpush.msra.mxu0 %v6321_v51  ;;  %3126 = vmatpush.msrb.mxu1 %v6324_v41 }
 0x759   :  { %3146 = vmatpush.msra.mxu2 %v6327_v21  ;;  %3166 = vmatpush.msra.mxu3 %v6330_v58 }
 0x75a   :  { %3107 = vmatpush.msra.mxu0 %v6333_v7  ;;  %3127 = vmatpush.msrb.mxu1 %v6336_v52 }
 0x75b   :  { %3147 = vmatpush.msra.mxu2 %v6339_v56  ;;  %3167 = vmatpush.msra.mxu3 %v6342_v31 }
 0x75c   :  { %3108 = vmatpush.msra.mxu0 %v6345_v23  ;;  %3128 = vmatpush.msrb.mxu1 %v6348_v25 }
 0x75d   :  { %3148 = vmatpush.msra.mxu2 %v6351_v29  ;;  %3168 = vmatpush.msra.mxu3 %v6354_v14 }
 0x75e   :  { %3109 = vmatpush.msra.mxu0 %v6357_v28  ;;  %3129 = vmatpush.msrb.mxu1 %v6360_v43 }
 0x75f   :  { %3149 = vmatpush.msra.mxu2 %v6363_v35  ;;  %3169 = vmatpush.msra.mxu3 %v6366_v49 }
 0x760   :  { %3110 = vmatpush.msra.mxu0 %v6369_v54  ;;  %3130 = vmatpush.msrb.mxu1 %v6372_v8  ;;  %v7159_v54 = vld [vmem:[#allocation52_spill] sm:$0xff] }
 0x761   :  { %3150 = vmatpush.msra.mxu2 %v6375_v16  ;;  %3170 = vmatpush.msra.mxu3 %v6378_v40 }
 0x762   :  { %3111 = vmatpush.msra.mxu0 %v6381_v24  ;;  %3131 = vmatpush.msrb.mxu1 %v6384_v32 }
 0x763   :  { %3151 = vmatpush.msra.mxu2 %v6387_v1  ;;  %3171 = vmatpush.msra.mxu3 %v6390_v38  ;;  %v6408_v38 = vld [vmem:[#allocation10 + $0x228] sm:$0xff] }
 0x764   :  { %3112 = vmatpush.msra.mxu0 %v6393_v62  ;;  %3132 = vmatpush.msrb.mxu1 %v6396_v13  ;;  %7150 = vst [vmem:[#allocation37_spill] sm:$0xff] %v6408_v38  ;;  %v6411_v62 = vld [vmem:[#allocation10 + $0x230] sm:$0xff]  ;;  %v6414_v13 = vld [vmem:[#allocation10 + $0x238] sm:$0xff] }
 0x765   :  { %3152 = vmatpush.msra.mxu2 %v6399_v59  ;;  %3172 = vmatpush.msra.mxu3 %v6402_v39  ;;  %7151 = vst [vmem:[#allocation39_spill] sm:$0xff] %v6411_v62  ;;  %v6417_v59 = vld [vmem:[#allocation10 + $0x200] sm:$0xff]  ;;  %v6420_v39 = vld [vmem:[#allocation10 + $0x208] sm:$0xff] }
 0x766   :  { %3113 = vmatpush.msra.mxu0 %v6405_v34  ;;  %3133 = vmatpush.msrb.mxu1 %v6408_v38  ;;  %7152 = vst [vmem:[#allocation43_spill] sm:$0xff] %v6414_v13  ;;  %v6423_v34 = vld [vmem:[#allocation10 + $0x210] sm:$0xff]  ;;  %v6426_v38 = vld [vmem:[#allocation10 + $0x218] sm:$0xff] }
 0x767   :  { %3153 = vmatpush.msra.mxu2 %v6411_v62  ;;  %3173 = vmatpush.msra.mxu3 %v6414_v13  ;;  %7153 = vst [vmem:[#allocation51_spill] sm:$0xff] %v6417_v59  ;;  %v7157_v62 = vld [vmem:[#allocation48_spill] sm:$0xff]  ;;  %v7158_v13 = vld [vmem:[#allocation50_spill] sm:$0xff] }
 0x768   :  { %3114 = vmatpush.msra.mxu0 %v6417_v59  ;;  %7154 = vst [vmem:[#allocation33_spill] sm:$0xff] %v6420_v39  ;;  %3134 = vmatpush.msrb.mxu1 %v6420_v39  ;;  %v2246_v1 = vadd.f32 %v7157_v62, %v7121_v2  ;;  %v2287_v32 = vadd.f32 %v7158_v13, %v7123_v47 }
 0x769   :  { %7155 = vst [vmem:[#allocation21_spill] sm:$0xff] %v6423_v34  ;;  %3154 = vmatpush.msra.mxu2 %v6423_v34  ;;  %3174 = vmatpush.msra.mxu3 %v6426_v38  ;;  %v2369_v34 = vadd.f32 %v7159_v54, %v7125_v53 }
 0x76a   :  { %7156 = vst [vmem:[#allocation45_spill] sm:$0xff] %v6426_v38 }
 0x7c5   :  { %v2810_v24 = vpop.f32.mrf.mxu0  ;;  %v2830_v59 = vpop.f32.mrf.mxu1 }
 0x7c6   :  { %v2873_v40 = vadd.f32 %v2810_v24, %v2246_v1  ;;  %v2874_v16 = vadd.f32 %v2830_v59, %v2287_v32 }
 0x7c8   :  { %v3815_v8 = vmul.f32 -1.442695, %v2873_v40  ;;  %v3816_v39 = vmul.f32 -1.442695, %v2874_v16  ;;  %v7160_v40 = vld [vmem:[#allocation55_spill] sm:$0xff] }
 0x7c9   :  { %v2328_v16 = vadd.f32 %v7160_v40, %v7127_v3 }
 0x7ca   :  { %4026 = vpow2.f32 %v3815_v8 }
 0x7cb   :  { %4028 = vpow2.f32 %v3816_v39 }
 0x7cc   :  { %v2870_v49 = vpop.f32.mrf.mxu3  ;;  %v2850_v13 = vpop.f32.mrf.mxu2 }
 0x7cd   :  { %v2876_v35 = vadd.f32 %v2870_v49, %v2369_v34  ;;  %v2875_v1 = vadd.f32 %v2850_v13, %v2328_v16 }
 0x7cf   :  { %v3817_v38 = vmul.f32 -1.442695, %v2876_v35 }
 0x7d0   :  { %v4027_v43 = vpop.eup %4026 }
 0x7d1   :  { %v4029_v28 = vpop.eup %4028  ;;  %v2880_v62 = vadd.f32 1.0, %v4027_v43  ;;  %4030 = vpow2.f32 %v3817_v38 }
 0x7d2   :  { %v2899_v2 = vadd.f32 1.0, %v4029_v28 }
 0x7d3   :  { %4032 = vrcp.f32 %v2880_v62  ;;  %v2892_v34 = vand.u32 2147483648, %v2880_v62  ;;  %v2890_v38 = vand.u32 2147483647, %v2880_v62  ;;  %vm2886_vm0 = vweird.f32 %v2880_v62 }
 0x7d4   :  { %4034 = vrcp.f32 %v2899_v2  ;;  %v2911_v43 = vand.u32 2147483648, %v2899_v2  ;;  %v2909_v47 = vand.u32 2147483647, %v2899_v2  ;;  %vm2905_vm1 = vweird.f32 %v2899_v2 }
 0x7d5   :  { %v2893_v13 = vor.u32 1.1754944e-38, %v2892_v34  ;;  %vm2891_vm13 = vcmp.eq.f32.partialorder %v2890_v38, 8.507059e+37 }
 0x7d6   :  { %vm2910_vm11 = vcmp.eq.f32.partialorder %v2909_v47, 8.507059e+37 }
 0x7d7   :  { %v4031_v24 = vpop.eup %4030 }
 0x7d8   :  { %v2919_v8 = vadd.f32 1.0, %v4031_v24 }
 0x7d9   :  { %v4033_v32 = vpop.eup %4032 }
 0x7da   :  { %v4035_v54 = vpop.eup %4034  ;;  %v2882_v59 = vmul.f32 %v4033_v32, %v2880_v62  ;;  %4036 = vrcp.f32 %v2919_v8  ;;  %vm2887_vm12 = vweird.f32 %v4033_v32  ;;  %vm2925_vm14 = vweird.f32 %v2919_v8 }
 0x7db   :  { %v2901_v49 = vmul.f32 %v4035_v54, %v2899_v2  ;;  %4038 = vtanh.f32 %v2875_v1  ;;  %vm2906_vm5 = vweird.f32 %v4035_v54  ;;  %vm2888_vm6 = vmor %vm2886_vm0, %vm2887_vm12  ;;  %v2929_v34 = vand.u32 2147483647, %v2919_v8 }
 0x7dc   :  { %v2883_v35 = vsub.f32 1.0, %v2882_v59  ;;  %vm2907_vm9 = vmor %vm2905_vm1, %vm2906_vm5  ;;  %v2912_v59 = vor.u32 1.1754944e-38, %v2911_v43 }
 0x7dd   :  { %v2902_v39 = vsub.f32 1.0, %v2901_v49  ;;  %vm2930_vm12 = vcmp.eq.f32.partialorder %v2929_v34, 8.507059e+37  ;;  %v7180_v34 = vld [vmem:[#allocation20_spill] sm:$0xff] }
 0x7de   :  { %v2884_v28 = vmul.f32 %v4033_v32, %v2883_v35 }
 0x7df   :  { %v2903_v53 = vmul.f32 %v4035_v54, %v2902_v39 }
 0x7e0   :  { %v4037_v14 = vpop.eup %4036  ;;  %v2885_v40 = vadd.f32 %v4033_v32, %v2884_v28 }
 0x7e1   :  { %v2904_v24 = vadd.f32 %v4035_v54, %v2903_v53  ;;  %v2921_v16 = vmul.f32 %v4037_v14, %v2919_v8  ;;  %v4039_v1 = vpop.eup %4038  ;;  %vm2926_vm8 = vweird.f32 %v4037_v14  ;;  %v2931_v53 = vand.u32 2147483648, %v2919_v8  ;;  %v7166_v8 = vld [vmem:[#allocation23_spill] sm:$0xff] }
 0x7e2   :  { %v2889_v49 = vsel %vm2888_vm6, %v4033_v32, %v2885_v40  ;;  %vm2927_vm15 = vmor %vm2925_vm14, %vm2926_vm8  ;;  %v7167_v40 = vld [vmem:[#allocation25_spill] sm:$0xff] }
 0x7e3   :  { %v2894_v3 = vsel %vm2891_vm13, %v2893_v13, %v2889_v49  ;;  %v2908_v35 = vsel %vm2907_vm9, %v4035_v54, %v2904_v24  ;;  %v2922_v29 = vsub.f32 1.0, %v2921_v16  ;;  %v2932_v54 = vor.u32 1.1754944e-38, %v2931_v53  ;;  %v7168_v13 = vld [vmem:[#allocation36_spill] sm:$0xff]  ;;  %v7169_v24 = vld [vmem:[#allocation22_spill] sm:$0xff]  ;;  %v7179_v53 = vld [vmem:[#allocation35_spill] sm:$0xff] }
 0x7e4   :  { %v2913_v39 = vsel %vm2910_vm11, %v2912_v59, %v2908_v35  ;;  %v2936_v25 = vmul.f32 %v4039_v1, %v2894_v3  ;;  %v7170_v16 = vld [vmem:[#allocation24_spill] sm:$0xff]  ;;  %v7171_v59 = vld [vmem:[#allocation41_spill] sm:$0xff]  ;;  %v7172_v49 = vld [vmem:[#allocation18_spill] sm:$0xff] }
 0x7e5   :  { %v2935_v23 = vmul.f32 %v2913_v39, %v6224_v61  ;;  %v2923_v28 = vmul.f32 %v4037_v14, %v2922_v29  ;;  %v7164_v29 = vld [vmem:[#allocation27_spill] sm:$0xff]  ;;  %v7173_v1 = vld [vmem:[#allocation28_spill] sm:$0xff]  ;;  %v7174_v35 = vld [vmem:[#allocation29_spill] sm:$0xff] }
 0x7e6   :  { %v7175_v39 = vld [vmem:[#allocation31_spill] sm:$0xff] }
 0x7e7   :  { %v2937_v62 = vadd.f32 %v2936_v25, %v2935_v23  ;;  %v2924_v2 = vadd.f32 %v4037_v14, %v2923_v28  ;;  %v7163_v25 = vld [vmem:[#allocation30_spill] sm:$0xff]  ;;  %v7176_v28 = vld [vmem:[#allocation19_spill] sm:$0xff] }
 0x7e9   :  { %4040 = vtanh.f32 %v2937_v62  ;;  %v6441_v32 = vsel %vm1028_vm3, %v2937_v62, %v6224_v61  ;;  %v2928_v47 = vsel %vm2927_vm15, %v4037_v14, %v2924_v2  ;;  %v7161_v61 = vld [vmem:[#allocation42_spill] sm:$0xff]  ;;  %v7177_v62 = vld [vmem:[#allocation32_spill] sm:$0xff] }
 0x7ea   :  { %v2933_v43 = vsel %vm2930_vm12, %v2932_v54, %v2928_v47  ;;  %v7165_v14 = vld [vmem:[#allocation38_spill] sm:$0xff]  ;;  %v7178_v2 = vld [vmem:[#allocation44_spill] sm:$0xff]  ;;  %v7182_v54 = vld [vmem:[#allocation37_spill] sm:$0xff] }
 0x7eb   :  { %v7181_v47 = vld [vmem:[#allocation34_spill] sm:$0xff] }
 0x7ef   :  { %v4041_v3 = vpop.eup %4040 }
 0x7f0   :  { %v2939_v38 = vmul.f32 %v4041_v3, %v2933_v43  ;;  %v7183_v3 = vld [vmem:[#allocation39_spill] sm:$0xff] }
 0x7f1   :  { %v7184_v43 = vld [vmem:[#allocation43_spill] sm:$0xff] }
 0x7f2   :  { %v6446_v23 = vsel %vm1028_vm3, %v2939_v38, %v6231_v46  ;;  %v7162_v46 = vld [vmem:[#allocation26_spill] sm:$0xff]  ;;  %v7185_v38 = vld [vmem:[#allocation51_spill] sm:$0xff] }
 0x7f3   :  { %2962 = vmatmul.f32.vlgmr.msrb.gmra.mxu0 %v6446_v23  ;;  %2982 = vmatmul.f32.vlgmr.msra.gmra.mxu1 %v6446_v23 }
 0x7f4   :  { %3002 = vmatmul.f32.vlgmr.msrb.gmra.mxu2 %v6446_v23  ;;  %3022 = vmatmul.f32.vlgmr.msrb.gmra.mxu3 %v6446_v23 }
 0x7f5   :  { %3252 = vmatpush.msrb.mxu0 %v6237_v42  ;;  %3272 = vmatpush.msra.mxu1 %v6240_v26 }
 0x7f6   :  { %3292 = vmatpush.msrb.mxu2 %v6243_v27  ;;  %3312 = vmatpush.msrb.mxu3 %v6246_v0 }
 0x7f7   :  { %3253 = vmatpush.msrb.mxu0 %v6249_v36  ;;  %3273 = vmatpush.msra.mxu1 %v6252_v30 }
 0x7f8   :  { %3293 = vmatpush.msrb.mxu2 %v6255_v4  ;;  %3313 = vmatpush.msrb.mxu3 %v6258_v18 }
 0x7f9   :  { %3254 = vmatpush.msrb.mxu0 %v6261_v55  ;;  %3274 = vmatpush.msra.mxu1 %v6264_v45 }
 0x7fa   :  { %3294 = vmatpush.msrb.mxu2 %v6267_v12  ;;  %3314 = vmatpush.msrb.mxu3 %v6270_v6 }
 0x7fb   :  { %3255 = vmatpush.msrb.mxu0 %v6273_v22  ;;  %3275 = vmatpush.msra.mxu1 %v6276_v57 }
 0x7fc   :  { %3295 = vmatpush.msrb.mxu2 %v6279_v19  ;;  %3315 = vmatpush.msrb.mxu3 %v6282_v20 }
 0x7fd   :  { %3256 = vmatpush.msrb.mxu0 %v6285_v15  ;;  %3276 = vmatpush.msra.mxu1 %v6288_v11 }
 0x7fe   :  { %3296 = vmatpush.msrb.mxu2 %v6291_v5  ;;  %3316 = vmatpush.msrb.mxu3 %v6294_v50 }
 0x7ff   :  { %3257 = vmatpush.msrb.mxu0 %v6297_v9  ;;  %3277 = vmatpush.msra.mxu1 %v6300_v33 }
 0x800   :  { %3297 = vmatpush.msrb.mxu2 %v6303_v17  ;;  %3317 = vmatpush.msrb.mxu3 %v6306_v48 }
 0x801   :  { %3258 = vmatpush.msrb.mxu0 %v6309_v37  ;;  %3278 = vmatpush.msra.mxu1 %v6312_v10 }
 0x802   :  { %3298 = vmatpush.msrb.mxu2 %v6315_v63  ;;  %3318 = vmatpush.msrb.mxu3 %v6318_v60 }
 0x803   :  { %3259 = vmatpush.msrb.mxu0 %v6321_v51  ;;  %3279 = vmatpush.msra.mxu1 %v6324_v41 }
 0x804   :  { %3299 = vmatpush.msrb.mxu2 %v6327_v21  ;;  %3319 = vmatpush.msrb.mxu3 %v6330_v58 }
 0x805   :  { %3260 = vmatpush.msrb.mxu0 %v6333_v7  ;;  %3280 = vmatpush.msra.mxu1 %v6336_v52 }
 0x806   :  { %3300 = vmatpush.msrb.mxu2 %v6339_v56  ;;  %3320 = vmatpush.msrb.mxu3 %v6342_v31 }
 0x807   :  { %3261 = vmatpush.msrb.mxu0 %v7161_v61  ;;  %3281 = vmatpush.msra.mxu1 %v7162_v46 }
 0x808   :  { %3301 = vmatpush.msrb.mxu2 %v7163_v25  ;;  %3321 = vmatpush.msrb.mxu3 %v7164_v29 }
 0x809   :  { %3262 = vmatpush.msrb.mxu0 %v7165_v14  ;;  %3282 = vmatpush.msra.mxu1 %v7166_v8 }
 0x80a   :  { %3302 = vmatpush.msrb.mxu2 %v7167_v40  ;;  %3322 = vmatpush.msrb.mxu3 %v7168_v13 }
 0x80b   :  { %3263 = vmatpush.msrb.mxu0 %v7169_v24  ;;  %3283 = vmatpush.msra.mxu1 %v7170_v16  ;;  %v7194_v24 = vld [vmem:[#allocation56_spill] sm:$0xff] }
 0x80c   :  { %3303 = vmatpush.msrb.mxu2 %v7171_v59  ;;  %3323 = vmatpush.msrb.mxu3 %v7172_v49 }
 0x80d   :  { %3264 = vmatpush.msrb.mxu0 %v7173_v1  ;;  %3284 = vmatpush.msra.mxu1 %v7174_v35  ;;  %v7192_v1 = vld [vmem:[#allocation54_spill] sm:$0xff] }
 0x80e   :  { %3304 = vmatpush.msrb.mxu2 %v7175_v39  ;;  %3324 = vmatpush.msrb.mxu3 %v7176_v28  ;;  %v7186_v39 = vld [vmem:[#allocation33_spill] sm:$0xff] }
 0x80f   :  { %3265 = vmatpush.msrb.mxu0 %v7177_v62  ;;  %3285 = vmatpush.msra.mxu1 %v7178_v2  ;;  %v7187_v28 = vld [vmem:[#allocation21_spill] sm:$0xff]  ;;  %v7189_v2 = vld [vmem:[#allocation71_spill] sm:$0xff] }
 0x810   :  { %3305 = vmatpush.msrb.mxu2 %v7179_v53  ;;  %3325 = vmatpush.msrb.mxu3 %v7180_v34  ;;  %v7188_v62 = vld [vmem:[#allocation45_spill] sm:$0xff]  ;;  %v7191_v34 = vld [vmem:[#allocation72_spill] sm:$0xff] }
 0x811   :  { %3266 = vmatpush.msrb.mxu0 %v7181_v47  ;;  %3286 = vmatpush.msra.mxu1 %v7182_v54  ;;  %v7190_v53 = vld [vmem:[#allocation53_spill] sm:$0xff]  ;;  %v2290_v47 = vadd.f32 %v7192_v1, %v7191_v34 }
 0x812   :  { %3306 = vmatpush.msrb.mxu2 %v7183_v3  ;;  %3326 = vmatpush.msrb.mxu3 %v7184_v43  ;;  %v2249_v35 = vadd.f32 %v7190_v53, %v7189_v2 }
 0x813   :  { %3267 = vmatpush.msrb.mxu0 %v7185_v38  ;;  %3287 = vmatpush.msra.mxu1 %v7186_v39  ;;  %v7193_v38 = vld [vmem:[#allocation75_spill] sm:$0xff] }
 0x814   :  { %3307 = vmatpush.msrb.mxu2 %v7187_v28  ;;  %3327 = vmatpush.msrb.mxu3 %v7188_v62  ;;  %v2372_v39 = vadd.f32 %v7194_v24, %v7193_v38 }
 0x870   :  { %v2963_v49 = vpop.f32.mrf.mxu0  ;;  %v2983_v54 = vpop.f32.mrf.mxu1 }
 0x871   :  { %v3026_v59 = vadd.f32 %v2963_v49, %v2249_v35  ;;  %v3027_v3 = vadd.f32 %v2983_v54, %v2290_v47  ;;  %v7195_v35 = vld [vmem:[#allocation77_spill] sm:$0xff] }
 0x873   :  { %v3818_v16 = vmul.f32 -1.442695, %v3026_v59  ;;  %v3819_v43 = vmul.f32 -1.442695, %v3027_v3  ;;  %v7196_v59 = vld [vmem:[#allocation59_spill] sm:$0xff] }
 0x874   :  { %v2331_v47 = vadd.f32 %v7196_v59, %v7195_v35 }
 0x875   :  { %4042 = vpow2.f32 %v3818_v16 }
 0x876   :  { %4044 = vpow2.f32 %v3819_v43 }
 0x877   :  { %v3023_v28 = vpop.f32.mrf.mxu3  ;;  %v3003_v1 = vpop.f32.mrf.mxu2 }
 0x878   :  { %v3029_v13 = vadd.f32 %v3023_v28, %v2372_v39  ;;  %v3028_v3 = vadd.f32 %v3003_v1, %v2331_v47 }
 0x87a   :  { %v3820_v62 = vmul.f32 -1.442695, %v3029_v13 }
 0x87b   :  { %v4043_v40 = vpop.eup %4042 }
 0x87c   :  { %v4045_v8 = vpop.eup %4044  ;;  %v3033_v53 = vadd.f32 1.0, %v4043_v40  ;;  %4046 = vpow2.f32 %v3820_v62 }
 0x87d   :  { %v3052_v2 = vadd.f32 1.0, %v4045_v8 }
 0x87e   :  { %4048 = vrcp.f32 %v3033_v53  ;;  %v3045_v38 = vand.u32 2147483648, %v3033_v53  ;;  %v3043_v62 = vand.u32 2147483647, %v3033_v53  ;;  %vm3039_vm0 = vweird.f32 %v3033_v53 }
 0x87f   :  { %4050 = vrcp.f32 %v3052_v2  ;;  %v3064_v40 = vand.u32 2147483648, %v3052_v2  ;;  %v3062_v14 = vand.u32 2147483647, %v3052_v2  ;;  %vm3058_vm1 = vweird.f32 %v3052_v2 }
 0x880   :  { %v3046_v1 = vor.u32 1.1754944e-38, %v3045_v38  ;;  %vm3044_vm13 = vcmp.eq.f32.partialorder %v3043_v62, 8.507059e+37 }
 0x881   :  { %vm3063_vm11 = vcmp.eq.f32.partialorder %v3062_v14, 8.507059e+37 }
 0x882   :  { %v4047_v49 = vpop.eup %4046 }
 0x883   :  { %v3072_v16 = vadd.f32 1.0, %v4047_v49 }
 0x884   :  { %v4049_v54 = vpop.eup %4048 }
 0x885   :  { %v4051_v24 = vpop.eup %4050  ;;  %v3035_v43 = vmul.f32 %v4049_v54, %v3033_v53  ;;  %4052 = vrcp.f32 %v3072_v16  ;;  %vm3040_vm3 = vweird.f32 %v4049_v54  ;;  %vm3078_vm14 = vweird.f32 %v3072_v16 }
 0x886   :  { %v3054_v39 = vmul.f32 %v4051_v24, %v3052_v2  ;;  %4054 = vtanh.f32 %v3028_v3  ;;  %vm3059_vm5 = vweird.f32 %v4051_v24  ;;  %vm3041_vm6 = vmor %vm3039_vm0, %vm3040_vm3 }
 0x887   :  { %v3036_v13 = vsub.f32 1.0, %v3035_v43  ;;  %vm3060_vm9 = vmor %vm3058_vm1, %vm3059_vm5  ;;  %v3065_v43 = vor.u32 1.1754944e-38, %v3064_v40 }
 0x888   :  { %v3055_v28 = vsub.f32 1.0, %v3054_v39 }
 0x889   :  { %v3037_v8 = vmul.f32 %v4049_v54, %v3036_v13 }
 0x88a   :  { %v3056_v34 = vmul.f32 %v4051_v24, %v3055_v28 }
 0x88b   :  { %v4053_v29 = vpop.eup %4052  ;;  %v3038_v59 = vadd.f32 %v4049_v54, %v3037_v8 }
 0x88c   :  { %v3057_v49 = vadd.f32 %v4051_v24, %v3056_v34  ;;  %v3074_v47 = vmul.f32 %v4053_v29, %v3072_v16  ;;  %v4055_v3 = vpop.eup %4054  ;;  %vm3079_vm8 = vweird.f32 %v4053_v29  ;;  %v3084_v34 = vand.u32 2147483648, %v3072_v16 }
 0x88d   :  { %v3042_v39 = vsel %vm3041_vm6, %v4049_v54, %v3038_v59  ;;  %v3082_v54 = vand.u32 2147483647, %v3072_v16  ;;  %vm3080_vm15 = vmor %vm3078_vm14, %vm3079_vm8  ;;  %v7202_v16 = vld [vmem:[#allocation23_spill] sm:$0xff]  ;;  %v7203_v59 = vld [vmem:[#allocation25_spill] sm:$0xff] }
 0x88e   :  { %v3047_v35 = vsel %vm3044_vm13, %v3046_v1, %v3042_v39  ;;  %v3061_v13 = vsel %vm3060_vm9, %v4051_v24, %v3057_v49  ;;  %v3075_v25 = vsub.f32 1.0, %v3074_v47  ;;  %v3085_v24 = vor.u32 1.1754944e-38, %v3084_v34  ;;  %v7204_v1 = vld [vmem:[#allocation36_spill] sm:$0xff]  ;;  %v7205_v49 = vld [vmem:[#allocation22_spill] sm:$0xff]  ;;  %v7215_v34 = vld [vmem:[#allocation35_spill] sm:$0xff] }
 0x88f   :  { %v3066_v28 = vsel %vm3063_vm11, %v3065_v43, %v3061_v13  ;;  %v3089_v46 = vmul.f32 %v4055_v3, %v3047_v35  ;;  %vm3083_vm12 = vcmp.eq.f32.partialorder %v3082_v54, 8.507059e+37  ;;  %v7206_v47 = vld [vmem:[#allocation24_spill] sm:$0xff]  ;;  %v7207_v43 = vld [vmem:[#allocation41_spill] sm:$0xff]  ;;  %v7208_v39 = vld [vmem:[#allocation18_spill] sm:$0xff] }
 0x890   :  { %v3088_v61 = vmul.f32 %v3066_v28, %v6441_v32  ;;  %v3076_v8 = vmul.f32 %v4053_v29, %v3075_v25  ;;  %v7200_v25 = vld [vmem:[#allocation27_spill] sm:$0xff]  ;;  %v7209_v3 = vld [vmem:[#allocation28_spill] sm:$0xff]  ;;  %v7210_v13 = vld [vmem:[#allocation29_spill] sm:$0xff] }
 0x891   :  { %v7211_v28 = vld [vmem:[#allocation31_spill] sm:$0xff]  ;;  %v7216_v54 = vld [vmem:[#allocation20_spill] sm:$0xff] }
 0x892   :  { %v3090_v53 = vadd.f32 %v3089_v46, %v3088_v61  ;;  %v3077_v2 = vadd.f32 %v4053_v29, %v3076_v8  ;;  %v7199_v46 = vld [vmem:[#allocation30_spill] sm:$0xff]  ;;  %v7212_v8 = vld [vmem:[#allocation19_spill] sm:$0xff] }
 0x894   :  { %4056 = vtanh.f32 %v3090_v53  ;;  %v6528_v38 = vsel %vm1249_vm2, %v3090_v53, %v6441_v32  ;;  %v3081_v14 = vsel %vm3080_vm15, %v4053_v29, %v3077_v2  ;;  %v7197_v32 = vld [vmem:[#allocation42_spill] sm:$0xff]  ;;  %v7213_v53 = vld [vmem:[#allocation32_spill] sm:$0xff] }
 0x895   :  { %v3086_v40 = vsel %vm3083_vm12, %v3085_v24, %v3081_v14  ;;  %v7201_v29 = vld [vmem:[#allocation38_spill] sm:$0xff]  ;;  %v7214_v2 = vld [vmem:[#allocation44_spill] sm:$0xff]  ;;  %v7218_v24 = vld [vmem:[#allocation37_spill] sm:$0xff] }
 0x896   :  { %v7217_v14 = vld [vmem:[#allocation34_spill] sm:$0xff] }
 0x89a   :  { %v4057_v35 = vpop.eup %4056 }
 0x89b   :  { %v3092_v62 = vmul.f32 %v4057_v35, %v3086_v40  ;;  %v7219_v35 = vld [vmem:[#allocation39_spill] sm:$0xff] }
 0x89c   :  { %v7220_v40 = vld [vmem:[#allocation43_spill] sm:$0xff] }
 0x89d   :  { %v6533_v61 = vsel %vm1249_vm2, %v3092_v62, %v6446_v23  ;;  %v7198_v23 = vld [vmem:[#allocation26_spill] sm:$0xff]  ;;  %v7221_v62 = vld [vmem:[#allocation51_spill] sm:$0xff] }
 0x89e   :  { %3115 = vmatmul.f32.vlgmr.msra.gmra.mxu0 %v6533_v61  ;;  %3135 = vmatmul.f32.vlgmr.msrb.gmra.mxu1 %v6533_v61 }
 0x89f   :  { %3155 = vmatmul.f32.vlgmr.msra.gmra.mxu2 %v6533_v61  ;;  %3175 = vmatmul.f32.vlgmr.msra.gmra.mxu3 %v6533_v61 }
 0x8a0   :  { %3405 = vmatpush.msra.mxu0 %v6237_v42  ;;  %3425 = vmatpush.msrb.mxu1 %v6240_v26 }
 0x8a1   :  { %3445 = vmatpush.msra.mxu2 %v6243_v27  ;;  %3465 = vmatpush.msra.mxu3 %v6246_v0 }
 0x8a2   :  { %3406 = vmatpush.msra.mxu0 %v6249_v36  ;;  %3426 = vmatpush.msrb.mxu1 %v6252_v30 }
 0x8a3   :  { %3446 = vmatpush.msra.mxu2 %v6255_v4  ;;  %3466 = vmatpush.msra.mxu3 %v6258_v18 }
 0x8a4   :  { %3407 = vmatpush.msra.mxu0 %v6261_v55  ;;  %3427 = vmatpush.msrb.mxu1 %v6264_v45 }
 0x8a5   :  { %3447 = vmatpush.msra.mxu2 %v6267_v12  ;;  %3467 = vmatpush.msra.mxu3 %v6270_v6 }
 0x8a6   :  { %3408 = vmatpush.msra.mxu0 %v6273_v22  ;;  %3428 = vmatpush.msrb.mxu1 %v6276_v57 }
 0x8a7   :  { %3448 = vmatpush.msra.mxu2 %v6279_v19  ;;  %3468 = vmatpush.msra.mxu3 %v6282_v20 }
 0x8a8   :  { %3409 = vmatpush.msra.mxu0 %v6285_v15  ;;  %3429 = vmatpush.msrb.mxu1 %v6288_v11 }
 0x8a9   :  { %3449 = vmatpush.msra.mxu2 %v6291_v5  ;;  %3469 = vmatpush.msra.mxu3 %v6294_v50 }
 0x8aa   :  { %3410 = vmatpush.msra.mxu0 %v6297_v9  ;;  %3430 = vmatpush.msrb.mxu1 %v6300_v33 }
 0x8ab   :  { %3450 = vmatpush.msra.mxu2 %v6303_v17  ;;  %3470 = vmatpush.msra.mxu3 %v6306_v48 }
 0x8ac   :  { %3411 = vmatpush.msra.mxu0 %v6309_v37  ;;  %3431 = vmatpush.msrb.mxu1 %v6312_v10 }
 0x8ad   :  { %3451 = vmatpush.msra.mxu2 %v6315_v63  ;;  %3471 = vmatpush.msra.mxu3 %v6318_v60 }
 0x8ae   :  { %3412 = vmatpush.msra.mxu0 %v6321_v51  ;;  %3432 = vmatpush.msrb.mxu1 %v6324_v41 }
 0x8af   :  { %3452 = vmatpush.msra.mxu2 %v6327_v21  ;;  %3472 = vmatpush.msra.mxu3 %v6330_v58 }
 0x8b0   :  { %3413 = vmatpush.msra.mxu0 %v6333_v7  ;;  %3433 = vmatpush.msrb.mxu1 %v6336_v52 }
 0x8b1   :  { %3453 = vmatpush.msra.mxu2 %v6339_v56  ;;  %3473 = vmatpush.msra.mxu3 %v6342_v31 }
 0x8b2   :  { %3414 = vmatpush.msra.mxu0 %v7197_v32  ;;  %3434 = vmatpush.msrb.mxu1 %v7198_v23 }
 0x8b3   :  { %3454 = vmatpush.msra.mxu2 %v7199_v46  ;;  %3474 = vmatpush.msra.mxu3 %v7200_v25 }
 0x8b4   :  { %3415 = vmatpush.msra.mxu0 %v7201_v29  ;;  %3435 = vmatpush.msrb.mxu1 %v7202_v16 }
 0x8b5   :  { %3455 = vmatpush.msra.mxu2 %v7203_v59  ;;  %3475 = vmatpush.msra.mxu3 %v7204_v1 }
 0x8b6   :  { %3416 = vmatpush.msra.mxu0 %v7205_v49  ;;  %3436 = vmatpush.msrb.mxu1 %v7206_v47  ;;  %v7230_v49 = vld [vmem:[#allocation60_spill] sm:$0xff] }
 0x8b7   :  { %3456 = vmatpush.msra.mxu2 %v7207_v43  ;;  %3476 = vmatpush.msra.mxu3 %v7208_v39 }
 0x8b8   :  { %3417 = vmatpush.msra.mxu0 %v7209_v3  ;;  %3437 = vmatpush.msrb.mxu1 %v7210_v13  ;;  %v7228_v3 = vld [vmem:[#allocation58_spill] sm:$0xff] }
 0x8b9   :  { %3457 = vmatpush.msra.mxu2 %v7211_v28  ;;  %3477 = vmatpush.msra.mxu3 %v7212_v8  ;;  %v7222_v28 = vld [vmem:[#allocation33_spill] sm:$0xff] }
 0x8ba   :  { %3418 = vmatpush.msra.mxu0 %v7213_v53  ;;  %3438 = vmatpush.msrb.mxu1 %v7214_v2  ;;  %v7223_v8 = vld [vmem:[#allocation21_spill] sm:$0xff]  ;;  %v7225_v2 = vld [vmem:[#allocation71_spill] sm:$0xff] }
 0x8bb   :  { %3458 = vmatpush.msra.mxu2 %v7215_v34  ;;  %3478 = vmatpush.msra.mxu3 %v7216_v54  ;;  %v7224_v53 = vld [vmem:[#allocation45_spill] sm:$0xff]  ;;  %v7227_v54 = vld [vmem:[#allocation72_spill] sm:$0xff] }
 0x8bc   :  { %3419 = vmatpush.msra.mxu0 %v7217_v14  ;;  %3439 = vmatpush.msrb.mxu1 %v7218_v24  ;;  %v7226_v34 = vld [vmem:[#allocation57_spill] sm:$0xff]  ;;  %v2293_v14 = vadd.f32 %v7228_v3, %v7227_v54 }
 0x8bd   :  { %3459 = vmatpush.msra.mxu2 %v7219_v35  ;;  %3479 = vmatpush.msra.mxu3 %v7220_v40  ;;  %v2252_v13 = vadd.f32 %v7226_v34, %v7225_v2 }
 0x8be   :  { %3420 = vmatpush.msra.mxu0 %v7221_v62  ;;  %3440 = vmatpush.msrb.mxu1 %v7222_v28  ;;  %v7229_v62 = vld [vmem:[#allocation75_spill] sm:$0xff] }
 0x8bf   :  { %3460 = vmatpush.msra.mxu2 %v7223_v8  ;;  %3480 = vmatpush.msra.mxu3 %v7224_v53  ;;  %v2375_v28 = vadd.f32 %v7230_v49, %v7229_v62 }
 0x91b   :  { %v3116_v39 = vpop.f32.mrf.mxu0  ;;  %v3136_v24 = vpop.f32.mrf.mxu1 }
 0x91c   :  { %v3179_v43 = vadd.f32 %v3116_v39, %v2252_v13  ;;  %v3180_v35 = vadd.f32 %v3136_v24, %v2293_v14  ;;  %v7231_v13 = vld [vmem:[#allocation77_spill] sm:$0xff] }
 0x91e   :  { %v3821_v47 = vmul.f32 -1.442695, %v3179_v43  ;;  %v3822_v40 = vmul.f32 -1.442695, %v3180_v35  ;;  %v7232_v43 = vld [vmem:[#allocation63_spill] sm:$0xff] }
 0x91f   :  { %v2334_v14 = vadd.f32 %v7232_v43, %v7231_v13 }
 0x920   :  { %4058 = vpow2.f32 %v3821_v47 }
 0x921   :  { %4060 = vpow2.f32 %v3822_v40 }
 0x922   :  { %v3176_v8 = vpop.f32.mrf.mxu3  ;;  %v3156_v3 = vpop.f32.mrf.mxu2 }
 0x923   :  { %v3182_v1 = vadd.f32 %v3176_v8, %v2375_v28  ;;  %v3181_v35 = vadd.f32 %v3156_v3, %v2334_v14 }
 0x925   :  { %v3823_v53 = vmul.f32 -1.442695, %v3182_v1 }
 0x926   :  { %v4059_v59 = vpop.eup %4058 }
 0x927   :  { %v4061_v16 = vpop.eup %4060  ;;  %v3186_v34 = vadd.f32 1.0, %v4059_v59  ;;  %4062 = vpow2.f32 %v3823_v53 }
 0x928   :  { %v3205_v2 = vadd.f32 1.0, %v4061_v16 }
 0x929   :  { %4064 = vrcp.f32 %v3186_v34  ;;  %v3198_v62 = vand.u32 2147483648, %v3186_v34  ;;  %v3196_v53 = vand.u32 2147483647, %v3186_v34  ;;  %vm3192_vm5 = vweird.f32 %v3186_v34 }
 0x92a   :  { %4066 = vrcp.f32 %v3205_v2  ;;  %v3217_v59 = vand.u32 2147483648, %v3205_v2  ;;  %v3215_v29 = vand.u32 2147483647, %v3205_v2  ;;  %vm3211_vm0 = vweird.f32 %v3205_v2 }
 0x92b   :  { %v3199_v3 = vor.u32 1.1754944e-38, %v3198_v62  ;;  %vm3197_vm9 = vcmp.eq.f32.partialorder %v3196_v53, 8.507059e+37 }
 0x92c   :  { %vm3216_vm13 = vcmp.eq.f32.partialorder %v3215_v29, 8.507059e+37 }
 0x92d   :  { %v4063_v39 = vpop.eup %4062 }
 0x92e   :  { %v3225_v47 = vadd.f32 1.0, %v4063_v39 }
 0x92f   :  { %v4065_v24 = vpop.eup %4064 }
 0x930   :  { %v4067_v49 = vpop.eup %4066  ;;  %v3188_v40 = vmul.f32 %v4065_v24, %v3186_v34  ;;  %4068 = vrcp.f32 %v3225_v47  ;;  %vm3193_vm2 = vweird.f32 %v4065_v24  ;;  %vm3231_vm8 = vweird.f32 %v3225_v47 }
 0x931   :  { %v3207_v28 = vmul.f32 %v4067_v49, %v3205_v2  ;;  %4070 = vtanh.f32 %v3181_v35  ;;  %vm3212_vm3 = vweird.f32 %v4067_v49  ;;  %vm3194_vm1 = vmor %vm3192_vm5, %vm3193_vm2 }
 0x932   :  { %v3189_v1 = vsub.f32 1.0, %v3188_v40  ;;  %vm3213_vm6 = vmor %vm3211_vm0, %vm3212_vm3  ;;  %v3218_v40 = vor.u32 1.1754944e-38, %v3217_v59 }
 0x933   :  { %v3208_v8 = vsub.f32 1.0, %v3207_v28 }
 0x934   :  { %v3190_v16 = vmul.f32 %v4065_v24, %v3189_v1 }
 0x935   :  { %v3209_v54 = vmul.f32 %v4067_v49, %v3208_v8 }
 0x936   :  { %v4069_v25 = vpop.eup %4068  ;;  %v3191_v43 = vadd.f32 %v4065_v24, %v3190_v16 }
 0x937   :  { %v3210_v39 = vadd.f32 %v4067_v49, %v3209_v54  ;;  %v3227_v14 = vmul.f32 %v4069_v25, %v3225_v47  ;;  %v4071_v35 = vpop.eup %4070  ;;  %vm3232_vm11 = vweird.f32 %v4069_v25  ;;  %v3237_v54 = vand.u32 2147483648, %v3225_v47 }
 0x938   :  { %v3195_v28 = vsel %vm3194_vm1, %v4065_v24, %v3191_v43  ;;  %v3235_v24 = vand.u32 2147483647, %v3225_v47  ;;  %vm3233_vm14 = vmor %vm3231_vm8, %vm3232_vm11  ;;  %v7266_v47 = vld [vmem:[#allocation64_spill] sm:$0xff] }
 0x939   :  { %v3200_v13 = vsel %vm3197_vm9, %v3199_v3, %v3195_v28  ;;  %v3214_v1 = vsel %vm3213_vm6, %v4067_v49, %v3210_v39  ;;  %v3228_v46 = vsub.f32 1.0, %v3227_v14  ;;  %v3238_v49 = vor.u32 1.1754944e-38, %v3237_v54 }
 0x93a   :  { %v3219_v8 = vsel %vm3216_vm13, %v3218_v40, %v3214_v1  ;;  %v3242_v23 = vmul.f32 %v4071_v35, %v3200_v13  ;;  %vm3236_vm15 = vcmp.eq.f32.partialorder %v3235_v24, 8.507059e+37 }
 0x93b   :  { %v3241_v32 = vmul.f32 %v3219_v8, %v6528_v38  ;;  %v3229_v16 = vmul.f32 %v4069_v25, %v3228_v46 }
 0x93d   :  { %v3243_v34 = vadd.f32 %v3242_v23, %v3241_v32  ;;  %v3230_v2 = vadd.f32 %v4069_v25, %v3229_v16 }
 0x93f   :  { %4072 = vtanh.f32 %v3243_v34  ;;  %v6615_v62 = vsel %vm1470_vm4, %v3243_v34, %v6528_v38  ;;  %v3234_v29 = vsel %vm3233_vm14, %v4069_v25, %v3230_v2  ;;  %v7265_v25 = vld [vmem:[#allocation75_spill] sm:$0xff]  ;;  %v7267_v34 = vld [vmem:[#allocation77_spill] sm:$0xff] }
 0x940   :  { %v3239_v59 = vsel %vm3236_vm15, %v3238_v49, %v3234_v29  ;;  %v2378_v43 = vadd.f32 %v7266_v47, %v7265_v25  ;;  %v7268_v2 = vld [vmem:[#allocation67_spill] sm:$0xff]  ;;  %v7270_v47 = vld [vmem:[#allocation66_spill] sm:$0xff] }
 0x941   :  { %v2337_v54 = vadd.f32 %v7268_v2, %v7267_v34  ;;  %v3718_v2 = vld [vmem:[#allocation11 + $0x40] sm:$0xff] }
 0x945   :  { %v4073_v13 = vpop.eup %4072 }
 0x946   :  { %v3245_v53 = vmul.f32 %v4073_v13, %v3239_v59 }
 0x948   :  { %v6620_v32 = vsel %vm1470_vm4, %v3245_v53, %v6533_v61 }
 0x949   :  { %3268 = vmatmul.f32.vlgmr.msrb.gmra.mxu0 %v6620_v32  ;;  %3288 = vmatmul.f32.vlgmr.msra.gmra.mxu1 %v6620_v32 }
 0x94a   :  { %3308 = vmatmul.f32.vlgmr.msrb.gmra.mxu2 %v6620_v32  ;;  %3328 = vmatmul.f32.vlgmr.msrb.gmra.mxu3 %v6620_v32 }
 0x94b   :  { %3558 = vmatpush.msrb.mxu0 %v6237_v42  ;;  %3578 = vmatpush.msra.mxu1 %v6240_v26  ;;  %v7233_v42 = vld [vmem:[#allocation42_spill] sm:$0xff] }
 0x94c   :  { %3598 = vmatpush.msrb.mxu2 %v6243_v27  ;;  %3618 = vmatpush.msrb.mxu3 %v6246_v0  ;;  %v7234_v26 = vld [vmem:[#allocation26_spill] sm:$0xff]  ;;  %v7236_v0 = vld [vmem:[#allocation27_spill] sm:$0xff] }
 0x94d   :  { %3559 = vmatpush.msrb.mxu0 %v6249_v36  ;;  %3579 = vmatpush.msra.mxu1 %v6252_v30  ;;  %v7235_v27 = vld [vmem:[#allocation30_spill] sm:$0xff]  ;;  %v7238_v30 = vld [vmem:[#allocation23_spill] sm:$0xff] }
 0x94e   :  { %3599 = vmatpush.msrb.mxu2 %v6255_v4  ;;  %3619 = vmatpush.msrb.mxu3 %v6258_v18  ;;  %v7237_v36 = vld [vmem:[#allocation38_spill] sm:$0xff]  ;;  %v7239_v4 = vld [vmem:[#allocation25_spill] sm:$0xff]  ;;  %v7240_v18 = vld [vmem:[#allocation36_spill] sm:$0xff] }
 0x94f   :  { %3560 = vmatpush.msrb.mxu0 %v6261_v55  ;;  %3580 = vmatpush.msra.mxu1 %v6264_v45  ;;  %v7241_v55 = vld [vmem:[#allocation22_spill] sm:$0xff]  ;;  %v7242_v45 = vld [vmem:[#allocation24_spill] sm:$0xff] }
 0x950   :  { %3600 = vmatpush.msrb.mxu2 %v6267_v12  ;;  %3620 = vmatpush.msrb.mxu3 %v6270_v6  ;;  %v7243_v12 = vld [vmem:[#allocation41_spill] sm:$0xff]  ;;  %v7244_v6 = vld [vmem:[#allocation18_spill] sm:$0xff] }
 0x951   :  { %3561 = vmatpush.msrb.mxu0 %v6273_v22  ;;  %3581 = vmatpush.msra.mxu1 %v6276_v57  ;;  %v7245_v22 = vld [vmem:[#allocation28_spill] sm:$0xff]  ;;  %v7246_v57 = vld [vmem:[#allocation29_spill] sm:$0xff] }
 0x952   :  { %3601 = vmatpush.msrb.mxu2 %v6279_v19  ;;  %3621 = vmatpush.msrb.mxu3 %v6282_v20  ;;  %v7247_v19 = vld [vmem:[#allocation31_spill] sm:$0xff] }
 0x953   :  { %3562 = vmatpush.msrb.mxu0 %v6285_v15  ;;  %3582 = vmatpush.msra.mxu1 %v6288_v11  ;;  %v7248_v20 = vld [vmem:[#allocation19_spill] sm:$0xff]  ;;  %v7249_v15 = vld [vmem:[#allocation32_spill] sm:$0xff] }
 0x954   :  { %3602 = vmatpush.msrb.mxu2 %v6291_v5  ;;  %3622 = vmatpush.msrb.mxu3 %v6294_v50  ;;  %v7250_v11 = vld [vmem:[#allocation44_spill] sm:$0xff]  ;;  %v7251_v5 = vld [vmem:[#allocation35_spill] sm:$0xff] }
 0x955   :  { %3563 = vmatpush.msrb.mxu0 %v6297_v9  ;;  %3583 = vmatpush.msra.mxu1 %v6300_v33  ;;  %v7252_v50 = vld [vmem:[#allocation20_spill] sm:$0xff]  ;;  %v7253_v9 = vld [vmem:[#allocation34_spill] sm:$0xff]  ;;  %v7254_v33 = vld [vmem:[#allocation37_spill] sm:$0xff] }
 0x956   :  { %3603 = vmatpush.msrb.mxu2 %v6303_v17  ;;  %3623 = vmatpush.msrb.mxu3 %v6306_v48  ;;  %v7255_v17 = vld [vmem:[#allocation39_spill] sm:$0xff] }
 0x957   :  { %3564 = vmatpush.msrb.mxu0 %v6309_v37  ;;  %3584 = vmatpush.msra.mxu1 %v6312_v10  ;;  %v7256_v48 = vld [vmem:[#allocation43_spill] sm:$0xff]  ;;  %v7258_v10 = vld [vmem:[#allocation33_spill] sm:$0xff] }
 0x958   :  { %3604 = vmatpush.msrb.mxu2 %v6315_v63  ;;  %3624 = vmatpush.msrb.mxu3 %v6318_v60  ;;  %v7257_v37 = vld [vmem:[#allocation51_spill] sm:$0xff]  ;;  %v7259_v63 = vld [vmem:[#allocation21_spill] sm:$0xff] }
 0x959   :  { %3565 = vmatpush.msrb.mxu0 %v6321_v51  ;;  %3585 = vmatpush.msra.mxu1 %v6324_v41  ;;  %v7260_v60 = vld [vmem:[#allocation45_spill] sm:$0xff]  ;;  %v7261_v51 = vld [vmem:[#allocation71_spill] sm:$0xff] }
 0x95a   :  { %3605 = vmatpush.msrb.mxu2 %v6327_v21  ;;  %3625 = vmatpush.msrb.mxu3 %v6330_v58  ;;  %v7262_v41 = vld [vmem:[#allocation61_spill] sm:$0xff]  ;;  %v7263_v58 = vld [vmem:[#allocation72_spill] sm:$0xff] }
 0x95b   :  { %3566 = vmatpush.msrb.mxu0 %v6333_v7  ;;  %3586 = vmatpush.msra.mxu1 %v6336_v52  ;;  %v2255_v21 = vadd.f32 %v7262_v41, %v7261_v51  ;;  %v7264_v7 = vld [vmem:[#allocation62_spill] sm:$0xff] }
 0x95c   :  { %3606 = vmatpush.msrb.mxu2 %v6339_v56  ;;  %3626 = vmatpush.msrb.mxu3 %v6342_v31  ;;  %v2296_v52 = vadd.f32 %v7264_v7, %v7263_v58 }
 0x95d   :  { %3567 = vmatpush.msrb.mxu0 %v7233_v42  ;;  %3587 = vmatpush.msra.mxu1 %v7234_v26 }
 0x95e   :  { %3607 = vmatpush.msrb.mxu2 %v7235_v27  ;;  %3627 = vmatpush.msrb.mxu3 %v7236_v0 }
 0x95f   :  { %3568 = vmatpush.msrb.mxu0 %v7237_v36  ;;  %3588 = vmatpush.msra.mxu1 %v7238_v30 }
 0x960   :  { %3608 = vmatpush.msrb.mxu2 %v7239_v4  ;;  %3628 = vmatpush.msrb.mxu3 %v7240_v18 }
 0x961   :  { %3569 = vmatpush.msrb.mxu0 %v7241_v55  ;;  %3589 = vmatpush.msra.mxu1 %v7242_v45 }
 0x962   :  { %3609 = vmatpush.msrb.mxu2 %v7243_v12  ;;  %3629 = vmatpush.msrb.mxu3 %v7244_v6 }
 0x963   :  { %3570 = vmatpush.msrb.mxu0 %v7245_v22  ;;  %3590 = vmatpush.msra.mxu1 %v7246_v57 }
 0x964   :  { %3610 = vmatpush.msrb.mxu2 %v7247_v19  ;;  %3630 = vmatpush.msrb.mxu3 %v7248_v20 }
 0x965   :  { %3571 = vmatpush.msrb.mxu0 %v7249_v15  ;;  %3591 = vmatpush.msra.mxu1 %v7250_v11 }
 0x966   :  { %3611 = vmatpush.msrb.mxu2 %v7251_v5  ;;  %3631 = vmatpush.msrb.mxu3 %v7252_v50 }
 0x967   :  { %3572 = vmatpush.msrb.mxu0 %v7253_v9  ;;  %3592 = vmatpush.msra.mxu1 %v7254_v33 }
 0x968   :  { %3612 = vmatpush.msrb.mxu2 %v7255_v17  ;;  %3632 = vmatpush.msrb.mxu3 %v7256_v48 }
 0x969   :  { %3573 = vmatpush.msrb.mxu0 %v7257_v37  ;;  %3593 = vmatpush.msra.mxu1 %v7258_v10 }
 0x96a   :  { %3613 = vmatpush.msrb.mxu2 %v7259_v63  ;;  %3633 = vmatpush.msrb.mxu3 %v7260_v60 }
 0x9c6   :  { %v3269_v56 = vpop.f32.mrf.mxu0  ;;  %v3289_v31 = vpop.f32.mrf.mxu1 }
 0x9c7   :  { %v3332_v38 = vadd.f32 %v3269_v56, %v2255_v21  ;;  %v3333_v61 = vadd.f32 %v3289_v31, %v2296_v52 }
 0x9c9   :  { %v3824_v23 = vmul.f32 -1.442695, %v3332_v38  ;;  %v3825_v46 = vmul.f32 -1.442695, %v3333_v61  ;;  %v3724_v38 = vld [vmem:[#allocation11 + $0x70] sm:$0xff]  ;;  %v3723_v61 = vld [vmem:[#allocation11 + $0x68] sm:$0xff] }
 0x9cb   :  { %4074 = vpow2.f32 %v3824_v23  ;;  %v3722_v23 = vld [vmem:[#allocation11 + $0x60] sm:$0xff] }
 0x9cc   :  { %4076 = vpow2.f32 %v3825_v46  ;;  %v7269_v46 = vld [vmem:[#allocation65_spill] sm:$0xff] }
 0x9cd   :  { %v3329_v3 = vpop.f32.mrf.mxu3  ;;  %v3309_v8 = vpop.f32.mrf.mxu2 }
 0x9ce   :  { %v3335_v39 = vadd.f32 %v3329_v3, %v2378_v43  ;;  %v3334_v49 = vadd.f32 %v3309_v8, %v2337_v54  ;;  %v2299_v43 = vadd.f32 %v7270_v47, %v7263_v58  ;;  %v3721_v3 = vld [vmem:[#allocation11 + $0x58] sm:$0xff] }
 0x9cf   :  { %v3717_v54 = vld [vmem:[#allocation11 + $0x38] sm:$0xff] }
 0x9d0   :  { %v3826_v14 = vmul.f32 -1.442695, %v3335_v39 }
 0x9d1   :  { %v4075_v40 = vpop.eup %4074 }
 0x9d2   :  { %v4077_v28 = vpop.eup %4076  ;;  %v3339_v35 = vadd.f32 1.0, %v4075_v40  ;;  %4078 = vpow2.f32 %v3826_v14 }
 0x9d3   :  { %v3358_v1 = vadd.f32 1.0, %v4077_v28 }
 0x9d4   :  { %4080 = vrcp.f32 %v3339_v35  ;;  %v3351_v27 = vand.u32 2147483648, %v3339_v35  ;;  %v3349_v30 = vand.u32 2147483647, %v3339_v35  ;;  %vm3345_vm2 = vweird.f32 %v3339_v35 }
 0x9d5   :  { %4082 = vrcp.f32 %v3358_v1  ;;  %v3370_v0 = vand.u32 2147483648, %v3358_v1  ;;  %v3368_v18 = vand.u32 2147483647, %v3358_v1  ;;  %vm3364_vm3 = vweird.f32 %v3358_v1 }
 0x9d6   :  { %v3352_v12 = vor.u32 1.1754944e-38, %v3351_v27  ;;  %vm3350_vm1 = vcmp.eq.f32.partialorder %v3349_v30, 8.507059e+37  ;;  %v3714_v27 = vld [vmem:[#allocation11 + $0x20] sm:$0xff] }
 0x9d7   :  { %v3371_v57 = vor.u32 1.1754944e-38, %v3370_v0  ;;  %vm3369_vm6 = vcmp.eq.f32.partialorder %v3368_v18, 8.507059e+37  ;;  %v3712_v18 = vld [vmem:[#allocation11 + $0x10] sm:$0xff] }
 0x9d8   :  { %v4079_v16 = vpop.eup %4078 }
 0x9d9   :  { %v3378_v24 = vadd.f32 1.0, %v4079_v16  ;;  %v3719_v16 = vld [vmem:[#allocation11 + $0x48] sm:$0xff] }
 0x9da   :  { %v4081_v29 = vpop.eup %4080 }
 0x9db   :  { %v4083_v13 = vpop.eup %4082  ;;  %v3341_v59 = vmul.f32 %v4081_v29, %v3339_v35  ;;  %4084 = vrcp.f32 %v3378_v24  ;;  %vm3346_vm4 = vweird.f32 %v4081_v29  ;;  %v3390_v10 = vand.u32 2147483648, %v3378_v24  ;;  %v3720_v35 = vld [vmem:[#allocation11 + $0x50] sm:$0xff] }
 0x9dc   :  { %v3360_v53 = vmul.f32 %v4083_v13, %v3358_v1  ;;  %4086 = vtanh.f32 %v3334_v49  ;;  %vm3365_vm12 = vweird.f32 %v4083_v13  ;;  %vm3347_vm5 = vmor %vm3345_vm2, %vm3346_vm4  ;;  %vm3384_vm13 = vweird.f32 %v3378_v24 }
 0x9dd   :  { %v3342_v42 = vsub.f32 1.0, %v3341_v59  ;;  %vm3366_vm0 = vmor %vm3364_vm3, %vm3365_vm12  ;;  %v3388_v60 = vand.u32 2147483647, %v3378_v24  ;;  %v3391_v21 = vor.u32 1.1754944e-38, %v3390_v10 }
 0x9de   :  { %v3361_v26 = vsub.f32 1.0, %v3360_v53  ;;  %v3715_v53 = vld [vmem:[#allocation11 + $0x28] sm:$0xff] }
 0x9df   :  { %v3343_v36 = vmul.f32 %v4081_v29, %v3342_v42  ;;  %vm3389_vm8 = vcmp.eq.f32.partialorder %v3388_v60, 8.507059e+37 }
 0x9e0   :  { %v3362_v4 = vmul.f32 %v4083_v13, %v3361_v26 }
 0x9e1   :  { %v4085_v55 = vpop.eup %4084  ;;  %v3344_v45 = vadd.f32 %v4081_v29, %v3343_v36 }
 0x9e2   :  { %v3363_v6 = vadd.f32 %v4083_v13, %v3362_v4  ;;  %v3380_v22 = vmul.f32 %v4085_v55, %v3378_v24  ;;  %v4087_v20 = vpop.eup %4086  ;;  %vm3385_vm9 = vweird.f32 %v4085_v55  ;;  %v7271_v24 = vld [vmem:[#allocation68_spill] sm:$0xff]  ;;  %v3713_v4 = vld [vmem:[#allocation11 + $0x18] sm:$0xff] }
 0x9e3   :  { %v3348_v19 = vsel %vm3347_vm5, %v4081_v29, %v3344_v45  ;;  %vm3386_vm11 = vmor %vm3384_vm13, %vm3385_vm9  ;;  %v2381_v29 = vadd.f32 %v7271_v24, %v7265_v25  ;;  %v3711_v45 = vld [vmem:[#allocation11 + $0x8] sm:$0xff] }
 0x9e4   :  { %v3353_v15 = vsel %vm3350_vm1, %v3352_v12, %v3348_v19  ;;  %v3367_v11 = vsel %vm3366_vm0, %v4083_v13, %v3363_v6  ;;  %v3381_v5 = vsub.f32 1.0, %v3380_v22  ;;  %v3716_v13 = vld [vmem:[#allocation11 + $0x30] sm:$0xff]  ;;  %v7272_v6 = vld [vmem:[#allocation73_spill] sm:$0xff]  ;;  %v3710_v19 = vld [vmem:[#allocation11] sm:$0xff] }
 0x9e5   :  { %v3372_v50 = vsel %vm3369_vm6, %v3371_v57, %v3367_v11  ;;  %v3395_v9 = vmul.f32 %v4087_v20, %v3353_v15  ;;  %v2340_v22 = vadd.f32 %v7272_v6, %v7267_v34 }
 0x9e6   :  { %v3394_v33 = vmul.f32 %v3372_v50, %v6615_v62  ;;  %v3382_v17 = vmul.f32 %v4085_v55, %v3381_v5 }
 0x9e8   :  { %v3396_v48 = vadd.f32 %v3395_v9, %v3394_v33  ;;  %v3383_v37 = vadd.f32 %v4085_v55, %v3382_v17 }
 0x9ea   :  { %4088 = vtanh.f32 %v3396_v48  ;;  %v6702_v63 = vsel %vm1691_vm7, %v3396_v48, %v6615_v62  ;;  %v3387_v41 = vsel %vm3386_vm11, %v4085_v55, %v3383_v37  ;;  %v3725_v62 = vld [vmem:[#allocation11 + $0x78] sm:$0xff] }
 0x9eb   :  { %v3392_v52 = vsel %vm3389_vm8, %v3391_v21, %v3387_v41 }
 0x9f0   :  { %v4089_v7 = vpop.eup %4088 }
 0x9f1   :  { %v3398_v56 = vmul.f32 %v4089_v7, %v3392_v52 }
 0x9f3   :  { %v6707_v31 = vsel %vm1691_vm7, %v3398_v56, %v6620_v32  ;;  %v2258_v32 = vadd.f32 %v7269_v46, %v7261_v51 }
 0x9f4   :  { %3421 = vmatmul.f32.vlgmr.msra.gmra.mxu0 %v6707_v31  ;;  %3441 = vmatmul.f32.vlgmr.msrb.gmra.mxu1 %v6707_v31 }
 0x9f5   :  { %3461 = vmatmul.f32.vlgmr.msra.gmra.mxu2 %v6707_v31  ;;  %3481 = vmatmul.f32.vlgmr.msra.gmra.mxu3 %v6707_v31 }
 0x9f6   :  { %3730 = vmatpush.msra.mxu0 %v3725_v62 }
 0x9f8   :  { %3731 = vmatpush.msra.mxu0 %v3724_v38 }
 0x9fa   :  { %3732 = vmatpush.msra.mxu0 %v3723_v61 }
 0x9fc   :  { %3733 = vmatpush.msra.mxu0 %v3722_v23 }
 0x9fe   :  { %3734 = vmatpush.msra.mxu0 %v3721_v3 }
 0xa00   :  { %3735 = vmatpush.msra.mxu0 %v3720_v35 }
 0xa02   :  { %3736 = vmatpush.msra.mxu0 %v3719_v16 }
 0xa04   :  { %3737 = vmatpush.msra.mxu0 %v3718_v2 }
 0xa06   :  { %3738 = vmatpush.msra.mxu0 %v3717_v54 }
 0xa08   :  { %3739 = vmatpush.msra.mxu0 %v3716_v13  ;;  %v7274_v13 = vld [vmem:[#allocation69_spill] sm:$0xff] }
 0xa0a   :  { %3740 = vmatpush.msra.mxu0 %v3715_v53  ;;  %v7275_v53 = vld [vmem:[#allocation70_spill] sm:$0xff] }
 0xa0c   :  { %3741 = vmatpush.msra.mxu0 %v3714_v27 }
 0xa0e   :  { %3742 = vmatpush.msra.mxu0 %v3713_v4  ;;  %v6744_v4 = vld [vmem:[%s6768_s6] ss:$0 sm:$0xff]  ;;  %s4324_s6 = smov [#allocation13]  }
 0xa0f   :  { %s3759_s27 = sshll.u32 %s4324_s6, 4  ;;  %s3760_s27 = int_to_ptr.vmem [resolvable:$true] %s3759_s27 }
 0xa10   :  { %3743 = vmatpush.msra.mxu0 %v3712_v18  ;;  %v7276_v18 = vld [vmem:[#allocation74_spill] sm:$0xff] }
 0xa12   :  { %3744 = vmatpush.msra.mxu0 %v3711_v45 }
 0xa14   :  { %3745 = vmatpush.msra.mxu0 %v3710_v19 }
 0xa71   :  { %v3422_v39 = vpop.f32.mrf.mxu0  ;;  %v3442_v14 = vpop.f32.mrf.mxu1 }
 0xa72   :  { %v3485_v40 = vadd.f32 %v3422_v39, %v2258_v32  ;;  %v3486_v28 = vadd.f32 %v3442_v14, %v2299_v43 }
 0xa74   :  { %v3827_v1 = vmul.f32 -1.442695, %v3485_v40  ;;  %v3828_v8 = vmul.f32 -1.442695, %v3486_v28 }
 0xa76   :  { %4090 = vpow2.f32 %v3827_v1 }
 0xa77   :  { %4092 = vpow2.f32 %v3828_v8 }
 0xa78   :  { %v3482_v49 = vpop.f32.mrf.mxu3  ;;  %v3462_v55 = vpop.f32.mrf.mxu2 }
 0xa79   :  { %v3488_v59 = vadd.f32 %v3482_v49, %v2381_v29  ;;  %v3487_v15 = vadd.f32 %v3462_v55, %v2340_v22  ;;  %v2384_v55 = vadd.f32 %v7276_v18, %v7265_v25 }
 0xa7b   :  { %v3829_v42 = vmul.f32 -1.442695, %v3488_v59  ;;  %v2261_v59 = vadd.f32 %v7274_v13, %v7261_v51 }
 0xa7c   :  { %v4091_v26 = vpop.eup %4090 }
 0xa7d   :  { %v4093_v0 = vpop.eup %4092  ;;  %v3492_v36 = vadd.f32 1.0, %v4091_v26  ;;  %4094 = vpow2.f32 %v3829_v42  ;;  %v2302_v42 = vadd.f32 %v7275_v53, %v7263_v58 }
 0xa7e   :  { %v3511_v30 = vadd.f32 1.0, %v4093_v0 }
 0xa7f   :  { %4096 = vrcp.f32 %v3492_v36  ;;  %v3504_v17 = vand.u32 2147483648, %v3492_v36  ;;  %v3502_v10 = vand.u32 2147483647, %v3492_v36  ;;  %vm3498_vm15 = vweird.f32 %v3492_v36 }
 0xa80   :  { %4098 = vrcp.f32 %v3511_v30  ;;  %v3523_v48 = vand.u32 2147483648, %v3511_v30  ;;  %v3521_v41 = vand.u32 2147483647, %v3511_v30  ;;  %vm3517_vm4 = vweird.f32 %v3511_v30 }
 0xa81   :  { %v3505_v52 = vor.u32 1.1754944e-38, %v3504_v17  ;;  %vm3503_vm3 = vcmp.eq.f32.partialorder %v3502_v10, 8.507059e+37 }
 0xa82   :  { %v3524_v38 = vor.u32 1.1754944e-38, %v3523_v48  ;;  %vm3522_vm5 = vcmp.eq.f32.partialorder %v3521_v41, 8.507059e+37 }
 0xa83   :  { %v4095_v12 = vpop.eup %4094 }
 0xa84   :  { %v3531_v57 = vadd.f32 1.0, %v4095_v12 }
 0xa85   :  { %v4097_v20 = vpop.eup %4096 }
 0xa86   :  { %v4099_v11 = vpop.eup %4098  ;;  %v3494_v5 = vmul.f32 %v4097_v20, %v3492_v36  ;;  %4100 = vrcp.f32 %v3531_v57  ;;  %vm3499_vm7 = vweird.f32 %v4097_v20  ;;  %v3543_v35 = vand.u32 2147483648, %v3531_v57 }
 0xa87   :  { %v3513_v50 = vmul.f32 %v4099_v11, %v3511_v30  ;;  %4102 = vtanh.f32 %v3487_v15  ;;  %vm3518_vm14 = vweird.f32 %v4099_v11  ;;  %vm3500_vm12 = vmor %vm3498_vm15, %vm3499_vm7  ;;  %vm3537_vm1 = vweird.f32 %v3531_v57 }
 0xa88   :  { %v3495_v9 = vsub.f32 1.0, %v3494_v5  ;;  %vm3519_vm2 = vmor %vm3517_vm4, %vm3518_vm14  ;;  %v3541_v8 = vand.u32 2147483647, %v3531_v57  ;;  %v3544_v2 = vor.u32 1.1754944e-38, %v3543_v35  ;;  %v7277_v5 = vld [vmem:[#allocation76_spill] sm:$0xff] }
 0xa89   :  { %v3514_v33 = vsub.f32 1.0, %v3513_v50  ;;  %v2343_v25 = vadd.f32 %v7277_v5, %v7267_v34 }
 0xa8a   :  { %v3496_v37 = vmul.f32 %v4097_v20, %v3495_v9  ;;  %vm3542_vm9 = vcmp.eq.f32.partialorder %v3541_v8, 8.507059e+37 }
 0xa8b   :  { %v3515_v60 = vmul.f32 %v4099_v11, %v3514_v33 }
 0xa8c   :  { %v4101_v21 = vpop.eup %4100  ;;  %v3497_v7 = vadd.f32 %v4097_v20, %v3496_v37 }
 0xa8d   :  { %v3516_v56 = vadd.f32 %v4099_v11, %v3515_v60  ;;  %v3533_v62 = vmul.f32 %v4101_v21, %v3531_v57  ;;  %v4103_v23 = vpop.eup %4102  ;;  %vm3538_vm0 = vweird.f32 %v4101_v21 }
 0xa8e   :  { %v3501_v61 = vsel %vm3500_vm12, %v4097_v20, %v3497_v7  ;;  %vm3539_vm6 = vmor %vm3537_vm1, %vm3538_vm0  ;;  %vm7278_vm0 = vcmp.gt.s32.totalorder %v7094_v44, 7 }
 0xa8f   :  { %v3506_v46 = vsel %vm3503_vm3, %v3505_v52, %v3501_v61  ;;  %v3520_v32 = vsel %vm3519_vm2, %v4099_v11, %v3516_v56  ;;  %v3534_v47 = vsub.f32 1.0, %v3533_v62 }
 0xa90   :  { %v3525_v43 = vsel %vm3522_vm5, %v3524_v38, %v3520_v32  ;;  %v3548_v3 = vmul.f32 %v4103_v23, %v3506_v46 }
 0xa91   :  { %v3547_v39 = vmul.f32 %v3525_v43, %v6702_v63  ;;  %v3535_v14 = vmul.f32 %v4101_v21, %v3534_v47 }
 0xa93   :  { %v3549_v40 = vadd.f32 %v3548_v3, %v3547_v39  ;;  %v3536_v28 = vadd.f32 %v4101_v21, %v3535_v14 }
 0xa95   :  { %4104 = vtanh.f32 %v3549_v40  ;;  %v6725_v1 = vsel %vm1912_vm10, %v3549_v40, %v6702_v63  ;;  %v3540_v16 = vsel %vm3539_vm6, %v4101_v21, %v3536_v28  ;;  %v7273_v63 = vld [vmem:[#allocation40_spill] sm:$0xff] }
 0xa96   :  { %v3545_v24 = vsel %vm3542_vm9, %v3544_v2, %v3540_v16 }
 0xa9b   :  { %v4105_v54 = vpop.eup %4104 }
 0xa9c   :  { %v3551_v29 = vmul.f32 %v4105_v54, %v3545_v24 }
 0xa9e   :  { %v6730_v49 = vsel %vm1912_vm10, %v3551_v29, %v6707_v31 }
 0xa9f   :  { %3574 = vmatmul.f32.vlgmr.msrb.gmra.mxu0 %v6730_v49  ;;  %3594 = vmatmul.f32.vlgmr.msra.gmra.mxu1 %v6730_v49 }
 0xaa0   :  { %3614 = vmatmul.f32.vlgmr.msrb.gmra.mxu2 %v6730_v49  ;;  %3634 = vmatmul.f32.vlgmr.msrb.gmra.mxu3 %v6730_v49 }
 0xaa7   :  { %3746 = vmatmul.f32.vlgmr.msra.gmra.mxu0 %v7273_v63 }
 0xb1c   :  { %v3575_v26 = vpop.f32.mrf.mxu0  ;;  %v3595_v27 = vpop.f32.mrf.mxu1 }
 0xb1d   :  { %v3638_v31 = vadd.f32 %v3575_v26, %v2261_v59  ;;  %v3639_v0 = vadd.f32 %v3595_v27, %v2302_v42 }
 0xb1f   :  { %v3830_v36 = vmul.f32 -1.442695, %v3638_v31  ;;  %v3831_v30 = vmul.f32 -1.442695, %v3639_v0 }
 0xb21   :  { %4106 = vpow2.f32 %v3830_v36 }
 0xb22   :  { %4108 = vpow2.f32 %v3831_v30 }
 0xb23   :  { %v3635_v51 = vpop.f32.mrf.mxu3  ;;  %v3615_v15 = vpop.f32.mrf.mxu2 }
 0xb24   :  { %v3641_v45 = vadd.f32 %v3635_v51, %v2384_v55  ;;  %v3747_v12 = vpop.f32.mrf.mxu0  ;;  %v3640_v33 = vadd.f32 %v3615_v15, %v2343_v25 }
 0xb25   :  { %v3748_v58 = vadd.f32 %v6744_v4, %v3747_v12 }
 0xb26   :  { %v3832_v6 = vmul.f32 -1.442695, %v3641_v45 }
 0xb27   :  { %v4107_v22 = vpop.eup %4106  ;;  %3753 = vst [vmem:[#allocation13] sm:$0xff] %v3748_v58 }
 0xb28   :  { %v4109_v57 = vpop.eup %4108  ;;  %v3645_v19 = vadd.f32 1.0, %v4107_v22  ;;  %4110 = vpow2.f32 %v3832_v6 }
 0xb29   :  { %v3664_v20 = vadd.f32 1.0, %v4109_v57 }
 0xb2a   :  { %4112 = vrcp.f32 %v3645_v19  ;;  %v3657_v41 = vand.u32 2147483648, %v3645_v19  ;;  %v3655_v52 = vand.u32 2147483647, %v3645_v19  ;;  %vm3651_vm11 = vweird.f32 %v3645_v19 }
 0xb2b   :  { %4114 = vrcp.f32 %v3664_v20  ;;  %v3676_v21 = vand.u32 2147483648, %v3664_v20  ;;  %v3674_v62 = vand.u32 2147483647, %v3664_v20  ;;  %vm3670_vm8 = vweird.f32 %v3664_v20 }
 0xb2c   :  { %v3658_v61 = vor.u32 1.1754944e-38, %v3657_v41  ;;  %vm3656_vm15 = vcmp.eq.f32.partialorder %v3655_v52, 8.507059e+37 }
 0xb2d   :  { %v3677_v32 = vor.u32 1.1754944e-38, %v3676_v21  ;;  %vm3675_vm4 = vcmp.eq.f32.partialorder %v3674_v62, 8.507059e+37 }
 0xb2e   :  { %v4111_v11 = vpop.eup %4110 }
 0xb2f   :  { %v3684_v50 = vadd.f32 1.0, %v4111_v11 }
 0xb30   :  { %v4113_v9 = vpop.eup %4112 }
 0xb31   :  { %v4115_v17 = vpop.eup %4114  ;;  %v3647_v48 = vmul.f32 %v4113_v9, %v3645_v19  ;;  %4116 = vrcp.f32 %v3684_v50  ;;  %vm3652_vm10 = vweird.f32 %v4113_v9  ;;  %v3696_v54 = vand.u32 2147483648, %v3684_v50 }
 0xb32   :  { %v3666_v37 = vmul.f32 %v4115_v17, %v3664_v20  ;;  %4118 = vtanh.f32 %v3640_v33  ;;  %vm3671_vm13 = vweird.f32 %v4115_v17  ;;  %vm3653_vm7 = vmor %vm3651_vm11, %vm3652_vm10  ;;  %vm3690_vm2 = vweird.f32 %v3684_v50 }
 0xb33   :  { %v3648_v10 = vsub.f32 1.0, %v3647_v48  ;;  %vm3672_vm14 = vmor %vm3670_vm8, %vm3671_vm13  ;;  %v3694_v24 = vand.u32 2147483647, %v3684_v50  ;;  %v3697_v63 = vor.u32 1.1754944e-38, %v3696_v54 }
 0xb34   :  { %v3667_v60 = vsub.f32 1.0, %v3666_v37 }
 0xb35   :  { %v3649_v7 = vmul.f32 %v4113_v9, %v3648_v10  ;;  %vm3695_vm5 = vcmp.eq.f32.partialorder %v3694_v24, 8.507059e+37 }
 0xb36   :  { %v3668_v56 = vmul.f32 %v4115_v17, %v3667_v60 }
 0xb37   :  { %v4117_v38 = vpop.eup %4116  ;;  %v3650_v34 = vadd.f32 %v4113_v9, %v3649_v7 }
 0xb38   :  { %v3669_v23 = vadd.f32 %v4115_v17, %v3668_v56  ;;  %v3686_v46 = vmul.f32 %v4117_v38, %v3684_v50  ;;  %v4119_v43 = vpop.eup %4118  ;;  %vm3691_vm12 = vweird.f32 %v4117_v38 }
 0xb39   :  { %v3654_v47 = vsel %vm3653_vm7, %v4113_v9, %v3650_v34  ;;  %vm3692_vm3 = vmor %vm3690_vm2, %vm3691_vm12 }
 0xb3a   :  { %v3659_v3 = vsel %vm3656_vm15, %v3658_v61, %v3654_v47  ;;  %v3673_v39 = vsel %vm3672_vm14, %v4115_v17, %v3669_v23  ;;  %v3687_v14 = vsub.f32 1.0, %v3686_v46 }
 0xb3b   :  { %v3678_v40 = vsel %vm3675_vm4, %v3677_v32, %v3673_v39  ;;  %v3701_v28 = vmul.f32 %v4119_v43, %v3659_v3 }
 0xb3c   :  { %v3700_v35 = vmul.f32 %v3678_v40, %v6725_v1  ;;  %v3688_v8 = vmul.f32 %v4117_v38, %v3687_v14 }
 0xb3e   :  { %v3702_v16 = vadd.f32 %v3701_v28, %v3700_v35  ;;  %v3689_v2 = vadd.f32 %v4117_v38, %v3688_v8 }
 0xb40   :  { %4120 = vtanh.f32 %v3702_v16  ;;  %v3693_v29 = vsel %vm3692_vm3, %v4117_v38, %v3689_v2 }
 0xb41   :  { %v3698_v59 = vsel %vm3695_vm5, %v3697_v63, %v3693_v29 }
 0xb46   :  { %v4121_v13 = vpop.eup %4120 }
 0xb47   :  { %v3704_v53 = vmul.f32 %v4121_v13, %v3698_v59 }
 0xb49   :  { %v3705_v42 = vsel %vm7278_vm0, %v3704_v53, %v6730_v49 }
 0xb4a   :  { %3749 = vmatmul.f32.gmra.mxu0 %v3705_v42 }
 0xbc7   :  { %v3750_v1 = vpop.f32.mrf.mxu0 }
 0xbc8   :  { %v3751_v26 = vadd.f32 %v6744_v4, %v3750_v1 }
 0xbca   :  { %3754 = vst [vmem:[#allocation13 + $0x8] sm:$0xff] %v3751_v26 }
 0xbcb   :  { %3767 = dma.vmem_to_hbm [thread:$0]  %s3760_s27, 256, %s3762_s30, [#allocation7], %s4318_s13, %s4318_s13, %s4319_s14  }
 0xbcc   :  { %4312 = dma.done.wait [#allocation7], 256  }
 0xbcd   :  { %4313 = vsyncadd [#allocation7], 4294967040 }
 0xbce   :  { %3772 = vsyncpa [#allocation6], 1 }
 0xbcf   :  { %3773 = vsyncpa [#allocation9], 1 }
 0xbd0   :  { %3774 = vsyncpa [#allocation12], 1 }
 0xbd1   :  { %3775 = vsyncpa [#allocation7], 1 }

</bundles_post_ra>
